<compile_context>
chip_gen: v5e
topology: v5e:2x2
jax: 0.10.0
libtpu: 0.0.40
codegen_flags: <defaults>
</compile_context>

<pallas_src>
import jax
import jax.numpy as jnp
from jax.experimental import pallas as pl
from jax.experimental.pallas import tpu as pltpu


NUM_CLASSES = 3
CLASS_PAD = 8      # pad the 3-wide class dim only to 8 (was 128 in v2)
FC_TK = 128        # FC reduction tile: K grid streams the weight through VMEM


# ---------------------------------------------------------------------------
# Register-level shift with zero fill (materialises the conv's pad=1 halo
# without any padded VMEM scratch or scratch zeroing).
# ---------------------------------------------------------------------------
def _shift(x, d, axis):
    """result[..., i, ...] = x[..., i + d, ...] along `axis`; zeros outside."""
    if d == 0:
        return x
    n = x.shape[axis]
    zshape = list(x.shape)
    zshape[axis] = abs(d)
    zeros = jnp.zeros(zshape, x.dtype)
    if d > 0:
        kept = jax.lax.slice_in_dim(x, d, n, axis=axis)
        return jnp.concatenate([kept, zeros], axis=axis)
    kept = jax.lax.slice_in_dim(x, 0, n + d, axis=axis)
    return jnp.concatenate([zeros, kept], axis=axis)


# ---------------------------------------------------------------------------
# Kernel 1: conv1 = Conv3x3(Cin=1, pad=1) + folded BN + ReLU + MaxPool2x2
#           as a pure VPU stencil (no im2col, no MXU, no padded scratch).
# ---------------------------------------------------------------------------
def _make_conv1_kernel(H, W, Cout):
    Ho, Wo = H // 2, W // 2

    def kernel(x_ref, w_ref, b_ref, o_ref):
        # x_ref : (1, H, W)        f32, one image, W on lanes (dense)
        # w_ref : (9, Cout)        f32 SMEM scalars, rows ordered (kh, kw)
        # b_ref : (1, Cout)        f32 folded conv bias + BN shift
        # o_ref : (1, Ho, Wo*Cout) bf16 lane-dense output slab
        x = x_ref[...].astype(jnp.float32)

        # 9 shifted planes (dense, full-lane width); halo handled in registers.
        taps = []
        for dh in (-1, 0, 1):
            xh = _shift(x, dh, axis=1)
            for dw in (-1, 0, 1):
                taps.append(_shift(xh, dw, axis=2))

        # Per-output-channel scalar-weighted accumulation on dense planes
        # (VPU work only; scalar weights come from SMEM).
        planes = []
        for c in range(Cout):
            acc = taps[0] * w_ref[0, c]
            for t in range(1, 9):
                acc = acc + taps[t] * w_ref[t, c]
            planes.append(acc)                               # (1, H, W) f32

        y = jnp.stack(planes, axis=-1)                       # (1, H, W, Cout)
        y = jnp.maximum(y + b_ref[...], 0.0)                 # bias + ReLU

        # MaxPool 2x2 stride 2 (channel dim stays intact on lanes).
        y = y.reshape(1, Ho, 2, W, Cout)
        y = jnp.maximum(y[:, :, 0], y[:, :, 1])              # (1, Ho, W, Cout)
        y = y.reshape(1, Ho, Wo, 2, Cout)
        y = jnp.maximum(y[:, :, :, 0], y[:, :, :, 1])        # (1, Ho, Wo, Cout)

        # Single lane-dense store (Wo*Cout is a multiple of 128).
        o_ref[...] = y.reshape(1, Ho, Wo * Cout).astype(o_ref.dtype)

    return kernel


def conv1_block(x_nhw, w, b, cout=16):
    n, h, wdt = x_nhw.shape
    assert h % 4 == 0 and wdt % 4 == 0, "pooling needs H, W divisible by 4"
    assert w.shape == (9, cout)
    ho, wo = h // 2, wdt // 2
    kernel = _make_conv1_kernel(h, wdt, cout)
    return pl.pallas_call(
        kernel,
        out_shape=jax.ShapeDtypeStruct((n, ho, wo * cout), jnp.bfloat16),
        grid=(n,),
        in_specs=[
            pl.BlockSpec((1, h, wdt), lambda i: (i, 0, 0)),
            pl.BlockSpec(memory_space=pltpu.MemorySpace.SMEM),   # (9, Cout) scalars
            pl.BlockSpec((1, cout), lambda i: (0, 0)),
        ],
        out_specs=pl.BlockSpec((1, ho, wo * cout), lambda i: (i, 0, 0)),
        compiler_params=pltpu.CompilerParams(
            dimension_semantics=("parallel",)),   # batch axis -> 2 TCs on v7x
    )(x_nhw, w, b)


# ---------------------------------------------------------------------------
# Kernel 2: conv2 = Conv3x3(Cin=16, pad=1) + folded BN + ReLU + MaxPool2x2.
# Taps are register shifts of the block; 3 accumulated MXU matmuls (K=48 per
# kh row-group) so tap assembly and MXU pushes can overlap.  No patch scratch.
# ---------------------------------------------------------------------------
def _make_conv2_kernel(H, W, Cin, Cout):
    Ho, Wo = H // 2, W // 2
    K = 3 * Cin

    def kernel(x_ref, w_ref, b_ref, o_ref):
        # x_ref : (1, H, W, Cin)     bf16
        # w_ref : (9*Cin, Cout)      bf16, rows ordered (kh, kw, cin), BN folded
        # b_ref : (1, Cout)          f32 folded bias
        # o_ref : (1, Ho, Wo*Cout)   bf16 lane-dense output slab
        x = x_ref[...]

        acc = None
        for g, dh in enumerate((-1, 0, 1)):              # kh row-groups
            xh = _shift(x, dh, axis=1)
            lhs = jnp.concatenate(
                [_shift(xh, dw, axis=2) for dw in (-1, 0, 1)],
                axis=-1)                                 # (1, H, W, 3*Cin)
            lhs = lhs.reshape(H * W, K)
            part = jnp.dot(lhs, w_ref[g * K:(g + 1) * K, :],
                           preferred_element_type=jnp.float32)   # (H*W, Cout)
            acc = part if acc is None else acc + part

        y = jnp.maximum(acc + b_ref[...], 0.0)           # bias + ReLU (f32)
        y = y.reshape(1, H, W, Cout)

        # MaxPool 2x2 stride 2.
        y = y.reshape(1, Ho, 2, W, Cout)
        y = jnp.maximum(y[:, :, 0], y[:, :, 1])          # (1, Ho, W, Cout)
        y = y.reshape(1, Ho, Wo, 2, Cout)
        y = jnp.maximum(y[:, :, :, 0], y[:, :, :, 1])    # (1, Ho, Wo, Cout)

        # Single lane-dense store (Wo*Cout is a multiple of 128).
        o_ref[...] = y.reshape(1, Ho, Wo * Cout).astype(o_ref.dtype)

    return kernel


def conv2_block(x_nhwc, w, b, cout=32):
    n, h, wdt, cin = x_nhwc.shape
    assert h % 4 == 0 and wdt % 4 == 0, "pooling needs H, W divisible by 4"
    assert w.shape == (9 * cin, cout)
    ho, wo = h // 2, wdt // 2
    kernel = _make_conv2_kernel(h, wdt, cin, cout)
    return pl.pallas_call(
        kernel,
        out_shape=jax.ShapeDtypeStruct((n, ho, wo * cout), jnp.bfloat16),
        grid=(n,),
        in_specs=[
            pl.BlockSpec((1, h, wdt, cin), lambda i: (i, 0, 0, 0)),
            pl.BlockSpec((9 * cin, cout), lambda i: (0, 0)),
            pl.BlockSpec((1, cout), lambda i: (0, 0)),
        ],
        out_specs=pl.BlockSpec((1, ho, wo * cout), lambda i: (i, 0, 0)),
        compiler_params=pltpu.CompilerParams(
            dimension_semantics=("parallel",)),
    )(x_nhwc, w, b)


# ---------------------------------------------------------------------------
# Kernel 3: fully-connected layer with a K grid (weight streams through a
# double-buffered (TK, 8) tile; resident f32 accumulator in the output block).
# ---------------------------------------------------------------------------
def _fc_kernel(x_ref, w_ref, b_ref, o_ref):
    @pl.when(pl.program_id(0) == 0)
    def _():
        o_ref[...] = jnp.broadcast_to(b_ref[...], o_ref.shape)
    o_ref[...] += jnp.dot(x_ref[...], w_ref[...],
                          preferred_element_type=jnp.float32)


def fc_layer(x, w, b, tk=FC_TK):
    n, f = x.shape
    cpad = w.shape[-1]
    assert f % tk == 0, "feature dim must be a multiple of the K tile"
    return pl.pallas_call(
        _fc_kernel,
        out_shape=jax.ShapeDtypeStruct((n, cpad), jnp.float32),
        grid=(f // tk,),
        in_specs=[
            pl.BlockSpec((n, tk), lambda k: (0, k)),
            pl.BlockSpec((tk, cpad), lambda k: (k, 0)),
            pl.BlockSpec((1, cpad), lambda k: (0, 0)),
        ],
        out_specs=pl.BlockSpec((n, cpad), lambda k: (0, 0)),   # resident accumulator
        compiler_params=pltpu.CompilerParams(
            dimension_semantics=("arbitrary",)),
    )(x, w, b)


# ---------------------------------------------------------------------------
# Parameters (BN scale + conv bias + flatten permutation folded at init)
# ---------------------------------------------------------------------------
def init_params(key, image_size, num_classes):
    eps = 1e-5
    ks = jax.random.split(key, 10)

    def conv_bn(kw, kb, kg, kbt, cin, cout, w_dtype):
        # Conv2d(bias=True) + BatchNorm2d folded for inference.
        w_hwio = 0.1 * jax.random.normal(kw, (3, 3, cin, cout), jnp.float32)
        b_conv = 0.1 * jax.random.normal(kb, (cout,), jnp.float32)
        gamma = 1.0 + 0.1 * jax.random.normal(kg, (cout,), jnp.float32)
        beta = 0.1 * jax.random.normal(kbt, (cout,), jnp.float32)
        run_mean = jnp.zeros((cout,), jnp.float32)   # fresh-init eval-mode BN
        run_var = jnp.ones((cout,), jnp.float32)
        # TODO(synk): train()-mode BatchNorm uses batch statistics; only
        # eval()-mode running-stat semantics are folded here.
        scale = gamma * jax.lax.rsqrt(run_var + eps)
        # Rows ordered (kh, kw, cin) — matches the in-kernel tap ordering.
        w_packed = (w_hwio * scale).reshape(9 * cin, cout).astype(w_dtype)
        bias = (scale * (b_conv - run_mean) + beta).reshape(1, cout)  # f32
        return w_packed, bias

    w1, b1 = conv_bn(ks[0], ks[1], ks[2], ks[3], 1, 16, jnp.float32)    # SMEM scalars
    w2, b2 = conv_bn(ks[4], ks[5], ks[6], ks[7], 16, 32, jnp.bfloat16)

    ho = wo = image_size // 4
    feat = 32 * ho * wo
    # FC weight generated in PyTorch's (c, h, w)-flatten row order, then the
    # permutation to our (h, w, c)-flatten order is folded in (free at init).
    wfc_torch = 0.05 * jax.random.normal(ks[8], (feat, num_classes), jnp.float32)
    bfc_torch = 0.05 * jax.random.normal(ks[9], (num_classes,), jnp.float32)
    perm = jnp.arange(feat).reshape(32, ho, wo).transpose(1, 2, 0).reshape(-1)
    wfc_hwc = wfc_torch[perm, :]
    # Pad the 3-wide class dim only to 8 (narrow storage, ~16x less HBM read
    # than padding to 128); the wrapper slices the first 3 columns.
    wfc = jnp.zeros((feat, CLASS_PAD), jnp.float32).at[:, :num_classes].set(wfc_hwc)
    bfc = jnp.zeros((1, CLASS_PAD), jnp.float32).at[0, :num_classes].set(bfc_torch)
    return dict(w1=w1, b1=b1, w2=w2, b2=b2,
                wfc=wfc.astype(jnp.bfloat16), bfc=bfc)


# ---------------------------------------------------------------------------
# Model wrapper (MyCNN.forward)
# ---------------------------------------------------------------------------
@jax.jit
def mycnn_forward(params, x_nchw):
    n, c, h, w = x_nchw.shape
    assert c == 1, "conv1 expects a single input channel"
    assert h % 4 == 0 and w % 4 == 0, "pool reshapes need H, W divisible by 4"
    # NCHW with C == 1 -> (N, H, W) is a pure reshape (no data movement).
    x = x_nchw.reshape(n, h, w).astype(jnp.float32)
    s1 = conv1_block(x, params["w1"], params["b1"], 16)     # (n, h/2, (w/2)*16)
    x2 = s1.reshape(n, h // 2, w // 2, 16)                  # free slab split
    s2 = conv2_block(x2, params["w2"], params["b2"], 32)    # (n, h/4, (w/4)*32)
    feat = s2.reshape(n, -1)                                # (h, w, c)-order flatten
    logits = fc_layer(feat, params["wfc"], params["bfc"])   # (n, 8) f32
    return logits[:, :NUM_CLASSES]


if __name__ == "__main__":
    image_size = 16          # real module's fc=Linear(32768, 3) implies 128
    batch = 2

    key = jax.random.PRNGKey(0)
    k_param, k_x = jax.random.split(key)
    params = init_params(k_param, image_size, NUM_CLASSES)
    # conv1 has in_channels=1, so the input is N x 1 x H x W.
    x = jax.random.normal(k_x, (batch, 1, image_size, image_size), jnp.float32)

    out = mycnn_forward(params, x)
    jax.block_until_ready(out)
    assert out.shape == (batch, NUM_CLASSES), out.shape
    print("KERNEL_OK")
</pallas_src>

<mosaic_0001>
module attributes {stable_mosaic.version = 11 : i64} {
  func.func @kernel(%arg0: i32, %arg1: memref<1x8x8x16xbf16, #tpu.memory_space<vmem>>, %arg2: memref<144x32xbf16, #tpu.memory_space<vmem>>, %arg3: memref<1x32xf32, #tpu.memory_space<vmem>>, %arg4: memref<1x4x128xbf16, #tpu.memory_space<vmem>>) attributes {dimension_semantics = [#tpu.dimension_semantics<parallel>], iteration_bounds = array<i64: 2>, scalar_prefetch = 0 : i64, scratch_operands = 0 : i64, tpu.core_type = #tpu.core_type<tc>, window_params = [{transform_indices = @transform_0, window_bounds = array<i64: 1, 8, 8, 16>}, {pipeline_mode = #tpu.pipeline_mode<synchronous>, transform_indices = @transform_1, window_bounds = array<i64: 144, 32>}, {pipeline_mode = #tpu.pipeline_mode<synchronous>, transform_indices = @transform_2, window_bounds = array<i64: 1, 32>}, {transform_indices = @transform_3, window_bounds = array<i64: 1, 4, 128>}]} {
    %c0 = arith.constant 0 : index
    %c0_0 = arith.constant 0 : index
    %c0_1 = arith.constant 0 : index
    %c0_2 = arith.constant 0 : index
    %0 = vector.load %arg1[%c0, %c0_0, %c0_1, %c0_2] : memref<1x8x8x16xbf16, #tpu.memory_space<vmem>>, vector<1x8x8x16xbf16>
    %cst = arith.constant 0.000000e+00 : bf16
    %1 = vector.broadcast %cst : bf16 to vector<1x1x8x16xbf16>
    %2 = vector.extract_strided_slice %0 {offsets = [0, 0, 0, 0], sizes = [1, 7, 8, 16], strides = [1, 1, 1, 1]} : vector<1x8x8x16xbf16> to vector<1x7x8x16xbf16>
    %3 = tpu.concatenate %1, %2 in 1 : vector<1x1x8x16xbf16>, vector<1x7x8x16xbf16> -> vector<1x8x8x16xbf16>
    %cst_3 = arith.constant 0.000000e+00 : bf16
    %4 = vector.broadcast %cst_3 : bf16 to vector<1x8x1x16xbf16>
    %5 = vector.extract_strided_slice %3 {offsets = [0, 0, 0, 0], sizes = [1, 8, 7, 16], strides = [1, 1, 1, 1]} : vector<1x8x8x16xbf16> to vector<1x8x7x16xbf16>
    %6 = tpu.concatenate %4, %5 in 2 : vector<1x8x1x16xbf16>, vector<1x8x7x16xbf16> -> vector<1x8x8x16xbf16>
    %cst_4 = arith.constant 0.000000e+00 : bf16
    %7 = vector.broadcast %cst_4 : bf16 to vector<1x8x1x16xbf16>
    %8 = vector.extract_strided_slice %3 {offsets = [0, 0, 1, 0], sizes = [1, 8, 7, 16], strides = [1, 1, 1, 1]} : vector<1x8x8x16xbf16> to vector<1x8x7x16xbf16>
    %9 = tpu.concatenate %8, %7 in 2 : vector<1x8x7x16xbf16>, vector<1x8x1x16xbf16> -> vector<1x8x8x16xbf16>
    %10 = tpu.concatenate %6, %3, %9 in 3 : vector<1x8x8x16xbf16>, vector<1x8x8x16xbf16>, vector<1x8x8x16xbf16> -> vector<1x8x8x48xbf16>
    %11 = vector.shape_cast %10 : vector<1x8x8x48xbf16> to vector<64x48xbf16>
    %c0_5 = arith.constant 0 : index
    %c0_6 = arith.constant 0 : index
    %12 = vector.load %arg2[%c0_5, %c0_6] : memref<144x32xbf16, #tpu.memory_space<vmem>>, vector<48x32xbf16>
    %cst_7 = arith.constant dense<0.000000e+00> : vector<64x32xf32>
    %13 = tpu.matmul %11, %12, %cst_7 {dimension_numbers = #tpu.dot_dimension_numbers<[1], [0], [0], [1], [0, 0, 1, 1], [], []>} : vector<64x48xbf16>, vector<48x32xbf16>, vector<64x32xf32> -> vector<64x32xf32>
    %cst_8 = arith.constant 0.000000e+00 : bf16
    %14 = vector.broadcast %cst_8 : bf16 to vector<1x8x1x16xbf16>
    %15 = vector.extract_strided_slice %0 {offsets = [0, 0, 0, 0], sizes = [1, 8, 7, 16], strides = [1, 1, 1, 1]} : vector<1x8x8x16xbf16> to vector<1x8x7x16xbf16>
    %16 = tpu.concatenate %14, %15 in 2 : vector<1x8x1x16xbf16>, vector<1x8x7x16xbf16> -> vector<1x8x8x16xbf16>
    %cst_9 = arith.constant 0.000000e+00 : bf16
    %17 = vector.broadcast %cst_9 : bf16 to vector<1x8x1x16xbf16>
    %18 = vector.extract_strided_slice %0 {offsets = [0, 0, 1, 0], sizes = [1, 8, 7, 16], strides = [1, 1, 1, 1]} : vector<1x8x8x16xbf16> to vector<1x8x7x16xbf16>
    %19 = tpu.concatenate %18, %17 in 2 : vector<1x8x7x16xbf16>, vector<1x8x1x16xbf16> -> vector<1x8x8x16xbf16>
    %20 = tpu.concatenate %16, %0, %19 in 3 : vector<1x8x8x16xbf16>, vector<1x8x8x16xbf16>, vector<1x8x8x16xbf16> -> vector<1x8x8x48xbf16>
    %21 = vector.shape_cast %20 : vector<1x8x8x48xbf16> to vector<64x48xbf16>
    %c48 = arith.constant 48 : index
    %c0_10 = arith.constant 0 : index
    %22 = vector.load %arg2[%c48, %c0_10] : memref<144x32xbf16, #tpu.memory_space<vmem>>, vector<48x32xbf16>
    %cst_11 = arith.constant dense<0.000000e+00> : vector<64x32xf32>
    %23 = tpu.matmul %21, %22, %cst_11 {dimension_numbers = #tpu.dot_dimension_numbers<[1], [0], [0], [1], [0, 0, 1, 1], [], []>} : vector<64x48xbf16>, vector<48x32xbf16>, vector<64x32xf32> -> vector<64x32xf32>
    %24 = arith.addf %13, %23 : vector<64x32xf32>
    %cst_12 = arith.constant 0.000000e+00 : bf16
    %25 = vector.broadcast %cst_12 : bf16 to vector<1x1x8x16xbf16>
    %26 = vector.extract_strided_slice %0 {offsets = [0, 1, 0, 0], sizes = [1, 7, 8, 16], strides = [1, 1, 1, 1]} : vector<1x8x8x16xbf16> to vector<1x7x8x16xbf16>
    %27 = tpu.concatenate %26, %25 in 1 : vector<1x7x8x16xbf16>, vector<1x1x8x16xbf16> -> vector<1x8x8x16xbf16>
    %cst_13 = arith.constant 0.000000e+00 : bf16
    %28 = vector.broadcast %cst_13 : bf16 to vector<1x8x1x16xbf16>
    %29 = vector.extract_strided_slice %27 {offsets = [0, 0, 0, 0], sizes = [1, 8, 7, 16], strides = [1, 1, 1, 1]} : vector<1x8x8x16xbf16> to vector<1x8x7x16xbf16>
    %30 = tpu.concatenate %28, %29 in 2 : vector<1x8x1x16xbf16>, vector<1x8x7x16xbf16> -> vector<1x8x8x16xbf16>
    %cst_14 = arith.constant 0.000000e+00 : bf16
    %31 = vector.broadcast %cst_14 : bf16 to vector<1x8x1x16xbf16>
    %32 = vector.extract_strided_slice %27 {offsets = [0, 0, 1, 0], sizes = [1, 8, 7, 16], strides = [1, 1, 1, 1]} : vector<1x8x8x16xbf16> to vector<1x8x7x16xbf16>
    %33 = tpu.concatenate %32, %31 in 2 : vector<1x8x7x16xbf16>, vector<1x8x1x16xbf16> -> vector<1x8x8x16xbf16>
    %34 = tpu.concatenate %30, %27, %33 in 3 : vector<1x8x8x16xbf16>, vector<1x8x8x16xbf16>, vector<1x8x8x16xbf16> -> vector<1x8x8x48xbf16>
    %35 = vector.shape_cast %34 : vector<1x8x8x48xbf16> to vector<64x48xbf16>
    %c96 = arith.constant 96 : index
    %c0_15 = arith.constant 0 : index
    %36 = vector.load %arg2[%c96, %c0_15] : memref<144x32xbf16, #tpu.memory_space<vmem>>, vector<48x32xbf16>
    %cst_16 = arith.constant dense<0.000000e+00> : vector<64x32xf32>
    %37 = tpu.matmul %35, %36, %cst_16 {dimension_numbers = #tpu.dot_dimension_numbers<[1], [0], [0], [1], [0, 0, 1, 1], [], []>} : vector<64x48xbf16>, vector<48x32xbf16>, vector<64x32xf32> -> vector<64x32xf32>
    %38 = arith.addf %24, %37 : vector<64x32xf32>
    %c0_17 = arith.constant 0 : index
    %c0_18 = arith.constant 0 : index
    %39 = vector.load %arg3[%c0_17, %c0_18] : memref<1x32xf32, #tpu.memory_space<vmem>>, vector<1x32xf32>
    %40 = vector.broadcast %39 : vector<1x32xf32> to vector<64x32xf32>
    %41 = arith.addf %38, %40 : vector<64x32xf32>
    %cst_19 = arith.constant 0.000000e+00 : f32
    %42 = vector.broadcast %cst_19 : f32 to vector<64x32xf32>
    %43 = arith.maximumf %41, %42 : vector<64x32xf32>
    %44 = vector.shape_cast %43 : vector<64x32xf32> to vector<1x8x8x32xf32>
    %45 = vector.shape_cast %44 : vector<1x8x8x32xf32> to vector<1x4x2x8x32xf32>
    %46 = vector.extract_strided_slice %45 {offsets = [0, 0, 0, 0, 0], sizes = [1, 4, 1, 8, 32], strides = [1, 1, 1, 1, 1]} : vector<1x4x2x8x32xf32> to vector<1x4x1x8x32xf32>
    %47 = vector.shape_cast %46 : vector<1x4x1x8x32xf32> to vector<1x4x8x32xf32>
    %48 = vector.extract_strided_slice %45 {offsets = [0, 0, 1, 0, 0], sizes = [1, 4, 1, 8, 32], strides = [1, 1, 1, 1, 1]} : vector<1x4x2x8x32xf32> to vector<1x4x1x8x32xf32>
    %49 = vector.shape_cast %48 : vector<1x4x1x8x32xf32> to vector<1x4x8x32xf32>
    %50 = arith.maximumf %47, %49 : vector<1x4x8x32xf32>
    %51 = vector.shape_cast %50 : vector<1x4x8x32xf32> to vector<1x4x4x2x32xf32>
    %52 = vector.extract_strided_slice %51 {offsets = [0, 0, 0, 0, 0], sizes = [1, 4, 4, 1, 32], strides = [1, 1, 1, 1, 1]} : vector<1x4x4x2x32xf32> to vector<1x4x4x1x32xf32>
    %53 = vector.shape_cast %52 : vector<1x4x4x1x32xf32> to vector<1x4x4x32xf32>
    %54 = vector.extract_strided_slice %51 {offsets = [0, 0, 0, 1, 0], sizes = [1, 4, 4, 1, 32], strides = [1, 1, 1, 1, 1]} : vector<1x4x4x2x32xf32> to vector<1x4x4x1x32xf32>
    %55 = vector.shape_cast %54 : vector<1x4x4x1x32xf32> to vector<1x4x4x32xf32>
    %56 = arith.maximumf %53, %55 : vector<1x4x4x32xf32>
    %57 = vector.shape_cast %56 : vector<1x4x4x32xf32> to vector<1x4x128xf32>
    %58 = arith.truncf %57 : vector<1x4x128xf32> to vector<1x4x128xbf16>
    %c0_20 = arith.constant 0 : index
    %c0_21 = arith.constant 0 : index
    %c0_22 = arith.constant 0 : index
    %59 = vector.load %arg4[%c0_20, %c0_21, %c0_22] : memref<1x4x128xbf16, #tpu.memory_space<vmem>>, vector<1x4x128xbf16>
    tpu.vector_store %arg4[%c0_20, %c0_21, %c0_22], %58 {strides = array<i32>} : memref<1x4x128xbf16, #tpu.memory_space<vmem>>, vector<1x4x128xbf16>,
    return
  }
  func.func @transform_0(%arg0: i32) -> (i32, i32, i32, i32) {
    %c0_i32 = arith.constant 0 : i32
    %c0_i32_0 = arith.constant 0 : i32
    %c0_i32_1 = arith.constant 0 : i32
    %c0_i32_2 = arith.constant 0 : i32
    return %arg0, %c0_i32, %c0_i32_0, %c0_i32_1 : i32, i32, i32, i32
  }
  func.func @transform_1(%arg0: i32) -> (i32, i32) {
    %c0_i32 = arith.constant 0 : i32
    %c0_i32_0 = arith.constant 0 : i32
    %c0_i32_1 = arith.constant 0 : i32
    return %c0_i32, %c0_i32_0 : i32, i32
  }
  func.func @transform_2(%arg0: i32) -> (i32, i32) {
    %c0_i32 = arith.constant 0 : i32
    %c0_i32_0 = arith.constant 0 : i32
    %c0_i32_1 = arith.constant 0 : i32
    return %c0_i32, %c0_i32_0 : i32, i32
  }
  func.func @transform_3(%arg0: i32) -> (i32, i32, i32) {
    %c0_i32 = arith.constant 0 : i32
    %c0_i32_0 = arith.constant 0 : i32
    %c0_i32_1 = arith.constant 0 : i32
    return %arg0, %c0_i32, %c0_i32_0 : i32, i32, i32
  }
}

module attributes {stable_mosaic.version = 11 : i64} {
  func.func @kernel(%arg0: i32, %arg1: memref<1x16x16xf32, #tpu.memory_space<vmem>>, %arg2: memref<9x16xf32, #tpu.memory_space<smem>>, %arg3: memref<1x16xf32, #tpu.memory_space<vmem>>, %arg4: memref<1x8x128xbf16, #tpu.memory_space<vmem>>) attributes {dimension_semantics = [#tpu.dimension_semantics<parallel>], iteration_bounds = array<i64: 2>, scalar_prefetch = 0 : i64, scratch_operands = 0 : i64, tpu.core_type = #tpu.core_type<tc>, window_params = [{transform_indices = @transform_0, window_bounds = array<i64: 1, 16, 16>}, {transform_indices = @transform_1, window_bounds = array<i64: 9, 16>}, {pipeline_mode = #tpu.pipeline_mode<synchronous>, transform_indices = @transform_2, window_bounds = array<i64: 1, 16>}, {transform_indices = @transform_3, window_bounds = array<i64: 1, 8, 128>}]} {
    %c0 = arith.constant 0 : index
    %c0_0 = arith.constant 0 : index
    %c0_1 = arith.constant 0 : index
    %0 = vector.load %arg1[%c0, %c0_0, %c0_1] : memref<1x16x16xf32, #tpu.memory_space<vmem>>, vector<1x16x16xf32>
    %cst = arith.constant 0.000000e+00 : f32
    %1 = vector.broadcast %cst : f32 to vector<1x1x16xf32>
    %2 = vector.extract_strided_slice %0 {offsets = [0, 0, 0], sizes = [1, 15, 16], strides = [1, 1, 1]} : vector<1x16x16xf32> to vector<1x15x16xf32>
    %3 = tpu.concatenate %1, %2 in 1 : vector<1x1x16xf32>, vector<1x15x16xf32> -> vector<1x16x16xf32>
    %cst_2 = arith.constant 0.000000e+00 : f32
    %4 = vector.broadcast %cst_2 : f32 to vector<1x16x1xf32>
    %5 = vector.extract_strided_slice %3 {offsets = [0, 0, 0], sizes = [1, 16, 15], strides = [1, 1, 1]} : vector<1x16x16xf32> to vector<1x16x15xf32>
    %6 = tpu.concatenate %4, %5 in 2 : vector<1x16x1xf32>, vector<1x16x15xf32> -> vector<1x16x16xf32>
    %cst_3 = arith.constant 0.000000e+00 : f32
    %7 = vector.broadcast %cst_3 : f32 to vector<1x16x1xf32>
    %8 = vector.extract_strided_slice %3 {offsets = [0, 0, 1], sizes = [1, 16, 15], strides = [1, 1, 1]} : vector<1x16x16xf32> to vector<1x16x15xf32>
    %9 = tpu.concatenate %8, %7 in 2 : vector<1x16x15xf32>, vector<1x16x1xf32> -> vector<1x16x16xf32>
    %cst_4 = arith.constant 0.000000e+00 : f32
    %10 = vector.broadcast %cst_4 : f32 to vector<1x16x1xf32>
    %11 = vector.extract_strided_slice %0 {offsets = [0, 0, 0], sizes = [1, 16, 15], strides = [1, 1, 1]} : vector<1x16x16xf32> to vector<1x16x15xf32>
    %12 = tpu.concatenate %10, %11 in 2 : vector<1x16x1xf32>, vector<1x16x15xf32> -> vector<1x16x16xf32>
    %cst_5 = arith.constant 0.000000e+00 : f32
    %13 = vector.broadcast %cst_5 : f32 to vector<1x16x1xf32>
    %14 = vector.extract_strided_slice %0 {offsets = [0, 0, 1], sizes = [1, 16, 15], strides = [1, 1, 1]} : vector<1x16x16xf32> to vector<1x16x15xf32>
    %15 = tpu.concatenate %14, %13 in 2 : vector<1x16x15xf32>, vector<1x16x1xf32> -> vector<1x16x16xf32>
    %cst_6 = arith.constant 0.000000e+00 : f32
    %16 = vector.broadcast %cst_6 : f32 to vector<1x1x16xf32>
    %17 = vector.extract_strided_slice %0 {offsets = [0, 1, 0], sizes = [1, 15, 16], strides = [1, 1, 1]} : vector<1x16x16xf32> to vector<1x15x16xf32>
    %18 = tpu.concatenate %17, %16 in 1 : vector<1x15x16xf32>, vector<1x1x16xf32> -> vector<1x16x16xf32>
    %cst_7 = arith.constant 0.000000e+00 : f32
    %19 = vector.broadcast %cst_7 : f32 to vector<1x16x1xf32>
    %20 = vector.extract_strided_slice %18 {offsets = [0, 0, 0], sizes = [1, 16, 15], strides = [1, 1, 1]} : vector<1x16x16xf32> to vector<1x16x15xf32>
    %21 = tpu.concatenate %19, %20 in 2 : vector<1x16x1xf32>, vector<1x16x15xf32> -> vector<1x16x16xf32>
    %cst_8 = arith.constant 0.000000e+00 : f32
    %22 = vector.broadcast %cst_8 : f32 to vector<1x16x1xf32>
    %23 = vector.extract_strided_slice %18 {offsets = [0, 0, 1], sizes = [1, 16, 15], strides = [1, 1, 1]} : vector<1x16x16xf32> to vector<1x16x15xf32>
    %24 = tpu.concatenate %23, %22 in 2 : vector<1x16x15xf32>, vector<1x16x1xf32> -> vector<1x16x16xf32>
    %c0_9 = arith.constant 0 : index
    %c0_10 = arith.constant 0 : index
    %25 = memref.load %arg2[%c0_9, %c0_10] : memref<9x16xf32, #tpu.memory_space<smem>>
    %26 = vector.broadcast %25 : f32 to vector<1x16x16xf32>
    %27 = arith.mulf %6, %26 : vector<1x16x16xf32>
    %c1 = arith.constant 1 : index
    %c0_11 = arith.constant 0 : index
    %28 = memref.load %arg2[%c1, %c0_11] : memref<9x16xf32, #tpu.memory_space<smem>>
    %29 = vector.broadcast %28 : f32 to vector<1x16x16xf32>
    %30 = arith.mulf %3, %29 : vector<1x16x16xf32>
    %31 = arith.addf %27, %30 : vector<1x16x16xf32>
    %c2 = arith.constant 2 : index
    %c0_12 = arith.constant 0 : index
    %32 = memref.load %arg2[%c2, %c0_12] : memref<9x16xf32, #tpu.memory_space<smem>>
    %33 = vector.broadcast %32 : f32 to vector<1x16x16xf32>
    %34 = arith.mulf %9, %33 : vector<1x16x16xf32>
    %35 = arith.addf %31, %34 : vector<1x16x16xf32>
    %c3 = arith.constant 3 : index
    %c0_13 = arith.constant 0 : index
    %36 = memref.load %arg2[%c3, %c0_13] : memref<9x16xf32, #tpu.memory_space<smem>>
    %37 = vector.broadcast %36 : f32 to vector<1x16x16xf32>
    %38 = arith.mulf %12, %37 : vector<1x16x16xf32>
    %39 = arith.addf %35, %38 : vector<1x16x16xf32>
    %c4 = arith.constant 4 : index
    %c0_14 = arith.constant 0 : index
    %40 = memref.load %arg2[%c4, %c0_14] : memref<9x16xf32, #tpu.memory_space<smem>>
    %41 = vector.broadcast %40 : f32 to vector<1x16x16xf32>
    %42 = arith.mulf %0, %41 : vector<1x16x16xf32>
    %43 = arith.addf %39, %42 : vector<1x16x16xf32>
    %c5 = arith.constant 5 : index
    %c0_15 = arith.constant 0 : index
    %44 = memref.load %arg2[%c5, %c0_15] : memref<9x16xf32, #tpu.memory_space<smem>>
    %45 = vector.broadcast %44 : f32 to vector<1x16x16xf32>
    %46 = arith.mulf %15, %45 : vector<1x16x16xf32>
    %47 = arith.addf %43, %46 : vector<1x16x16xf32>
    %c6 = arith.constant 6 : index
    %c0_16 = arith.constant 0 : index
    %48 = memref.load %arg2[%c6, %c0_16] : memref<9x16xf32, #tpu.memory_space<smem>>
    %49 = vector.broadcast %48 : f32 to vector<1x16x16xf32>
    %50 = arith.mulf %21, %49 : vector<1x16x16xf32>
    %51 = arith.addf %47, %50 : vector<1x16x16xf32>
    %c7 = arith.constant 7 : index
    %c0_17 = arith.constant 0 : index
    %52 = memref.load %arg2[%c7, %c0_17] : memref<9x16xf32, #tpu.memory_space<smem>>
    %53 = vector.broadcast %52 : f32 to vector<1x16x16xf32>
    %54 = arith.mulf %18, %53 : vector<1x16x16xf32>
    %55 = arith.addf %51, %54 : vector<1x16x16xf32>
    %c8 = arith.constant 8 : index
    %c0_18 = arith.constant 0 : index
    %56 = memref.load %arg2[%c8, %c0_18] : memref<9x16xf32, #tpu.memory_space<smem>>
    %57 = vector.broadcast %56 : f32 to vector<1x16x16xf32>
    %58 = arith.mulf %24, %57 : vector<1x16x16xf32>
    %59 = arith.addf %55, %58 : vector<1x16x16xf32>
    %c0_19 = arith.constant 0 : index
    %c1_20 = arith.constant 1 : index
    %60 = memref.load %arg2[%c0_19, %c1_20] : memref<9x16xf32, #tpu.memory_space<smem>>
    %61 = vector.broadcast %60 : f32 to vector<1x16x16xf32>
    %62 = arith.mulf %6, %61 : vector<1x16x16xf32>
    %c1_21 = arith.constant 1 : index
    %c1_22 = arith.constant 1 : index
    %63 = memref.load %arg2[%c1_21, %c1_22] : memref<9x16xf32, #tpu.memory_space<smem>>
    %64 = vector.broadcast %63 : f32 to vector<1x16x16xf32>
    %65 = arith.mulf %3, %64 : vector<1x16x16xf32>
    %66 = arith.addf %62, %65 : vector<1x16x16xf32>
    %c2_23 = arith.constant 2 : index
    %c1_24 = arith.constant 1 : index
    %67 = memref.load %arg2[%c2_23, %c1_24] : memref<9x16xf32, #tpu.memory_space<smem>>
    %68 = vector.broadcast %67 : f32 to vector<1x16x16xf32>
    %69 = arith.mulf %9, %68 : vector<1x16x16xf32>
    %70 = arith.addf %66, %69 : vector<1x16x16xf32>
    %c3_25 = arith.constant 3 : index
    %c1_26 = arith.constant 1 : index
    %71 = memref.load %arg2[%c3_25, %c1_26] : memref<9x16xf32, #tpu.memory_space<smem>>
    %72 = vector.broadcast %71 : f32 to vector<1x16x16xf32>
    %73 = arith.mulf %12, %72 : vector<1x16x16xf32>
    %74 = arith.addf %70, %73 : vector<1x16x16xf32>
    %c4_27 = arith.constant 4 : index
    %c1_28 = arith.constant 1 : index
    %75 = memref.load %arg2[%c4_27, %c1_28] : memref<9x16xf32, #tpu.memory_space<smem>>
    %76 = vector.broadcast %75 : f32 to vector<1x16x16xf32>
    %77 = arith.mulf %0, %76 : vector<1x16x16xf32>
    %78 = arith.addf %74, %77 : vector<1x16x16xf32>
    %c5_29 = arith.constant 5 : index
    %c1_30 = arith.constant 1 : index
    %79 = memref.load %arg2[%c5_29, %c1_30] : memref<9x16xf32, #tpu.memory_space<smem>>
    %80 = vector.broadcast %79 : f32 to vector<1x16x16xf32>
    %81 = arith.mulf %15, %80 : vector<1x16x16xf32>
    %82 = arith.addf %78, %81 : vector<1x16x16xf32>
    %c6_31 = arith.constant 6 : index
    %c1_32 = arith.constant 1 : index
    %83 = memref.load %arg2[%c6_31, %c1_32] : memref<9x16xf32, #tpu.memory_space<smem>>
    %84 = vector.broadcast %83 : f32 to vector<1x16x16xf32>
    %85 = arith.mulf %21, %84 : vector<1x16x16xf32>
    %86 = arith.addf %82, %85 : vector<1x16x16xf32>
    %c7_33 = arith.constant 7 : index
    %c1_34 = arith.constant 1 : index
    %87 = memref.load %arg2[%c7_33, %c1_34] : memref<9x16xf32, #tpu.memory_space<smem>>
    %88 = vector.broadcast %87 : f32 to vector<1x16x16xf32>
    %89 = arith.mulf %18, %88 : vector<1x16x16xf32>
    %90 = arith.addf %86, %89 : vector<1x16x16xf32>
    %c8_35 = arith.constant 8 : index
    %c1_36 = arith.constant 1 : index
    %91 = memref.load %arg2[%c8_35, %c1_36] : memref<9x16xf32, #tpu.memory_space<smem>>
    %92 = vector.broadcast %91 : f32 to vector<1x16x16xf32>
    %93 = arith.mulf %24, %92 : vector<1x16x16xf32>
    %94 = arith.addf %90, %93 : vector<1x16x16xf32>
    %c0_37 = arith.constant 0 : index
    %c2_38 = arith.constant 2 : index
    %95 = memref.load %arg2[%c0_37, %c2_38] : memref<9x16xf32, #tpu.memory_space<smem>>
    %96 = vector.broadcast %95 : f32 to vector<1x16x16xf32>
    %97 = arith.mulf %6, %96 : vector<1x16x16xf32>
    %c1_39 = arith.constant 1 : index
    %c2_40 = arith.constant 2 : index
    %98 = memref.load %arg2[%c1_39, %c2_40] : memref<9x16xf32, #tpu.memory_space<smem>>
    %99 = vector.broadcast %98 : f32 to vector<1x16x16xf32>
    %100 = arith.mulf %3, %99 : vector<1x16x16xf32>
    %101 = arith.addf %97, %100 : vector<1x16x16xf32>
    %c2_41 = arith.constant 2 : index
    %c2_42 = arith.constant 2 : index
    %102 = memref.load %arg2[%c2_41, %c2_42] : memref<9x16xf32, #tpu.memory_space<smem>>
    %103 = vector.broadcast %102 : f32 to vector<1x16x16xf32>
    %104 = arith.mulf %9, %103 : vector<1x16x16xf32>
    %105 = arith.addf %101, %104 : vector<1x16x16xf32>
    %c3_43 = arith.constant 3 : index
    %c2_44 = arith.constant 2 : index
    %106 = memref.load %arg2[%c3_43, %c2_44] : memref<9x16xf32, #tpu.memory_space<smem>>
    %107 = vector.broadcast %106 : f32 to vector<1x16x16xf32>
    %108 = arith.mulf %12, %107 : vector<1x16x16xf32>
    %109 = arith.addf %105, %108 : vector<1x16x16xf32>
    %c4_45 = arith.constant 4 : index
    %c2_46 = arith.constant 2 : index
    %110 = memref.load %arg2[%c4_45, %c2_46] : memref<9x16xf32, #tpu.memory_space<smem>>
    %111 = vector.broadcast %110 : f32 to vector<1x16x16xf32>
    %112 = arith.mulf %0, %111 : vector<1x16x16xf32>
    %113 = arith.addf %109, %112 : vector<1x16x16xf32>
    %c5_47 = arith.constant 5 : index
    %c2_48 = arith.constant 2 : index
    %114 = memref.load %arg2[%c5_47, %c2_48] : memref<9x16xf32, #tpu.memory_space<smem>>
    %115 = vector.broadcast %114 : f32 to vector<1x16x16xf32>
    %116 = arith.mulf %15, %115 : vector<1x16x16xf32>
    %117 = arith.addf %113, %116 : vector<1x16x16xf32>
    %c6_49 = arith.constant 6 : index
    %c2_50 = arith.constant 2 : index
    %118 = memref.load %arg2[%c6_49, %c2_50] : memref<9x16xf32, #tpu.memory_space<smem>>
    %119 = vector.broadcast %118 : f32 to vector<1x16x16xf32>
    %120 = arith.mulf %21, %119 : vector<1x16x16xf32>
    %121 = arith.addf %117, %120 : vector<1x16x16xf32>
    %c7_51 = arith.constant 7 : index
    %c2_52 = arith.constant 2 : index
    %122 = memref.load %arg2[%c7_51, %c2_52] : memref<9x16xf32, #tpu.memory_space<smem>>
    %123 = vector.broadcast %122 : f32 to vector<1x16x16xf32>
    %124 = arith.mulf %18, %123 : vector<1x16x16xf32>
    %125 = arith.addf %121, %124 : vector<1x16x16xf32>
    %c8_53 = arith.constant 8 : index
    %c2_54 = arith.constant 2 : index
    %126 = memref.load %arg2[%c8_53, %c2_54] : memref<9x16xf32, #tpu.memory_space<smem>>
    %127 = vector.broadcast %126 : f32 to vector<1x16x16xf32>
    %128 = arith.mulf %24, %127 : vector<1x16x16xf32>
    %129 = arith.addf %125, %128 : vector<1x16x16xf32>
    %c0_55 = arith.constant 0 : index
    %c3_56 = arith.constant 3 : index
    %130 = memref.load %arg2[%c0_55, %c3_56] : memref<9x16xf32, #tpu.memory_space<smem>>
    %131 = vector.broadcast %130 : f32 to vector<1x16x16xf32>
    %132 = arith.mulf %6, %131 : vector<1x16x16xf32>
    %c1_57 = arith.constant 1 : index
    %c3_58 = arith.constant 3 : index
    %133 = memref.load %arg2[%c1_57, %c3_58] : memref<9x16xf32, #tpu.memory_space<smem>>
    %134 = vector.broadcast %133 : f32 to vector<1x16x16xf32>
    %135 = arith.mulf %3, %134 : vector<1x16x16xf32>
    %136 = arith.addf %132, %135 : vector<1x16x16xf32>
    %c2_59 = arith.constant 2 : index
    %c3_60 = arith.constant 3 : index
    %137 = memref.load %arg2[%c2_59, %c3_60] : memref<9x16xf32, #tpu.memory_space<smem>>
    %138 = vector.broadcast %137 : f32 to vector<1x16x16xf32>
    %139 = arith.mulf %9, %138 : vector<1x16x16xf32>
    %140 = arith.addf %136, %139 : vector<1x16x16xf32>
    %c3_61 = arith.constant 3 : index
    %c3_62 = arith.constant 3 : index
    %141 = memref.load %arg2[%c3_61, %c3_62] : memref<9x16xf32, #tpu.memory_space<smem>>
    %142 = vector.broadcast %141 : f32 to vector<1x16x16xf32>
    %143 = arith.mulf %12, %142 : vector<1x16x16xf32>
    %144 = arith.addf %140, %143 : vector<1x16x16xf32>
    %c4_63 = arith.constant 4 : index
    %c3_64 = arith.constant 3 : index
    %145 = memref.load %arg2[%c4_63, %c3_64] : memref<9x16xf32, #tpu.memory_space<smem>>
    %146 = vector.broadcast %145 : f32 to vector<1x16x16xf32>
    %147 = arith.mulf %0, %146 : vector<1x16x16xf32>
    %148 = arith.addf %144, %147 : vector<1x16x16xf32>
    %c5_65 = arith.constant 5 : index
    %c3_66 = arith.constant 3 : index
    %149 = memref.load %arg2[%c5_65, %c3_66] : memref<9x16xf32, #tpu.memory_space<smem>>
    %150 = vector.broadcast %149 : f32 to vector<1x16x16xf32>
    %151 = arith.mulf %15, %150 : vector<1x16x16xf32>
    %152 = arith.addf %148, %151 : vector<1x16x16xf32>
    %c6_67 = arith.constant 6 : index
    %c3_68 = arith.constant 3 : index
    %153 = memref.load %arg2[%c6_67, %c3_68] : memref<9x16xf32, #tpu.memory_space<smem>>
    %154 = vector.broadcast %153 : f32 to vector<1x16x16xf32>
    %155 = arith.mulf %21, %154 : vector<1x16x16xf32>
    %156 = arith.addf %152, %155 : vector<1x16x16xf32>
    %c7_69 = arith.constant 7 : index
    %c3_70 = arith.constant 3 : index
    %157 = memref.load %arg2[%c7_69, %c3_70] : memref<9x16xf32, #tpu.memory_space<smem>>
    %158 = vector.broadcast %157 : f32 to vector<1x16x16xf32>
    %159 = arith.mulf %18, %158 : vector<1x16x16xf32>
    %160 = arith.addf %156, %159 : vector<1x16x16xf32>
    %c8_71 = arith.constant 8 : index
    %c3_72 = arith.constant 3 : index
    %161 = memref.load %arg2[%c8_71, %c3_72] : memref<9x16xf32, #tpu.memory_space<smem>>
    %162 = vector.broadcast %161 : f32 to vector<1x16x16xf32>
    %163 = arith.mulf %24, %162 : vector<1x16x16xf32>
    %164 = arith.addf %160, %163 : vector<1x16x16xf32>
    %c0_73 = arith.constant 0 : index
    %c4_74 = arith.constant 4 : index
    %165 = memref.load %arg2[%c0_73, %c4_74] : memref<9x16xf32, #tpu.memory_space<smem>>
    %166 = vector.broadcast %165 : f32 to vector<1x16x16xf32>
    %167 = arith.mulf %6, %166 : vector<1x16x16xf32>
    %c1_75 = arith.constant 1 : index
    %c4_76 = arith.constant 4 : index
    %168 = memref.load %arg2[%c1_75, %c4_76] : memref<9x16xf32, #tpu.memory_space<smem>>
    %169 = vector.broadcast %168 : f32 to vector<1x16x16xf32>
    %170 = arith.mulf %3, %169 : vector<1x16x16xf32>
    %171 = arith.addf %167, %170 : vector<1x16x16xf32>
    %c2_77 = arith.constant 2 : index
    %c4_78 = arith.constant 4 : index
    %172 = memref.load %arg2[%c2_77, %c4_78] : memref<9x16xf32, #tpu.memory_space<smem>>
    %173 = vector.broadcast %172 : f32 to vector<1x16x16xf32>
    %174 = arith.mulf %9, %173 : vector<1x16x16xf32>
    %175 = arith.addf %171, %174 : vector<1x16x16xf32>
    %c3_79 = arith.constant 3 : index
    %c4_80 = arith.constant 4 : index
    %176 = memref.load %arg2[%c3_79, %c4_80] : memref<9x16xf32, #tpu.memory_space<smem>>
    %177 = vector.broadcast %176 : f32 to vector<1x16x16xf32>
    %178 = arith.mulf %12, %177 : vector<1x16x16xf32>
    %179 = arith.addf %175, %178 : vector<1x16x16xf32>
    %c4_81 = arith.constant 4 : index
    %c4_82 = arith.constant 4 : index
    %180 = memref.load %arg2[%c4_81, %c4_82] : memref<9x16xf32, #tpu.memory_space<smem>>
    %181 = vector.broadcast %180 : f32 to vector<1x16x16xf32>
    %182 = arith.mulf %0, %181 : vector<1x16x16xf32>
    %183 = arith.addf %179, %182 : vector<1x16x16xf32>
    %c5_83 = arith.constant 5 : index
    %c4_84 = arith.constant 4 : index
    %184 = memref.load %arg2[%c5_83, %c4_84] : memref<9x16xf32, #tpu.memory_space<smem>>
    %185 = vector.broadcast %184 : f32 to vector<1x16x16xf32>
    %186 = arith.mulf %15, %185 : vector<1x16x16xf32>
    %187 = arith.addf %183, %186 : vector<1x16x16xf32>
    %c6_85 = arith.constant 6 : index
    %c4_86 = arith.constant 4 : index
    %188 = memref.load %arg2[%c6_85, %c4_86] : memref<9x16xf32, #tpu.memory_space<smem>>
    %189 = vector.broadcast %188 : f32 to vector<1x16x16xf32>
    %190 = arith.mulf %21, %189 : vector<1x16x16xf32>
    %191 = arith.addf %187, %190 : vector<1x16x16xf32>
    %c7_87 = arith.constant 7 : index
    %c4_88 = arith.constant 4 : index
    %192 = memref.load %arg2[%c7_87, %c4_88] : memref<9x16xf32, #tpu.memory_space<smem>>
    %193 = vector.broadcast %192 : f32 to vector<1x16x16xf32>
    %194 = arith.mulf %18, %193 : vector<1x16x16xf32>
    %195 = arith.addf %191, %194 : vector<1x16x16xf32>
    %c8_89 = arith.constant 8 : index
    %c4_90 = arith.constant 4 : index
    %196 = memref.load %arg2[%c8_89, %c4_90] : memref<9x16xf32, #tpu.memory_space<smem>>
    %197 = vector.broadcast %196 : f32 to vector<1x16x16xf32>
    %198 = arith.mulf %24, %197 : vector<1x16x16xf32>
    %199 = arith.addf %195, %198 : vector<1x16x16xf32>
    %c0_91 = arith.constant 0 : index
    %c5_92 = arith.constant 5 : index
    %200 = memref.load %arg2[%c0_91, %c5_92] : memref<9x16xf32, #tpu.memory_space<smem>>
    %201 = vector.broadcast %200 : f32 to vector<1x16x16xf32>
    %202 = arith.mulf %6, %201 : vector<1x16x16xf32>
    %c1_93 = arith.constant 1 : index
    %c5_94 = arith.constant 5 : index
    %203 = memref.load %arg2[%c1_93, %c5_94] : memref<9x16xf32, #tpu.memory_space<smem>>
    %204 = vector.broadcast %203 : f32 to vector<1x16x16xf32>
    %205 = arith.mulf %3, %204 : vector<1x16x16xf32>
    %206 = arith.addf %202, %205 : vector<1x16x16xf32>
    %c2_95 = arith.constant 2 : index
    %c5_96 = arith.constant 5 : index
    %207 = memref.load %arg2[%c2_95, %c5_96] : memref<9x16xf32, #tpu.memory_space<smem>>
    %208 = vector.broadcast %207 : f32 to vector<1x16x16xf32>
    %209 = arith.mulf %9, %208 : vector<1x16x16xf32>
    %210 = arith.addf %206, %209 : vector<1x16x16xf32>
    %c3_97 = arith.constant 3 : index
    %c5_98 = arith.constant 5 : index
    %211 = memref.load %arg2[%c3_97, %c5_98] : memref<9x16xf32, #tpu.memory_space<smem>>
    %212 = vector.broadcast %211 : f32 to vector<1x16x16xf32>
    %213 = arith.mulf %12, %212 : vector<1x16x16xf32>
    %214 = arith.addf %210, %213 : vector<1x16x16xf32>
    %c4_99 = arith.constant 4 : index
    %c5_100 = arith.constant 5 : index
    %215 = memref.load %arg2[%c4_99, %c5_100] : memref<9x16xf32, #tpu.memory_space<smem>>
    %216 = vector.broadcast %215 : f32 to vector<1x16x16xf32>
    %217 = arith.mulf %0, %216 : vector<1x16x16xf32>
    %218 = arith.addf %214, %217 : vector<1x16x16xf32>
    %c5_101 = arith.constant 5 : index
    %c5_102 = arith.constant 5 : index
    %219 = memref.load %arg2[%c5_101, %c5_102] : memref<9x16xf32, #tpu.memory_space<smem>>
    %220 = vector.broadcast %219 : f32 to vector<1x16x16xf32>
    %221 = arith.mulf %15, %220 : vector<1x16x16xf32>
    %222 = arith.addf %218, %221 : vector<1x16x16xf32>
    %c6_103 = arith.constant 6 : index
    %c5_104 = arith.constant 5 : index
    %223 = memref.load %arg2[%c6_103, %c5_104] : memref<9x16xf32, #tpu.memory_space<smem>>
    %224 = vector.broadcast %223 : f32 to vector<1x16x16xf32>
    %225 = arith.mulf %21, %224 : vector<1x16x16xf32>
    %226 = arith.addf %222, %225 : vector<1x16x16xf32>
    %c7_105 = arith.constant 7 : index
    %c5_106 = arith.constant 5 : index
    %227 = memref.load %arg2[%c7_105, %c5_106] : memref<9x16xf32, #tpu.memory_space<smem>>
    %228 = vector.broadcast %227 : f32 to vector<1x16x16xf32>
    %229 = arith.mulf %18, %228 : vector<1x16x16xf32>
    %230 = arith.addf %226, %229 : vector<1x16x16xf32>
    %c8_107 = arith.constant 8 : index
    %c5_108 = arith.constant 5 : index
    %231 = memref.load %arg2[%c8_107, %c5_108] : memref<9x16xf32, #tpu.memory_space<smem>>
    %232 = vector.broadcast %231 : f32 to vector<1x16x16xf32>
    %233 = arith.mulf %24, %232 : vector<1x16x16xf32>
    %234 = arith.addf %230, %233 : vector<1x16x16xf32>
    %c0_109 = arith.constant 0 : index
    %c6_110 = arith.constant 6 : index
    %235 = memref.load %arg2[%c0_109, %c6_110] : memref<9x16xf32, #tpu.memory_space<smem>>
    %236 = vector.broadcast %235 : f32 to vector<1x16x16xf32>
    %237 = arith.mulf %6, %236 : vector<1x16x16xf32>
    %c1_111 = arith.constant 1 : index
    %c6_112 = arith.constant 6 : index
    %238 = memref.load %arg2[%c1_111, %c6_112] : memref<9x16xf32, #tpu.memory_space<smem>>
    %239 = vector.broadcast %238 : f32 to vector<1x16x16xf32>
    %240 = arith.mulf %3, %239 : vector<1x16x16xf32>
    %241 = arith.addf %237, %240 : vector<1x16x16xf32>
    %c2_113 = arith.constant 2 : index
    %c6_114 = arith.constant 6 : index
    %242 = memref.load %arg2[%c2_113, %c6_114] : memref<9x16xf32, #tpu.memory_space<smem>>
    %243 = vector.broadcast %242 : f32 to vector<1x16x16xf32>
    %244 = arith.mulf %9, %243 : vector<1x16x16xf32>
    %245 = arith.addf %241, %244 : vector<1x16x16xf32>
    %c3_115 = arith.constant 3 : index
    %c6_116 = arith.constant 6 : index
    %246 = memref.load %arg2[%c3_115, %c6_116] : memref<9x16xf32, #tpu.memory_space<smem>>
    %247 = vector.broadcast %246 : f32 to vector<1x16x16xf32>
    %248 = arith.mulf %12, %247 : vector<1x16x16xf32>
    %249 = arith.addf %245, %248 : vector<1x16x16xf32>
    %c4_117 = arith.constant 4 : index
    %c6_118 = arith.constant 6 : index
    %250 = memref.load %arg2[%c4_117, %c6_118] : memref<9x16xf32, #tpu.memory_space<smem>>
    %251 = vector.broadcast %250 : f32 to vector<1x16x16xf32>
    %252 = arith.mulf %0, %251 : vector<1x16x16xf32>
    %253 = arith.addf %249, %252 : vector<1x16x16xf32>
    %c5_119 = arith.constant 5 : index
    %c6_120 = arith.constant 6 : index
    %254 = memref.load %arg2[%c5_119, %c6_120] : memref<9x16xf32, #tpu.memory_space<smem>>
    %255 = vector.broadcast %254 : f32 to vector<1x16x16xf32>
    %256 = arith.mulf %15, %255 : vector<1x16x16xf32>
    %257 = arith.addf %253, %256 : vector<1x16x16xf32>
    %c6_121 = arith.constant 6 : index
    %c6_122 = arith.constant 6 : index
    %258 = memref.load %arg2[%c6_121, %c6_122] : memref<9x16xf32, #tpu.memory_space<smem>>
    %259 = vector.broadcast %258 : f32 to vector<1x16x16xf32>
    %260 = arith.mulf %21, %259 : vector<1x16x16xf32>
    %261 = arith.addf %257, %260 : vector<1x16x16xf32>
    %c7_123 = arith.constant 7 : index
    %c6_124 = arith.constant 6 : index
    %262 = memref.load %arg2[%c7_123, %c6_124] : memref<9x16xf32, #tpu.memory_space<smem>>
    %263 = vector.broadcast %262 : f32 to vector<1x16x16xf32>
    %264 = arith.mulf %18, %263 : vector<1x16x16xf32>
    %265 = arith.addf %261, %264 : vector<1x16x16xf32>
    %c8_125 = arith.constant 8 : index
    %c6_126 = arith.constant 6 : index
    %266 = memref.load %arg2[%c8_125, %c6_126] : memref<9x16xf32, #tpu.memory_space<smem>>
    %267 = vector.broadcast %266 : f32 to vector<1x16x16xf32>
    %268 = arith.mulf %24, %267 : vector<1x16x16xf32>
    %269 = arith.addf %265, %268 : vector<1x16x16xf32>
    %c0_127 = arith.constant 0 : index
    %c7_128 = arith.constant 7 : index
    %270 = memref.load %arg2[%c0_127, %c7_128] : memref<9x16xf32, #tpu.memory_space<smem>>
    %271 = vector.broadcast %270 : f32 to vector<1x16x16xf32>
    %272 = arith.mulf %6, %271 : vector<1x16x16xf32>
    %c1_129 = arith.constant 1 : index
    %c7_130 = arith.constant 7 : index
    %273 = memref.load %arg2[%c1_129, %c7_130] : memref<9x16xf32, #tpu.memory_space<smem>>
    %274 = vector.broadcast %273 : f32 to vector<1x16x16xf32>
    %275 = arith.mulf %3, %274 : vector<1x16x16xf32>
    %276 = arith.addf %272, %275 : vector<1x16x16xf32>
    %c2_131 = arith.constant 2 : index
    %c7_132 = arith.constant 7 : index
    %277 = memref.load %arg2[%c2_131, %c7_132] : memref<9x16xf32, #tpu.memory_space<smem>>
    %278 = vector.broadcast %277 : f32 to vector<1x16x16xf32>
    %279 = arith.mulf %9, %278 : vector<1x16x16xf32>
    %280 = arith.addf %276, %279 : vector<1x16x16xf32>
    %c3_133 = arith.constant 3 : index
    %c7_134 = arith.constant 7 : index
    %281 = memref.load %arg2[%c3_133, %c7_134] : memref<9x16xf32, #tpu.memory_space<smem>>
    %282 = vector.broadcast %281 : f32 to vector<1x16x16xf32>
    %283 = arith.mulf %12, %282 : vector<1x16x16xf32>
    %284 = arith.addf %280, %283 : vector<1x16x16xf32>
    %c4_135 = arith.constant 4 : index
    %c7_136 = arith.constant 7 : index
    %285 = memref.load %arg2[%c4_135, %c7_136] : memref<9x16xf32, #tpu.memory_space<smem>>
    %286 = vector.broadcast %285 : f32 to vector<1x16x16xf32>
    %287 = arith.mulf %0, %286 : vector<1x16x16xf32>
    %288 = arith.addf %284, %287 : vector<1x16x16xf32>
    %c5_137 = arith.constant 5 : index
    %c7_138 = arith.constant 7 : index
    %289 = memref.load %arg2[%c5_137, %c7_138] : memref<9x16xf32, #tpu.memory_space<smem>>
    %290 = vector.broadcast %289 : f32 to vector<1x16x16xf32>
    %291 = arith.mulf %15, %290 : vector<1x16x16xf32>
    %292 = arith.addf %288, %291 : vector<1x16x16xf32>
    %c6_139 = arith.constant 6 : index
    %c7_140 = arith.constant 7 : index
    %293 = memref.load %arg2[%c6_139, %c7_140] : memref<9x16xf32, #tpu.memory_space<smem>>
    %294 = vector.broadcast %293 : f32 to vector<1x16x16xf32>
    %295 = arith.mulf %21, %294 : vector<1x16x16xf32>
    %296 = arith.addf %292, %295 : vector<1x16x16xf32>
    %c7_141 = arith.constant 7 : index
    %c7_142 = arith.constant 7 : index
    %297 = memref.load %arg2[%c7_141, %c7_142] : memref<9x16xf32, #tpu.memory_space<smem>>
    %298 = vector.broadcast %297 : f32 to vector<1x16x16xf32>
    %299 = arith.mulf %18, %298 : vector<1x16x16xf32>
    %300 = arith.addf %296, %299 : vector<1x16x16xf32>
    %c8_143 = arith.constant 8 : index
    %c7_144 = arith.constant 7 : index
    %301 = memref.load %arg2[%c8_143, %c7_144] : memref<9x16xf32, #tpu.memory_space<smem>>
    %302 = vector.broadcast %301 : f32 to vector<1x16x16xf32>
    %303 = arith.mulf %24, %302 : vector<1x16x16xf32>
    %304 = arith.addf %300, %303 : vector<1x16x16xf32>
    %c0_145 = arith.constant 0 : index
    %c8_146 = arith.constant 8 : index
    %305 = memref.load %arg2[%c0_145, %c8_146] : memref<9x16xf32, #tpu.memory_space<smem>>
    %306 = vector.broadcast %305 : f32 to vector<1x16x16xf32>
    %307 = arith.mulf %6, %306 : vector<1x16x16xf32>
    %c1_147 = arith.constant 1 : index
    %c8_148 = arith.constant 8 : index
    %308 = memref.load %arg2[%c1_147, %c8_148] : memref<9x16xf32, #tpu.memory_space<smem>>
    %309 = vector.broadcast %308 : f32 to vector<1x16x16xf32>
    %310 = arith.mulf %3, %309 : vector<1x16x16xf32>
    %311 = arith.addf %307, %310 : vector<1x16x16xf32>
    %c2_149 = arith.constant 2 : index
    %c8_150 = arith.constant 8 : index
    %312 = memref.load %arg2[%c2_149, %c8_150] : memref<9x16xf32, #tpu.memory_space<smem>>
    %313 = vector.broadcast %312 : f32 to vector<1x16x16xf32>
    %314 = arith.mulf %9, %313 : vector<1x16x16xf32>
    %315 = arith.addf %311, %314 : vector<1x16x16xf32>
    %c3_151 = arith.constant 3 : index
    %c8_152 = arith.constant 8 : index
    %316 = memref.load %arg2[%c3_151, %c8_152] : memref<9x16xf32, #tpu.memory_space<smem>>
    %317 = vector.broadcast %316 : f32 to vector<1x16x16xf32>
    %318 = arith.mulf %12, %317 : vector<1x16x16xf32>
    %319 = arith.addf %315, %318 : vector<1x16x16xf32>
    %c4_153 = arith.constant 4 : index
    %c8_154 = arith.constant 8 : index
    %320 = memref.load %arg2[%c4_153, %c8_154] : memref<9x16xf32, #tpu.memory_space<smem>>
    %321 = vector.broadcast %320 : f32 to vector<1x16x16xf32>
    %322 = arith.mulf %0, %321 : vector<1x16x16xf32>
    %323 = arith.addf %319, %322 : vector<1x16x16xf32>
    %c5_155 = arith.constant 5 : index
    %c8_156 = arith.constant 8 : index
    %324 = memref.load %arg2[%c5_155, %c8_156] : memref<9x16xf32, #tpu.memory_space<smem>>
    %325 = vector.broadcast %324 : f32 to vector<1x16x16xf32>
    %326 = arith.mulf %15, %325 : vector<1x16x16xf32>
    %327 = arith.addf %323, %326 : vector<1x16x16xf32>
    %c6_157 = arith.constant 6 : index
    %c8_158 = arith.constant 8 : index
    %328 = memref.load %arg2[%c6_157, %c8_158] : memref<9x16xf32, #tpu.memory_space<smem>>
    %329 = vector.broadcast %328 : f32 to vector<1x16x16xf32>
    %330 = arith.mulf %21, %329 : vector<1x16x16xf32>
    %331 = arith.addf %327, %330 : vector<1x16x16xf32>
    %c7_159 = arith.constant 7 : index
    %c8_160 = arith.constant 8 : index
    %332 = memref.load %arg2[%c7_159, %c8_160] : memref<9x16xf32, #tpu.memory_space<smem>>
    %333 = vector.broadcast %332 : f32 to vector<1x16x16xf32>
    %334 = arith.mulf %18, %333 : vector<1x16x16xf32>
    %335 = arith.addf %331, %334 : vector<1x16x16xf32>
    %c8_161 = arith.constant 8 : index
    %c8_162 = arith.constant 8 : index
    %336 = memref.load %arg2[%c8_161, %c8_162] : memref<9x16xf32, #tpu.memory_space<smem>>
    %337 = vector.broadcast %336 : f32 to vector<1x16x16xf32>
    %338 = arith.mulf %24, %337 : vector<1x16x16xf32>
    %339 = arith.addf %335, %338 : vector<1x16x16xf32>
    %c0_163 = arith.constant 0 : index
    %c9 = arith.constant 9 : index
    %340 = memref.load %arg2[%c0_163, %c9] : memref<9x16xf32, #tpu.memory_space<smem>>
    %341 = vector.broadcast %340 : f32 to vector<1x16x16xf32>
    %342 = arith.mulf %6, %341 : vector<1x16x16xf32>
    %c1_164 = arith.constant 1 : index
    %c9_165 = arith.constant 9 : index
    %343 = memref.load %arg2[%c1_164, %c9_165] : memref<9x16xf32, #tpu.memory_space<smem>>
    %344 = vector.broadcast %343 : f32 to vector<1x16x16xf32>
    %345 = arith.mulf %3, %344 : vector<1x16x16xf32>
    %346 = arith.addf %342, %345 : vector<1x16x16xf32>
    %c2_166 = arith.constant 2 : index
    %c9_167 = arith.constant 9 : index
    %347 = memref.load %arg2[%c2_166, %c9_167] : memref<9x16xf32, #tpu.memory_space<smem>>
    %348 = vector.broadcast %347 : f32 to vector<1x16x16xf32>
    %349 = arith.mulf %9, %348 : vector<1x16x16xf32>
    %350 = arith.addf %346, %349 : vector<1x16x16xf32>
    %c3_168 = arith.constant 3 : index
    %c9_169 = arith.constant 9 : index
    %351 = memref.load %arg2[%c3_168, %c9_169] : memref<9x16xf32, #tpu.memory_space<smem>>
    %352 = vector.broadcast %351 : f32 to vector<1x16x16xf32>
    %353 = arith.mulf %12, %352 : vector<1x16x16xf32>
    %354 = arith.addf %350, %353 : vector<1x16x16xf32>
    %c4_170 = arith.constant 4 : index
    %c9_171 = arith.constant 9 : index
    %355 = memref.load %arg2[%c4_170, %c9_171] : memref<9x16xf32, #tpu.memory_space<smem>>
    %356 = vector.broadcast %355 : f32 to vector<1x16x16xf32>
    %357 = arith.mulf %0, %356 : vector<1x16x16xf32>
    %358 = arith.addf %354, %357 : vector<1x16x16xf32>
    %c5_172 = arith.constant 5 : index
    %c9_173 = arith.constant 9 : index
    %359 = memref.load %arg2[%c5_172, %c9_173] : memref<9x16xf32, #tpu.memory_space<smem>>
    %360 = vector.broadcast %359 : f32 to vector<1x16x16xf32>
    %361 = arith.mulf %15, %360 : vector<1x16x16xf32>
    %362 = arith.addf %358, %361 : vector<1x16x16xf32>
    %c6_174 = arith.constant 6 : index
    %c9_175 = arith.constant 9 : index
    %363 = memref.load %arg2[%c6_174, %c9_175] : memref<9x16xf32, #tpu.memory_space<smem>>
    %364 = vector.broadcast %363 : f32 to vector<1x16x16xf32>
    %365 = arith.mulf %21, %364 : vector<1x16x16xf32>
    %366 = arith.addf %362, %365 : vector<1x16x16xf32>
    %c7_176 = arith.constant 7 : index
    %c9_177 = arith.constant 9 : index
    %367 = memref.load %arg2[%c7_176, %c9_177] : memref<9x16xf32, #tpu.memory_space<smem>>
    %368 = vector.broadcast %367 : f32 to vector<1x16x16xf32>
    %369 = arith.mulf %18, %368 : vector<1x16x16xf32>
    %370 = arith.addf %366, %369 : vector<1x16x16xf32>
    %c8_178 = arith.constant 8 : index
    %c9_179 = arith.constant 9 : index
    %371 = memref.load %arg2[%c8_178, %c9_179] : memref<9x16xf32, #tpu.memory_space<smem>>
    %372 = vector.broadcast %371 : f32 to vector<1x16x16xf32>
    %373 = arith.mulf %24, %372 : vector<1x16x16xf32>
    %374 = arith.addf %370, %373 : vector<1x16x16xf32>
    %c0_180 = arith.constant 0 : index
    %c10 = arith.constant 10 : index
    %375 = memref.load %arg2[%c0_180, %c10] : memref<9x16xf32, #tpu.memory_space<smem>>
    %376 = vector.broadcast %375 : f32 to vector<1x16x16xf32>
    %377 = arith.mulf %6, %376 : vector<1x16x16xf32>
    %c1_181 = arith.constant 1 : index
    %c10_182 = arith.constant 10 : index
    %378 = memref.load %arg2[%c1_181, %c10_182] : memref<9x16xf32, #tpu.memory_space<smem>>
    %379 = vector.broadcast %378 : f32 to vector<1x16x16xf32>
    %380 = arith.mulf %3, %379 : vector<1x16x16xf32>
    %381 = arith.addf %377, %380 : vector<1x16x16xf32>
    %c2_183 = arith.constant 2 : index
    %c10_184 = arith.constant 10 : index
    %382 = memref.load %arg2[%c2_183, %c10_184] : memref<9x16xf32, #tpu.memory_space<smem>>
    %383 = vector.broadcast %382 : f32 to vector<1x16x16xf32>
    %384 = arith.mulf %9, %383 : vector<1x16x16xf32>
    %385 = arith.addf %381, %384 : vector<1x16x16xf32>
    %c3_185 = arith.constant 3 : index
    %c10_186 = arith.constant 10 : index
    %386 = memref.load %arg2[%c3_185, %c10_186] : memref<9x16xf32, #tpu.memory_space<smem>>
    %387 = vector.broadcast %386 : f32 to vector<1x16x16xf32>
    %388 = arith.mulf %12, %387 : vector<1x16x16xf32>
    %389 = arith.addf %385, %388 : vector<1x16x16xf32>
    %c4_187 = arith.constant 4 : index
    %c10_188 = arith.constant 10 : index
    %390 = memref.load %arg2[%c4_187, %c10_188] : memref<9x16xf32, #tpu.memory_space<smem>>
    %391 = vector.broadcast %390 : f32 to vector<1x16x16xf32>
    %392 = arith.mulf %0, %391 : vector<1x16x16xf32>
    %393 = arith.addf %389, %392 : vector<1x16x16xf32>
    %c5_189 = arith.constant 5 : index
    %c10_190 = arith.constant 10 : index
    %394 = memref.load %arg2[%c5_189, %c10_190] : memref<9x16xf32, #tpu.memory_space<smem>>
    %395 = vector.broadcast %394 : f32 to vector<1x16x16xf32>
    %396 = arith.mulf %15, %395 : vector<1x16x16xf32>
    %397 = arith.addf %393, %396 : vector<1x16x16xf32>
    %c6_191 = arith.constant 6 : index
    %c10_192 = arith.constant 10 : index
    %398 = memref.load %arg2[%c6_191, %c10_192] : memref<9x16xf32, #tpu.memory_space<smem>>
    %399 = vector.broadcast %398 : f32 to vector<1x16x16xf32>
    %400 = arith.mulf %21, %399 : vector<1x16x16xf32>
    %401 = arith.addf %397, %400 : vector<1x16x16xf32>
    %c7_193 = arith.constant 7 : index
    %c10_194 = arith.constant 10 : index
    %402 = memref.load %arg2[%c7_193, %c10_194] : memref<9x16xf32, #tpu.memory_space<smem>>
    %403 = vector.broadcast %402 : f32 to vector<1x16x16xf32>
    %404 = arith.mulf %18, %403 : vector<1x16x16xf32>
    %405 = arith.addf %401, %404 : vector<1x16x16xf32>
    %c8_195 = arith.constant 8 : index
    %c10_196 = arith.constant 10 : index
    %406 = memref.load %arg2[%c8_195, %c10_196] : memref<9x16xf32, #tpu.memory_space<smem>>
    %407 = vector.broadcast %406 : f32 to vector<1x16x16xf32>
    %408 = arith.mulf %24, %407 : vector<1x16x16xf32>
    %409 = arith.addf %405, %408 : vector<1x16x16xf32>
    %c0_197 = arith.constant 0 : index
    %c11 = arith.constant 11 : index
    %410 = memref.load %arg2[%c0_197, %c11] : memref<9x16xf32, #tpu.memory_space<smem>>
    %411 = vector.broadcast %410 : f32 to vector<1x16x16xf32>
    %412 = arith.mulf %6, %411 : vector<1x16x16xf32>
    %c1_198 = arith.constant 1 : index
    %c11_199 = arith.constant 11 : index
    %413 = memref.load %arg2[%c1_198, %c11_199] : memref<9x16xf32, #tpu.memory_space<smem>>
    %414 = vector.broadcast %413 : f32 to vector<1x16x16xf32>
    %415 = arith.mulf %3, %414 : vector<1x16x16xf32>
    %416 = arith.addf %412, %415 : vector<1x16x16xf32>
    %c2_200 = arith.constant 2 : index
    %c11_201 = arith.constant 11 : index
    %417 = memref.load %arg2[%c2_200, %c11_201] : memref<9x16xf32, #tpu.memory_space<smem>>
    %418 = vector.broadcast %417 : f32 to vector<1x16x16xf32>
    %419 = arith.mulf %9, %418 : vector<1x16x16xf32>
    %420 = arith.addf %416, %419 : vector<1x16x16xf32>
    %c3_202 = arith.constant 3 : index
    %c11_203 = arith.constant 11 : index
    %421 = memref.load %arg2[%c3_202, %c11_203] : memref<9x16xf32, #tpu.memory_space<smem>>
    %422 = vector.broadcast %421 : f32 to vector<1x16x16xf32>
    %423 = arith.mulf %12, %422 : vector<1x16x16xf32>
    %424 = arith.addf %420, %423 : vector<1x16x16xf32>
    %c4_204 = arith.constant 4 : index
    %c11_205 = arith.constant 11 : index
    %425 = memref.load %arg2[%c4_204, %c11_205] : memref<9x16xf32, #tpu.memory_space<smem>>
    %426 = vector.broadcast %425 : f32 to vector<1x16x16xf32>
    %427 = arith.mulf %0, %426 : vector<1x16x16xf32>
    %428 = arith.addf %424, %427 : vector<1x16x16xf32>
    %c5_206 = arith.constant 5 : index
    %c11_207 = arith.constant 11 : index
    %429 = memref.load %arg2[%c5_206, %c11_207] : memref<9x16xf32, #tpu.memory_space<smem>>
    %430 = vector.broadcast %429 : f32 to vector<1x16x16xf32>
    %431 = arith.mulf %15, %430 : vector<1x16x16xf32>
    %432 = arith.addf %428, %431 : vector<1x16x16xf32>
    %c6_208 = arith.constant 6 : index
    %c11_209 = arith.constant 11 : index
    %433 = memref.load %arg2[%c6_208, %c11_209] : memref<9x16xf32, #tpu.memory_space<smem>>
    %434 = vector.broadcast %433 : f32 to vector<1x16x16xf32>
    %435 = arith.mulf %21, %434 : vector<1x16x16xf32>
    %436 = arith.addf %432, %435 : vector<1x16x16xf32>
    %c7_210 = arith.constant 7 : index
    %c11_211 = arith.constant 11 : index
    %437 = memref.load %arg2[%c7_210, %c11_211] : memref<9x16xf32, #tpu.memory_space<smem>>
    %438 = vector.broadcast %437 : f32 to vector<1x16x16xf32>
    %439 = arith.mulf %18, %438 : vector<1x16x16xf32>
    %440 = arith.addf %436, %439 : vector<1x16x16xf32>
    %c8_212 = arith.constant 8 : index
    %c11_213 = arith.constant 11 : index
    %441 = memref.load %arg2[%c8_212, %c11_213] : memref<9x16xf32, #tpu.memory_space<smem>>
    %442 = vector.broadcast %441 : f32 to vector<1x16x16xf32>
    %443 = arith.mulf %24, %442 : vector<1x16x16xf32>
    %444 = arith.addf %440, %443 : vector<1x16x16xf32>
    %c0_214 = arith.constant 0 : index
    %c12 = arith.constant 12 : index
    %445 = memref.load %arg2[%c0_214, %c12] : memref<9x16xf32, #tpu.memory_space<smem>>
    %446 = vector.broadcast %445 : f32 to vector<1x16x16xf32>
    %447 = arith.mulf %6, %446 : vector<1x16x16xf32>
    %c1_215 = arith.constant 1 : index
    %c12_216 = arith.constant 12 : index
    %448 = memref.load %arg2[%c1_215, %c12_216] : memref<9x16xf32, #tpu.memory_space<smem>>
    %449 = vector.broadcast %448 : f32 to vector<1x16x16xf32>
    %450 = arith.mulf %3, %449 : vector<1x16x16xf32>
    %451 = arith.addf %447, %450 : vector<1x16x16xf32>
    %c2_217 = arith.constant 2 : index
    %c12_218 = arith.constant 12 : index
    %452 = memref.load %arg2[%c2_217, %c12_218] : memref<9x16xf32, #tpu.memory_space<smem>>
    %453 = vector.broadcast %452 : f32 to vector<1x16x16xf32>
    %454 = arith.mulf %9, %453 : vector<1x16x16xf32>
    %455 = arith.addf %451, %454 : vector<1x16x16xf32>
    %c3_219 = arith.constant 3 : index
    %c12_220 = arith.constant 12 : index
    %456 = memref.load %arg2[%c3_219, %c12_220] : memref<9x16xf32, #tpu.memory_space<smem>>
    %457 = vector.broadcast %456 : f32 to vector<1x16x16xf32>
    %458 = arith.mulf %12, %457 : vector<1x16x16xf32>
    %459 = arith.addf %455, %458 : vector<1x16x16xf32>
    %c4_221 = arith.constant 4 : index
    %c12_222 = arith.constant 12 : index
    %460 = memref.load %arg2[%c4_221, %c12_222] : memref<9x16xf32, #tpu.memory_space<smem>>
    %461 = vector.broadcast %460 : f32 to vector<1x16x16xf32>
    %462 = arith.mulf %0, %461 : vector<1x16x16xf32>
    %463 = arith.addf %459, %462 : vector<1x16x16xf32>
    %c5_223 = arith.constant 5 : index
    %c12_224 = arith.constant 12 : index
    %464 = memref.load %arg2[%c5_223, %c12_224] : memref<9x16xf32, #tpu.memory_space<smem>>
    %465 = vector.broadcast %464 : f32 to vector<1x16x16xf32>
    %466 = arith.mulf %15, %465 : vector<1x16x16xf32>
    %467 = arith.addf %463, %466 : vector<1x16x16xf32>
    %c6_225 = arith.constant 6 : index
    %c12_226 = arith.constant 12 : index
    %468 = memref.load %arg2[%c6_225, %c12_226] : memref<9x16xf32, #tpu.memory_space<smem>>
    %469 = vector.broadcast %468 : f32 to vector<1x16x16xf32>
    %470 = arith.mulf %21, %469 : vector<1x16x16xf32>
    %471 = arith.addf %467, %470 : vector<1x16x16xf32>
    %c7_227 = arith.constant 7 : index
    %c12_228 = arith.constant 12 : index
    %472 = memref.load %arg2[%c7_227, %c12_228] : memref<9x16xf32, #tpu.memory_space<smem>>
    %473 = vector.broadcast %472 : f32 to vector<1x16x16xf32>
    %474 = arith.mulf %18, %473 : vector<1x16x16xf32>
    %475 = arith.addf %471, %474 : vector<1x16x16xf32>
    %c8_229 = arith.constant 8 : index
    %c12_230 = arith.constant 12 : index
    %476 = memref.load %arg2[%c8_229, %c12_230] : memref<9x16xf32, #tpu.memory_space<smem>>
    %477 = vector.broadcast %476 : f32 to vector<1x16x16xf32>
    %478 = arith.mulf %24, %477 : vector<1x16x16xf32>
    %479 = arith.addf %475, %478 : vector<1x16x16xf32>
    %c0_231 = arith.constant 0 : index
    %c13 = arith.constant 13 : index
    %480 = memref.load %arg2[%c0_231, %c13] : memref<9x16xf32, #tpu.memory_space<smem>>
    %481 = vector.broadcast %480 : f32 to vector<1x16x16xf32>
    %482 = arith.mulf %6, %481 : vector<1x16x16xf32>
    %c1_232 = arith.constant 1 : index
    %c13_233 = arith.constant 13 : index
    %483 = memref.load %arg2[%c1_232, %c13_233] : memref<9x16xf32, #tpu.memory_space<smem>>
    %484 = vector.broadcast %483 : f32 to vector<1x16x16xf32>
    %485 = arith.mulf %3, %484 : vector<1x16x16xf32>
    %486 = arith.addf %482, %485 : vector<1x16x16xf32>
    %c2_234 = arith.constant 2 : index
    %c13_235 = arith.constant 13 : index
    %487 = memref.load %arg2[%c2_234, %c13_235] : memref<9x16xf32, #tpu.memory_space<smem>>
    %488 = vector.broadcast %487 : f32 to vector<1x16x16xf32>
    %489 = arith.mulf %9, %488 : vector<1x16x16xf32>
    %490 = arith.addf %486, %489 : vector<1x16x16xf32>
    %c3_236 = arith.constant 3 : index
    %c13_237 = arith.constant 13 : index
    %491 = memref.load %arg2[%c3_236, %c13_237] : memref<9x16xf32, #tpu.memory_space<smem>>
    %492 = vector.broadcast %491 : f32 to vector<1x16x16xf32>
    %493 = arith.mulf %12, %492 : vector<1x16x16xf32>
    %494 = arith.addf %490, %493 : vector<1x16x16xf32>
    %c4_238 = arith.constant 4 : index
    %c13_239 = arith.constant 13 : index
    %495 = memref.load %arg2[%c4_238, %c13_239] : memref<9x16xf32, #tpu.memory_space<smem>>
    %496 = vector.broadcast %495 : f32 to vector<1x16x16xf32>
    %497 = arith.mulf %0, %496 : vector<1x16x16xf32>
    %498 = arith.addf %494, %497 : vector<1x16x16xf32>
    %c5_240 = arith.constant 5 : index
    %c13_241 = arith.constant 13 : index
    %499 = memref.load %arg2[%c5_240, %c13_241] : memref<9x16xf32, #tpu.memory_space<smem>>
    %500 = vector.broadcast %499 : f32 to vector<1x16x16xf32>
    %501 = arith.mulf %15, %500 : vector<1x16x16xf32>
    %502 = arith.addf %498, %501 : vector<1x16x16xf32>
    %c6_242 = arith.constant 6 : index
    %c13_243 = arith.constant 13 : index
    %503 = memref.load %arg2[%c6_242, %c13_243] : memref<9x16xf32, #tpu.memory_space<smem>>
    %504 = vector.broadcast %503 : f32 to vector<1x16x16xf32>
    %505 = arith.mulf %21, %504 : vector<1x16x16xf32>
    %506 = arith.addf %502, %505 : vector<1x16x16xf32>
    %c7_244 = arith.constant 7 : index
    %c13_245 = arith.constant 13 : index
    %507 = memref.load %arg2[%c7_244, %c13_245] : memref<9x16xf32, #tpu.memory_space<smem>>
    %508 = vector.broadcast %507 : f32 to vector<1x16x16xf32>
    %509 = arith.mulf %18, %508 : vector<1x16x16xf32>
    %510 = arith.addf %506, %509 : vector<1x16x16xf32>
    %c8_246 = arith.constant 8 : index
    %c13_247 = arith.constant 13 : index
    %511 = memref.load %arg2[%c8_246, %c13_247] : memref<9x16xf32, #tpu.memory_space<smem>>
    %512 = vector.broadcast %511 : f32 to vector<1x16x16xf32>
    %513 = arith.mulf %24, %512 : vector<1x16x16xf32>
    %514 = arith.addf %510, %513 : vector<1x16x16xf32>
    %c0_248 = arith.constant 0 : index
    %c14 = arith.constant 14 : index
    %515 = memref.load %arg2[%c0_248, %c14] : memref<9x16xf32, #tpu.memory_space<smem>>
    %516 = vector.broadcast %515 : f32 to vector<1x16x16xf32>
    %517 = arith.mulf %6, %516 : vector<1x16x16xf32>
    %c1_249 = arith.constant 1 : index
    %c14_250 = arith.constant 14 : index
    %518 = memref.load %arg2[%c1_249, %c14_250] : memref<9x16xf32, #tpu.memory_space<smem>>
    %519 = vector.broadcast %518 : f32 to vector<1x16x16xf32>
    %520 = arith.mulf %3, %519 : vector<1x16x16xf32>
    %521 = arith.addf %517, %520 : vector<1x16x16xf32>
    %c2_251 = arith.constant 2 : index
    %c14_252 = arith.constant 14 : index
    %522 = memref.load %arg2[%c2_251, %c14_252] : memref<9x16xf32, #tpu.memory_space<smem>>
    %523 = vector.broadcast %522 : f32 to vector<1x16x16xf32>
    %524 = arith.mulf %9, %523 : vector<1x16x16xf32>
    %525 = arith.addf %521, %524 : vector<1x16x16xf32>
    %c3_253 = arith.constant 3 : index
    %c14_254 = arith.constant 14 : index
    %526 = memref.load %arg2[%c3_253, %c14_254] : memref<9x16xf32, #tpu.memory_space<smem>>
    %527 = vector.broadcast %526 : f32 to vector<1x16x16xf32>
    %528 = arith.mulf %12, %527 : vector<1x16x16xf32>
    %529 = arith.addf %525, %528 : vector<1x16x16xf32>
    %c4_255 = arith.constant 4 : index
    %c14_256 = arith.constant 14 : index
    %530 = memref.load %arg2[%c4_255, %c14_256] : memref<9x16xf32, #tpu.memory_space<smem>>
    %531 = vector.broadcast %530 : f32 to vector<1x16x16xf32>
    %532 = arith.mulf %0, %531 : vector<1x16x16xf32>
    %533 = arith.addf %529, %532 : vector<1x16x16xf32>
    %c5_257 = arith.constant 5 : index
    %c14_258 = arith.constant 14 : index
    %534 = memref.load %arg2[%c5_257, %c14_258] : memref<9x16xf32, #tpu.memory_space<smem>>
    %535 = vector.broadcast %534 : f32 to vector<1x16x16xf32>
    %536 = arith.mulf %15, %535 : vector<1x16x16xf32>
    %537 = arith.addf %533, %536 : vector<1x16x16xf32>
    %c6_259 = arith.constant 6 : index
    %c14_260 = arith.constant 14 : index
    %538 = memref.load %arg2[%c6_259, %c14_260] : memref<9x16xf32, #tpu.memory_space<smem>>
    %539 = vector.broadcast %538 : f32 to vector<1x16x16xf32>
    %540 = arith.mulf %21, %539 : vector<1x16x16xf32>
    %541 = arith.addf %537, %540 : vector<1x16x16xf32>
    %c7_261 = arith.constant 7 : index
    %c14_262 = arith.constant 14 : index
    %542 = memref.load %arg2[%c7_261, %c14_262] : memref<9x16xf32, #tpu.memory_space<smem>>
    %543 = vector.broadcast %542 : f32 to vector<1x16x16xf32>
    %544 = arith.mulf %18, %543 : vector<1x16x16xf32>
    %545 = arith.addf %541, %544 : vector<1x16x16xf32>
    %c8_263 = arith.constant 8 : index
    %c14_264 = arith.constant 14 : index
    %546 = memref.load %arg2[%c8_263, %c14_264] : memref<9x16xf32, #tpu.memory_space<smem>>
    %547 = vector.broadcast %546 : f32 to vector<1x16x16xf32>
    %548 = arith.mulf %24, %547 : vector<1x16x16xf32>
    %549 = arith.addf %545, %548 : vector<1x16x16xf32>
    %c0_265 = arith.constant 0 : index
    %c15 = arith.constant 15 : index
    %550 = memref.load %arg2[%c0_265, %c15] : memref<9x16xf32, #tpu.memory_space<smem>>
    %551 = vector.broadcast %550 : f32 to vector<1x16x16xf32>
    %552 = arith.mulf %6, %551 : vector<1x16x16xf32>
    %c1_266 = arith.constant 1 : index
    %c15_267 = arith.constant 15 : index
    %553 = memref.load %arg2[%c1_266, %c15_267] : memref<9x16xf32, #tpu.memory_space<smem>>
    %554 = vector.broadcast %553 : f32 to vector<1x16x16xf32>
    %555 = arith.mulf %3, %554 : vector<1x16x16xf32>
    %556 = arith.addf %552, %555 : vector<1x16x16xf32>
    %c2_268 = arith.constant 2 : index
    %c15_269 = arith.constant 15 : index
    %557 = memref.load %arg2[%c2_268, %c15_269] : memref<9x16xf32, #tpu.memory_space<smem>>
    %558 = vector.broadcast %557 : f32 to vector<1x16x16xf32>
    %559 = arith.mulf %9, %558 : vector<1x16x16xf32>
    %560 = arith.addf %556, %559 : vector<1x16x16xf32>
    %c3_270 = arith.constant 3 : index
    %c15_271 = arith.constant 15 : index
    %561 = memref.load %arg2[%c3_270, %c15_271] : memref<9x16xf32, #tpu.memory_space<smem>>
    %562 = vector.broadcast %561 : f32 to vector<1x16x16xf32>
    %563 = arith.mulf %12, %562 : vector<1x16x16xf32>
    %564 = arith.addf %560, %563 : vector<1x16x16xf32>
    %c4_272 = arith.constant 4 : index
    %c15_273 = arith.constant 15 : index
    %565 = memref.load %arg2[%c4_272, %c15_273] : memref<9x16xf32, #tpu.memory_space<smem>>
    %566 = vector.broadcast %565 : f32 to vector<1x16x16xf32>
    %567 = arith.mulf %0, %566 : vector<1x16x16xf32>
    %568 = arith.addf %564, %567 : vector<1x16x16xf32>
    %c5_274 = arith.constant 5 : index
    %c15_275 = arith.constant 15 : index
    %569 = memref.load %arg2[%c5_274, %c15_275] : memref<9x16xf32, #tpu.memory_space<smem>>
    %570 = vector.broadcast %569 : f32 to vector<1x16x16xf32>
    %571 = arith.mulf %15, %570 : vector<1x16x16xf32>
    %572 = arith.addf %568, %571 : vector<1x16x16xf32>
    %c6_276 = arith.constant 6 : index
    %c15_277 = arith.constant 15 : index
    %573 = memref.load %arg2[%c6_276, %c15_277] : memref<9x16xf32, #tpu.memory_space<smem>>
    %574 = vector.broadcast %573 : f32 to vector<1x16x16xf32>
    %575 = arith.mulf %21, %574 : vector<1x16x16xf32>
    %576 = arith.addf %572, %575 : vector<1x16x16xf32>
    %c7_278 = arith.constant 7 : index
    %c15_279 = arith.constant 15 : index
    %577 = memref.load %arg2[%c7_278, %c15_279] : memref<9x16xf32, #tpu.memory_space<smem>>
    %578 = vector.broadcast %577 : f32 to vector<1x16x16xf32>
    %579 = arith.mulf %18, %578 : vector<1x16x16xf32>
    %580 = arith.addf %576, %579 : vector<1x16x16xf32>
    %c8_280 = arith.constant 8 : index
    %c15_281 = arith.constant 15 : index
    %581 = memref.load %arg2[%c8_280, %c15_281] : memref<9x16xf32, #tpu.memory_space<smem>>
    %582 = vector.broadcast %581 : f32 to vector<1x16x16xf32>
    %583 = arith.mulf %24, %582 : vector<1x16x16xf32>
    %584 = arith.addf %580, %583 : vector<1x16x16xf32>
    %585 = vector.shape_cast %59 : vector<1x16x16xf32> to vector<1x16x16x1xf32>
    %586 = vector.shape_cast %94 : vector<1x16x16xf32> to vector<1x16x16x1xf32>
    %587 = vector.shape_cast %129 : vector<1x16x16xf32> to vector<1x16x16x1xf32>
    %588 = vector.shape_cast %164 : vector<1x16x16xf32> to vector<1x16x16x1xf32>
    %589 = vector.shape_cast %199 : vector<1x16x16xf32> to vector<1x16x16x1xf32>
    %590 = vector.shape_cast %234 : vector<1x16x16xf32> to vector<1x16x16x1xf32>
    %591 = vector.shape_cast %269 : vector<1x16x16xf32> to vector<1x16x16x1xf32>
    %592 = vector.shape_cast %304 : vector<1x16x16xf32> to vector<1x16x16x1xf32>
    %593 = vector.shape_cast %339 : vector<1x16x16xf32> to vector<1x16x16x1xf32>
    %594 = vector.shape_cast %374 : vector<1x16x16xf32> to vector<1x16x16x1xf32>
    %595 = vector.shape_cast %409 : vector<1x16x16xf32> to vector<1x16x16x1xf32>
    %596 = vector.shape_cast %444 : vector<1x16x16xf32> to vector<1x16x16x1xf32>
    %597 = vector.shape_cast %479 : vector<1x16x16xf32> to vector<1x16x16x1xf32>
    %598 = vector.shape_cast %514 : vector<1x16x16xf32> to vector<1x16x16x1xf32>
    %599 = vector.shape_cast %549 : vector<1x16x16xf32> to vector<1x16x16x1xf32>
    %600 = vector.shape_cast %584 : vector<1x16x16xf32> to vector<1x16x16x1xf32>
    %601 = tpu.concatenate %585, %586, %587, %588, %589, %590, %591, %592, %593, %594, %595, %596, %597, %598, %599, %600 in 3 : vector<1x16x16x1xf32>, vector<1x16x16x1xf32>, vector<1x16x16x1xf32>, vector<1x16x16x1xf32>, vector<1x16x16x1xf32>, vector<1x16x16x1xf32>, vector<1x16x16x1xf32>, vector<1x16x16x1xf32>, vector<1x16x16x1xf32>, vector<1x16x16x1xf32>, vector<1x16x16x1xf32>, vector<1x16x16x1xf32>, vector<1x16x16x1xf32>, vector<1x16x16x1xf32>, vector<1x16x16x1xf32>, vector<1x16x16x1xf32> -> vector<1x16x16x16xf32>
    %c0_282 = arith.constant 0 : index
    %c0_283 = arith.constant 0 : index
    %602 = vector.load %arg3[%c0_282, %c0_283] : memref<1x16xf32, #tpu.memory_space<vmem>>, vector<1x16xf32>
    %603 = vector.shape_cast %602 : vector<1x16xf32> to vector<1x1x1x16xf32>
    %604 = vector.broadcast %603 : vector<1x1x1x16xf32> to vector<1x16x16x16xf32>
    %605 = arith.addf %601, %604 : vector<1x16x16x16xf32>
    %cst_284 = arith.constant 0.000000e+00 : f32
    %606 = vector.broadcast %cst_284 : f32 to vector<1x16x16x16xf32>
    %607 = arith.maximumf %605, %606 : vector<1x16x16x16xf32>
    %608 = vector.shape_cast %607 : vector<1x16x16x16xf32> to vector<1x8x2x16x16xf32>
    %609 = vector.extract_strided_slice %608 {offsets = [0, 0, 0, 0, 0], sizes = [1, 8, 1, 16, 16], strides = [1, 1, 1, 1, 1]} : vector<1x8x2x16x16xf32> to vector<1x8x1x16x16xf32>
    %610 = vector.shape_cast %609 : vector<1x8x1x16x16xf32> to vector<1x8x16x16xf32>
    %611 = vector.extract_strided_slice %608 {offsets = [0, 0, 1, 0, 0], sizes = [1, 8, 1, 16, 16], strides = [1, 1, 1, 1, 1]} : vector<1x8x2x16x16xf32> to vector<1x8x1x16x16xf32>
    %612 = vector.shape_cast %611 : vector<1x8x1x16x16xf32> to vector<1x8x16x16xf32>
    %613 = arith.maximumf %610, %612 : vector<1x8x16x16xf32>
    %614 = vector.shape_cast %613 : vector<1x8x16x16xf32> to vector<1x8x8x2x16xf32>
    %615 = vector.extract_strided_slice %614 {offsets = [0, 0, 0, 0, 0], sizes = [1, 8, 8, 1, 16], strides = [1, 1, 1, 1, 1]} : vector<1x8x8x2x16xf32> to vector<1x8x8x1x16xf32>
    %616 = vector.shape_cast %615 : vector<1x8x8x1x16xf32> to vector<1x8x8x16xf32>
    %617 = vector.extract_strided_slice %614 {offsets = [0, 0, 0, 1, 0], sizes = [1, 8, 8, 1, 16], strides = [1, 1, 1, 1, 1]} : vector<1x8x8x2x16xf32> to vector<1x8x8x1x16xf32>
    %618 = vector.shape_cast %617 : vector<1x8x8x1x16xf32> to vector<1x8x8x16xf32>
    %619 = arith.maximumf %616, %618 : vector<1x8x8x16xf32>
    %620 = vector.shape_cast %619 : vector<1x8x8x16xf32> to vector<1x8x128xf32>
    %621 = arith.truncf %620 : vector<1x8x128xf32> to vector<1x8x128xbf16>
    %c0_285 = arith.constant 0 : index
    %c0_286 = arith.constant 0 : index
    %c0_287 = arith.constant 0 : index
    %622 = vector.load %arg4[%c0_285, %c0_286, %c0_287] : memref<1x8x128xbf16, #tpu.memory_space<vmem>>, vector<1x8x128xbf16>
    tpu.vector_store %arg4[%c0_285, %c0_286, %c0_287], %621 {strides = array<i32>} : memref<1x8x128xbf16, #tpu.memory_space<vmem>>, vector<1x8x128xbf16>,
    return
  }
  func.func @transform_0(%arg0: i32) -> (i32, i32, i32) {
    %c0_i32 = arith.constant 0 : i32
    %c0_i32_0 = arith.constant 0 : i32
    %c0_i32_1 = arith.constant 0 : i32
    return %arg0, %c0_i32, %c0_i32_0 : i32, i32, i32
  }
  func.func @transform_1(%arg0: i32) -> (i32, i32) {
    %c0_i32 = arith.constant 0 : i32
    %c0_i32_0 = arith.constant 0 : i32
    %c0_i32_1 = arith.constant 0 : i32
    return %c0_i32, %c0_i32_0 : i32, i32
  }
  func.func @transform_2(%arg0: i32) -> (i32, i32) {
    %c0_i32 = arith.constant 0 : i32
    %c0_i32_0 = arith.constant 0 : i32
    %c0_i32_1 = arith.constant 0 : i32
    return %c0_i32, %c0_i32_0 : i32, i32
  }
  func.func @transform_3(%arg0: i32) -> (i32, i32, i32) {
    %c0_i32 = arith.constant 0 : i32
    %c0_i32_0 = arith.constant 0 : i32
    %c0_i32_1 = arith.constant 0 : i32
    return %arg0, %c0_i32, %c0_i32_0 : i32, i32, i32
  }
}

module attributes {stable_mosaic.version = 11 : i64} {
  func.func @_fc_kernel(%arg0: i32, %arg1: memref<2x128xbf16, #tpu.memory_space<vmem>>, %arg2: memref<128x8xbf16, #tpu.memory_space<vmem>>, %arg3: memref<1x8xf32, #tpu.memory_space<vmem>>, %arg4: memref<2x8xf32, #tpu.memory_space<vmem>>) attributes {dimension_semantics = [#tpu.dimension_semantics<arbitrary>], iteration_bounds = array<i64: 4>, scalar_prefetch = 0 : i64, scratch_operands = 0 : i64, tpu.core_type = #tpu.core_type<tc>, window_params = [{transform_indices = @transform_0, window_bounds = array<i64: 2, 128>}, {transform_indices = @transform_1, window_bounds = array<i64: 128, 8>}, {pipeline_mode = #tpu.pipeline_mode<synchronous>, transform_indices = @transform_2, window_bounds = array<i64: 1, 8>}, {pipeline_mode = #tpu.pipeline_mode<synchronous>, transform_indices = @transform_3, window_bounds = array<i64: 2, 8>}]} {
    %c0_i32 = arith.constant 0 : i32
    %0 = arith.cmpi eq, %arg0, %c0_i32 : i32
    %1 = arith.extui %0 : i1 to i32
    %c0_i32_0 = arith.constant 0 : i32
    %2 = arith.cmpi ne, %1, %c0_i32_0 : i32
    scf.if %2 {
      %c0_8 = arith.constant 0 : index
      %c0_9 = arith.constant 0 : index
      %9 = vector.load %arg3[%c0_8, %c0_9] : memref<1x8xf32, #tpu.memory_space<vmem>>, vector<1x8xf32>
      %10 = vector.shape_cast %9 : vector<1x8xf32> to vector<1x8xf32>
      %11 = vector.broadcast %10 : vector<1x8xf32> to vector<2x8xf32>
      %c0_10 = arith.constant 0 : index
      %c0_11 = arith.constant 0 : index
      %12 = vector.load %arg4[%c0_10, %c0_11] : memref<2x8xf32, #tpu.memory_space<vmem>>, vector<2x8xf32>
      tpu.vector_store %arg4[%c0_10, %c0_11], %11 {strides = array<i32>} : memref<2x8xf32, #tpu.memory_space<vmem>>, vector<2x8xf32>,
    } else {
    }
    %c0 = arith.constant 0 : index
    %c0_1 = arith.constant 0 : index
    %3 = vector.load %arg4[%c0, %c0_1] : memref<2x8xf32, #tpu.memory_space<vmem>>, vector<2x8xf32>
    %c0_2 = arith.constant 0 : index
    %c0_3 = arith.constant 0 : index
    %4 = vector.load %arg1[%c0_2, %c0_3] : memref<2x128xbf16, #tpu.memory_space<vmem>>, vector<2x128xbf16>
    %c0_4 = arith.constant 0 : index
    %c0_5 = arith.constant 0 : index
    %5 = vector.load %arg2[%c0_4, %c0_5] : memref<128x8xbf16, #tpu.memory_space<vmem>>, vector<128x8xbf16>
    %cst = arith.constant dense<0.000000e+00> : vector<2x8xf32>
    %6 = tpu.matmul %4, %5, %cst {dimension_numbers = #tpu.dot_dimension_numbers<[1], [0], [0], [1], [0, 0, 1, 1], [], []>} : vector<2x128xbf16>, vector<128x8xbf16>, vector<2x8xf32> -> vector<2x8xf32>
    %7 = arith.addf %3, %6 : vector<2x8xf32>
    %c0_6 = arith.constant 0 : index
    %c0_7 = arith.constant 0 : index
    %8 = vector.load %arg4[%c0_6, %c0_7] : memref<2x8xf32, #tpu.memory_space<vmem>>, vector<2x8xf32>
    tpu.vector_store %arg4[%c0_6, %c0_7], %7 {strides = array<i32>} : memref<2x8xf32, #tpu.memory_space<vmem>>, vector<2x8xf32>,
    return
  }
  func.func @transform_0(%arg0: i32) -> (i32, i32) {
    %c0_i32 = arith.constant 0 : i32
    %c0_i32_0 = arith.constant 0 : i32
    return %c0_i32, %arg0 : i32, i32
  }
  func.func @transform_1(%arg0: i32) -> (i32, i32) {
    %c0_i32 = arith.constant 0 : i32
    %c0_i32_0 = arith.constant 0 : i32
    return %arg0, %c0_i32 : i32, i32
  }
  func.func @transform_2(%arg0: i32) -> (i32, i32) {
    %c0_i32 = arith.constant 0 : i32
    %c0_i32_0 = arith.constant 0 : i32
    %c0_i32_1 = arith.constant 0 : i32
    return %c0_i32, %c0_i32_0 : i32, i32
  }
  func.func @transform_3(%arg0: i32) -> (i32, i32) {
    %c0_i32 = arith.constant 0 : i32
    %c0_i32_0 = arith.constant 0 : i32
    %c0_i32_1 = arith.constant 0 : i32
    return %c0_i32, %c0_i32_0 : i32, i32
  }
}

</mosaic_0001>

<bundles_post_ra>
// kernel: mycnn_forward.5
= control target key start
LH: loop header
LB: loop body
LE: loop exit
PB: predicated region body
PF: predicated region fallthrough
CT: control target
= control target key end

     0   :  { %8 = vsyncpa [#allocation3], 0  ;;  %s450_s12 = smov 0   ;;  %s480_s0 = inlined_call_operand.vmem [shape: bf16[2,512], index: 0, kind: input, shape index: {}]   ;;  %s481_s1 = inlined_call_operand.vmem [shape: bf16[512,8], index: 1, kind: input, shape index: {}]   ;;  %s482_s2 = inlined_call_operand.vmem [shape: f32[1,8], index: 2, kind: input, shape index: {}]   ;;  %s483_s3 = inlined_call_operand.hbm [shape: f32[2,8], index: 3, kind: output, shape index: {}]  }
   0x1 LB: > { %s456_s13 = sadd.s32 4294967295, %s427_s12   ;;  %p325_p0 = scmp.ge.s32.totalorder %s427_s12, 1  ;;  %s427_s12 = sphi %s450_s12, %s14_s12  }
   0x2   : > { %p142_p1 = scmp.lt.s32.totalorder %s427_s12, 5 }
   0x4   : > { %p143_p2 = pnand %p325_p0, %p142_p1 }
   0x5   : > { %p164_p3 = scmp.lt.s32.totalorder (!%p143_p2), %s456_s13, 3  ;;  %s326_s14 = sshll.u32 (!%p143_p2), %s456_s13, 4 }
   0x6   : > { %146 = sbr.rel (%p143_p2) target bundleno = 187 (0xbb), region = 32  ;;  %p168_p4 = scmp.lt.s32.totalorder (!%p143_p2), %s326_s14, 63 }
   0x7   : > { %p328_p5 = scmp.ne.s32.totalorder (!%p143_p2), %s456_s13, 0 }
   0xb   : > { %s165_s15 = scalar_select %p164_p3, %s456_s13, 3 }
   0xc   : > { %s485_s14 = smov (!%p168_p4, %s326_s14), 63  ;;  %176 = sbr.rel (%p328_p5) target bundleno = 19 (0x13), region = 36 }
   0xd   : > { %s166_s18 = scalar_lea.vmem %s480_s0, %s165_s15  ;;  %s327_s19 = sshll.u32 %s485_s14, 2 }
   0xe   : > { %s171_s22 = scalar_lea.vmem %s481_s1, %s327_s19 }
  0x11   : > { %v388_v0 = vld [vmem:[%s482_s2] ss:$0 sm:$0xff]  ;;  %vm181_vm0 = vcmask 58368  }
  0x12   : > { %182 = vst.msk [vmem:[#allocation2] sm:$0x3] %vm181_vm0, %v388_v0 }
  0x13 PF: > { %v372_v1 = vld [vmem:[%s171_s22 + $0x38] sm:$0xff]  ;;  %v371_v2 = vld [vmem:[%s171_s22 + $0x30] sm:$0xff]  ;;  %v370_v3 = vld [vmem:[%s171_s22 + $0x28] sm:$0xff]  ;;  %s429_s25 = smov [#allocation2]   ;;  %s273_s29 = sshll.u32 %s483_s3, 4  ;;  %vm263_vm1 = vcmask 58368   ;;  %s274_s29 = int_to_ptr.hbm [resolvable:$true] %s273_s29 }
  0x14   : > { %249 = vmatpush.bf16.msra.mxu0 %v372_v1  ;;  %v369_v4 = vld [vmem:[%s171_s22 + $0x20] sm:$0xff]  ;;  %v368_v5 = vld [vmem:[%s171_s22 + $0x18] sm:$0xff]  ;;  %v367_v6 = vld [vmem:[%s171_s22 + $0x10] sm:$0xff]  ;;  %s271_s26 = sshll.u32 %s429_s25, 4  ;;  %p377_p6 = scmp.eq.s32.totalorder %s456_s13, 3  ;;  %s272_s26 = int_to_ptr.vmem [resolvable:$true] %s271_s26 }
  0x15   : > { %v366_v7 = vld [vmem:[%s171_s22 + $0x8] sm:$0xff]  ;;  %v365_v8 = vld [vmem:[%s171_s22] sm:$0xff] }
  0x16   : > { %v184_v9 = vld [vmem:[%s166_s18] sm:$0x1] }
  0x18   : > { %250 = vmatpush.bf16.msra.mxu0 %v371_v2 }
  0x19   : > { %v183_v10 = vld [vmem:[#allocation2] sm:$0x3] }
  0x1c   : > { %251 = vmatpush.bf16.msra.mxu0 %v370_v3 }
  0x20   : > { %252 = vmatpush.bf16.msra.mxu0 %v369_v4 }
  0x24   : > { %253 = vmatpush.bf16.msra.mxu0 %v368_v5 }
  0x28   : > { %254 = vmatpush.bf16.msra.mxu0 %v367_v6 }
  0x2c   : > { %255 = vmatpush.bf16.msra.mxu0 %v366_v7 }
  0x30   : > { %256 = vmatpush.bf16.msra.mxu0 %v365_v8 }
  0x33   : > { %257 = vmatmul.bf16.vlgmr.msra.gmra.mxu0 %v184_v9 }
  0xb0   : > { %v258_v11 = vpop.f32.mrf.mxu0 }
  0xb1   : > { %v262_v12 = vadd.f32 %v258_v11, %v183_v10 }
  0xb3   : > { %264 = vst.msk [vmem:[#allocation2] sm:$0x3] %vm263_vm1, %v262_v12 }
  0xb4   : > { %374 = dma.vmem_to_hbm [thread:$0]  (%p377_p6), %s272_s26, 32, %s274_s29, [#allocation3]  }
  0xb8   : > { %v260_v13 = vpop.f32.mrf.mxu0 }
  0xb9   : > { %422 = dma.done.wait (%p377_p6), [#allocation3], 32  }
  0xba   : > { %424 = vsyncadd (%p377_p6), [#allocation3], 4294967264 }
  0xbb PF: > { %s14_s12 = sadd.s32 1, %s427_s12  }
  0xbc   : > { %p11_p7 = scmp.ge.s32.totalorder %s14_s12, 6  }
  0xbe   :  { %13 = sbr.rel (!%p11_p7) target bundleno = 1 (0x1), region = 66 }
  0xc3   :  { %287 = vsyncpa [#allocation3], 1 }
  0xc4   :  { %289 = vsyncpa [#allocation3 + $0x1], 1 }

// kernel: mycnn_forward.4
= control target key start
LH: loop header
LB: loop body
LE: loop exit
PB: predicated region body
PF: predicated region fallthrough
CT: control target
= control target key end

     0   :  { %s1325_s12 = smov 0   ;;  %s1851_s0 = inlined_call_operand.vmem [shape: bf16[2,8,8,16], index: 0, kind: input, shape index: {}]   ;;  %s1852_s1 = inlined_call_operand.vmem [shape: bf16[144,32], index: 1, kind: input, shape index: {}]   ;;  %s1853_s2 = inlined_call_operand.vmem [shape: f32[1,32], index: 2, kind: input, shape index: {}]   ;;  %s1854_s3 = inlined_call_operand.vmem [shape: bf16[2,4,128], index: 3, kind: output, shape index: {}]  }
   0x1 LB: > { %s1183_s13 = sadd.s32 4294967295, %s1297_s12   ;;  %p1187_p0 = scmp.ge.s32.totalorder %s1297_s12, 1  ;;  %s1297_s12 = sphi %s1325_s12, %s13_s12  }
   0x2   : > { %p137_p1 = scmp.lt.s32.totalorder %s1297_s12, 3 }
   0x4   : > { %p138_p2 = pnand %p1187_p0, %p137_p1 }
   0x5   : > { %p160_p3 = scmp.lt.s32.totalorder (!%p138_p2), %s1183_s13, 1  ;;  %s1299_s18 = smov (!%p138_p2), 16  }
   0x6   : > { %141 = sbr.rel (%p138_p2) target bundleno = 542 (0x21e), region = 32  ;;  %s1300_s19 = smov (!%p138_p2), 32  }
   0x7   : > { %s1303_s15 = smov (!%p138_p2), 64   ;;  %s1304_s16 = smov (!%p138_p2), 96  }
   0xb   : > { %s1860_s13 = smov (!%p160_p3, %s1183_s13), 1  ;;  %vm277_vm0 = vcmask 1043456   ;;  %vm278_vm1 = vsmask.f32 3328  ;;  %v1596_v17 = vld [vmem:[%s1852_s1 + $0x38] sm:$0xff]  ;;  %vm242_vm3 = vcmask 1040384  }
   0xc   : > { %s1257_s14 = sshll.u32 %s1860_s13, 5  ;;  %vm1377_vm2 = vmand %vm277_vm0, %vm278_vm1  ;;  %vm243_vm4 = vsmask.f32 256  ;;  %vm336_vm6 = vcmask 130048   ;;  %vm361_vm7 = vcmask 261120   ;;  %vm629_vm8 = vcmask 392192  }
   0xd   : > { %s1339_s17 = scalar_lea.vmem %s1851_s0, %s1257_s14  ;;  %vm1623_vm5 = vmand %vm242_vm3, %vm243_vm4  ;;  %vm991_vm9 = vcmask 1041409   ;;  %vm993_vm10 = vcmask 1043459   ;;  %vm995_vm11 = vcmask 1045509   ;;  %vm997_vm12 = vcmask 1047559  }
   0xe   : > { %v1342_v0 = vld [vmem:[%s1339_s17 + $0x8] sm:$0xf]  ;;  %v1345_v1 = vld [vmem:[%s1339_s17 + $0xc] sm:$0xf]  ;;  %v1352_v4 = vld [vmem:[%s1339_s17 + $0x4] sm:$0xf] }
   0xf   : > { %302 = vrot.lane.b32.xlu1 %v1342_v0, %s1299_s18  ;;  %v387_v2 = vunpack.c.l.b16 %v1342_v0  ;;  %v388_v3 = vunpack.c.l.b16 %v1345_v1  ;;  %v1355_v5 = vld [vmem:[%s1339_s17 + $0x10] sm:$0xf]  ;;  %v196_v6 = vshll.u32 %v1352_v4, 16  ;;  %v193_v11 = vshrl.u32 %v1352_v4, 16  ;;  %v1403_v29 = vld [vmem:[%s1339_s17] sm:$0xf] }
  0x10   : > { %v389_v7 = vunpack.c.l.b16 %v1355_v5  ;;  %v386_v28 = vunpack.c.l.b16 %v1352_v4  ;;  %v203_v30 = vshll.u32 %v1342_v0, 16  ;;  %v385_v32 = vunpack.c.l.b16 %v1403_v29  ;;  %v1420_v38 = vld [vmem:[%s1339_s17 + $0x14] sm:$0xf]  ;;  %v1433_v43 = vld [vmem:[%s1339_s17 + $0x18] sm:$0xf] }
  0x11   : > { %v1359_v8 = vpack.c.b16 %v387_v2, %v387_v2  ;;  %v1361_v9 = vpack.c.b16 %v388_v3, %v388_v3  ;;  %v257_v15 = vrot.slane %v196_v6, 1  ;;  %v200_v35 = vshrl.u32 %v1342_v0, 16  ;;  %v177_v58 = vld [vmem:[%s1339_s17 + $0x1c] sm:$0xf]  ;;  %s1190_s17 = sshll.u32 %s1860_s13, 1 }
  0x12   : > { %v1363_v10 = vpack.c.b16 %v389_v7, %v389_v7  ;;  %v1412_v34 = vpack.c.b16 %v386_v28, %v386_v28  ;;  %v259_v36 = vrot.slane %v203_v30, 1  ;;  %v1423_v39 = vpack.c.b16 %v385_v32, %v385_v32  ;;  %s168_s20 = scalar_lea.vmem %s1854_s3, %s1190_s17 }
  0x13   : > { %509 = vrot.lane.b32.xlu0 %v1359_v8, %s1299_s18  ;;  %v416_v12 = vshrl.u32 %v1359_v8, 16  ;;  %v419_v13 = vshll.u32 %v1359_v8, 16  ;;  %v426_v14 = vshll.u32 %v1361_v9, 16  ;;  %v258_v18 = vor.u32 %v257_v15, %v193_v11 }
  0x14   : > { %513 = vrot.lane.b32.xlu2 %v1363_v10, %s1299_s18  ;;  %v423_v20 = vshrl.u32 %v1361_v9, 16  ;;  %v433_v22 = vshll.u32 %v1363_v10, 16  ;;  %v430_v25 = vshrl.u32 %v1363_v10, 16  ;;  %v412_v40 = vshll.u32 %v1412_v34, 16 }
  0x15   : > { %v477_v16 = vrot.slane %v419_v13, 1  ;;  %v479_v21 = vrot.slane %v426_v14, 1  ;;  %v282_v24 = vsel %vm1377_vm2, %v258_v18, 0  ;;  %v260_v41 = vor.u32 %v259_v36, %v200_v35 }
  0x16   : > { %v481_v26 = vrot.slane %v433_v22, 1  ;;  %v405_v42 = vshll.u32 %v1423_v39, 16  ;;  %v390_v44 = vunpack.c.l.b16 %v1420_v38  ;;  %v409_v45 = vshrl.u32 %v1412_v34, 16 }
  0x17   : > { %v478_v19 = vor.u32 %v477_v16, %v416_v12  ;;  %v480_v27 = vor.u32 %v479_v21, %v423_v20  ;;  %v475_v46 = vrot.slane %v412_v40, 1  ;;  %v391_v47 = vunpack.c.l.b16 %v1433_v43 }
  0x18   : > { %v482_v31 = vor.u32 %v481_v26, %v430_v25  ;;  %v283_v48 = vsel %vm1377_vm2, %v260_v41, 0  ;;  %v402_v49 = vshrl.u32 %v1423_v39, 16  ;;  %v473_v50 = vrot.slane %v405_v42, 1 }
  0x19   : > { %v499_v23 = vsel %vm1377_vm2, %v478_v19, 0  ;;  %v500_v33 = vsel %vm1377_vm2, %v480_v27, 0  ;;  %v1445_v51 = vpack.c.b16 %v390_v44, %v390_v44  ;;  %v476_v52 = vor.u32 %v475_v46, %v409_v45 }
  0x1a   : > { %533 = vrot.lane.b32.xlu1 %v499_v23, %s1300_s19  ;;  %v501_v37 = vsel %vm1377_vm2, %v482_v31, 0  ;;  %v1452_v53 = vpack.c.b16 %v391_v47, %v391_v47  ;;  %v474_v54 = vor.u32 %v473_v50, %v402_v49  ;;  %v392_v62 = vunpack.c.l.b16 %v177_v58 }
  0x1b   : > { %511 = vrot.lane.b32.xlu0 %v1361_v9, %s1299_s18  ;;  %v440_v55 = vshll.u32 %v1445_v51, 16  ;;  %v498_v57 = vsel %vm1377_vm2, %v476_v52, 0  ;;  %v437_v60 = vshrl.u32 %v1445_v51, 16  ;;  %v210_v16 = vshll.u32 %v1345_v1, 16 }
  0x1c   : > { %324 = vrot.lane.b32.xlu2 %v282_v24, %s1300_s19  ;;  %v447_v56 = vshll.u32 %v1452_v53, 16  ;;  %v497_v59 = vsel %vm1377_vm2, %v474_v54, 0  ;;  %v444_v63 = vshrl.u32 %v1452_v53, 16  ;;  %v1473_v3 = vpack.c.b16 %v392_v62, %v392_v62 }
  0x1d   : > { %v483_v61 = vrot.slane %v440_v55, 1  ;;  %v207_v26 = vshrl.u32 %v1345_v1, 16  ;;  %v261_v27 = vrot.slane %v210_v16, 1  ;;  %v217_v32 = vshll.u32 %v1355_v5, 16 }
  0x1e   : > { %v485_v2 = vrot.slane %v447_v56, 1  ;;  %v454_v18 = vshll.u32 %v1473_v3, 16  ;;  %v451_v19 = vshrl.u32 %v1473_v3, 16  ;;  %v214_v36 = vshrl.u32 %v1355_v5, 16 }
  0x1f   : > { %v484_v7 = vor.u32 %v483_v61, %v437_v60  ;;  %v189_v44 = vshll.u32 %v1403_v29, 16  ;;  %v186_v47 = vshrl.u32 %v1403_v29, 16  ;;  %v1301_v50 = vmov 0  }
  0x20   : > { %v486_v15 = vor.u32 %v485_v2, %v444_v63  ;;  %v487_v21 = vrot.slane %v454_v18, 1  ;;  %v750_v52 = vunpack.c.l.b16 %v1301_v50  ;;  %v253_v61 = vrot.slane %v1301_v50, 1 }
  0x21   : > { %v502_v23 = vsel %vm1377_vm2, %v484_v7, 0  ;;  %vm1057_vm13 = vcmask 1047556   ;;  %vm1124_vm14 = vcmask 523264   ;;  %vm1126_vm15 = vcmask 785408  }
  0x22   : > { %535 = vrot.lane.b32.xlu1 %v500_v33, %s1300_s19  ;;  %v503_v24 = vsel %vm1377_vm2, %v486_v15, 0  ;;  %v488_v28 = vor.u32 %v487_v21, %v451_v19  ;;  %v262_v33 = vor.u32 %v261_v27, %v207_v26  ;;  %v280_v7 = vsel %vm1377_vm2, %v253_v61, 0  ;;  %v1261_v61 = vld [vmem:[%s1852_s1 + $0x18] sm:$0xff] }
  0x23   : > { %300 = vrot.lane.b32.xlu0 %v1352_v4, %s1299_s18 }
  0x24   : > { %537 = vrot.lane.b32.xlu2 %v501_v37, %s1300_s19  ;;  %v504_v31 = vsel %vm1377_vm2, %v488_v28, 0  ;;  %v263_v37 = vrot.slane %v217_v32, 1  ;;  %v284_v41 = vsel %vm1377_vm2, %v262_v33, 0  ;;  %v231_v28 = vshll.u32 %v1433_v43, 16 }
  0x26   : > { %v264_v46 = vor.u32 %v263_v37, %v214_v36  ;;  %v228_v37 = vshrl.u32 %v1433_v43, 16 }
  0x28   : > { %v285_v54 = vsel %vm1377_vm2, %v264_v46, 0 }
  0x2a   : > { %505 = vrot.lane.b32.xlu1 %v1423_v39, %s1299_s18  ;;  %v446_v39 = vrot.slane %v444_v63, 7 }
  0x2b   : > { %326 = vrot.lane.b32.xlu0 %v283_v48, %s1300_s19  ;;  %v255_v48 = vrot.slane %v189_v44, 1 }
  0x2c   : > { %507 = vrot.lane.b32.xlu2 %v1412_v34, %s1299_s18  ;;  %v439_v34 = vrot.slane %v437_v60, 7  ;;  %v449_v63 = vor.u32 %v447_v56, %v446_v39  ;;  %v453_v39 = vrot.slane %v451_v19, 7 }
  0x2d   : > { %v256_v58 = vor.u32 %v255_v48, %v186_v47 }
  0x2f   : > { %v281_v2 = vsel %vm1377_vm2, %v256_v58, 0 }
  0x32   : > { %531 = vrot.lane.b32.xlu1 %v498_v57, %s1300_s19  ;;  %v432_v57 = vrot.slane %v430_v25, 7 }
  0x33   : > { %529 = vrot.lane.b32.xlu0 %v497_v59, %s1300_s19  ;;  %v1530_v59 = vpack.c.b16 %v750_v52, %v750_v52  ;;  %v1263_v52 = vld [vmem:[%s1852_s1 + $0x28] sm:$0xff] }
  0x34   : > { %515 = vrot.lane.b32.xlu2 %v1445_v51, %s1299_s18  ;;  %v1538_v25 = vor.u32 %v433_v22, %v432_v57  ;;  %v224_v22 = vshll.u32 %v1420_v38, 16  ;;  %1267 = vmatpush.bf16.msra.mxu3 %v1263_v52  ;;  %v1262_v57 = vld [vmem:[%s1852_s1 + $0x20] sm:$0xff]  ;;  %v471_v51 = vsel %vm1623_vm5, 0, %v449_v63 }
  0x35   : > { %v756_v62 = vshll.u32 %v1530_v59, 16  ;;  %v753_v15 = vshrl.u32 %v1530_v59, 16  ;;  %647 = vmatpush.bf16.msra.mxu0 %v1263_v52 }
  0x36   : > { %v265_v27 = vrot.slane %v224_v22, 1 }
  0x37   : > { %v761_v21 = vrot.slane %v756_v62, 1 }
  0x38   : > { %1268 = vmatpush.bf16.msra.mxu3 %v1262_v57 }
  0x39   : > { %v762_v10 = vor.u32 %v761_v21, %v753_v15  ;;  %648 = vmatpush.bf16.msra.mxu0 %v1262_v57  ;;  %v1259_v21 = vld [vmem:[%s1852_s1 + $0x8] sm:$0xff] }
  0x3a   : > { %517 = vrot.lane.b32.xlu1 %v1452_v53, %s1299_s18 }
  0x3b   : > { %539 = vrot.lane.b32.xlu0 %v502_v23, %s1300_s19  ;;  %v764_v23 = vsel %vm1377_vm2, %v762_v10, 0 }
  0x3c   : > { %541 = vrot.lane.b32.xlu2 %v503_v24, %s1300_s19  ;;  %v221_v24 = vshrl.u32 %v1420_v38, 16  ;;  %1269 = vmatpush.bf16.msra.mxu3 %v1261_v61 }
  0x3d   : > { %649 = vmatpush.bf16.msra.mxu0 %v1261_v61  ;;  %v469_v61 = vsel %vm1623_vm5, 0, %v1538_v25 }
  0x3e   : > { %v266_v33 = vor.u32 %v265_v27, %v221_v24 }
  0x40   : > { %v286_v46 = vsel %vm1377_vm2, %v266_v33, 0 }
  0x42   : > { %306 = vrot.lane.b32.xlu1 %v1355_v5, %s1299_s18 }
  0x43   : > { %304 = vrot.lane.b32.xlu0 %v1345_v1, %s1299_s18 }
  0x44   : > { %328 = vrot.lane.b32.xlu2 %v284_v41, %s1300_s19  ;;  %v267_v41 = vrot.slane %v231_v28, 1 }
  0x4a   : > { %296 = vrot.lane.b32.xlu1 %v1301_v50, %s1299_s18 }
  0x4b   : > { %330 = vrot.lane.b32.xlu0 %v285_v54, %s1300_s19  ;;  %v1587_v54 = vld [vmem:[%s1852_s1 + $0x40] sm:$0xff] }
  0x4c   : > { %298 = vrot.lane.b32.xlu2 %v1403_v29, %s1299_s18  ;;  %1273 = vmatpush.bf16.msra.mxu2 %v1587_v54 }
  0x50   : > { %1274 = vmatpush.bf16.msra.mxu2 %v1596_v17 }
  0x52   : > { %322 = vrot.lane.b32.xlu1 %v281_v2, %s1300_s19  ;;  %v1605_v2 = vld [vmem:[%s1852_s1 + $0x30] sm:$0xff] }
  0x53   : > { %320 = vrot.lane.b32.xlu0 %v280_v7, %s1300_s19  ;;  %v1260_v7 = vld [vmem:[%s1852_s1 + $0x10] sm:$0xff] }
  0x54   : > { %519 = vrot.lane.b32.xlu2 %v1473_v3, %s1299_s18  ;;  %1275 = vmatpush.bf16.msra.mxu2 %v1605_v2 }
  0x55   : > { %1270 = vmatpush.bf16.msra.mxu1 %v1260_v7  ;;  %726 = vmatpush.bf16.msrb.mxu0 %v1260_v7 }
  0x59   : > { %1271 = vmatpush.bf16.msra.mxu1 %v1259_v21  ;;  %727 = vmatpush.bf16.msrb.mxu0 %v1259_v21 }
  0x5a   : > { %765 = vrot.lane.b32.xlu1 %v1530_v59, %s1299_s18  ;;  %v223_v59 = vrot.slane %v221_v24, 7 }
  0x5b   : > { %543 = vrot.lane.b32.xlu0 %v504_v31, %s1300_s19  ;;  %v268_v31 = vor.u32 %v267_v41, %v228_v37  ;;  %v418_v41 = vrot.slane %v416_v12, 7 }
  0x5c   : > { %768 = vrot.lane.b32.xlu2 %v764_v23, %s1300_s19  ;;  %v1258_v23 = vld [vmem:[%s1852_s1] sm:$0xff] }
  0x5d   : > { %v287_v48 = vsel %vm1377_vm2, %v268_v31, 0  ;;  %1272 = vmatpush.bf16.msra.mxu1 %v1258_v23  ;;  %728 = vmatpush.bf16.msrb.mxu0 %v1258_v23  ;;  %v425_v31 = vrot.slane %v423_v20, 7  ;;  %v195_v20 = vrot.slane %v193_v11, 7  ;;  %v202_v23 = vrot.slane %v200_v35, 7 }
  0x5f   : > { %v428_v12 = vor.u32 %v426_v14, %v425_v31  ;;  %v198_v14 = vor.u32 %v196_v6, %v195_v20  ;;  %v411_v6 = vrot.slane %v409_v45, 7 }
  0x61   : > { %v468_v25 = vsel %vm1623_vm5, 0, %v428_v12  ;;  %v247_v4 = vsel %vm1623_vm5, 0, %v198_v14 }
  0x62   : > { %310 = vrot.lane.b32.xlu1 %v1433_v43, %s1299_s18 }
  0x63   : > { %308 = vrot.lane.b32.xlu0 %v1420_v38, %s1299_s18 }
  0x64   : > { %332 = vrot.lane.b32.xlu2 %v286_v46, %s1300_s19 }
  0x6b   : > { %334 = vrot.lane.b32.xlu0 %v287_v48, %s1300_s19  ;;  %v421_v48 = vor.u32 %v419_v13, %v418_v41 }
  0x6d   : > { %v467_v8 = vsel %vm1623_vm5, 0, %v421_v48  ;;  %v205_v48 = vor.u32 %v203_v30, %v202_v23 }
  0x6e   : > { %v514_v58 = vpop.permute.xlu2 %513 }
  0x6f   : > { %v559_v21 = vsel %vm336_vm6, %v469_v61, %v514_v58  ;;  %v248_v20 = vsel %vm1623_vm5, 0, %v205_v48 }
  0x76   : > { %v325_v10 = vpop.permute.xlu2 %324 }
  0x7e   : > { %v538_v46 = vpop.permute.xlu2 %537 }
  0x7f   : > { %v1646_v41 = vsel %vm361_vm7, %v559_v21, %v538_v46  ;;  %v404_v46 = vrot.slane %v402_v49, 7  ;;  %v414_v21 = vor.u32 %v412_v40, %v411_v6 }
  0x81   : > { %v303_v27 = vpop.permute.xlu1 %302  ;;  %v407_v49 = vor.u32 %v405_v42, %v404_v46 }
  0x83   : > { %v465_v40 = vsel %vm1623_vm5, 0, %v407_v49 }
  0x85   : > { %v510_v33 = vpop.permute.xlu0 %509 }
  0x86   : > { %v508_v13 = vpop.permute.xlu2 %507  ;;  %v553_v9 = vsel %vm336_vm6, %v467_v8, %v510_v33  ;;  %v603_v33 = vunpack.c.l.b16 %v1646_v41 }
  0x8c   : > { %v534_v57 = vpop.permute.xlu1 %533 }
  0x8d   : > { %v512_v7 = vpop.permute.xlu0 %511  ;;  %v574_v11 = vsel %vm361_vm7, %v553_v9, %v534_v57 }
  0x8e   : > { %v556_v31 = vsel %vm336_vm6, %v468_v25, %v512_v7  ;;  %v601_v12 = vunpack.c.l.b16 %v574_v11  ;;  %v516_v7 = vpop.permute.xlu2 %515  ;;  %v348_v25 = vsel %vm336_vm6, %v248_v20, %v303_v27 }
  0x94   : > { %v536_v58 = vpop.permute.xlu1 %535 }
  0x95   : > { %v576_v35 = vsel %vm361_vm7, %v556_v31, %v536_v58  ;;  %v301_v61 = vpop.permute.xlu0 %300  ;;  %v466_v31 = vsel %vm1623_vm5, 0, %v414_v21 }
  0x96   : > { %v602_v8 = vunpack.c.l.b16 %v576_v35  ;;  %v345_v30 = vsel %vm336_vm6, %v247_v4, %v301_v61  ;;  %v550_v42 = vsel %vm336_vm6, %v466_v31, %v508_v13  ;;  %v542_v58 = vpop.permute.xlu2 %541  ;;  %v442_v35 = vor.u32 %v440_v55, %v439_v34 }
  0x97   : > { %v367_v45 = vsel %vm361_vm7, %v345_v30, %v325_v10 }
  0x98   : > { %v608_v57 = vpack.c.b16 %v602_v8, %v601_v12  ;;  %v784_v0 = vpack.c.b16 %v603_v33, %v602_v8  ;;  %v681_v11 = vunpack.c.l.b16 %v367_v45  ;;  %v470_v46 = vsel %vm1623_vm5, 0, %v442_v35 }
  0x99   : > { %v562_v55 = vsel %vm336_vm6, %v470_v46, %v516_v7  ;;  %v216_v7 = vrot.slane %v214_v36, 7  ;;  %v456_v35 = vor.u32 %v454_v18, %v453_v39 }
  0x9a   : > { %1204 = vmatmul.msk.bf16.vlgmr.msra.gmra.mxu3 %vm629_vm8, %v608_v57  ;;  %1236 = vmatmul.msk.bf16.vlgmr.msra.gmra.mxu2 %vm629_vm8, %v784_v0 }
  0x9b   : > { %v472_v63 = vsel %vm1623_vm5, 0, %v456_v35 }
  0x9c   : > { %v506_v23 = vpop.permute.xlu1 %505 }
  0x9d   : > { %v327_v9 = vpop.permute.xlu0 %326  ;;  %v547_v27 = vsel %vm336_vm6, %v465_v40, %v506_v23 }
  0x9e   : > { %v369_v14 = vsel %vm361_vm7, %v348_v25, %v327_v9  ;;  %v329_v30 = vpop.permute.xlu2 %328 }
  0x9f   : > { %v682_v41 = vunpack.c.l.b16 %v369_v14 }
  0xa1   : > { %v688_v10 = vpack.c.b16 %v682_v41, %v681_v11 }
  0xa3   : > { %1220 = vmatmul.msk.bf16.vlgmr.msra.gmra.mxu1 %vm629_vm8, %v688_v10 }
  0xa4   : > { %v532_v48 = vpop.permute.xlu1 %531 }
  0xa5   : > { %v572_v60 = vsel %vm361_vm7, %v550_v42, %v532_v48  ;;  %v530_v61 = vpop.permute.xlu0 %529 }
  0xa6   : > { %v600_v8 = vunpack.c.l.b16 %v572_v60  ;;  %v570_v4 = vsel %vm361_vm7, %v547_v27, %v530_v61 }
  0xa7   : > { %v599_v6 = vunpack.c.l.b16 %v570_v4 }
  0xa8   : > { %v1688_v13 = vpack.c.b16 %v601_v12, %v600_v8  ;;  %v209_v12 = vrot.slane %v207_v26, 7  ;;  %v219_v26 = vor.u32 %v217_v32, %v216_v7 }
  0xa9   : > { %v607_v57 = vpack.c.b16 %v600_v8, %v599_v6 }
  0xaa   : > { %v212_v25 = vor.u32 %v210_v16, %v209_v12  ;;  %v250_v1 = vsel %vm1623_vm5, 0, %v219_v26 }
  0xab   : > { %1203 = vmatmul.msk.bf16.vlgmr.msra.gmra.mxu0 %vm629_vm8, %v607_v57 }
  0xac   : > { %v518_v0 = vpop.permute.xlu1 %517  ;;  %822 = vmatpush.bf16.msra.mxu0 %v1587_v54  ;;  %v249_v36 = vsel %vm1623_vm5, 0, %v212_v25 }
  0xad   : > { %v565_v53 = vsel %vm336_vm6, %v471_v51, %v518_v0  ;;  %v540_v56 = vpop.permute.xlu0 %539 }
  0xae   : > { %v582_v20 = vsel %vm361_vm7, %v565_v53, %v542_v58  ;;  %v580_v21 = vsel %vm361_vm7, %v562_v55, %v540_v56 }
  0xaf   : > { %v605_v45 = vunpack.c.l.b16 %v582_v20  ;;  %v604_v23 = vunpack.c.l.b16 %v580_v21  ;;  %v226_v21 = vor.u32 %v224_v22, %v223_v59 }
  0xb0   : > { %823 = vmatpush.bf16.msra.mxu0 %v1596_v17  ;;  %v188_v17 = vrot.slane %v186_v47, 7 }
  0xb1   : > { %v609_v49 = vpack.c.b16 %v604_v23, %v603_v33  ;;  %v785_v54 = vpack.c.b16 %v605_v45, %v604_v23  ;;  %v299_v33 = vpop.permute.xlu2 %298  ;;  %v251_v7 = vsel %vm1623_vm5, 0, %v226_v21 }
  0xb2   : > { %v191_v5 = vor.u32 %v189_v44, %v188_v17 }
  0xb3   : > { %1205 = vmatmul.msk.bf16.gmra.mxu3 %vm629_vm8, %v609_v49  ;;  %1237 = vmatmul.msk.bf16.gmra.mxu2 %vm629_vm8, %v785_v54 }
  0xb4   : > { %v307_v9 = vpop.permute.xlu1 %306  ;;  %824 = vmatpush.bf16.msra.mxu0 %v1605_v2  ;;  %v181_v2 = vrot.slane %v1301_v50, 7  ;;  %v246_v40 = vsel %vm1623_vm5, 0, %v191_v5  ;;  %v755_v50 = vrot.slane %v753_v15, 7 }
  0xb5   : > { %v305_v14 = vpop.permute.xlu0 %304  ;;  %v354_v11 = vsel %vm336_vm6, %v250_v1, %v307_v9  ;;  %v342_v27 = vsel %vm336_vm6, %v246_v40, %v299_v33 }
  0xb6   : > { %v351_v16 = vsel %vm336_vm6, %v249_v36, %v305_v14  ;;  %v245_v29 = vsel %vm1623_vm5, 0, %v181_v2  ;;  %v758_v4 = vor.u32 %v756_v62, %v755_v50 }
  0xb7   : > { %v371_v32 = vsel %vm361_vm7, %v351_v16, %v329_v30  ;;  %v230_v30 = vrot.slane %v228_v37, 7 }
  0xb8   : > { %v683_v47 = vunpack.c.l.b16 %v371_v32  ;;  %v760_v46 = vsel %vm1623_vm5, 0, %v758_v4 }
  0xb9   : > { %v520_v42 = vpop.permute.xlu2 %519  ;;  %v233_v24 = vor.u32 %v231_v28, %v230_v30 }
  0xba   : > { %v568_v3 = vsel %vm336_vm6, %v472_v63, %v520_v42 }
  0xbb   : > { %v252_v49 = vsel %vm1623_vm5, 0, %v233_v24 }
  0xbc   : > { %v297_v41 = vpop.permute.xlu1 %296 }
  0xbd   : > { %v331_v31 = vpop.permute.xlu0 %330  ;;  %v339_v58 = vsel %vm336_vm6, %v245_v29, %v297_v41 }
  0xbe   : > { %v373_v34 = vsel %vm361_vm7, %v354_v11, %v331_v31 }
  0xbf   : > { %v684_v10 = vunpack.c.l.b16 %v373_v34 }
  0xc1   : > { %v689_v44 = vpack.c.b16 %v684_v10, %v683_v47  ;;  %v769_v18 = vpop.permute.xlu2 %768  ;;  %v1290_v47 = vld [vmem:[%s1853_s2] ss:$0 sm:$0xff] }
  0xc3   : > { %1221 = vmatmul.msk.bf16.gmra.mxu1 %vm629_vm8, %v689_v44 }
  0xc4   : > { %v323_v48 = vpop.permute.xlu1 %322 }
  0xc5   : > { %v365_v19 = vsel %vm361_vm7, %v342_v27, %v323_v48  ;;  %v321_v60 = vpop.permute.xlu0 %320 }
  0xc6   : > { %v680_v61 = vunpack.c.l.b16 %v365_v19  ;;  %v363_v8 = vsel %vm361_vm7, %v339_v58, %v321_v60 }
  0xc7   : > { %v679_v15 = vunpack.c.l.b16 %v363_v8 }
  0xc9   : > { %v687_v6 = vpack.c.b16 %v680_v61, %v679_v15  ;;  %v333_v54 = vpop.permute.xlu2 %332 }
  0xcb   : > { %1219 = vmatmul.msk.bf16.vlgmr.msrb.gmra.mxu0 %vm629_vm8, %v687_v6 }
  0xcc   : > { %v766_v57 = vpop.permute.xlu1 %765 }
  0xcd   : > { %v772_v51 = vsel %vm336_vm6, %v760_v46, %v766_v57  ;;  %v544_v55 = vpop.permute.xlu0 %543 }
  0xce   : > { %v774_v62 = vsel %vm361_vm7, %v772_v51, %v769_v18  ;;  %v584_v0 = vsel %vm361_vm7, %v568_v3, %v544_v55 }
  0xcf   : > { %v782_v53 = vunpack.c.l.b16 %v774_v62  ;;  %v606_v56 = vunpack.c.l.b16 %v584_v0 }
  0xd1   : > { %v610_v12 = vpack.c.b16 %v606_v56, %v605_v45  ;;  %v786_v20 = vpack.c.b16 %v782_v53, %v606_v56 }
  0xd3   : > { %1206 = vmatmul.msk.bf16.gmra.mxu3 %vm629_vm8, %v610_v12  ;;  %1238 = vmatmul.msk.bf16.gmra.mxu2 %vm629_vm8, %v786_v20 }
  0xd4   : > { %v311_v37 = vpop.permute.xlu1 %310 }
  0xd5   : > { %v309_v23 = vpop.permute.xlu0 %308  ;;  %v360_v38 = vsel %vm336_vm6, %v252_v49, %v311_v37 }
  0xd6   : > { %v357_v45 = vsel %vm336_vm6, %v251_v7, %v309_v23 }
  0xd7   : > { %v375_v22 = vsel %vm361_vm7, %v357_v45, %v333_v54 }
  0xd8   : > { %v685_v25 = vunpack.c.l.b16 %v375_v22 }
  0xdb   : > { %1235 = vmatmul.msk.bf16.vlgmr.msra.gmra.mxu0 %vm629_vm8, %v1688_v13 }
  0xdd   : > { %v335_v43 = vpop.permute.xlu0 %334 }
  0xde   : > { %v377_v28 = vsel %vm361_vm7, %v360_v38, %v335_v43 }
  0xdf   : > { %v686_v26 = vunpack.c.l.b16 %v377_v28 }
  0xe1   : > { %v690_v9 = vpack.c.b16 %v686_v26, %v685_v25 }
  0xe3   : > { %1222 = vmatmul.msk.bf16.gmra.mxu1 %vm629_vm8, %v690_v9 }
 0x11d   : > { %v656_v36 = vpop.f32.mrf.mxu3  ;;  %v831_v17 = vpop.f32.mrf.mxu2 }
 0x120   : > { %v735_v52 = vpop.f32.mrf.mxu1 }
 0x121   : > { %v736_v5 = vadd.f32 %v735_v52, %v656_v36 }
 0x123   : > { %v848_v34 = vadd.f32 %v831_v17, %v736_v5 }
 0x125   : > { %v658_v16 = vpop.f32.mrf.mxu3  ;;  %v833_v13 = vpop.f32.mrf.mxu2  ;;  %v860_v39 = vadd.f32 %v1290_v47, %v848_v34  ;;  %v1302_v34 = vmov 1934713408  }
 0x127   : > { %v868_v50 = vmax.f32 %v860_v39, 0.0 }
 0x128   : > { %v651_v14 = vpop.f32.mrf.mxu0  ;;  %v737_v33 = vpop.f32.mrf.mxu1 }
 0x129   : > { %v738_v11 = vadd.f32 %v737_v33, %v658_v16 }
 0x12b   : > { %v849_v41 = vadd.f32 %v833_v13, %v738_v11 }
 0x12d   : > { %v861_v40 = vadd.f32 %v1290_v47, %v849_v41 }
 0x12f   : > { %v869_v44 = vmax.f32 %v861_v40, 0.0  ;;  %v1060_v40 = vunpack.c.l.s4 %v1302_v34 }
 0x130   : > { %v653_v1 = vpop.f32.mrf.mxu0 }
 0x131   : > { %v1775_v48 = vmax.f32 %v868_v50, %v869_v44 }
 0x133   : > { %v885_v8 = vrot.slane %v1775_v48, 2  ;;  %v1243_v12 = vrot.slane %v1775_v48, 9 }
 0x135   : > { %v1244_v6 = vrot.slane %v885_v8, 9  ;;  %v958_v37 = vmax.f32 %v1775_v48, %v1243_v12 }
 0x136   : > { %v661_v31 = vpop.f32.mrf.mxu3  ;;  %v836_v10 = vpop.f32.mrf.mxu2 }
 0x137   : > { %v959_v62 = vmax.f32 %v885_v8, %v1244_v6 }
 0x139   : > { %v1008_v23 = vrot.slane %v959_v62, 7  ;;  %v886_v62 = vrot.slane %v1775_v48, 4 }
 0x13b   : > { %v1009_v43 = vsel %vm991_vm9, %v1008_v23, %v958_v37  ;;  %v1245_v37 = vrot.slane %v886_v62, 9 }
 0x13c   : > { %v1010_v36 = vsel %vm993_vm10, %v1008_v23, %v1009_v43 }
 0x13e   : > { %v663_v27 = vpop.f32.mrf.mxu3  ;;  %v838_v19 = vpop.f32.mrf.mxu2 }
 0x140   : > { %v740_v32 = vpop.f32.mrf.mxu1 }
 0x141   : > { %v741_v35 = vadd.f32 %v740_v32, %v661_v31  ;;  %v1011_v32 = vsel %vm995_vm11, %v1008_v23, %v1010_v36  ;;  %v960_v36 = vmax.f32 %v886_v62, %v1245_v37 }
 0x143   : > { %v850_v4 = vadd.f32 %v836_v10, %v741_v35 }
 0x145   : > { %v862_v3 = vadd.f32 %v1290_v47, %v850_v4 }
 0x147   : > { %v870_v30 = vmax.f32 %v862_v3, 0.0 }
 0x148   : > { %v730_v2 = vpop.f32.mrf.mxu0  ;;  %v742_v42 = vpop.f32.mrf.mxu1 }
 0x149   : > { %v743_v58 = vadd.f32 %v742_v42, %v663_v27  ;;  %v731_v15 = vadd.f32 %v730_v2, %v651_v14  ;;  %v887_v42 = vrot.slane %v1775_v48, 6 }
 0x14b   : > { %v851_v60 = vadd.f32 %v838_v19, %v743_v58  ;;  %v1797_v19 = vunpack.c.0.s8 %v1060_v40 }
 0x14d   : > { %v863_v63 = vadd.f32 %v1290_v47, %v851_v60 }
 0x14f   : > { %v871_v51 = vmax.f32 %v863_v63, 0.0 }
 0x150   : > { %v732_v29 = vpop.f32.mrf.mxu0 }
 0x151   : > { %v733_v18 = vadd.f32 %v732_v29, %v653_v1  ;;  %v1779_v21 = vmax.f32 %v870_v30, %v871_v51 }
 0x153   : > { %v888_v54 = vrot.slane %v1779_v21, 2  ;;  %v1247_v39 = vrot.slane %v1779_v21, 9  ;;  %v890_v3 = vrot.slane %v1779_v21, 6  ;;  %v889_v48 = vrot.slane %v1779_v21, 4 }
 0x155   : > { %v1248_v17 = vrot.slane %v888_v54, 9  ;;  %v962_v4 = vmax.f32 %v1779_v21, %v1247_v39 }
 0x156   : > { %v666_v57 = vpop.f32.mrf.mxu3  ;;  %v841_v0 = vpop.f32.mrf.mxu2 }
 0x157   : > { %v963_v2 = vmax.f32 %v888_v54, %v1248_v17 }
 0x158   : > { %v826_v61 = vpop.f32.mrf.mxu0 }
 0x159   : > { %v846_v46 = vadd.f32 %v826_v61, %v731_v15  ;;  %v1022_v27 = vrot.slane %v963_v2, 7 }
 0x15b   : > { %v858_v53 = vadd.f32 %v1290_v47, %v846_v46  ;;  %v1246_v46 = vrot.slane %v887_v42, 9 }
 0x15d   : > { %v866_v7 = vmax.f32 %v858_v53, 0.0  ;;  %v961_v12 = vmax.f32 %v887_v42, %v1246_v46 }
 0x15e   : > { %v668_v28 = vpop.f32.mrf.mxu3  ;;  %v843_v9 = vpop.f32.mrf.mxu2 }
 0x160   : > { %v745_v55 = vpop.f32.mrf.mxu1  ;;  %v828_v59 = vpop.f32.mrf.mxu0 }
 0x161   : > { %v847_v56 = vadd.f32 %v828_v59, %v733_v18  ;;  %v746_v24 = vadd.f32 %v745_v55, %v666_v57  ;;  %v1023_v57 = vsel %vm991_vm9, %v1022_v27, %v962_v4 }
 0x163   : > { %v859_v20 = vadd.f32 %v1290_v47, %v847_v56  ;;  %v852_v38 = vadd.f32 %v841_v0, %v746_v24 }
 0x165   : > { %v867_v49 = vmax.f32 %v859_v20, 0.0  ;;  %v864_v33 = vadd.f32 %v1290_v47, %v852_v38  ;;  %v1024_v20 = vsel %vm993_vm10, %v1022_v27, %v1023_v57 }
 0x166   : > { %v1025_v43 = vsel %vm995_vm11, %v1022_v27, %v1024_v20 }
 0x167   : > { %v1782_v45 = vmax.f32 %v866_v7, %v867_v49  ;;  %v872_v41 = vmax.f32 %v864_v33, 0.0  ;;  %v1026_v33 = vsel %vm997_vm12, %v1022_v27, %v1025_v43 }
 0x168   : > { %v747_v22 = vpop.f32.mrf.mxu1 }
 0x169   : > { %v882_v25 = vrot.slane %v1782_v45, 2  ;;  %v748_v26 = vadd.f32 %v747_v22, %v668_v28  ;;  %v1239_v52 = vrot.slane %v1782_v45, 9  ;;  %v884_v60 = vrot.slane %v1782_v45, 6 }
 0x16a   : > { %v883_v24 = vrot.slane %v1782_v45, 4 }
 0x16b   : > { %v1240_v14 = vrot.slane %v882_v25, 9  ;;  %v853_v1 = vadd.f32 %v843_v9, %v748_v26  ;;  %v954_v11 = vmax.f32 %v1782_v45, %v1239_v52  ;;  %v1242_v0 = vrot.slane %v884_v60, 9 }
 0x16c   : > { %v1241_v26 = vrot.slane %v883_v24, 9 }
 0x16d   : > { %v955_v16 = vmax.f32 %v882_v25, %v1240_v14  ;;  %v865_v13 = vadd.f32 %v1290_v47, %v853_v1  ;;  %v1012_v47 = vsel %vm997_vm12, %v1008_v23, %v1011_v32  ;;  %v1250_v23 = vrot.slane %v890_v3, 9 }
 0x16e   : > { %v1056_v8 = vrot.slane %v1012_v47, 4  ;;  %v957_v54 = vmax.f32 %v884_v60, %v1242_v0  ;;  %v1015_v25 = vrot.slane %v961_v12, 7  ;;  %v1249_v1 = vrot.slane %v889_v48, 9 }
 0x16f   : > { %v990_v5 = vrot.slane %v955_v16, 7  ;;  %v873_v31 = vmax.f32 %v865_v13, 0.0  ;;  %v965_v45 = vmax.f32 %v890_v3, %v1250_v23 }
 0x170   : > { %v1001_v17 = vrot.slane %v957_v54, 7  ;;  %v1016_v13 = vsel %vm991_vm9, %v1015_v25, %v960_v36  ;;  %v964_v34 = vmax.f32 %v889_v48, %v1249_v1 }
 0x171   : > { %v992_v10 = vsel %vm991_vm9, %v990_v5, %v954_v11  ;;  %v877_v44 = vmax.f32 %v872_v41, %v873_v31  ;;  %v956_v11 = vmax.f32 %v883_v24, %v1241_v26  ;;  %v1029_v32 = vrot.slane %v965_v45, 7 }
 0x172   : > { %v994_v29 = vsel %vm993_vm10, %v990_v5, %v992_v10  ;;  %v1017_v31 = vsel %vm993_vm10, %v1015_v25, %v1016_v13 }
 0x173   : > { %v996_v50 = vsel %vm995_vm11, %v990_v5, %v994_v29  ;;  %v891_v58 = vrot.slane %v877_v44, 2  ;;  %v893_v35 = vrot.slane %v877_v44, 6  ;;  %v1251_v15 = vrot.slane %v877_v44, 9 }
 0x174   : > { %v998_v61 = vsel %vm997_vm12, %v990_v5, %v996_v50  ;;  %v892_v51 = vrot.slane %v877_v44, 4  ;;  %v1002_v2 = vsel %vm991_vm9, %v1001_v17, %v956_v11  ;;  %v1030_v40 = vsel %vm991_vm9, %v1029_v32, %v964_v34 }
 0x175   : > { %v1252_v63 = vrot.slane %v891_v58, 9  ;;  %v1254_v6 = vrot.slane %v893_v35, 9  ;;  %v1058_v18 = vsel %vm1057_vm13, %v1056_v8, %v998_v61  ;;  %v966_v53 = vmax.f32 %v877_v44, %v1251_v15 }
 0x176   : > { %v1062_v59 = vperm.slane %v1058_v18, %v1797_v19  ;;  %v1253_v7 = vrot.slane %v892_v51, 9  ;;  %v1003_v10 = vsel %vm993_vm10, %v1001_v17, %v1002_v2  ;;  %v1018_v44 = vsel %vm995_vm11, %v1015_v25, %v1017_v31 }
 0x177   : > { %v967_v55 = vmax.f32 %v891_v58, %v1252_v63  ;;  %v969_v56 = vmax.f32 %v893_v35, %v1254_v6  ;;  %v1004_v42 = vsel %vm995_vm11, %v1001_v17, %v1003_v10  ;;  %v1031_v50 = vsel %vm993_vm10, %v1029_v32, %v1030_v40 }
 0x178   : > { %1091 = vst [vmem:[#allocation1] ss:$4 sm:$0xff] %v1062_v59  ;;  %v968_v52 = vmax.f32 %v892_v51, %v1253_v7  ;;  %v1063_v29 = vrot.slane %v1062_v59, 4  ;;  %v1019_v58 = vsel %vm997_vm12, %v1015_v25, %v1018_v44  ;;  %v1005_v8 = vsel %vm997_vm12, %v1001_v17, %v1004_v42 }
 0x179   : > { %v1036_v30 = vrot.slane %v967_v55, 7  ;;  %v1043_v22 = vrot.slane %v969_v56, 7  ;;  %v1032_v4 = vsel %vm995_vm11, %v1029_v32, %v1031_v50  ;;  %v1073_v63 = vrot.slane %v1019_v58, 4 }
 0x17a   : > { %v1064_v35 = vsel %vm1057_vm13, 0.0, %v1063_v29  ;;  %v1033_v6 = vsel %vm997_vm12, %v1029_v32, %v1032_v4 }
 0x17b   : > { %v1037_v49 = vsel %vm991_vm9, %v1036_v30, %v966_v53  ;;  %v1044_v16 = vsel %vm991_vm9, %v1043_v22, %v968_v52  ;;  %v1074_v46 = vsel %vm1057_vm13, %v1073_v63, %v1005_v8 }
 0x17c   : > { %v1038_v38 = vsel %vm993_vm10, %v1036_v30, %v1037_v49  ;;  %v1045_v41 = vsel %vm993_vm10, %v1043_v22, %v1044_v16  ;;  %v1078_v18 = vperm.slane %v1074_v46, %v1797_v19 }
 0x17d   : > { %v1039_v28 = vsel %vm995_vm11, %v1036_v30, %v1038_v38  ;;  %v1046_v39 = vsel %vm995_vm11, %v1043_v22, %v1045_v41 }
 0x17e   : > { %v1040_v9 = vsel %vm997_vm12, %v1036_v30, %v1039_v28  ;;  %v1047_v27 = vsel %vm997_vm12, %v1043_v22, %v1046_v39  ;;  %v1079_v55 = vrot.slane %v1078_v18, 4 }
 0x17f   : > { %v1065_v14 = vrot.slane %v1040_v9, 4  ;;  %v1081_v15 = vrot.slane %v1047_v27, 4 }
 0x180   : > { %v1080_v62 = vsel %vm1057_vm13, 0.0, %v1079_v55 }
 0x181   : > { %v1066_v21 = vsel %vm1057_vm13, %v1065_v14, %v1026_v33  ;;  %v1082_v3 = vsel %vm1057_vm13, %v1081_v15, %v1033_v6 }
 0x182   : > { %v1070_v5 = vperm.slane %v1066_v21, %v1797_v19  ;;  %v1086_v57 = vperm.slane %v1082_v3, %v1797_v19 }
 0x184   : > { %1093 = vst [vmem:[#allocation1 + $0x1] ss:$4 sm:$0xff] %v1070_v5  ;;  %v1071_v47 = vrot.slane %v1070_v5, 4  ;;  %v1087_v59 = vrot.slane %v1086_v57, 4 }
 0x186   : > { %v1072_v61 = vsel %vm1057_vm13, 0.0, %v1071_v47  ;;  %v1088_v53 = vsel %vm1057_vm13, 0.0, %v1087_v59 }
 0x18b   : > { %v1094_v60 = vld.sshfl [vmem:[#allocation1] sm:$0xff pattern:$0x73625140] }
 0x18c   : > { %1098 = vst [vmem:[#allocation1] ss:$4 sm:$0xff] %v1064_v35 }
 0x18d   : > { %1100 = vst [vmem:[#allocation1 + $0x1] ss:$4 sm:$0xff] %v1072_v61 }
 0x194   : > { %v1101_v51 = vld.sshfl [vmem:[#allocation1] sm:$0xff pattern:$0x73625140] }
 0x195   : > { %1102 = vrot.lane.b32.xlu1 %v1101_v51, %s1300_s19  ;;  %1107 = vst [vmem:[#allocation1] ss:$4 sm:$0xff] %v1078_v18 }
 0x196   : > { %1109 = vst [vmem:[#allocation1 + $0x1] ss:$4 sm:$0xff] %v1086_v57 }
 0x19d   : > { %v1110_v0 = vld.sshfl [vmem:[#allocation1] sm:$0xff pattern:$0x73625140] }
 0x19e   : > { %1111 = vrot.lane.b32.xlu2 %v1110_v0, %s1303_s15  ;;  %1116 = vst [vmem:[#allocation1] ss:$4 sm:$0xff] %v1080_v62 }
 0x19f   : > { %1118 = vst [vmem:[#allocation1 + $0x1] ss:$4 sm:$0xff] %v1088_v53 }
 0x1a6   : > { %v1119_v56 = vld.sshfl [vmem:[#allocation1] sm:$0xff pattern:$0x73625140] }
 0x1a7   : > { %1120 = vrot.lane.b32.xlu0 %v1119_v56, %s1304_s16 }
 0x1f8   : > { %v1112_v12 = vpop.permute.xlu2 %1111 }
 0x207   : > { %v1103_v19 = vpop.permute.xlu1 %1102 }
 0x208   : > { %v1123_v30 = vsel %vm361_vm7, %v1094_v60, %v1103_v19 }
 0x209   : > { %v1125_v20 = vsel %vm1124_vm14, %v1123_v30, %v1112_v12 }
 0x219   : > { %v1121_v24 = vpop.permute.xlu0 %1120 }
 0x21a   : > { %v1127_v23 = vsel %vm1126_vm15, %v1125_v20, %v1121_v24 }
 0x21b   : > { %v1128_v7 = vpack.c.bf16 %v1127_v23, %v1127_v23 }
 0x21d   : > { %1129 = vst [vmem:[%s168_s20] sm:$0x3] %v1128_v7 }
 0x21e PF: > { %s13_s12 = sadd.s32 1, %s1297_s12  }
 0x21f   : > { %p10_p4 = scmp.ge.s32.totalorder %s13_s12, 4  }
 0x221   :  { %12 = sbr.rel (!%p10_p4) target bundleno = 1 (0x1), region = 66 }

// kernel: mycnn_forward.3
= control target key start
LH: loop header
LB: loop body
LE: loop exit
PB: predicated region body
PF: predicated region fallthrough
CT: control target
= control target key end

     0   :  { %8 = vsyncpa [#allocation3], 0  ;;  %s10772_s0 = inlined_call_operand.hbm [shape: f32[2,16,16], index: 0, kind: input, shape index: {}]   ;;  %s10773_s1 = inlined_call_operand.hbm [shape: f32[9,16], index: 1, kind: input, shape index: {}]   ;;  %s10774_s2 = inlined_call_operand.hbm [shape: f32[1,16], index: 2, kind: input, shape index: {}]   ;;  %s10775_s3 = inlined_call_operand.vmem [shape: bf16[2,8,128], index: 3, kind: output, shape index: {}]  }
   0x1   :  { %10 = vsyncpa [#allocation3 + $0x1], 0 }
   0x2   :  { %11 = vsyncpa [#allocation4], 0 }
   0x3   :  { %12 = vsyncpa [#allocation7], 0  ;;  %s6728_s12 = smov 0   ;;  %s6730_s13 = smov 0  }
   0x4   :  { %s6732_s14 = smov 0   ;;  %s6734_s15 = smov 0  }
   0x5 LB: > { %s6747_s16 = sadd.s32 4294967295, %s6692_s15   ;;  %p38_p0 = scmp.ne.s32.totalorder %s6684_s13, %s6680_s12  ;;  %s6692_s15 = sphi %s6734_s15, %s11692_s15   ;;  %s6688_s14 = sphi %s6732_s14, %s11691_s14   ;;  %s6684_s13 = sphi %s6730_s13, %s11690_s13   ;;  %s6680_s12 = sphi %s6728_s12, %s11689_s12  }
   0x6   : > { %p39_p1 = scmp.eq.s32.totalorder %s6747_s16, 0  ;;  %p6074_p2 = scmp.ge.s32.totalorder %s6692_s15, 1 }
   0x7   : > { %p117_p3 = scmp.lt.s32.totalorder %s6692_s15, 3  ;;  %s128_s20 = sshll.u32 %s10773_s1, 4  ;;  %s129_s20 = int_to_ptr.hbm [resolvable:$true] %s128_s20 }
   0x8   : > { %p6755_p4 = por %p39_p1, %p38_p0  ;;  %s141_s24 = sshll.u32 %s10774_s2, 4  ;;  %s142_s24 = int_to_ptr.hbm [resolvable:$true] %s141_s24 }
   0x9   : > { %p6762_p5 = pnand %p6074_p2, %p117_p3  ;;  %s6694_s25 = smov [#allocation6]  }
   0xa   : > { %s143_s26 = sshll.u32 %s6694_s25, 4  ;;  %s6695_s27 = smov [#allocation5]   ;;  %s144_s26 = int_to_ptr.vmem [resolvable:$true] %s143_s26 }
   0xb   : > { %p6306_p6 = pneg %p6762_p5  ;;  %s6696_s28 = smov 128  }
   0xc   : > { %s6697_s29 = smov 8   ;;  %s6777_s30 = sadd.s32 1, %s6692_s15  }
   0xd   : > { %p6307_p7 = pnand %p6306_p6, %p39_p1  ;;  %s25_s4 = sadd.s32 1, %s6688_s14 }
   0xe   : > { %s22_s5 = ssub.s32 %s6692_s15, %s6777_s30  ;;  %p32_p8 = scmp.ne.s32.totalorder %s6688_s14, %s6684_s13 }
   0xf   : > { %6309 = dma.hbm_to_smem (!%p6307_p7), %s129_s20, 256, %s6695_s27, [#allocation4], %s6696_s28, %s6696_s28, %s6697_s29  }
  0x10   : > { %6312 = dma.hbm_to_vmem [thread:$0]  (!%p6307_p7), %s142_s24, 16, %s144_s26, [#allocation7]  }
  0x11   : > { %p23_p9 = scmp.eq.s32.totalorder %s22_s5, 0  ;;  %p33_p10 = scmp.eq.s32.totalorder %s6692_s15, 0 }
  0x12   : > { %s154_s6 = sand.u32 1, %s6688_s14   ;;  %p6319_p12 = scmp.lt.s32.totalorder %s6692_s15, 2 }
  0x13   : > { %s6787_s7 = scalar_select %p23_p9, %s6688_s14, %s25_s4  }
  0x14   : > { %p34_p11 = por %p33_p10, %p32_p8  ;;  %s6078_s8 = sshll.u32 %s154_s6, 4 }
  0x15   : > { %s6295_s9 = sshll.u32 %s6692_s15, 4  ;;  %s158_s19 = scalar_lea.vmem [#allocation2], %s6078_s8 }
  0x16   : > { %s163_s12 = scalar_lea.hbm %s10772_s0, %s6295_s9  ;;  %s166_s20 = sshll.u32 %s158_s19, 4  ;;  %s167_s20 = int_to_ptr.vmem [resolvable:$true] %s166_s20 }
  0x17   : > { %s164_s18 = sshll.u32 %s163_s12, 4  ;;  %p6794_p13 = pnand %p6319_p12, %p34_p11  ;;  %s165_s18 = int_to_ptr.hbm [resolvable:$true] %s164_s18 }
  0x18   : > { %s155_s23 = scalar_lea.sflag [#allocation3], %s154_s6  ;;  %s6620_s24 = sshra.s32 %s165_s18, 4  ;;  %s6621_s24 = int_to_ptr.hbm [resolvable:$true] %s6620_s24 }
  0x19   : > { %s6622_s25 = scalar_lea.hbm %s6621_s24, 16  ;;  %p6624_p2 = pneg %p6794_p13 }
  0x1a   : > { %p6623_p0 = scmp.ne.s32.totalorder %s6621_s24, %s6622_s25  ;;  %s6627_s27 = scalar_lea.hbm %s10772_s0, 32 }
  0x1b   : > { %p6628_p7 = scmp.lt.s32.totalorder %s6621_s24, %s10772_s0  ;;  %p6629_p8 = scmp.lt.s32.totalorder %s6627_s27, %s6622_s25 }
  0x1c   : > { %p6625_p3 = pnand %p6624_p2, %p6623_p0 }
  0x1d   : > { %p6630_p9 = por %p6629_p8, %p6628_p7 }
  0x1e   : > { %p6626_p6 = pneg %p6625_p3 }
  0x20   : > { %p6631_p10 = pnand %p6630_p9, %p6626_p6 }
  0x22   : > { %6634 = shalt.err (!%p6631_p10)
}
  0x23   : > { %6316 = dma.hbm_to_vmem [thread:$0]  (!%p6794_p13), %s165_s18, 256, %s167_s20, %s155_s23, %s6696_s28, %s6696_s28, %s6697_s29  }
  0x24   : > { %178 = sbr.rel (%p6762_p5) target bundleno = 2921 (0xb69), region = 32 }
  0x29   : > { %s180_s6 = sand.u32 1, %s6684_s13  }
  0x2a   : > { %s6082_s8 = sshll.u32 %s180_s6, 4  ;;  %s181_s9 = scalar_lea.sflag [#allocation3], %s180_s6 }
  0x2b   : > { %s6814_s10 = scalar_lea.vmem [#allocation2], %s6082_s8 }
  0x2c   : > { %6667 = dma.done.wait (%p6755_p4), %s181_s9, 256  }
  0x2d   : > { %6669 = vsyncadd (%p6755_p4), %s181_s9, 4294967040 }
  0x2e   : > { %6671 = dma.done.wait (%p39_p1), [#allocation4], 256  }
  0x2f   : > { %6673 = vsyncadd (%p39_p1), [#allocation4], 4294967040 }
  0x30   : > { %6675 = dma.done.wait (%p39_p1), [#allocation7], 16  }
  0x31   : > { %6677 = vsyncadd (%p39_p1), [#allocation7], 4294967280 }
  0x32   : > { %200 = sfence }
  0x33   : > { %v6829_v0 = vld [vmem:[%s6814_s10] sm:$0xff]  ;;  %vm226_vm0 = vcmask 1040384   ;;  %s6698_s17 = smov 1   ;;  %v6834_v2 = vld [vmem:[%s6814_s10 + $0x8] sm:$0xff]  ;;  %s6699_s21 = smov 127   ;;  %vm268_vm1 = vcmask 1046528   ;;  %v1125_v10 = vlaneseq }
  0x34   : > { %v227_v1 = vrot.slane %v6829_v0, 7  ;;  %252 = vrot.lane.b32.xlu2 %v6829_v0, %s6698_s17  ;;  %v228_v4 = vrot.slane %v6834_v2, 7  ;;  %v269_v6 = vrot.slane %v6829_v0, 1  ;;  %v270_v7 = vrot.slane %v6834_v2, 1  ;;  %s6865_s28 = sld [smem:[#allocation5]]  ;;  %p218_p1 = scmp.lt.s32.totalorder %s6747_s16, 1 }
  0x35   : > { %v6858_v11 = vshrl.u32 %v1125_v10, 7  ;;  %s6868_s29 = sld [smem:[#allocation5 + $0x80]]  ;;  %vm240_vm2 = vcmask 7168   ;;  %vm249_vm3 = vcmask 121856   ;;  %vm4484_vm4 = vcmask 15360  }
  0x36   : > { %v6836_v3 = vsel %vm226_vm0, 0.0, %v227_v1  ;;  %v6841_v5 = vsel %vm226_vm0, %v227_v1, %v228_v4  ;;  %v6848_v8 = vsel %vm268_vm1, %v269_v6, %v270_v7  ;;  %v6853_v9 = vsel %vm268_vm1, %v270_v7, 0.0  ;;  %s6870_s11 = sld [smem:[#allocation5 + $0x100]]  ;;  %s11694_s16 = smov (!%p218_p1, %s6747_s16), 1 }
  0x37   : > { %243 = vrot.lane.b32.xlu1 %v6836_v3, %s6699_s21  ;;  %234 = vrot.lane.b32.xlu0 %v6836_v3, %s6698_s17  ;;  %v6863_v12 = vadd.s32 8, %v6858_v11  ;;  %s6874_s12 = sld [smem:[#allocation5 + $0x180]]  ;;  %vm4517_vm5 = vcmask 23552   ;;  %vm4550_vm6 = vcmask 31744   ;;  %vm4583_vm7 = vcmask 39936  }
  0x38   : > { %6370 = vset.pattern.permute.xlu2 %v6858_v11  ;;  %6368 = vset.pattern.permute.xlu0 %v6858_v11  ;;  %s6881_s18 = sld [smem:[#allocation5 + $0x200]]  ;;  %vm4616_vm8 = vcmask 48128   ;;  %vm4649_vm9 = vcmask 56320   ;;  %vm4682_vm10 = vcmask 64512   ;;  %vm4715_vm11 = vcmask 72704  }
  0x39   : > { %6369 = vset.pattern.permute.xlu1 %v6863_v12  ;;  %s6887_s19 = sld [smem:[#allocation5 + $0x280]]  ;;  %vm4748_vm12 = vcmask 80896   ;;  %vm4781_vm13 = vcmask 89088   ;;  %vm4814_vm14 = vcmask 97280   ;;  %vm4847_vm15 = vcmask 105472  }
  0x3a   : > { %v293_v14 = vstv %s6865_s28  ;;  %s6893_s20 = sld [smem:[#allocation5 + $0x300]]  ;;  %vm4880_vm0 = vcmask 113664   ;;  %vm5466_vm1 = vcmask 1041409  }
  0x3b   : > { %v297_v15 = vstv %s6868_s29  ;;  %s6901_s22 = sld [smem:[#allocation5 + $0x380]] }
  0x3c   : > { %254 = vrot.lane.b32.xlu2 %v6834_v2, %s6698_s17  ;;  %v298_v21 = vmul.f32 %v297_v15, %v6836_v3  ;;  %v303_v23 = vstv %s6870_s11  ;;  %v299_v36 = vmul.f32 %v297_v15, %v6841_v5  ;;  %s6911_s23 = sld [smem:[#allocation5 + $0x400]] }
  0x3d   : > { %v309_v26 = vstv %s6874_s12  ;;  %s6926_s24 = sld [smem:[#allocation5 + $0x1]] }
  0x3e   : > { %v315_v33 = vstv %s6881_s18  ;;  %s6928_s25 = sld [smem:[#allocation5 + $0x81]] }
  0x3f   : > { %245 = vrot.lane.b32.xlu1 %v6841_v5, %s6699_s21  ;;  %236 = vrot.lane.b32.xlu0 %v6841_v5, %s6698_s17  ;;  %v316_v38 = vmul.f32 %v315_v33, %v6829_v0  ;;  %v321_v40 = vstv %s6887_s19  ;;  %v317_v63 = vmul.f32 %v315_v33, %v6834_v2  ;;  %s6941_s15 = sld [smem:[#allocation5 + $0x101]] }
  0x40   : > { %v327_v41 = vstv %s6893_s20  ;;  %s6943_s26 = sld [smem:[#allocation5 + $0x181]] }
  0x41   : > { %v333_v51 = vstv %s6901_s22  ;;  %s6958_s27 = sld [smem:[#allocation5 + $0x201]] }
  0x42   : > { %v334_v57 = vmul.f32 %v333_v51, %v6848_v8  ;;  %v339_v58 = vstv %s6911_s23  ;;  %s6961_s4 = sld [smem:[#allocation5 + $0x281]] }
  0x43   : > { %s6973_s5 = sld [smem:[#allocation5 + $0x301]] }
  0x44   : > { %276 = vrot.lane.b32.xlu2 %v6848_v8, %s6698_s17  ;;  %s6982_s6 = sld [smem:[#allocation5 + $0x381]] }
  0x45   : > { %s6985_s8 = sld [smem:[#allocation5 + $0x401]] }
  0x46   : > { %s6991_s9 = sld [smem:[#allocation5 + $0x82]] }
  0x47   : > { %262 = vrot.lane.b32.xlu1 %v6834_v2, %s6699_s21  ;;  %260 = vrot.lane.b32.xlu0 %v6829_v0, %s6699_s21  ;;  %s7008_s28 = sld [smem:[#allocation5 + $0x182]] }
  0x48   : > { %s7021_s29 = sld [smem:[#allocation5 + $0x202]] }
  0x49   : > { %s7027_s11 = sld [smem:[#allocation5 + $0x282]] }
  0x4a   : > { %s7037_s12 = sld [smem:[#allocation5 + $0x302]] }
  0x4b   : > { %s7044_s18 = sld [smem:[#allocation5 + $0x382]] }
  0x4c   : > { %286 = vrot.lane.b32.xlu2 %v6853_v9, %s6699_s21  ;;  %s7047_s19 = sld [smem:[#allocation5 + $0x402]] }
  0x4d   : > { %s7053_s20 = sld [smem:[#allocation5 + $0x83]] }
  0x4e   : > { %s7055_s22 = sld [smem:[#allocation5 + $0x3]] }
  0x4f   : > { %284 = vrot.lane.b32.xlu1 %v6848_v8, %s6699_s21  ;;  %278 = vrot.lane.b32.xlu0 %v6853_v9, %s6698_s17  ;;  %s6993_s17 = sld [smem:[#allocation5 + $0x2]] }
  0x50   : > { %s7005_s21 = sld [smem:[#allocation5 + $0x102]] }
  0x51   : > { %s7067_s23 = sld [smem:[#allocation5 + $0x103]] }
  0x8e   : > { %v253_v13 = vpop.permute.xlu2 %252 }
  0x8f   : > { %v6890_v25 = vsel %vm240_vm2, 0.0, %v253_v13  ;;  %v345_v13 = vstv %s6926_s24  ;;  %s7070_s24 = sld [smem:[#allocation5 + $0x183]] }
  0x90   : > { %v310_v32 = vmul.f32 %v309_v26, %v6890_v25 }
  0x96   : > { %v255_v19 = vpop.permute.xlu2 %254 }
  0x97   : > { %v6920_v47 = vsel %vm240_vm2, 0.0, %v255_v19 }
  0x98   : > { %v311_v55 = vmul.f32 %v309_v26, %v6920_v47 }
  0x9e   : > { %v277_v34 = vpop.permute.xlu2 %276 }
  0x9f   : > { %v6907_v39 = vsel %vm240_vm2, 0.0, %v277_v34 }
  0xa0   : > { %v328_v50 = vmul.f32 %v327_v41, %v6907_v39 }
  0xa9   : > { %v244_v16 = vpop.permute.xlu1 %243  ;;  %v235_v17 = vpop.permute.xlu0 %234 }
  0xaa   : > { %v6877_v18 = vsel %vm240_vm2, 0.0, %v235_v17  ;;  %v6884_v22 = vsel %vm249_vm3, %v244_v16, 0.0 }
  0xab   : > { %v294_v20 = vmul.f32 %v293_v14, %v6877_v18  ;;  %v304_v29 = vmul.f32 %v303_v23, %v6884_v22 }
  0xad   : > { %v300_v24 = vadd.f32 %v298_v21, %v294_v20  ;;  %v346_v21 = vmul.f32 %v345_v13, %v6877_v18 }
  0xaf   : > { %v306_v31 = vadd.f32 %v304_v29, %v300_v24  ;;  %v287_v24 = vpop.permute.xlu2 %286  ;;  %v335_v29 = vmul.f32 %v333_v51, %v6853_v9 }
  0xb0   : > { %v6966_v33 = vsel %vm249_vm3, %v287_v24, 0.0 }
  0xb1   : > { %v246_v27 = vpop.permute.xlu1 %245  ;;  %v237_v28 = vpop.permute.xlu0 %236  ;;  %v312_v37 = vadd.f32 %v310_v32, %v306_v31  ;;  %v361_v32 = vstv %s6943_s26  ;;  %s7099_s26 = sld [smem:[#allocation5 + $0x303]] }
  0xb2   : > { %v6897_v30 = vsel %vm240_vm2, 0.0, %v237_v28  ;;  %v6914_v42 = vsel %vm249_vm3, %v246_v27, 0.0  ;;  %v355_v27 = vstv %s6941_s15  ;;  %s7091_s15 = sld [smem:[#allocation5 + $0x283]] }
  0xb3   : > { %v295_v35 = vmul.f32 %v293_v14, %v6897_v30  ;;  %v318_v48 = vadd.f32 %v316_v38, %v312_v37  ;;  %v305_v52 = vmul.f32 %v303_v23, %v6914_v42  ;;  %v349_v14 = vstv %s6928_s25  ;;  %s7085_s25 = sld [smem:[#allocation5 + $0x203]] }
  0xb4   : > { %v350_v23 = vmul.f32 %v349_v14, %v6836_v3  ;;  %v356_v34 = vmul.f32 %v355_v27, %v6884_v22  ;;  %v362_v38 = vmul.f32 %v361_v32, %v6890_v25 }
  0xb5   : > { %v301_v46 = vadd.f32 %v299_v36, %v295_v35  ;;  %v347_v35 = vmul.f32 %v345_v13, %v6897_v30  ;;  %v351_v36 = vmul.f32 %v349_v14, %v6841_v5  ;;  %v401_v13 = vstv %s6991_s9  ;;  %s7137_s9 = sld [smem:[#allocation5 + $0x184]] }
  0xb6   : > { %v352_v31 = vadd.f32 %v350_v23, %v346_v21  ;;  %v391_v14 = vstv %s6985_s8  ;;  %v402_v23 = vmul.f32 %v401_v13, %v6836_v3  ;;  %s7131_s8 = sld [smem:[#allocation5 + $0x104]] }
  0xb7   : > { %v307_v54 = vadd.f32 %v305_v52, %v301_v46  ;;  %v367_v46 = vstv %s6958_s27  ;;  %s7108_s27 = sld [smem:[#allocation5 + $0x383]] }
  0xb8   : > { %v368_v52 = vmul.f32 %v367_v46, %v6829_v0 }
  0xb9   : > { %v263_v43 = vpop.permute.xlu1 %262  ;;  %v261_v44 = vpop.permute.xlu0 %260  ;;  %v313_v62 = vadd.f32 %v311_v55, %v307_v54 }
  0xba   : > { %v6917_v45 = vsel %vm249_vm3, %v261_v44, 0.0  ;;  %v6938_v1 = vsel %vm249_vm3, %v263_v43, 0.0  ;;  %v341_v43 = vmul.f32 %v339_v58, %v6966_v33  ;;  %v358_v44 = vadd.f32 %v356_v34, %v352_v31 }
  0xbb   : > { %v322_v49 = vmul.f32 %v321_v40, %v6917_v45  ;;  %v319_v15 = vadd.f32 %v317_v63, %v313_v62  ;;  %v323_v16 = vmul.f32 %v321_v40, %v6938_v1  ;;  %v413_v34 = vstv %s7008_s28  ;;  %s7160_s28 = sld [smem:[#allocation5 + $0x304]] }
  0xbc   : > { %v364_v51 = vadd.f32 %v362_v38, %v358_v44 }
  0xbd   : > { %v324_v53 = vadd.f32 %v322_v49, %v318_v48  ;;  %v325_v26 = vadd.f32 %v323_v16, %v319_v15  ;;  %v353_v48 = vadd.f32 %v351_v36, %v347_v35  ;;  %v373_v49 = vstv %s6961_s4  ;;  %s7111_s4 = sld [smem:[#allocation5 + $0x403]] }
  0xbe   : > { %v374_v54 = vmul.f32 %v373_v49, %v6917_v45  ;;  %v397_v15 = vstv %s6993_s17  ;;  %s7146_s17 = sld [smem:[#allocation5 + $0x204]] }
  0xbf   : > { %v330_v56 = vadd.f32 %v328_v50, %v324_v53  ;;  %v357_v53 = vmul.f32 %v355_v27, %v6914_v42  ;;  %v399_v44 = vmul.f32 %v397_v15, %v6897_v30 }
  0xc1   : > { %v285_v59 = vpop.permute.xlu1 %284  ;;  %v279_v61 = vpop.permute.xlu0 %278  ;;  %v336_v4 = vadd.f32 %v334_v57, %v330_v56  ;;  %v359_v55 = vadd.f32 %v357_v53, %v353_v48  ;;  %v363_v56 = vmul.f32 %v361_v32, %v6920_v47  ;;  %v379_v57 = vstv %s6973_s5  ;;  %s7116_s5 = sld [smem:[#allocation5 + $0x4]] }
  0xc2   : > { %v6934_v60 = vsel %vm249_vm3, %v285_v59, 0.0  ;;  %v6946_v7 = vsel %vm240_vm2, 0.0, %v279_v61  ;;  %v370_v59 = vadd.f32 %v368_v52, %v364_v51  ;;  %v380_v62 = vmul.f32 %v379_v57, %v6907_v39 }
  0xc3   : > { %v340_v6 = vmul.f32 %v339_v58, %v6934_v60  ;;  %v329_v20 = vmul.f32 %v327_v41, %v6946_v7  ;;  %v365_v63 = vadd.f32 %v363_v56, %v359_v55  ;;  %v381_v27 = vmul.f32 %v379_v57, %v6946_v7 }
  0xc4   : > { %v376_v61 = vadd.f32 %v374_v54, %v370_v59  ;;  %v407_v32 = vstv %s7005_s21  ;;  %v393_v53 = vmul.f32 %v391_v14, %v6966_v33  ;;  %v419_v55 = vstv %s7021_s29  ;;  %s7152_s21 = sld [smem:[#allocation5 + $0x284]] }
  0xc5   : > { %v6948_v10 = vadd.f32 %v340_v6, %v336_v4  ;;  %v331_v28 = vadd.f32 %v329_v20, %v325_v26  ;;  %v369_v4 = vmul.f32 %v367_v46, %v6834_v2  ;;  %v385_v6 = vstv %s6982_s6  ;;  %s7118_s6 = sld [smem:[#allocation5 + $0x84]] }
  0xc6   : > { %v382_v16 = vadd.f32 %v380_v62, %v376_v61  ;;  %v375_v20 = vmul.f32 %v373_v49, %v6938_v1  ;;  %v392_v26 = vmul.f32 %v391_v14, %v6934_v60  ;;  %v387_v38 = vmul.f32 %v385_v6, %v6853_v9  ;;  %s7168_s29 = sld [smem:[#allocation5 + $0x384]] }
  0xc7   : > { %v1137_v17 = vperm.slane %v6948_v10, 1  ;;  %v1124_v19 = vperm.slane %v6948_v10, 0  ;;  %v10795_v37 = vperm.slane %v6948_v10, 2  ;;  %v1189_v40 = vperm.slane %v6948_v10, 5 }
  0xc8   : > { %v337_v41 = vadd.f32 %v335_v29, %v331_v28  ;;  %v1163_v21 = vperm.slane %v6948_v10, 3  ;;  %v398_v28 = vmul.f32 %v397_v15, %v6877_v18  ;;  %v403_v46 = vmul.f32 %v401_v13, %v6841_v5 }
  0xc9   : > { %1142 = vperm.xlu2 %6370, %v1137_v17   ;;  %1135 = vperm.xlu1 %6369, %v1124_v19   ;;  %v1176_v48 = vperm.slane %v6948_v10, 4  ;;  %v414_v49 = vmul.f32 %v413_v34, %v6890_v25  ;;  %v425_v57 = vstv %s7027_s11  ;;  %v420_v62 = vmul.f32 %v419_v55, %v6829_v0  ;;  %s7171_s11 = sld [smem:[#allocation5 + $0x404]] }
  0xca   : > { %1129 = vperm.xlu0 %6368, %v1124_v19   ;;  %v6987_v50 = vadd.f32 %v341_v43, %v337_v41  ;;  %v371_v19 = vadd.f32 %v369_v4, %v365_v63  ;;  %v404_v41 = vadd.f32 %v402_v23, %v398_v28  ;;  %v408_v43 = vmul.f32 %v407_v32, %v6884_v22 }
  0xcb   : > { %v405_v56 = vadd.f32 %v403_v46, %v399_v44  ;;  %v409_v63 = vmul.f32 %v407_v32, %v6914_v42  ;;  %v426_v4 = vmul.f32 %v425_v57, %v6917_v45  ;;  %v415_v13 = vmul.f32 %v413_v34, %v6920_v47 }
  0xcc   : > { %v1254_v58 = vperm.slane %v6987_v50, 2  ;;  %v1319_v24 = vperm.slane %v6987_v50, 7  ;;  %v377_v31 = vadd.f32 %v375_v20, %v371_v19  ;;  %v410_v54 = vadd.f32 %v408_v43, %v404_v41 }
  0xcd   : > { %v431_v14 = vstv %s7037_s12  ;;  %v437_v23 = vstv %s7044_s18  ;;  %v449_v28 = vstv %s7055_s22  ;;  %v427_v34 = vmul.f32 %v425_v57, %v6938_v1  ;;  %s7175_s12 = sld [smem:[#allocation5 + $0x5]] }
  0xce   : > { %v383_v36 = vadd.f32 %v381_v27, %v377_v31  ;;  %v416_v61 = vadd.f32 %v414_v49, %v410_v54  ;;  %v432_v19 = vmul.f32 %v431_v14, %v6907_v39  ;;  %v443_v27 = vstv %s7047_s19  ;;  %s7177_s18 = sld [smem:[#allocation5 + $0x85]] }
  0xcf   : > { %v438_v31 = vmul.f32 %v437_v23, %v6848_v8  ;;  %v444_v43 = vmul.f32 %v443_v27, %v6934_v60  ;;  %v433_v44 = vmul.f32 %v431_v14, %v6946_v7  ;;  %v450_v46 = vmul.f32 %v449_v28, %v6877_v18  ;;  %s7191_s19 = sld [smem:[#allocation5 + $0x105]] }
  0xd0   : > { %v389_v52 = vadd.f32 %v387_v38, %v383_v36  ;;  %v1202_v36 = vperm.slane %v6948_v10, 6  ;;  %v471_v14 = vstv %s7085_s25  ;;  %s7210_s22 = sld [smem:[#allocation5 + $0x205]] }
  0xd1   : > { %1155 = vperm.xlu2 %6370, %v10795_v37   ;;  %1148 = vperm.xlu1 %6369, %v1137_v17   ;;  %v386_v17 = vmul.f32 %v385_v6, %v6848_v8  ;;  %v411_v6 = vadd.f32 %v409_v63, %v405_v56  ;;  %v439_v56 = vmul.f32 %v437_v23, %v6853_v9  ;;  %s7235_s25 = sld [smem:[#allocation5 + $0x385]] }
  0xd2   : > { %1194 = vperm.xlu0 %6368, %v1189_v40   ;;  %v7049_v59 = vadd.f32 %v393_v53, %v389_v52  ;;  %v459_v52 = vstv %s7067_s23  ;;  %v465_v53 = vstv %s7070_s24  ;;  %v451_v23 = vmul.f32 %v449_v28, %v6897_v30  ;;  %s7216_s23 = sld [smem:[#allocation5 + $0x285]] }
  0xd3   : > { %v388_v29 = vadd.f32 %v386_v17, %v382_v16  ;;  %v422_v16 = vadd.f32 %v420_v62, %v416_v61  ;;  %v417_v20 = vadd.f32 %v415_v13, %v411_v6  ;;  %v10790_v61 = vperm.slane %v6948_v10, 7  ;;  %s7224_s24 = sld [smem:[#allocation5 + $0x305]] }
  0xd4   : > { %v1449_v15 = vperm.slane %v7049_v59, 1  ;;  %v10802_v41 = vperm.slane %v7049_v59, 6  ;;  %v466_v62 = vmul.f32 %v465_v53, %v6890_v25  ;;  %v445_v6 = vmul.f32 %v443_v27, %v6966_v33 }
  0xd5   : > { %v7029_v35 = vadd.f32 %v392_v26, %v388_v29  ;;  %v428_v17 = vadd.f32 %v426_v4, %v422_v16  ;;  %v453_v26 = vstv %s7053_s20  ;;  %v477_v16 = vstv %s7091_s15  ;;  %s7199_s20 = sld [smem:[#allocation5 + $0x185]] }
  0xd6   : > { %v454_v38 = vmul.f32 %v453_v26, %v6836_v3  ;;  %v455_v27 = vmul.f32 %v453_v26, %v6841_v5  ;;  %v461_v26 = vmul.f32 %v459_v52, %v6914_v42  ;;  %v495_v28 = vstv %s7111_s4  ;;  %s7239_s15 = sld [smem:[#allocation5 + $0x405]] }
  0xd7   : > { %v1384_v51 = vperm.slane %v7029_v35, 4  ;;  %v434_v29 = vadd.f32 %v432_v19, %v428_v17  ;;  %s7269_s4 = sld [smem:[#allocation5 + $0x106]] }
  0xd8   : > { %v456_v57 = vadd.f32 %v454_v38, %v450_v46  ;;  %v457_v38 = vadd.f32 %v455_v27, %v451_v23  ;;  %v505_v46 = vstv %s7118_s6  ;;  %v517_v23 = vstv %s7137_s9  ;;  %s7283_s6 = sld [smem:[#allocation5 + $0x206]] }
  0xd9   : > { %6372 = vset.pattern.permute.xlu2 %v6863_v12  ;;  %6371 = vset.pattern.permute.xlu1 %v6858_v11  ;;  %s7296_s9 = sld [smem:[#allocation5 + $0x306]] }
  0xda   : > { %1259 = vperm.xlu0 %6368, %v1254_v58  }
  0xe1   : > { %1174 = vperm.xlu2 %6372, %v1163_v21   ;;  %1168 = vperm.xlu1 %6371, %v1163_v21   ;;  %v421_v21 = vmul.f32 %v419_v55, %v6834_v2 }
  0xe2   : > { %1324 = vperm.xlu0 %6368, %v1319_v24  }
  0xe3   : > { %v423_v32 = vadd.f32 %v421_v21, %v417_v20  ;;  %v472_v20 = vmul.f32 %v471_v14, %v6829_v0  ;;  %v478_v21 = vmul.f32 %v477_v16, %v6917_v45 }
  0xe5   : > { %v429_v49 = vadd.f32 %v427_v34, %v423_v32 }
  0xe7   : > { %v435_v55 = vadd.f32 %v433_v44, %v429_v49  ;;  %v501_v44 = vstv %s7116_s5  ;;  %s7275_s5 = sld [smem:[#allocation5 + $0x186]] }
  0xe9   : > { %1187 = vperm.xlu2 %6372, %v1176_v48   ;;  %1181 = vperm.xlu1 %6371, %v1176_v48   ;;  %v440_v48 = vadd.f32 %v438_v31, %v434_v29  ;;  %v441_v4 = vadd.f32 %v439_v56, %v435_v55  ;;  %v483_v29 = vstv %s7099_s26  ;;  %v463_v55 = vadd.f32 %v461_v26, %v457_v38  ;;  %s7256_s26 = sld [smem:[#allocation5 + $0x6]] }
  0xea   : > { %1389 = vperm.xlu0 %6368, %v1384_v51   ;;  %v467_v56 = vmul.f32 %v465_v53, %v6920_v47  ;;  %v485_v38 = vmul.f32 %v483_v29, %v6946_v7 }
  0xeb   : > { %v7093_v54 = vadd.f32 %v444_v43, %v440_v48  ;;  %v7113_v17 = vadd.f32 %v445_v6, %v441_v4  ;;  %v489_v43 = vstv %s7108_s27  ;;  %v506_v4 = vmul.f32 %v505_v46, %v6836_v3  ;;  %s7259_s27 = sld [smem:[#allocation5 + $0x86]] }
  0xec   : > { %v490_v49 = vmul.f32 %v489_v43, %v6848_v8  ;;  %v469_v53 = vadd.f32 %v467_v56, %v463_v55  ;;  %v529_v55 = vstv %s7152_s21  ;;  %s7308_s21 = sld [smem:[#allocation5 + $0x406]] }
  0xed   : > { %v10801_v63 = vperm.slane %v7093_v54, 3  ;;  %v10797_v31 = vperm.slane %v7113_v17, 0 }
  0xf1   : > { %6374 = vset.pattern.permute.xlu2 %v6858_v11  ;;  %6373 = vset.pattern.permute.xlu1 %v6863_v12 }
  0xf2   : > { %1454 = vperm.xlu0 %6368, %v1449_v15  }
  0xf9   : > { %1207 = vperm.xlu2 %6374, %v1202_v36   ;;  %1200 = vperm.xlu1 %6373, %v1189_v40   ;;  %v460_v40 = vmul.f32 %v459_v52, %v6884_v22  ;;  %v502_v52 = vmul.f32 %v501_v44, %v6877_v18 }
  0xfa   : > { %1519 = vperm.xlu0 %6368, %v10802_v41  }
  0xfb   : > { %v462_v13 = vadd.f32 %v460_v40, %v456_v57  ;;  %v1228_v57 = vperm.slane %v6987_v50, 0  ;;  %v10794_v40 = vperm.slane %v7113_v17, 5 }
  0xfd   : > { %v468_v19 = vadd.f32 %v466_v62, %v462_v13  ;;  %v496_v62 = vmul.f32 %v495_v28, %v6934_v60  ;;  %v473_v13 = vmul.f32 %v471_v14, %v6834_v2 }
  0xff   : > { %v474_v32 = vadd.f32 %v472_v20, %v468_v19  ;;  %v511_v19 = vstv %s7131_s8  ;;  %v475_v27 = vadd.f32 %v473_v13, %v469_v53  ;;  %v535_v53 = vstv %s7160_s28  ;;  %s7288_s8 = sld [smem:[#allocation5 + $0x286]] }
 0x100   : > { %s7314_s28 = sld [smem:[#allocation5 + $0x7]] }
 0x101   : > { %1220 = vperm.xlu2 %6374, %v10790_v61   ;;  %1213 = vperm.xlu1 %6373, %v1202_v36   ;;  %v480_v34 = vadd.f32 %v478_v21, %v474_v32  ;;  %v484_v36 = vmul.f32 %v483_v29, %v6907_v39  ;;  %v508_v21 = vadd.f32 %v506_v4, %v502_v52 }
 0x102   : > { %1584 = vperm.xlu0 %6368, %v10801_v63   ;;  %v479_v32 = vmul.f32 %v477_v16, %v6938_v1  ;;  %v530_v52 = vmul.f32 %v529_v55, %v6917_v45  ;;  %v503_v4 = vmul.f32 %v501_v44, %v6897_v30 }
 0x103   : > { %v486_v48 = vadd.f32 %v484_v36, %v480_v34  ;;  %v512_v34 = vmul.f32 %v511_v19, %v6884_v22  ;;  %v1241_v36 = vperm.slane %v6987_v50, 1 }
 0x104   : > { %v481_v16 = vadd.f32 %v479_v32, %v475_v27 }
 0x105   : > { %v492_v6 = vadd.f32 %v490_v49, %v486_v48  ;;  %v514_v26 = vadd.f32 %v512_v34, %v508_v21  ;;  %v518_v48 = vmul.f32 %v517_v23, %v6890_v25  ;;  %v523_v49 = vstv %s7146_s17  ;;  %s7305_s17 = sld [smem:[#allocation5 + $0x386]] }
 0x106   : > { %v487_v56 = vadd.f32 %v485_v38, %v481_v16  ;;  %v497_v21 = vmul.f32 %v495_v28, %v6966_v33  ;;  %v541_v34 = vstv %s7168_s29  ;;  %v513_v38 = vmul.f32 %v511_v19, %v6914_v42  ;;  %s7316_s29 = sld [smem:[#allocation5 + $0x87]] }
 0x107   : > { %v7154_v20 = vadd.f32 %v496_v62, %v492_v6  ;;  %v520_v29 = vadd.f32 %v518_v48, %v514_v26  ;;  %v524_v62 = vmul.f32 %v523_v49, %v6829_v0  ;;  %v507_v6 = vmul.f32 %v505_v46, %v6841_v5 }
 0x108   : > { %v536_v46 = vmul.f32 %v535_v53, %v6907_v39  ;;  %v547_v28 = vstv %s7171_s11  ;;  %v553_v26 = vstv %s7175_s12  ;;  %v557_v48 = vstv %s7177_s18  ;;  %s7330_s11 = sld [smem:[#allocation5 + $0x107]] }
 0x109   : > { %6376 = vset.pattern.permute.xlu2 %v6863_v12  ;;  %6375 = vset.pattern.permute.xlu1 %v6858_v11  ;;  %v10787_v14 = vperm.slane %v7154_v20, 2  ;;  %v10776_v13 = vperm.slane %v7154_v20, 7  ;;  %v526_v27 = vadd.f32 %v524_v62, %v520_v29  ;;  %v509_v32 = vadd.f32 %v507_v6, %v503_v4  ;;  %s7335_s12 = sld [smem:[#allocation5 + $0x187]] }
 0x10a   : > { %1649 = vperm.xlu0 %6368, %v10797_v31   ;;  %v519_v29 = vmul.f32 %v517_v23, %v6920_v47  ;;  %v1267_v62 = vperm.slane %v6987_v50, 3  ;;  %v548_v4 = vmul.f32 %v547_v28, %v6934_v60  ;;  %v554_v19 = vmul.f32 %v553_v26, %v6877_v18  ;;  %s7347_s18 = sld [smem:[#allocation5 + $0x207]] }
 0x10b   : > { %v532_v44 = vadd.f32 %v530_v52, %v526_v27  ;;  %v558_v6 = vmul.f32 %v557_v48, %v6836_v3  ;;  %v563_v27 = vstv %s7191_s19  ;;  %s7352_s19 = sld [smem:[#allocation5 + $0x287]] }
 0x10d   : > { %v538_v16 = vadd.f32 %v536_v46, %v532_v44  ;;  %v560_v46 = vadd.f32 %v558_v6, %v554_v19  ;;  %v543_v6 = vmul.f32 %v541_v34, %v6853_v9 }
 0x111   : > { %1239 = vperm.xlu2 %6376, %v1228_v57   ;;  %1233 = vperm.xlu1 %6375, %v1228_v57   ;;  %v491_v57 = vmul.f32 %v489_v43, %v6853_v9 }
 0x112   : > { %1714 = vperm.xlu0 %6368, %v10794_v40  }
 0x113   : > { %v493_v43 = vadd.f32 %v491_v57, %v487_v56  ;;  %v542_v56 = vmul.f32 %v541_v34, %v6848_v8  ;;  %v515_v57 = vadd.f32 %v513_v38, %v509_v32  ;;  %v569_v32 = vstv %s7199_s20  ;;  %s7362_s20 = sld [smem:[#allocation5 + $0x307]] }
 0x115   : > { %v544_v23 = vadd.f32 %v542_v56, %v538_v16  ;;  %v537_v16 = vmul.f32 %v535_v53, %v6946_v7 }
 0x117   : > { %v7218_v44 = vadd.f32 %v548_v4, %v544_v23  ;;  %v581_v4 = vstv %s7216_s23  ;;  %s7374_s23 = sld [smem:[#allocation5 + $0x407]] }
 0x118   : > { %v582_v23 = vmul.f32 %v581_v4, %v6917_v45 }
 0x119   : > { %1252 = vperm.xlu2 %6376, %v1241_v36   ;;  %1246 = vperm.xlu1 %6375, %v1241_v36   ;;  %v7193_v36 = vadd.f32 %v497_v21, %v493_v43  ;;  %v521_v43 = vadd.f32 %v519_v29, %v515_v57  ;;  %v525_v21 = vmul.f32 %v523_v49, %v6834_v2  ;;  %v10783_v49 = vperm.slane %v7218_v44, 1 }
 0x11a   : > { %1779 = vperm.xlu0 %6368, %v10787_v14   ;;  %v570_v57 = vmul.f32 %v569_v32, %v6890_v25  ;;  %v575_v29 = vstv %s7210_s22  ;;  %s7371_s22 = sld [smem:[#allocation5 + $0x387]] }
 0x11b   : > { %v10777_v52 = vperm.slane %v7193_v36, 4  ;;  %v527_v38 = vadd.f32 %v525_v21, %v521_v43  ;;  %v559_v43 = vmul.f32 %v557_v48, %v6841_v5  ;;  %v587_v21 = vstv %s7224_s24  ;;  %s7383_s24 = sld [smem:[#allocation5 + $0x8]] }
 0x11c   : > { %v593_v48 = vstv %s7235_s25  ;;  %s7385_s25 = sld [smem:[#allocation5 + $0x88]] }
 0x121   : > { %6378 = vset.pattern.permute.xlu2 %v6858_v11  ;;  %6377 = vset.pattern.permute.xlu1 %v6863_v12 }
 0x122   : > { %1844 = vperm.xlu0 %6368, %v10776_v13   ;;  %v564_v13 = vmul.f32 %v563_v27, %v6884_v22 }
 0x124   : > { %v566_v56 = vadd.f32 %v564_v13, %v560_v46  ;;  %v576_v13 = vmul.f32 %v575_v29, %v6829_v0  ;;  %v10782_v46 = vperm.slane %v7218_v44, 6 }
 0x126   : > { %v572_v53 = vadd.f32 %v570_v57, %v566_v56 }
 0x128   : > { %v578_v34 = vadd.f32 %v576_v13, %v572_v53  ;;  %v571_v13 = vmul.f32 %v569_v32, %v6920_v47  ;;  %v605_v32 = vstv %s7256_s26  ;;  %s7405_s26 = sld [smem:[#allocation5 + $0x188]] }
 0x129   : > { %1272 = vperm.xlu2 %6378, %v1267_v62   ;;  %1265 = vperm.xlu1 %6377, %v1254_v58   ;;  %v531_v58 = vmul.f32 %v529_v55, %v6938_v1 }
 0x12a   : > { %1909 = vperm.xlu0 %6368, %v10777_v52   ;;  %v10789_v52 = vperm.slane %v6987_v50, 4 }
 0x12b   : > { %v533_v55 = vadd.f32 %v531_v58, %v527_v38  ;;  %v549_v58 = vmul.f32 %v547_v28, %v6966_v33  ;;  %v599_v28 = vstv %s7239_s15  ;;  %s7400_s15 = sld [smem:[#allocation5 + $0x108]] }
 0x12d   : > { %v539_v19 = vadd.f32 %v537_v16, %v533_v55  ;;  %v584_v16 = vadd.f32 %v582_v23, %v578_v34  ;;  %v565_v55 = vmul.f32 %v563_v27, %v6914_v42  ;;  %v1293_v23 = vperm.slane %v6987_v50, 5 }
 0x12f   : > { %v545_v38 = vadd.f32 %v543_v6, %v539_v19  ;;  %v594_v6 = vmul.f32 %v593_v48, %v6848_v8 }
 0x131   : > { %1285 = vperm.xlu2 %6378, %v10789_v52   ;;  %1278 = vperm.xlu1 %6377, %v1267_v62   ;;  %v555_v62 = vmul.f32 %v553_v26, %v6897_v30  ;;  %v588_v26 = vmul.f32 %v587_v21, %v6907_v39  ;;  %v7253_v57 = vadd.f32 %v549_v58, %v545_v38  ;;  %v725_v52 = vstv %s7405_s26  ;;  %s7553_s26 = sld [smem:[#allocation5 + $0x30a]] }
 0x132   : > { %1974 = vperm.xlu0 %6368, %v10783_v49   ;;  %v577_v58 = vmul.f32 %v575_v29, %v6834_v2  ;;  %v606_v29 = vmul.f32 %v605_v32, %v6877_v18 }
 0x133   : > { %v561_v56 = vadd.f32 %v559_v43, %v555_v62  ;;  %v590_v19 = vadd.f32 %v588_v26, %v584_v16  ;;  %v10778_v62 = vperm.slane %v7253_v57, 3  ;;  %v600_v43 = vmul.f32 %v599_v28, %v6934_v60 }
 0x134   : > { %v609_v16 = vstv %s7259_s27  ;;  %s7415_s27 = sld [smem:[#allocation5 + $0x208]] }
 0x135   : > { %v567_v53 = vadd.f32 %v565_v55, %v561_v56  ;;  %v596_v27 = vadd.f32 %v594_v6, %v590_v19  ;;  %v583_v56 = vmul.f32 %v581_v4, %v6938_v1  ;;  %v1306_v55 = vperm.slane %v6987_v50, 6 }
 0x136   : > { %v589_v6 = vmul.f32 %v587_v21, %v6946_v7  ;;  %v615_v4 = vstv %s7269_s4  ;;  %s7420_s4 = sld [smem:[#allocation5 + $0x288]] }
 0x137   : > { %v573_v38 = vadd.f32 %v571_v13, %v567_v53  ;;  %v7271_v34 = vadd.f32 %v600_v43, %v596_v27  ;;  %v610_v53 = vmul.f32 %v609_v16, %v6836_v3  ;;  %v595_v43 = vmul.f32 %v593_v48, %v6853_v9 }
 0x138   : > { %v621_v27 = vstv %s7275_s5  ;;  %v627_v48 = vstv %s7283_s6  ;;  %s7428_s5 = sld [smem:[#allocation5 + $0x308]] }
 0x139   : > { %6380 = vset.pattern.permute.xlu2 %v6863_v12  ;;  %6379 = vset.pattern.permute.xlu1 %v6858_v11  ;;  %v579_v26 = vadd.f32 %v577_v58, %v573_v38  ;;  %v10779_v19 = vperm.slane %v7271_v34, 0  ;;  %v612_v21 = vadd.f32 %v610_v53, %v606_v29  ;;  %v616_v38 = vmul.f32 %v615_v4, %v6884_v22  ;;  %s7437_s6 = sld [smem:[#allocation5 + $0x388]] }
 0x13a   : > { %2039 = vperm.xlu0 %6368, %v10782_v46   ;;  %v607_v58 = vmul.f32 %v605_v32, %v6897_v30  ;;  %v633_v32 = vstv %s7288_s8  ;;  %v628_v53 = vmul.f32 %v627_v48, %v6829_v0  ;;  %v673_v46 = vstv %s7335_s12  ;;  %s7440_s8 = sld [smem:[#allocation5 + $0x9]] }
 0x13b   : > { %v585_v13 = vadd.f32 %v583_v56, %v579_v26  ;;  %v10781_v26 = vperm.slane %v7271_v34, 5  ;;  %s7491_s12 = sld [smem:[#allocation5 + $0x309]] }
 0x141   : > { %1304 = vperm.xlu2 %6380, %v1293_v23   ;;  %1298 = vperm.xlu1 %6379, %v1293_v23   ;;  %v591_v23 = vadd.f32 %v589_v6, %v585_v13  ;;  %v622_v6 = vmul.f32 %v621_v27, %v6890_v25  ;;  %v617_v13 = vmul.f32 %v615_v4, %v6914_v42 }
 0x142   : > { %2104 = vperm.xlu0 %6368, %v10778_v62   ;;  %v601_v62 = vmul.f32 %v599_v28, %v6966_v33 }
 0x143   : > { %v597_v56 = vadd.f32 %v595_v43, %v591_v23  ;;  %v634_v23 = vmul.f32 %v633_v32, %v6917_v45 }
 0x149   : > { %1317 = vperm.xlu2 %6380, %v1306_v55   ;;  %1311 = vperm.xlu1 %6379, %v1306_v55   ;;  %v611_v55 = vmul.f32 %v609_v16, %v6841_v5  ;;  %v7310_v16 = vadd.f32 %v601_v62, %v597_v56  ;;  %v1332_v62 = vperm.slane %v7029_v35, 0  ;;  %v645_v56 = vstv %s7305_s17  ;;  %s7447_s17 = sld [smem:[#allocation5 + $0x408]] }
 0x14a   : > { %2169 = vperm.xlu0 %6368, %v10779_v19   ;;  %v618_v19 = vadd.f32 %v616_v38, %v612_v21  ;;  %v623_v21 = vmul.f32 %v621_v27, %v6920_v47  ;;  %v629_v27 = vmul.f32 %v627_v48, %v6834_v2 }
 0x14b   : > { %v613_v28 = vadd.f32 %v611_v55, %v607_v58  ;;  %v10780_v0 = vperm.slane %v7310_v16, 2  ;;  %v10784_v2 = vperm.slane %v7310_v16, 7 }
 0x14c   : > { %v624_v29 = vadd.f32 %v622_v6, %v618_v19  ;;  %v639_v19 = vstv %s7296_s9  ;;  %v651_v6 = vstv %s7308_s21  ;;  %s7445_s9 = sld [smem:[#allocation5 + $0x89]] }
 0x14d   : > { %v619_v43 = vadd.f32 %v617_v13, %v613_v28  ;;  %v640_v58 = vmul.f32 %v639_v19, %v6907_v39  ;;  %v657_v28 = vstv %s7314_s28  ;;  %v661_v13 = vstv %s7316_s29  ;;  %s7461_s21 = sld [smem:[#allocation5 + $0x109]] }
 0x14e   : > { %v630_v38 = vadd.f32 %v628_v53, %v624_v29  ;;  %v641_v48 = vmul.f32 %v639_v19, %v6946_v7  ;;  %v659_v49 = vmul.f32 %v657_v28, %v6897_v30  ;;  %s7467_s28 = sld [smem:[#allocation5 + $0x189]] }
 0x14f   : > { %v625_v55 = vadd.f32 %v623_v21, %v619_v43  ;;  %v652_v43 = vmul.f32 %v651_v6, %v6934_v60  ;;  %v658_v21 = vmul.f32 %v657_v28, %v6877_v18  ;;  %v685_v28 = vstv %s7352_s19  ;;  %s7478_s29 = sld [smem:[#allocation5 + $0x209]] }
 0x150   : > { %v636_v4 = vadd.f32 %v634_v23, %v630_v38  ;;  %v635_v23 = vmul.f32 %v633_v32, %v6938_v1  ;;  %v10788_v38 = vperm.slane %v7029_v35, 1  ;;  %s7504_s19 = sld [smem:[#allocation5 + $0x389]] }
 0x151   : > { %6382 = vset.pattern.permute.xlu2 %v6858_v11  ;;  %6381 = vset.pattern.permute.xlu1 %v6863_v12  ;;  %v631_v53 = vadd.f32 %v629_v27, %v625_v55  ;;  %v647_v27 = vmul.f32 %v645_v56, %v6853_v9 }
 0x152   : > { %2234 = vperm.xlu0 %6368, %v10781_v26   ;;  %v642_v29 = vadd.f32 %v640_v58, %v636_v4  ;;  %v667_v58 = vstv %s7330_s11  ;;  %s7484_s11 = sld [smem:[#allocation5 + $0x289]] }
 0x153   : > { %v637_v4 = vadd.f32 %v635_v23, %v631_v53 }
 0x154   : > { %v777_v37 = vstv %s7467_s28  ;;  %s7630_s28 = sld [smem:[#allocation5 + $0x30b]] }
 0x155   : > { %v643_v19 = vadd.f32 %v641_v48, %v637_v4  ;;  %v1358_v4 = vperm.slane %v7029_v35, 2 }
 0x157   : > { %v649_v53 = vadd.f32 %v647_v27, %v643_v19  ;;  %v691_v19 = vstv %s7362_s20  ;;  %s7508_s20 = sld [smem:[#allocation5 + $0x8a]] }
 0x159   : > { %1337 = vperm.xlu2 %6382, %v1332_v62   ;;  %1330 = vperm.xlu1 %6381, %v1319_v24   ;;  %v646_v24 = vmul.f32 %v645_v56, %v6848_v8  ;;  %v674_v56 = vmul.f32 %v673_v46, %v6890_v25 }
 0x15a   : > { %2299 = vperm.xlu0 %6368, %v10780_v0   ;;  %v662_v0 = vmul.f32 %v661_v13, %v6836_v3 }
 0x15b   : > { %v648_v32 = vadd.f32 %v646_v24, %v642_v29  ;;  %v653_v29 = vmul.f32 %v651_v6, %v6966_v33 }
 0x15c   : > { %v664_v26 = vadd.f32 %v662_v0, %v658_v21  ;;  %v679_v0 = vstv %s7347_s18  ;;  %v669_v21 = vmul.f32 %v667_v58, %v6914_v42  ;;  %s7501_s18 = sld [smem:[#allocation5 + $0xa]] }
 0x15d   : > { %v7354_v55 = vadd.f32 %v652_v43, %v648_v32  ;;  %v7379_v43 = vld [vmem:[%s6814_s10] sm:$0xff]  ;;  %v675_v32 = vmul.f32 %v673_v46, %v6920_v47 }
 0x15e   : > { %v680_v48 = vmul.f32 %v7379_v43, %v679_v0 }
 0x15f   : > { %v10785_v24 = vperm.slane %v7354_v55, 4 }
 0x161   : > { %1350 = vperm.xlu2 %6382, %v10788_v38   ;;  %1343 = vperm.xlu1 %6381, %v1332_v62   ;;  %v668_v62 = vmul.f32 %v667_v58, %v6884_v22 }
 0x162   : > { %2364 = vperm.xlu0 %6368, %v10784_v2   ;;  %v663_v2 = vmul.f32 %v661_v13, %v6841_v5  ;;  %v7376_v13 = vadd.f32 %v653_v29, %v649_v53  ;;  %v692_v29 = vmul.f32 %v691_v19, %v6907_v39 }
 0x163   : > { %v670_v23 = vadd.f32 %v668_v62, %v664_v26 }
 0x164   : > { %v665_v6 = vadd.f32 %v663_v2, %v659_v49  ;;  %v686_v49 = vmul.f32 %v685_v28, %v6917_v45  ;;  %v10786_v27 = vperm.slane %v7376_v13, 1 }
 0x165   : > { %v676_v26 = vadd.f32 %v674_v56, %v670_v23  ;;  %v7396_v23 = vld [vmem:[%s6814_s10 + $0x8] sm:$0xff]  ;;  %v697_v56 = vstv %s7371_s22  ;;  %s7510_s22 = sld [smem:[#allocation5 + $0x409]] }
 0x166   : > { %v671_v2 = vadd.f32 %v669_v21, %v665_v6  ;;  %v681_v46 = vmul.f32 %v7396_v23, %v679_v0  ;;  %v703_v6 = vstv %s7374_s23  ;;  %v709_v21 = vstv %s7383_s24  ;;  %s7523_s23 = sld [smem:[#allocation5 + $0x10a]] }
 0x167   : > { %v682_v58 = vadd.f32 %v680_v48, %v676_v26  ;;  %v698_v48 = vmul.f32 %v697_v56, %v6848_v8  ;;  %v10792_v0 = vperm.slane %v7376_v13, 6  ;;  %v705_v61 = vmul.f32 %v703_v6, %v6966_v33  ;;  %s7531_s24 = sld [smem:[#allocation5 + $0x18a]] }
 0x168   : > { %v677_v53 = vadd.f32 %v675_v32, %v671_v2  ;;  %v1371_v2 = vperm.slane %v7029_v35, 3  ;;  %v704_v32 = vmul.f32 %v703_v6, %v6934_v60 }
 0x169   : > { %6384 = vset.pattern.permute.xlu2 %v6863_v12  ;;  %6383 = vset.pattern.permute.xlu1 %v6858_v11  ;;  %v688_v62 = vadd.f32 %v686_v49, %v682_v58  ;;  %v693_v58 = vmul.f32 %v691_v19, %v6946_v7 }
 0x16a   : > { %2429 = vperm.xlu0 %6368, %v10785_v24   ;;  %v713_v24 = vstv %s7385_s25  ;;  %v683_v49 = vadd.f32 %v681_v46, %v677_v53  ;;  %v699_v46 = vmul.f32 %v697_v56, %v6853_v9  ;;  %v731_v56 = vstv %s7415_s27  ;;  %s7540_s25 = sld [smem:[#allocation5 + $0x20a]] }
 0x16b   : > { %v694_v26 = vadd.f32 %v692_v29, %v688_v62  ;;  %v714_v14 = vmul.f32 %v713_v24, %v6836_v3  ;;  %v719_v29 = vstv %s7400_s15  ;;  %s7546_s15 = sld [smem:[#allocation5 + $0x28a]] }
 0x16c   : > { %s7564_s27 = sld [smem:[#allocation5 + $0x38a]] }
 0x171   : > { %1369 = vperm.xlu2 %6384, %v1358_v4   ;;  %1363 = vperm.xlu1 %6383, %v1358_v4   ;;  %v687_v4 = vmul.f32 %v685_v28, %v6938_v1  ;;  %v700_v28 = vadd.f32 %v698_v48, %v694_v26 }
 0x172   : > { %2494 = vperm.xlu0 %6368, %v10786_v27   ;;  %v710_v27 = vmul.f32 %v709_v21, %v6877_v18 }
 0x173   : > { %v689_v62 = vadd.f32 %v687_v4, %v683_v49  ;;  %v7422_v53 = vadd.f32 %v704_v32, %v700_v28  ;;  %v726_v4 = vmul.f32 %v725_v52, %v6890_v25  ;;  %v715_v28 = vmul.f32 %v713_v24, %v6841_v5 }
 0x174   : > { %v716_v38 = vadd.f32 %v714_v14, %v710_v27  ;;  %v737_v14 = vstv %s7420_s4  ;;  %v721_v24 = vmul.f32 %v719_v29, %v6914_v42  ;;  %s7568_s4 = sld [smem:[#allocation5 + $0x40a]] }
 0x175   : > { %v695_v19 = vadd.f32 %v693_v58, %v689_v62  ;;  %v10791_v26 = vperm.slane %v7422_v53, 3  ;;  %v738_v32 = vmul.f32 %v737_v14, %v6917_v45  ;;  %v711_v58 = vmul.f32 %v709_v21, %v6897_v30 }
 0x176   : > { %v743_v62 = vstv %s7428_s5  ;;  %s7586_s5 = sld [smem:[#allocation5 + $0xb]] }
 0x177   : > { %v701_v48 = vadd.f32 %v699_v46, %v695_v19  ;;  %v744_v21 = vmul.f32 %v743_v62, %v6907_v39 }
 0x179   : > { %1382 = vperm.xlu2 %6384, %v1371_v2   ;;  %1376 = vperm.xlu1 %6383, %v1371_v2   ;;  %v720_v2 = vmul.f32 %v719_v29, %v6884_v22  ;;  %v7442_v27 = vadd.f32 %v705_v61, %v701_v48  ;;  %v1397_v61 = vperm.slane %v7029_v35, 5  ;;  %v717_v48 = vadd.f32 %v715_v28, %v711_v58 }
 0x17a   : > { %2559 = vperm.xlu0 %6368, %v10792_v0   ;;  %v765_v0 = vstv %s7445_s9  ;;  %s7607_s9 = sld [smem:[#allocation5 + $0x18b]] }
 0x17b   : > { %v722_v49 = vadd.f32 %v720_v2, %v716_v38  ;;  %v732_v38 = vmul.f32 %v7379_v43, %v731_v56  ;;  %v10793_v19 = vperm.slane %v7442_v27, 0  ;;  %v10799_v58 = vperm.slane %v7442_v27, 5 }
 0x17d   : > { %v728_v6 = vadd.f32 %v726_v4, %v722_v49  ;;  %v749_v49 = vstv %s7437_s6  ;;  %v755_v4 = vstv %s7447_s17  ;;  %s7589_s6 = sld [smem:[#allocation5 + $0x8b]] }
 0x17e   : > { %v756_v28 = vmul.f32 %v755_v4, %v6934_v60  ;;  %s7616_s17 = sld [smem:[#allocation5 + $0x20b]] }
 0x17f   : > { %v734_v46 = vadd.f32 %v732_v38, %v728_v6  ;;  %v723_v38 = vadd.f32 %v721_v24, %v717_v48  ;;  %v771_v48 = vstv %s7461_s21  ;;  %s7621_s21 = sld [smem:[#allocation5 + $0x28b]] }
 0x180   : > { %v772_v31 = vmul.f32 %v771_v48, %v6884_v22 }
 0x181   : > { %6386 = vset.pattern.permute.xlu2 %v6858_v11  ;;  %6385 = vset.pattern.permute.xlu1 %v6863_v12  ;;  %v740_v2 = vadd.f32 %v738_v32, %v734_v46  ;;  %v727_v32 = vmul.f32 %v725_v52, %v6920_v47  ;;  %v10796_v46 = vperm.slane %v7029_v35, 6 }
 0x182   : > { %2624 = vperm.xlu0 %6368, %v10791_v26   ;;  %v761_v26 = vstv %s7440_s8  ;;  %s7601_s8 = sld [smem:[#allocation5 + $0x10b]] }
 0x183   : > { %v746_v6 = vadd.f32 %v744_v21, %v740_v2  ;;  %v762_v29 = vmul.f32 %v761_v26, %v6877_v18  ;;  %v729_v2 = vadd.f32 %v727_v32, %v723_v38  ;;  %v733_v21 = vmul.f32 %v7396_v23, %v731_v56 }
 0x184   : > { %v745_v56 = vmul.f32 %v743_v62, %v6946_v7  ;;  %v778_v38 = vmul.f32 %v777_v37, %v6890_v25  ;;  %v789_v32 = vstv %s7484_s11  ;;  %s7640_s11 = sld [smem:[#allocation5 + $0x38b]] }
 0x189   : > { %1402 = vperm.xlu2 %6386, %v1397_v61   ;;  %1395 = vperm.xlu1 %6385, %v1384_v51   ;;  %v750_v51 = vmul.f32 %v749_v49, %v6848_v8 }
 0x18a   : > { %2689 = vperm.xlu0 %6368, %v10793_v19   ;;  %v766_v19 = vmul.f32 %v765_v0, %v6836_v3 }
 0x18b   : > { %v752_v52 = vadd.f32 %v750_v51, %v746_v6 }
 0x18c   : > { %v768_v40 = vadd.f32 %v766_v19, %v762_v29  ;;  %v783_v19 = vstv %s7478_s29  ;;  %v790_v29 = vmul.f32 %v789_v32, %v6917_v45  ;;  %s7637_s29 = sld [smem:[#allocation5 + $0xc]] }
 0x18d   : > { %v7486_v24 = vadd.f32 %v756_v28, %v752_v52  ;;  %v784_v62 = vmul.f32 %v7379_v43, %v783_v19  ;;  %v767_v52 = vmul.f32 %v765_v0, %v6841_v5 }
 0x18e   : > { %v774_v51 = vadd.f32 %v772_v31, %v768_v40  ;;  %v751_v31 = vmul.f32 %v749_v49, %v6853_v9 }
 0x18f   : > { %v10798_v6 = vperm.slane %v7486_v24, 2  ;;  %v10800_v49 = vperm.slane %v7486_v24, 7 }
 0x190   : > { %v780_v40 = vadd.f32 %v778_v38, %v774_v51 }
 0x191   : > { %1415 = vperm.xlu2 %6386, %v10796_v46   ;;  %1408 = vperm.xlu1 %6385, %v1397_v61   ;;  %v735_v46 = vadd.f32 %v733_v21, %v729_v2  ;;  %v739_v61 = vmul.f32 %v737_v14, %v6938_v1  ;;  %v1423_v2 = vperm.slane %v7029_v35, 7  ;;  %v795_v21 = vstv %s7491_s12  ;;  %s7645_s12 = sld [smem:[#allocation5 + $0x40b]] }
 0x192   : > { %2754 = vperm.xlu0 %6368, %v10799_v58   ;;  %v786_v51 = vadd.f32 %v784_v62, %v780_v40  ;;  %v796_v0 = vmul.f32 %v795_v21, %v6907_v39  ;;  %v773_v58 = vmul.f32 %v771_v48, %v6914_v42 }
 0x193   : > { %v741_v14 = vadd.f32 %v739_v61, %v735_v46  ;;  %v763_v46 = vmul.f32 %v761_v26, %v6897_v30 }
 0x194   : > { %v792_v26 = vadd.f32 %v790_v29, %v786_v51  ;;  %v785_v51 = vmul.f32 %v7396_v23, %v783_v19  ;;  %v797_v19 = vmul.f32 %v795_v21, %v6946_v7 }
 0x195   : > { %v747_v28 = vadd.f32 %v745_v56, %v741_v14  ;;  %v757_v56 = vmul.f32 %v755_v4, %v6966_v33  ;;  %v769_v38 = vadd.f32 %v767_v52, %v763_v46  ;;  %v801_v14 = vstv %s7504_s19  ;;  %s7660_s19 = sld [smem:[#allocation5 + $0x10c]] }
 0x196   : > { %v817_v4 = vstv %s7508_s20  ;;  %v798_v40 = vadd.f32 %v796_v0, %v792_v26  ;;  %v802_v62 = vmul.f32 %v801_v14, %v6848_v8  ;;  %v1436_v46 = vperm.slane %v7049_v59, 0  ;;  %s7665_s20 = sld [smem:[#allocation5 + $0x18c]] }
 0x197   : > { %v753_v61 = vadd.f32 %v751_v31, %v747_v28  ;;  %v807_v28 = vstv %s7510_s22  ;;  %v813_v31 = vstv %s7501_s18  ;;  %v775_v29 = vadd.f32 %v773_v58, %v769_v38  ;;  %s7648_s18 = sld [smem:[#allocation5 + $0x8c]] }
 0x198   : > { %v814_v48 = vmul.f32 %v813_v31, %v6877_v18  ;;  %v804_v58 = vadd.f32 %v802_v62, %v798_v40  ;;  %v823_v26 = vstv %s7523_s23  ;;  %s7676_s22 = sld [smem:[#allocation5 + $0x20c]] }
 0x199   : > { %6388 = vset.pattern.permute.xlu2 %v6863_v12  ;;  %6387 = vset.pattern.permute.xlu1 %v6858_v11  ;;  %v824_v41 = vmul.f32 %v823_v26, %v6884_v22  ;;  %s7681_s23 = sld [smem:[#allocation5 + $0x28c]] }
 0x19a   : > { %2819 = vperm.xlu0 %6368, %v10798_v6   ;;  %v7525_v6 = vadd.f32 %v757_v56, %v753_v61  ;;  %v808_v61 = vmul.f32 %v807_v28, %v6934_v60  ;;  %v818_v56 = vmul.f32 %v817_v4, %v6836_v3 }
 0x19c   : > { %v10804_v52 = vperm.slane %v7525_v6, 4  ;;  %v7548_v0 = vadd.f32 %v808_v61, %v804_v58  ;;  %v820_v38 = vadd.f32 %v818_v56, %v814_v48  ;;  %v841_v61 = vstv %s7546_s15  ;;  %s7704_s15 = sld [smem:[#allocation5 + $0x38c]] }
 0x19d   : > { %v803_v56 = vmul.f32 %v801_v14, %v6853_v9  ;;  %v842_v58 = vmul.f32 %v841_v61, %v6917_v45  ;;  %v809_v14 = vmul.f32 %v807_v28, %v6966_v33  ;;  %v859_v28 = vstv %s7568_s4  ;;  %s7728_s4 = sld [smem:[#allocation5 + $0x10d]] }
 0x19e   : > { %10893 = vst [vmem:[#allocation11_spill] sm:$0xff] %v7548_v0  ;;  %v10803_v40 = vperm.slane %v7548_v0, 1  ;;  %v826_v62 = vadd.f32 %v824_v41, %v820_v38  ;;  %v847_v38 = vstv %s7553_s26  ;;  %s7709_s26 = sld [smem:[#allocation5 + $0x40c]] }
 0x1a1   : > { %1434 = vperm.xlu2 %6388, %v1423_v2   ;;  %1428 = vperm.xlu1 %6387, %v1423_v2   ;;  %v779_v2 = vmul.f32 %v777_v37, %v6920_v47 }
 0x1a2   : > { %2884 = vperm.xlu0 %6368, %v10800_v49   ;;  %v829_v49 = vstv %s7531_s24  ;;  %s7692_s24 = sld [smem:[#allocation5 + $0x30c]] }
 0x1a3   : > { %v781_v37 = vadd.f32 %v779_v2, %v775_v29  ;;  %v830_v29 = vmul.f32 %v829_v49, %v6890_v25  ;;  %v835_v2 = vstv %s7540_s25  ;;  %s7701_s25 = sld [smem:[#allocation5 + $0xd]] }
 0x1a4   : > { %v836_v41 = vmul.f32 %v7379_v43, %v835_v2 }
 0x1a5   : > { %v787_v63 = vadd.f32 %v785_v51, %v781_v37  ;;  %v832_v21 = vadd.f32 %v830_v29, %v826_v62  ;;  %v815_v37 = vmul.f32 %v813_v31, %v6897_v30  ;;  %v819_v51 = vmul.f32 %v817_v4, %v6841_v5 }
 0x1a6   : > { %v848_v4 = vmul.f32 %v847_v38, %v6907_v39 }
 0x1a7   : > { %v838_v62 = vadd.f32 %v836_v41, %v832_v21  ;;  %v821_v29 = vadd.f32 %v819_v51, %v815_v37  ;;  %v831_v21 = vmul.f32 %v829_v49, %v6920_v47  ;;  %v10810_v41 = vperm.slane %v7049_v59, 3 }
 0x1a8   : > { %v860_v37 = vmul.f32 %v859_v28, %v6934_v60 }
 0x1a9   : > { %1447 = vperm.xlu2 %6388, %v1436_v46   ;;  %1441 = vperm.xlu1 %6387, %v1436_v46   ;;  %v791_v46 = vmul.f32 %v789_v32, %v6938_v1  ;;  %v844_v31 = vadd.f32 %v842_v58, %v838_v62 }
 0x1aa   : > { %2949 = vperm.xlu0 %6368, %v10804_v52   ;;  %v825_v52 = vmul.f32 %v823_v26, %v6914_v42 }
 0x1ab   : > { %v793_v32 = vadd.f32 %v791_v46, %v787_v63  ;;  %v1462_v63 = vperm.slane %v7049_v59, 2  ;;  %v10809_v46 = vperm.slane %v7548_v0, 6 }
 0x1ad   : > { %v799_v48 = vadd.f32 %v797_v19, %v793_v32  ;;  %v853_v32 = vstv %s7564_s27  ;;  %s7712_s27 = sld [smem:[#allocation5 + $0x8d]] }
 0x1af   : > { %v805_v19 = vadd.f32 %v803_v56, %v799_v48  ;;  %v850_v48 = vadd.f32 %v848_v4, %v844_v31  ;;  %v827_v56 = vadd.f32 %v825_v52, %v821_v29  ;;  %v865_v52 = vstv %s7586_s5  ;;  %s7733_s5 = sld [smem:[#allocation5 + $0x18d]] }
 0x1b0   : > { %v849_v4 = vmul.f32 %v847_v38, %v6946_v7  ;;  %v866_v29 = vmul.f32 %v865_v52, %v6877_v18  ;;  %v855_v38 = vmul.f32 %v853_v32, %v6853_v9 }
 0x1b1   : > { %6390 = vset.pattern.permute.xlu2 %v6858_v11  ;;  %6389 = vset.pattern.permute.xlu1 %v6863_v12  ;;  %v833_v51 = vadd.f32 %v831_v21, %v827_v56  ;;  %v881_v21 = vstv %s7607_s9  ;;  %s7760_s9 = sld [smem:[#allocation5 + $0x30d]] }
 0x1b2   : > { %3014 = vperm.xlu0 %6368, %v10803_v40   ;;  %v7583_v40 = vadd.f32 %v809_v14, %v805_v19  ;;  %v837_v19 = vmul.f32 %v7396_v23, %v835_v2  ;;  %v869_v14 = vstv %s7589_s6  ;;  %s7744_s6 = sld [smem:[#allocation5 + $0x20d]] }
 0x1b3   : > { %v870_v2 = vmul.f32 %v869_v14, %v6836_v3 }
 0x1b4   : > { %10894 = vst [vmem:[#allocation12_spill] sm:$0xff] %v7583_v40  ;;  %v10808_v58 = vperm.slane %v7583_v40, 3  ;;  %v839_v62 = vadd.f32 %v837_v19, %v833_v51  ;;  %v871_v51 = vmul.f32 %v869_v14, %v6841_v5  ;;  %v1488_v19 = vperm.slane %v7049_v59, 4 }
 0x1b5   : > { %v872_v56 = vadd.f32 %v870_v2, %v866_v29  ;;  %v887_v29 = vstv %s7616_s17  ;;  %v893_v14 = vstv %s7621_s21  ;;  %s7767_s17 = sld [smem:[#allocation5 + $0xe]] }
 0x1b6   : > { %s7770_s21 = sld [smem:[#allocation5 + $0x38d]] }
 0x1b9   : > { %1467 = vperm.xlu2 %6390, %v1462_v63   ;;  %1460 = vperm.xlu1 %6389, %v1449_v15   ;;  %v854_v15 = vmul.f32 %v853_v32, %v6848_v8  ;;  %v882_v32 = vmul.f32 %v881_v21, %v6890_v25 }
 0x1ba   : > { %3079 = vperm.xlu0 %6368, %v10809_v46   ;;  %v933_v46 = vstv %s7665_s20  ;;  %s7823_s20 = sld [smem:[#allocation5 + $0x30e]] }
 0x1bb   : > { %v856_v26 = vadd.f32 %v854_v15, %v850_v48  ;;  %v875_v15 = vstv %s7601_s8  ;;  %s7751_s8 = sld [smem:[#allocation5 + $0x28d]] }
 0x1bd   : > { %v7603_v49 = vadd.f32 %v860_v37, %v856_v26  ;;  %v876_v37 = vmul.f32 %v875_v15, %v6884_v22  ;;  %v867_v26 = vmul.f32 %v865_v52, %v6897_v30 }
 0x1bf   : > { %10895 = vst [vmem:[#allocation13_spill] sm:$0xff] %v7603_v49  ;;  %v10806_v31 = vperm.slane %v7603_v49, 0  ;;  %v873_v52 = vadd.f32 %v871_v51, %v867_v26  ;;  %v883_v26 = vmul.f32 %v881_v21, %v6920_v47  ;;  %v1501_v51 = vperm.slane %v7049_v59, 5 }
 0x1c0   : > { %v911_v21 = vstv %s7645_s12  ;;  %s7797_s12 = sld [smem:[#allocation5 + $0x18e]] }
 0x1c1   : > { %1480 = vperm.xlu2 %6390, %v10810_v41   ;;  %1473 = vperm.xlu1 %6389, %v1462_v63   ;;  %v843_v63 = vmul.f32 %v841_v61, %v6938_v1 }
 0x1c2   : > { %3144 = vperm.xlu0 %6368, %v10808_v58  }
 0x1c3   : > { %v845_v48 = vadd.f32 %v843_v63, %v839_v62  ;;  %v861_v62 = vmul.f32 %v859_v28, %v6966_v33  ;;  %v10805_v63 = vperm.slane %v7603_v49, 5 }
 0x1c5   : > { %v851_v61 = vadd.f32 %v849_v4, %v845_v48  ;;  %v878_v48 = vadd.f32 %v876_v37, %v872_v56  ;;  %v894_v56 = vmul.f32 %v893_v14, %v6917_v45 }
 0x1c7   : > { %v857_v4 = vadd.f32 %v855_v38, %v851_v61  ;;  %v884_v2 = vadd.f32 %v882_v32, %v878_v48  ;;  %v888_v61 = vmul.f32 %v7379_v43, %v887_v29  ;;  %v877_v38 = vmul.f32 %v875_v15, %v6914_v42 }
 0x1c9   : > { %6392 = vset.pattern.permute.xlu2 %v6863_v12  ;;  %6391 = vset.pattern.permute.xlu1 %v6858_v11  ;;  %v7642_v28 = vadd.f32 %v861_v62, %v857_v4  ;;  %v879_v37 = vadd.f32 %v877_v38, %v873_v52  ;;  %v890_v4 = vadd.f32 %v888_v61, %v884_v2  ;;  %v905_v38 = vstv %s7640_s11  ;;  %s7791_s11 = sld [smem:[#allocation5 + $0x10e]] }
 0x1ca   : > { %3209 = vperm.xlu0 %6368, %v10806_v31   ;;  %v889_v52 = vmul.f32 %v7396_v23, %v887_v29  ;;  %v921_v31 = vstv %s7648_s18  ;;  %v906_v61 = vmul.f32 %v905_v38, %v6848_v8  ;;  %s7809_s18 = sld [smem:[#allocation5 + $0x20e]] }
 0x1cb   : > { %10896 = vst [vmem:[#allocation14_spill] sm:$0xff] %v7642_v28  ;;  %v10807_v62 = vperm.slane %v7642_v28, 2  ;;  %v896_v15 = vadd.f32 %v894_v56, %v890_v4  ;;  %v885_v32 = vadd.f32 %v883_v26, %v879_v37  ;;  %v895_v56 = vmul.f32 %v893_v14, %v6938_v1 }
 0x1cc   : > { %v912_v4 = vmul.f32 %v911_v21, %v6934_v60  ;;  %v10813_v37 = vperm.slane %v7642_v28, 7 }
 0x1d1   : > { %1499 = vperm.xlu2 %6392, %v1488_v19   ;;  %1493 = vperm.xlu1 %6391, %v1488_v19   ;;  %v899_v19 = vstv %s7630_s28  ;;  %s7777_s28 = sld [smem:[#allocation5 + $0x8e]] }
 0x1d2   : > { %3274 = vperm.xlu0 %6368, %v10805_v63   ;;  %v900_v48 = vmul.f32 %v899_v19, %v6907_v39  ;;  %v917_v63 = vstv %s7637_s29  ;;  %v901_v29 = vmul.f32 %v899_v19, %v6946_v7  ;;  %s7779_s29 = sld [smem:[#allocation5 + $0x40d]] }
 0x1d3   : > { %v918_v26 = vmul.f32 %v917_v63, %v6877_v18  ;;  %v919_v49 = vmul.f32 %v917_v63, %v6897_v30  ;;  %v945_v63 = vstv %s7681_s23  ;;  %s7838_s23 = sld [smem:[#allocation5 + $0x38e]] }
 0x1d4   : > { %v902_v2 = vadd.f32 %v900_v48, %v896_v15  ;;  %v927_v48 = vstv %s7660_s19  ;;  %s7815_s19 = sld [smem:[#allocation5 + $0x28e]] }
 0x1d5   : > { %v928_v41 = vmul.f32 %v927_v48, %v6884_v22 }
 0x1d6   : > { %v908_v14 = vadd.f32 %v906_v61, %v902_v2  ;;  %v1527_v2 = vperm.slane %v7049_v59, 7  ;;  %v913_v61 = vmul.f32 %v911_v21, %v6966_v33 }
 0x1d9   : > { %1512 = vperm.xlu2 %6392, %v1501_v51   ;;  %1506 = vperm.xlu1 %6391, %v1501_v51   ;;  %v891_v51 = vadd.f32 %v889_v52, %v885_v32  ;;  %v7683_v32 = vadd.f32 %v912_v4, %v908_v14  ;;  %v907_v52 = vmul.f32 %v905_v38, %v6853_v9  ;;  %v10898_v38 = vperm.slane %v7049_v59, 6 }
 0x1da   : > { %3339 = vperm.xlu0 %6368, %v10807_v62   ;;  %v922_v62 = vmul.f32 %v921_v31, %v6836_v3  ;;  %v946_v14 = vmul.f32 %v945_v63, %v6917_v45 }
 0x1db   : > { %v897_v15 = vadd.f32 %v895_v56, %v891_v51  ;;  %10897 = vst [vmem:[#allocation15_spill] sm:$0xff] %v7683_v32  ;;  %v10814_v51 = vperm.slane %v7683_v32, 4  ;;  %v985_v32 = vstv %s7733_s5  ;;  %s7897_s5 = sld [smem:[#allocation5 + $0x30f]] }
 0x1dc   : > { %v924_v58 = vadd.f32 %v922_v62, %v918_v26  ;;  %v934_v62 = vmul.f32 %v933_v46, %v6890_v25  ;;  %v929_v26 = vmul.f32 %v927_v48, %v6914_v42 }
 0x1dd   : > { %v903_v19 = vadd.f32 %v901_v29, %v897_v15  ;;  %v939_v29 = vstv %s7676_s22  ;;  %v10816_v15 = vperm.slane %v7093_v54, 0  ;;  %s7835_s22 = sld [smem:[#allocation5 + $0xf]] }
 0x1de   : > { %v930_v4 = vadd.f32 %v928_v41, %v924_v58  ;;  %v940_v58 = vmul.f32 %v7379_v43, %v939_v29 }
 0x1df   : > { %v909_v56 = vadd.f32 %v907_v52, %v903_v19  ;;  %v951_v19 = vstv %s7692_s24  ;;  %v7718_v52 = vpop.permute.xlu0 %1129  ;;  %s7842_s24 = sld [smem:[#allocation5 + $0x8f]] }
 0x1e0   : > { %v936_v41 = vadd.f32 %v934_v62, %v930_v4  ;;  %10900 = vst [vmem:[#allocation17_spill] sm:$0xff] %v7718_v52  ;;  %v941_v62 = vmul.f32 %v7396_v23, %v939_v29  ;;  %v953_v29 = vmul.f32 %v951_v19, %v6946_v7 }
 0x1e1   : > { %6394 = vset.pattern.permute.xlu2 %v6858_v11  ;;  %6393 = vset.pattern.permute.xlu1 %v6863_v12  ;;  %v7706_v21 = vadd.f32 %v913_v61, %v909_v56 }
 0x1e2   : > { %3404 = vperm.xlu0 %6368, %v10813_v37   ;;  %v923_v37 = vmul.f32 %v921_v31, %v6841_v5  ;;  %v942_v56 = vadd.f32 %v940_v58, %v936_v41 }
 0x1e3   : > { %10899 = vst [vmem:[#allocation16_spill] sm:$0xff] %v7706_v21  ;;  %v10815_v61 = vperm.slane %v7706_v21, 1 }
 0x1e4   : > { %v925_v31 = vadd.f32 %v923_v37, %v919_v49  ;;  %v935_v37 = vmul.f32 %v933_v46, %v6920_v47  ;;  %v948_v48 = vadd.f32 %v946_v14, %v942_v56  ;;  %v952_v46 = vmul.f32 %v951_v19, %v6907_v39 }
 0x1e5   : > { %v947_v14 = vmul.f32 %v945_v63, %v6938_v1 }
 0x1e6   : > { %v931_v49 = vadd.f32 %v929_v26, %v925_v31  ;;  %v963_v31 = vstv %s7709_s26  ;;  %v969_v26 = vstv %s7701_s25  ;;  %v954_v41 = vadd.f32 %v952_v46, %v948_v48  ;;  %s7844_s25 = sld [smem:[#allocation5 + $0x40e]] }
 0x1e7   : > { %v964_v56 = vmul.f32 %v963_v31, %v6934_v60  ;;  %v7746_v48 = vpop.permute.xlu0 %1194  ;;  %s7869_s26 = sld [smem:[#allocation5 + $0x18f]] }
 0x1e8   : > { %v937_v4 = vadd.f32 %v935_v37, %v931_v49  ;;  %v10821_v49 = vperm.slane %v7706_v21, 6  ;;  %v970_v37 = vmul.f32 %v969_v26, %v6877_v18  ;;  %10901 = vst [vmem:[#allocation18_spill] sm:$0xff] %v7746_v48  ;;  %v1553_v48 = vperm.slane %v7093_v54, 1 }
 0x1e9   : > { %1532 = vperm.xlu2 %6394, %v1527_v2   ;;  %1525 = vperm.xlu1 %6393, %v10898_v38   ;;  %v957_v38 = vstv %s7704_s15  ;;  %s7861_s15 = sld [smem:[#allocation5 + $0x10f]] }
 0x1ea   : > { %3469 = vperm.xlu0 %6368, %v10814_v51   ;;  %v973_v51 = vstv %s7712_s27  ;;  %v943_v58 = vadd.f32 %v941_v62, %v937_v4  ;;  %v979_v4 = vstv %s7728_s4  ;;  %s7879_s27 = sld [smem:[#allocation5 + $0x20f]] }
 0x1eb   : > { %v980_v28 = vmul.f32 %v979_v4, %v6884_v22  ;;  %s7885_s4 = sld [smem:[#allocation5 + $0x28f]] }
 0x1ec   : > { %v949_v46 = vadd.f32 %v947_v14, %v943_v58  ;;  %v986_v14 = vmul.f32 %v985_v32, %v6890_v25 }
 0x1ee   : > { %v955_v62 = vadd.f32 %v953_v29, %v949_v46  ;;  %v971_v29 = vmul.f32 %v969_v26, %v6897_v30  ;;  %v1009_v26 = vstv %s7770_s21  ;;  %s6704_s21 = smov 64  }
 0x1f1   : > { %1545 = vperm.xlu2 %6394, %v10816_v15   ;;  %1538 = vperm.xlu1 %6393, %v1527_v2   ;;  %v958_v2 = vmul.f32 %v957_v38, %v6848_v8  ;;  %v959_v15 = vmul.f32 %v957_v38, %v6853_v9  ;;  %v991_v38 = vstv %s7744_s6  ;;  %s7907_s6 = sld [smem:[#allocation5 + $0x38f]] }
 0x1f2   : > { %3534 = vperm.xlu0 %6368, %v10815_v61   ;;  %v974_v61 = vmul.f32 %v973_v51, %v6836_v3 }
 0x1f3   : > { %v960_v63 = vadd.f32 %v958_v2, %v954_v41  ;;  %v961_v2 = vadd.f32 %v959_v15, %v955_v62 }
 0x1f4   : > { %v976_v52 = vadd.f32 %v974_v61, %v970_v37  ;;  %v997_v61 = vstv %s7751_s8  ;;  %v975_v37 = vmul.f32 %v973_v51, %v6841_v5  ;;  %v981_v51 = vmul.f32 %v979_v4, %v6914_v42  ;;  %s7911_s8 = sld [smem:[#allocation5 + $0x40f]] }
 0x1f5   : > { %v7753_v19 = vadd.f32 %v964_v56, %v960_v63  ;;  %v999_v40 = vmul.f32 %v997_v61, %v6938_v1 }
 0x1f6   : > { %v982_v58 = vadd.f32 %v980_v28, %v976_v52  ;;  %v992_v28 = vmul.f32 %v7379_v43, %v991_v38  ;;  %v998_v52 = vmul.f32 %v997_v61, %v6917_v45  ;;  %v1043_v61 = vstv %s7809_s18 }
 0x1f7   : > { %10902 = vst [vmem:[#allocation19_spill] sm:$0xff] %v7753_v19  ;;  %v10822_v41 = vperm.slane %v7753_v19, 3  ;;  %v1037_v19 = vstv %s7797_s12  ;;  %s6085_s12 = sshll.u32 %s11694_s16, 2 }
 0x1f8   : > { %v988_v15 = vadd.f32 %v986_v14, %v982_v58  ;;  %v977_v58 = vadd.f32 %v975_v37, %v971_v29  ;;  %v1015_v14 = vstv %s7779_s29  ;;  %s6706_s29 = smov 96  }
 0x1f9   : > { %6396 = vset.pattern.permute.xlu2 %v6863_v12  ;;  %6395 = vset.pattern.permute.xlu1 %v6858_v11  ;;  %v1016_v37 = vmul.f32 %v1015_v14, %v6934_v60 }
 0x1fa   : > { %3599 = vperm.xlu0 %6368, %v10821_v49   ;;  %v965_v49 = vmul.f32 %v963_v31, %v6966_v33  ;;  %v7772_v31 = vpop.permute.xlu0 %1259  ;;  %v994_v46 = vadd.f32 %v992_v28, %v988_v15 }
 0x1fb   : > { %10903 = vst [vmem:[#allocation20_spill] sm:$0xff] %v7772_v31  ;;  %v1025_v31 = vstv %s7777_s28  ;;  %s6705_s28 = smov 80  }
 0x1fc   : > { %v7774_v56 = vadd.f32 %v965_v49, %v961_v2  ;;  %v1566_v49 = vperm.slane %v7093_v54, 2  ;;  %v1000_v62 = vadd.f32 %v998_v52, %v994_v46  ;;  %v983_v52 = vadd.f32 %v981_v51, %v977_v58 }
 0x1fd   : > { %v987_v46 = vmul.f32 %v985_v32, %v6920_v47  ;;  %v1031_v58 = vstv %s7791_s11  ;;  %s6707_s11 = smov 112  }
 0x1fe   : > { %v10823_v63 = vperm.slane %v7774_v56, 0  ;;  %v10832_v29 = vperm.slane %v7774_v56, 5  ;;  %v1032_v0 = vmul.f32 %v1031_v58, %v6884_v22 }
 0x1ff   : > { %v989_v32 = vadd.f32 %v987_v46, %v983_v52  ;;  %v10906_v46 = vperm.slane %v7093_v54, 3 }
 0x201   : > { %1564 = vperm.xlu2 %6396, %v1553_v48   ;;  %1558 = vperm.xlu1 %6395, %v1553_v48   ;;  %v1003_v48 = vstv %s7760_s9  ;;  %s6702_s9 = smov 32  }
 0x202   : > { %3664 = vperm.xlu0 %6368, %v10822_v41   ;;  %v1004_v2 = vmul.f32 %v1003_v48, %v6907_v39  ;;  %v1021_v41 = vstv %s7767_s17  ;;  %v7799_v15 = vpop.permute.xlu0 %1324  ;;  %s6703_s17 = smov 48  }
 0x203   : > { %10904 = vst [vmem:[#allocation21_spill] sm:$0xff] %v7799_v15  ;;  %v1022_v4 = vmul.f32 %v1021_v41, %v6877_v18 }
 0x204   : > { %v1006_v28 = vadd.f32 %v1004_v2, %v1000_v62  ;;  %v993_v2 = vmul.f32 %v7396_v23, %v991_v38 }
 0x206   : > { %v995_v21 = vadd.f32 %v993_v2, %v989_v32  ;;  %v10835_v2 = vperm.slane %v7093_v54, 5 }
 0x209   : > { %1577 = vperm.xlu2 %6396, %v1566_v49   ;;  %1571 = vperm.xlu1 %6395, %v1566_v49   ;;  %v1010_v49 = vmul.f32 %v1009_v26, %v6848_v8 }
 0x20a   : > { %3729 = vperm.xlu0 %6368, %v10823_v63   ;;  %v1026_v63 = vmul.f32 %v1025_v31, %v6836_v3 }
 0x20b   : > { %v1012_v62 = vadd.f32 %v1010_v49, %v1006_v28  ;;  %v7825_v28 = vpop.permute.xlu0 %1389  ;;  %v1005_v49 = vmul.f32 %v1003_v48, %v6946_v7 }
 0x20c   : > { %v1028_v15 = vadd.f32 %v1026_v63, %v1022_v4  ;;  %10905 = vst [vmem:[#allocation22_spill] sm:$0xff] %v7825_v28  ;;  %v1038_v63 = vmul.f32 %v1037_v19, %v6890_v25  ;;  %v1049_v4 = vstv %s7815_s19 }
 0x20d   : > { %v7817_v51 = vadd.f32 %v1016_v37, %v1012_v62  ;;  %v1001_v37 = vadd.f32 %v999_v40, %v995_v21  ;;  %v1050_v32 = vmul.f32 %v1049_v4, %v6917_v45  ;;  %v1023_v40 = vmul.f32 %v1021_v41, %v6897_v30 }
 0x20e   : > { %v1034_v52 = vadd.f32 %v1032_v0, %v1028_v15  ;;  %v1011_v0 = vmul.f32 %v1009_v26, %v6853_v9  ;;  %v1044_v15 = vmul.f32 %v7379_v43, %v1043_v61  ;;  %v1027_v21 = vmul.f32 %v1025_v31, %v6841_v5 }
 0x20f   : > { %v10833_v38 = vperm.slane %v7817_v51, 2  ;;  %v1007_v62 = vadd.f32 %v1005_v49, %v1001_v37  ;;  %v10834_v26 = vperm.slane %v7817_v51, 7  ;;  %v1017_v43 = vmul.f32 %v1015_v14, %v6966_v33 }
 0x210   : > { %v1040_v48 = vadd.f32 %v1038_v63, %v1034_v52  ;;  %v1029_v37 = vadd.f32 %v1027_v21, %v1023_v40  ;;  %v1033_v14 = vmul.f32 %v1031_v58, %v6914_v42 }
 0x211   : > { %6398 = vset.pattern.permute.xlu2 %v6858_v11  ;;  %6397 = vset.pattern.permute.xlu1 %v6863_v12  ;;  %v1013_v49 = vadd.f32 %v1011_v0, %v1007_v62  ;;  %v1067_v0 = vstv %s7844_s25 }
 0x212   : > { %3794 = vperm.xlu0 %6368, %v10832_v29   ;;  %v1592_v29 = vperm.slane %v7093_v54, 4  ;;  %v1046_v52 = vadd.f32 %v1044_v15, %v1040_v48  ;;  %v1073_v48 = vstv %s7835_s22  ;;  %v1077_v15 = vstv %s7842_s24 }
 0x213   : > { %v7855_v63 = vpop.permute.xlu0 %1454  ;;  %v7863_v62 = vadd.f32 %v1017_v43, %v1013_v49  ;;  %v1068_v21 = vmul.f32 %v1067_v0, %v6934_v60  ;;  %v1074_v49 = vmul.f32 %v1073_v48, %v6877_v18  ;;  %v1078_v58 = vmul.f32 %v1077_v15, %v6836_v3 }
 0x214   : > { %10907 = vst [vmem:[#allocation23_spill] sm:$0xff] %v7855_v63  ;;  %v1052_v41 = vadd.f32 %v1050_v32, %v1046_v52  ;;  %v1035_v32 = vadd.f32 %v1033_v14, %v1029_v37  ;;  %v1039_v52 = vmul.f32 %v1037_v19, %v6920_v47  ;;  %v1051_v14 = vmul.f32 %v1049_v4, %v6938_v1 }
 0x215   : > { %v10843_v40 = vperm.slane %v7863_v62, 4  ;;  %v1080_v3 = vadd.f32 %v1078_v58, %v1074_v49 }
 0x216   : > { %v1041_v19 = vadd.f32 %v1039_v52, %v1035_v32 }
 0x219   : > { %1597 = vperm.xlu2 %6398, %v1592_v29   ;;  %1590 = vperm.xlu1 %6397, %v10906_v46   ;;  %v1055_v46 = vstv %s7823_s20  ;;  %s221_s20 = scalar_lea.vmem %s10775_s3, %s6085_s12 }
 0x21a   : > { %3859 = vperm.xlu0 %6368, %v10833_v38   ;;  %v1056_v31 = vmul.f32 %v1055_v46, %v6907_v39  ;;  %v1061_v38 = vstv %s7838_s23  ;;  %v1057_v32 = vmul.f32 %v1055_v46, %v6946_v7  ;;  %v6572_v46 = vld [vmem:[%s6814_s10] sm:$0xff] }
 0x21b   : > { %v7887_v37 = vpop.permute.xlu0 %1519 }
 0x21c   : > { %10908 = vst [vmem:[#allocation24_spill] sm:$0xff] %v7887_v37 }
 0x221   : > { %1610 = vperm.xlu2 %6398, %v10835_v2   ;;  %1603 = vperm.xlu1 %6397, %v1592_v29   ;;  %v1058_v29 = vadd.f32 %v1056_v31, %v1052_v41  ;;  %v1045_v41 = vmul.f32 %v7396_v23, %v1043_v61  ;;  %v1083_v31 = vstv %s7861_s15  ;;  %v1089_v2 = vstv %s7869_s26 }
 0x222   : > { %3924 = vperm.xlu0 %6368, %v10834_v26   ;;  %v1062_v26 = vmul.f32 %v1061_v38, %v6848_v8  ;;  %v1084_v63 = vmul.f32 %v1083_v31, %v6884_v22  ;;  %v1079_v23 = vmul.f32 %v1077_v15, %v6841_v5  ;;  %v1618_v61 = vperm.slane %v7093_v54, 6 }
 0x223   : > { %v1047_v28 = vadd.f32 %v1045_v41, %v1041_v19  ;;  %v1090_v4 = vmul.f32 %v1089_v2, %v6890_v25  ;;  %v1095_v22 = vstv %s7879_s27  ;;  %v1101_v15 = vstv %s7885_s4  ;;  %v7913_v58 = vpop.permute.xlu0 %1584 }
 0x224   : > { %v1064_v43 = vadd.f32 %v1062_v26, %v1058_v29  ;;  %v1075_v26 = vmul.f32 %v1073_v48, %v6897_v30  ;;  %v1086_v52 = vadd.f32 %v1084_v63, %v1080_v3  ;;  %v1063_v48 = vmul.f32 %v1061_v38, %v6853_v9  ;;  %10910 = vst [vmem:[#allocation26_spill] sm:$0xff] %v7913_v58 }
 0x225   : > { %v1053_v30 = vadd.f32 %v1051_v14, %v1047_v28  ;;  %v1096_v63 = vmul.f32 %v6572_v46, %v1095_v22  ;;  %v1085_v25 = vmul.f32 %v1083_v31, %v6914_v42  ;;  %v1102_v28 = vmul.f32 %v1101_v15, %v6917_v45 }
 0x226   : > { %v7889_v18 = vadd.f32 %v1068_v21, %v1064_v43  ;;  %v1081_v5 = vadd.f32 %v1079_v23, %v1075_v26  ;;  %v1092_v49 = vadd.f32 %v1090_v4, %v1086_v52  ;;  %v1091_v38 = vmul.f32 %v1089_v2, %v6920_v47  ;;  %v6573_v47 = vld [vmem:[%s6814_s10 + $0x8] sm:$0xff]  ;;  %s6701_s10 = smov 16  }
 0x227   : > { %v1059_v21 = vadd.f32 %v1057_v32, %v1053_v30  ;;  %v1631_v19 = vperm.slane %v7093_v54, 7  ;;  %v1107_v41 = vstv %s7897_s5  ;;  %v1069_v42 = vmul.f32 %v1067_v0, %v6966_v33 }
 0x228   : > { %10909 = vst [vmem:[#allocation25_spill] sm:$0xff] %v7889_v18  ;;  %v10842_v29 = vperm.slane %v7889_v18, 1  ;;  %v1087_v43 = vadd.f32 %v1085_v25, %v1081_v5  ;;  %v10841_v3 = vperm.slane %v7889_v18, 6  ;;  %v1098_v31 = vadd.f32 %v1096_v63, %v1092_v49 }
 0x229   : > { %6400 = vset.pattern.permute.xlu2 %v6863_v12  ;;  %6399 = vset.pattern.permute.xlu1 %v6858_v11  ;;  %v1065_v14 = vadd.f32 %v1063_v48, %v1059_v21  ;;  %v1108_v26 = vmul.f32 %v1107_v41, %v6907_v39  ;;  %v1097_v2 = vmul.f32 %v6573_v47, %v1095_v22  ;;  %v1119_v52 = vstv %s7911_s8 }
 0x22a   : > { %3989 = vperm.xlu0 %6368, %v10843_v40   ;;  %v1104_v45 = vadd.f32 %v1102_v28, %v1098_v31  ;;  %v1093_v23 = vadd.f32 %v1091_v38, %v1087_v43  ;;  %v1103_v5 = vmul.f32 %v1101_v15, %v6938_v1  ;;  %v1120_v49 = vmul.f32 %v1119_v52, %v6934_v60 }
 0x22b   : > { %v7926_v32 = vadd.f32 %v1069_v42, %v1065_v14  ;;  %v7931_v48 = vpop.permute.xlu0 %1649  ;;  %v1109_v39 = vmul.f32 %v1107_v41, %v6946_v7  ;;  %v1657_v63 = vperm.slane %v7113_v17, 1  ;;  %v1121_v7 = vmul.f32 %v1119_v52, %v6966_v33 }
 0x22c   : > { %v1110_v4 = vadd.f32 %v1108_v26, %v1104_v45  ;;  %v1099_v0 = vadd.f32 %v1097_v2, %v1093_v23  ;;  %10912 = vst [vmem:[#allocation28_spill] sm:$0xff] %v7931_v48  ;;  %v10914_v28 = vperm.slane %v7113_v17, 0  ;;  %v1683_v42 = vperm.slane %v7113_v17, 3 }
 0x22d   : > { %10911 = vst [vmem:[#allocation27_spill] sm:$0xff] %v7926_v32  ;;  %v10840_v21 = vperm.slane %v7926_v32, 3  ;;  %v1696_v45 = vperm.slane %v7113_v17, 4  ;;  %v10921_v47 = vperm.slane %v6948_v10, 2  ;;  %v1722_v2 = vperm.slane %v7113_v17, 6 }
 0x22e   : > { %v10923_v52 = vperm.slane %v6948_v10, 7  ;;  %v1748_v10 = vperm.slane %v7154_v20, 0  ;;  %v1956_v40 = vperm.slane %v7218_v44, 0  ;;  %v10977_v48 = vperm.slane %v7218_v44, 6 }
 0x231   : > { %1629 = vperm.xlu2 %6400, %v1618_v61   ;;  %1623 = vperm.xlu1 %6399, %v1618_v61   ;;  %v1113_v61 = vstv %s7907_s6 }
 0x232   : > { %4054 = vperm.xlu0 %6368, %v10842_v29   ;;  %v1114_v30 = vmul.f32 %v1113_v61, %v6848_v8  ;;  %v1105_v8 = vadd.f32 %v1103_v5, %v1099_v0  ;;  %v1115_v15 = vmul.f32 %v1113_v61, %v6853_v9  ;;  %v1670_v9 = vperm.slane %v7113_v17, 2 }
 0x233   : > { %v7948_v43 = vpop.permute.xlu0 %1714  ;;  %v10922_v61 = vperm.slane %v7113_v17, 5  ;;  %v10925_v0 = vperm.slane %v6987_v50, 4  ;;  %v1761_v50 = vperm.slane %v7154_v20, 1 }
 0x234   : > { %v1116_v22 = vadd.f32 %v1114_v30, %v1110_v4  ;;  %v1111_v1 = vadd.f32 %v1109_v39, %v1105_v8  ;;  %10915 = vst [vmem:[#allocation30_spill] sm:$0xff] %v7948_v43  ;;  %v1735_v30 = vperm.slane %v7113_v17, 7  ;;  %v10929_v17 = vperm.slane %v7029_v35, 6 }
 0x235   : > { %v10931_v8 = vperm.slane %v7049_v59, 3 }
 0x236   : > { %v7940_v46 = vadd.f32 %v1120_v49, %v1116_v22  ;;  %v1117_v25 = vadd.f32 %v1115_v15, %v1111_v1  ;;  %v10927_v49 = vperm.slane %v7029_v35, 1  ;;  %v10932_v1 = vperm.slane %v7093_v54, 0 }
 0x237   : > { %v1787_v35 = vperm.slane %v7154_v20, 3 }
 0x238   : > { %10913 = vst [vmem:[#allocation29_spill] sm:$0xff] %v7940_v46  ;;  %v10839_v60 = vperm.slane %v7940_v46, 0  ;;  %v7952_v38 = vadd.f32 %v1121_v7, %v1117_v25  ;;  %v10837_v41 = vperm.slane %v7940_v46, 5  ;;  %v10935_v25 = vperm.slane %v7093_v54, 5 }
 0x239   : > { %1642 = vperm.xlu2 %6400, %v1631_v19   ;;  %1636 = vperm.xlu1 %6399, %v1631_v19   ;;  %v1800_v7 = vperm.slane %v7154_v20, 4 }
 0x23a   : > { %4119 = vperm.xlu0 %6368, %v10841_v3   ;;  %10916 = vst [vmem:[#allocation31_spill] sm:$0xff] %v7952_v38  ;;  %v10838_v19 = vperm.slane %v7952_v38, 2  ;;  %v10836_v31 = vperm.slane %v7952_v38, 4 }
 0x23b   : > { %v7958_v33 = vpop.permute.xlu0 %1779 }
 0x23c   : > { %10917 = vst [vmem:[#allocation32_spill] sm:$0xff] %v7958_v33  ;;  %v10857_v33 = vperm.slane %v7525_v6, 1 }
 0x241   : > { %6402 = vset.pattern.permute.xlu2 %v6858_v11  ;;  %6401 = vset.pattern.permute.xlu1 %v6863_v12 }
 0x242   : > { %4184 = vperm.xlu0 %6368, %v10840_v21  }
 0x243   : > { %v7965_v14 = vpop.permute.xlu0 %1844 }
 0x244   : > { %10918 = vst [vmem:[#allocation33_spill] sm:$0xff] %v7965_v14 }
 0x249   : > { %1662 = vperm.xlu2 %6402, %v1657_v63   ;;  %1655 = vperm.xlu1 %6401, %v10914_v28  }
 0x24a   : > { %4249 = vperm.xlu0 %6368, %v10839_v60   ;;  %v10846_v60 = vperm.slane %v7422_v53, 0 }
 0x24b   : > { %v7972_v26 = vpop.permute.xlu0 %1909 }
 0x24c   : > { %10919 = vst [vmem:[#allocation34_spill] sm:$0xff] %v7972_v26 }
 0x251   : > { %1675 = vperm.xlu2 %6402, %v1670_v9   ;;  %1668 = vperm.xlu1 %6401, %v1657_v63   ;;  %v10934_v63 = vperm.slane %v7154_v20, 2 }
 0x252   : > { %4379 = vperm.xlu0 %6368, %v10838_v19  }
 0x253   : > { %v7977_v23 = vpop.permute.xlu0 %1974 }
 0x254   : > { %10920 = vst [vmem:[#allocation35_spill] sm:$0xff] %v7977_v23 }
 0x259   : > { %6404 = vset.pattern.permute.xlu2 %v6863_v12  ;;  %6403 = vset.pattern.permute.xlu1 %v6858_v11 }
 0x25a   : > { %4314 = vperm.xlu0 %6368, %v10837_v41   ;;  %v10844_v41 = vperm.slane %v7376_v13, 3 }
 0x25b   : > { %v7986_v4 = vpop.permute.xlu0 %2039 }
 0x25c   : > { %10924 = vst [vmem:[#allocation36_spill] sm:$0xff] %v7986_v4  ;;  %v2658_v4 = vperm.slane %v7422_v53, 6 }
 0x261   : > { %1694 = vperm.xlu2 %6404, %v1683_v42   ;;  %1688 = vperm.xlu1 %6403, %v1683_v42   ;;  %v1813_v42 = vperm.slane %v7154_v20, 5 }
 0x262   : > { %4405 = vperm.xlu0 %6368, %v10836_v31  }
 0x263   : > { %v7991_v5 = vpop.permute.xlu0 %2104 }
 0x264   : > { %10926 = vst [vmem:[#allocation37_spill] sm:$0xff] %v7991_v5 }
 0x269   : > { %1707 = vperm.xlu2 %6404, %v1696_v45   ;;  %1701 = vperm.xlu1 %6403, %v1696_v45   ;;  %v1826_v45 = vperm.slane %v7154_v20, 6 }
 0x26a   : > { %6566 = vset.pattern.permute.xlu0 %v6863_v12 }
 0x26b   : > { %v7998_v39 = vpop.permute.xlu0 %2169 }
 0x26c   : > { %10928 = vst [vmem:[#allocation38_spill] sm:$0xff] %v7998_v39 }
 0x271   : > { %6406 = vset.pattern.permute.xlu2 %v6858_v11  ;;  %6405 = vset.pattern.permute.xlu1 %v6863_v12 }
 0x272   : > { %1161 = vperm.xlu0 %6566, %v10921_v47   ;;  %v1865_v47 = vperm.slane %v7193_v36, 1 }
 0x273   : > { %v8003_v22 = vpop.permute.xlu0 %2234 }
 0x274   : > { %10930 = vst [vmem:[#allocation39_spill] sm:$0xff] %v8003_v22 }
 0x279   : > { %1727 = vperm.xlu2 %6406, %v1722_v2   ;;  %1720 = vperm.xlu1 %6405, %v10922_v61  }
 0x27a   : > { %1226 = vperm.xlu0 %6566, %v10923_v52   ;;  %v1852_v52 = vperm.slane %v7193_v36, 0 }
 0x27b   : > { %v8011_v15 = vpop.permute.xlu0 %2299 }
 0x27c   : > { %10933 = vst [vmem:[#allocation40_spill] sm:$0xff] %v8011_v15 }
 0x281   : > { %1740 = vperm.xlu2 %6406, %v1735_v30   ;;  %1733 = vperm.xlu1 %6405, %v1722_v2   ;;  %v1930_v2 = vperm.slane %v7193_v36, 6 }
 0x282   : > { %1291 = vperm.xlu0 %6566, %v10925_v0   ;;  %v10941_v0 = vperm.slane %v7154_v20, 7 }
 0x283   : > { %v8018_v59 = vpop.permute.xlu0 %2364 }
 0x284   : > { %10936 = vst [vmem:[#allocation41_spill] sm:$0xff] %v8018_v59 }
 0x289   : > { %6408 = vset.pattern.permute.xlu2 %v6863_v12  ;;  %6407 = vset.pattern.permute.xlu1 %v6858_v11 }
 0x28a   : > { %1356 = vperm.xlu0 %6566, %v10927_v49  }
 0x28b   : > { %v8021_v28 = vpop.permute.xlu0 %2429 }
 0x28c   : > { %10937 = vst [vmem:[#allocation42_spill] sm:$0xff] %v8021_v28 }
 0x291   : > { %1759 = vperm.xlu2 %6408, %v1748_v10   ;;  %1753 = vperm.xlu1 %6407, %v1748_v10   ;;  %v10854_v10 = vperm.slane %v7253_v57, 0 }
 0x292   : > { %1421 = vperm.xlu0 %6566, %v10929_v17   ;;  %v10852_v17 = vperm.slane %v7253_v57, 5 }
 0x293   : > { %v8026_v54 = vpop.permute.xlu0 %2494 }
 0x294   : > { %10938 = vst [vmem:[#allocation43_spill] sm:$0xff] %v8026_v54  ;;  %v11100_v54 = vperm.slane %v7422_v53, 3 }
 0x299   : > { %1772 = vperm.xlu2 %6408, %v1761_v50   ;;  %1766 = vperm.xlu1 %6407, %v1761_v50   ;;  %v1878_v50 = vperm.slane %v7193_v36, 2 }
 0x29a   : > { %1486 = vperm.xlu0 %6566, %v10931_v8   ;;  %v10851_v8 = vperm.slane %v7271_v34, 2 }
 0x2a1   : > { %6410 = vset.pattern.permute.xlu2 %v6858_v11  ;;  %6409 = vset.pattern.permute.xlu1 %v6863_v12 }
 0x2a2   : > { %1551 = vperm.xlu0 %6566, %v10932_v1  }
 0x2a9   : > { %1792 = vperm.xlu2 %6410, %v1787_v35   ;;  %1785 = vperm.xlu1 %6409, %v10934_v63   ;;  %v10850_v63 = vperm.slane %v7271_v34, 7 }
 0x2aa   : > { %1616 = vperm.xlu0 %6566, %v10935_v25  }
 0x2b1   : > { %1805 = vperm.xlu2 %6410, %v1800_v7   ;;  %1798 = vperm.xlu1 %6409, %v1787_v35   ;;  %v1891_v35 = vperm.slane %v7193_v36, 3 }
 0x2b2   : > { %1681 = vperm.xlu0 %6566, %v1670_v9   ;;  %v8030_v9 = vpop.permute.xlu0 %2559 }
 0x2b3   : > { %10939 = vst [vmem:[#allocation44_spill] sm:$0xff] %v8030_v9 }
 0x2b9   : > { %6412 = vset.pattern.permute.xlu2 %v6863_v12  ;;  %6411 = vset.pattern.permute.xlu1 %v6858_v11 }
 0x2ba   : > { %1746 = vperm.xlu0 %6566, %v1735_v30   ;;  %v8035_v61 = vpop.permute.xlu0 %2624  ;;  %v1995_v30 = vperm.slane %v7218_v44, 3 }
 0x2bb   : > { %10940 = vst [vmem:[#allocation45_spill] sm:$0xff] %v8035_v61 }
 0x2c1   : > { %1824 = vperm.xlu2 %6412, %v1813_v42   ;;  %1818 = vperm.xlu1 %6411, %v1813_v42   ;;  %v1917_v42 = vperm.slane %v7193_v36, 5 }
 0x2c2   : > { %1811 = vperm.xlu0 %6566, %v1800_v7   ;;  %v8043_v49 = vpop.permute.xlu0 %2689  ;;  %v10849_v7 = vperm.slane %v7310_v16, 4 }
 0x2c3   : > { %10942 = vst [vmem:[#allocation46_spill] sm:$0xff] %v8043_v49 }
 0x2c9   : > { %1837 = vperm.xlu2 %6412, %v1826_v45   ;;  %1831 = vperm.xlu1 %6411, %v1826_v45  }
 0x2ca   : > { %1876 = vperm.xlu0 %6566, %v1865_v47   ;;  %v8051_v20 = vpop.permute.xlu0 %2754 }
 0x2cb   : > { %10943 = vst [vmem:[#allocation47_spill] sm:$0xff] %v8051_v20  ;;  %v10970_v20 = vld [vmem:[#allocation11_spill] sm:$0xff] }
 0x2d1   : > { %6414 = vset.pattern.permute.xlu2 %v6858_v11  ;;  %6413 = vset.pattern.permute.xlu1 %v6863_v12 }
 0x2d2   : > { %1941 = vperm.xlu0 %6566, %v1930_v2   ;;  %v8059_v1 = vpop.permute.xlu0 %2819 }
 0x2d3   : > { %10944 = vst [vmem:[#allocation48_spill] sm:$0xff] %v8059_v1 }
 0x2d9   : > { %1857 = vperm.xlu2 %6414, %v1852_v52   ;;  %1850 = vperm.xlu1 %6413, %v10941_v0   ;;  %v8080_v0 = vpop.permute.xlu1 %1135 }
 0x2da   : > { %2006 = vperm.xlu0 %6566, %v1995_v30   ;;  %v8065_v25 = vpop.permute.xlu0 %2884 }
 0x2db   : > { %10945 = vst [vmem:[#allocation49_spill] sm:$0xff] %v8065_v25 }
 0x2e1   : > { %1870 = vperm.xlu2 %6414, %v1865_v47   ;;  %1863 = vperm.xlu1 %6413, %v1852_v52   ;;  %v10847_v47 = vperm.slane %v7354_v55, 1  ;;  %v10947_v52 = vperm.slane %v7193_v36, 4  ;;  %v8090_v19 = vpop.permute.xlu1 %1148 }
 0x2e2   : > { %2071 = vperm.xlu0 %6566, %v10854_v10   ;;  %v8073_v45 = vpop.permute.xlu0 %2949  ;;  %10950 = vst [vmem:[#allocation53_spill] sm:$0xff] %v8090_v19  ;;  %v2086_v19 = vperm.slane %v7253_v57, 2 }
 0x2e3   : > { %10946 = vst [vmem:[#allocation50_spill] sm:$0xff] %v8073_v45  ;;  %v10859_v45 = vperm.slane %v10970_v20, 3 }
 0x2e9   : > { %6416 = vset.pattern.permute.xlu2 %v6863_v12  ;;  %6415 = vset.pattern.permute.xlu1 %v6858_v11  ;;  %v8102_v21 = vpop.permute.xlu1 %1168 }
 0x2ea   : > { %2136 = vperm.xlu0 %6566, %v10852_v17   ;;  %v8085_v31 = vpop.permute.xlu0 %3014  ;;  %10953 = vst [vmem:[#allocation56_spill] sm:$0xff] %v8102_v21  ;;  %v11000_v21 = vperm.slane %v7253_v57, 5 }
 0x2eb   : > { %10949 = vst [vmem:[#allocation52_spill] sm:$0xff] %v8085_v31 }
 0x2f1   : > { %1889 = vperm.xlu2 %6416, %v1878_v50   ;;  %1883 = vperm.xlu1 %6415, %v1878_v50   ;;  %v10845_v50 = vperm.slane %v7354_v55, 6 }
 0x2f2   : > { %2201 = vperm.xlu0 %6566, %v10851_v8  }
 0x2f9   : > { %1902 = vperm.xlu2 %6416, %v1891_v35   ;;  %1896 = vperm.xlu1 %6415, %v1891_v35   ;;  %v8083_v35 = vpop.permute.xlu2 %1142 }
 0x2fa   : > { %2266 = vperm.xlu0 %6566, %v10850_v63   ;;  %10948 = vst [vmem:[#allocation51_spill] sm:$0xff] %v8083_v35  ;;  %v10959_v63 = vperm.slane %v7218_v44, 1 }
 0x301   : > { %6418 = vset.pattern.permute.xlu2 %v6858_v11  ;;  %6417 = vset.pattern.permute.xlu1 %v6863_v12 }
 0x302   : > { %2331 = vperm.xlu0 %6566, %v10849_v7  }
 0x309   : > { %1922 = vperm.xlu2 %6418, %v1917_v42   ;;  %1915 = vperm.xlu1 %6417, %v10947_v52   ;;  %v8096_v52 = vpop.permute.xlu0 %3079 }
 0x30a   : > { %2396 = vperm.xlu0 %6566, %v10847_v47   ;;  %10951 = vst [vmem:[#allocation54_spill] sm:$0xff] %v8096_v52 }
 0x311   : > { %1935 = vperm.xlu2 %6418, %v1930_v2   ;;  %1928 = vperm.xlu1 %6417, %v1917_v42   ;;  %v8098_v2 = vpop.permute.xlu2 %1155  ;;  %v1943_v42 = vperm.slane %v7193_v36, 7  ;;  %v8106_v3 = vpop.permute.xlu0 %3144 }
 0x312   : > { %2461 = vperm.xlu0 %6566, %v10845_v50   ;;  %10952 = vst [vmem:[#allocation55_spill] sm:$0xff] %v8098_v2  ;;  %v8114_v36 = vpop.permute.xlu1 %1181  ;;  %v10858_v2 = vperm.slane %v7525_v6, 6 }
 0x313   : > { %10954 = vst [vmem:[#allocation57_spill] sm:$0xff] %v8106_v3 }
 0x314   : > { %10956 = vst [vmem:[#allocation59_spill] sm:$0xff] %v8114_v36  ;;  %v10986_v36 = vld [vmem:[#allocation14_spill] sm:$0xff] }
 0x319   : > { %6420 = vset.pattern.permute.xlu2 %v6863_v12  ;;  %6419 = vset.pattern.permute.xlu1 %v6858_v11  ;;  %v8108_v29 = vpop.permute.xlu2 %1174  ;;  %v8116_v50 = vpop.permute.xlu0 %3209 }
 0x31a   : > { %2526 = vperm.xlu0 %6566, %v10844_v41   ;;  %10955 = vst [vmem:[#allocation58_spill] sm:$0xff] %v8108_v29  ;;  %v10848_v41 = vperm.slane %v7422_v53, 5  ;;  %v8125_v47 = vpop.permute.xlu1 %1200 }
 0x31b   : > { %10957 = vst [vmem:[#allocation60_spill] sm:$0xff] %v8116_v50 }
 0x321   : > { %1954 = vperm.xlu2 %6420, %v1943_v42   ;;  %1948 = vperm.xlu1 %6419, %v1943_v42   ;;  %v10853_v42 = vperm.slane %v7442_v27, 2  ;;  %v8133_v8 = vpop.permute.xlu0 %3274 }
 0x322   : > { %2591 = vperm.xlu0 %6566, %v10846_v60   ;;  %v8119_v60 = vpop.permute.xlu2 %1187  ;;  %10960 = vst [vmem:[#allocation62_spill] sm:$0xff] %v8133_v8  ;;  %v8137_v17 = vpop.permute.xlu1 %1213 }
 0x323   : > { %10961 = vst [vmem:[#allocation63_spill] sm:$0xff] %v8137_v17 }
 0x329   : > { %1967 = vperm.xlu2 %6420, %v1956_v40   ;;  %1961 = vperm.xlu1 %6419, %v1956_v40   ;;  %v1982_v40 = vperm.slane %v7218_v44, 2  ;;  %v8146_v1 = vpop.permute.xlu0 %3339 }
 0x32a   : > { %2656 = vperm.xlu0 %6566, %v10848_v41   ;;  %v10856_v41 = vperm.slane %v7442_v27, 7  ;;  %v8129_v7 = vpop.permute.xlu2 %1207  ;;  %10963 = vst [vmem:[#allocation65_spill] sm:$0xff] %v8146_v1  ;;  %v10874_v1 = vperm.slane %v7863_v62, 6 }
 0x32b   : > { %10958 = vst [vmem:[#allocation61_spill] sm:$0xff] %v8129_v7 }
 0x331   : > { %6422 = vset.pattern.permute.xlu2 %v6858_v11  ;;  %6421 = vset.pattern.permute.xlu1 %v6863_v12 }
 0x332   : > { %2721 = vperm.xlu0 %6566, %v10853_v42   ;;  %v10855_v42 = vperm.slane %v7486_v24, 4  ;;  %v8144_v10 = vpop.permute.xlu2 %1220 }
 0x333   : > { %10962 = vst [vmem:[#allocation64_spill] sm:$0xff] %v8144_v10  ;;  %v10864_v10 = vperm.slane %v10986_v36, 4 }
 0x339   : > { %1987 = vperm.xlu2 %6422, %v1982_v40   ;;  %1980 = vperm.xlu1 %6421, %v10959_v63   ;;  %v8148_v63 = vpop.permute.xlu1 %1233 }
 0x33a   : > { %2786 = vperm.xlu0 %6566, %v10856_v41   ;;  %10964 = vst [vmem:[#allocation66_spill] sm:$0xff] %v8148_v63  ;;  %v2008_v41 = vperm.slane %v7218_v44, 4 }
 0x341   : > { %2000 = vperm.xlu2 %6422, %v1995_v30   ;;  %1993 = vperm.xlu1 %6421, %v1982_v40   ;;  %v8155_v30 = vpop.permute.xlu2 %1239  ;;  %v8157_v40 = vpop.permute.xlu0 %3404 }
 0x342   : > { %2851 = vperm.xlu0 %6566, %v10855_v42   ;;  %10965 = vst [vmem:[#allocation67_spill] sm:$0xff] %v8155_v30  ;;  %v8159_v42 = vpop.permute.xlu1 %1246 }
 0x343   : > { %10966 = vst [vmem:[#allocation68_spill] sm:$0xff] %v8157_v40 }
 0x344   : > { %10967 = vst [vmem:[#allocation69_spill] sm:$0xff] %v8159_v42 }
 0x349   : > { %6424 = vset.pattern.permute.xlu2 %v6863_v12  ;;  %6423 = vset.pattern.permute.xlu1 %v6858_v11  ;;  %v8165_v31 = vpop.permute.xlu2 %1252  ;;  %v8170_v35 = vpop.permute.xlu0 %3469 }
 0x34a   : > { %2916 = vperm.xlu0 %6566, %v10857_v33   ;;  %v8167_v23 = vpop.permute.xlu1 %1265  ;;  %v2021_v33 = vperm.slane %v7218_v44, 5  ;;  %10969 = vst [vmem:[#allocation71_spill] sm:$0xff] %v8170_v35 }
 0x34b   : > { %10968 = vst [vmem:[#allocation70_spill] sm:$0xff] %v8167_v23  ;;  %v2463_v23 = vperm.slane %v7354_v55, 7 }
 0x351   : > { %2019 = vperm.xlu2 %6424, %v2008_v41   ;;  %2013 = vperm.xlu1 %6423, %v2008_v41   ;;  %v8175_v43 = vpop.permute.xlu2 %1272  ;;  %v10972_v41 = vld [vmem:[#allocation12_spill] sm:$0xff]  ;;  %v8182_v49 = vpop.permute.xlu0 %3534 }
 0x352   : > { %2981 = vperm.xlu0 %6566, %v10858_v2   ;;  %10971 = vst [vmem:[#allocation11_spill] sm:$0xff] %v8175_v43  ;;  %v10860_v26 = vperm.slane %v10972_v41, 0  ;;  %v8178_v2 = vpop.permute.xlu1 %1278 }
 0x353   : > { %10973 = vst [vmem:[#allocation12_spill] sm:$0xff] %v8178_v2 }
 0x354   : > { %10974 = vst [vmem:[#allocation72_spill] sm:$0xff] %v8182_v49 }
 0x359   : > { %2032 = vperm.xlu2 %6424, %v2021_v33   ;;  %2026 = vperm.xlu1 %6423, %v2021_v33   ;;  %v8186_v35 = vpop.permute.xlu2 %1285  ;;  %v2047_v33 = vperm.slane %v7218_v44, 7  ;;  %v8196_v28 = vpop.permute.xlu0 %3599 }
 0x35a   : > { %3046 = vperm.xlu0 %6566, %v10859_v45   ;;  %10975 = vst [vmem:[#allocation73_spill] sm:$0xff] %v8186_v35  ;;  %v10861_v45 = vperm.slane %v10972_v41, 5  ;;  %v8190_v25 = vpop.permute.xlu1 %1298  ;;  %v10981_v35 = vperm.slane %v7253_v57, 0 }
 0x35b   : > { %10976 = vst [vmem:[#allocation74_spill] sm:$0xff] %v8190_v25 }
 0x35c   : > { %10978 = vst [vmem:[#allocation75_spill] sm:$0xff] %v8196_v28  ;;  %v2151_v28 = vperm.slane %v7253_v57, 7 }
 0x361   : > { %6426 = vset.pattern.permute.xlu2 %v6858_v11  ;;  %6425 = vset.pattern.permute.xlu1 %v6863_v12  ;;  %v8198_v63 = vpop.permute.xlu2 %1304  ;;  %v8207_v44 = vpop.permute.xlu0 %3664 }
 0x362   : > { %3111 = vperm.xlu0 %6566, %v10860_v26   ;;  %10979 = vst [vmem:[#allocation76_spill] sm:$0xff] %v8198_v63  ;;  %v10980_v26 = vld [vmem:[#allocation13_spill] sm:$0xff]  ;;  %v8205_v25 = vpop.permute.xlu1 %1311 }
 0x363   : > { %v10862_v14 = vperm.slane %v10980_v26, 2  ;;  %10982 = vst [vmem:[#allocation13_spill] sm:$0xff] %v8205_v25 }
 0x364   : > { %10983 = vst [vmem:[#allocation77_spill] sm:$0xff] %v8207_v44 }
 0x369   : > { %2052 = vperm.xlu2 %6426, %v2047_v33   ;;  %2045 = vperm.xlu1 %6425, %v10977_v48   ;;  %v10863_v48 = vperm.slane %v10980_v26, 7 }
 0x36a   : > { %3176 = vperm.xlu0 %6566, %v10861_v45   ;;  %v8210_v45 = vpop.permute.xlu2 %1317 }
 0x371   : > { %2065 = vperm.xlu2 %6426, %v10981_v35   ;;  %2058 = vperm.xlu1 %6425, %v2047_v33   ;;  %v8216_v35 = vpop.permute.xlu1 %1330  ;;  %v2073_v33 = vperm.slane %v7253_v57, 1 }
 0x372   : > { %3241 = vperm.xlu0 %6566, %v10862_v14   ;;  %10984 = vst [vmem:[#allocation78_spill] sm:$0xff] %v8216_v35  ;;  %v8219_v14 = vpop.permute.xlu0 %3729  ;;  %v8222_v44 = vpop.permute.xlu2 %1337 }
 0x373   : > { %10985 = vst [vmem:[#allocation79_spill] sm:$0xff] %v8219_v14 }
 0x374   : > { %10987 = vst [vmem:[#allocation14_spill] sm:$0xff] %v8222_v44 }
 0x379   : > { %6428 = vset.pattern.permute.xlu2 %v6863_v12  ;;  %6427 = vset.pattern.permute.xlu1 %v6858_v11  ;;  %v8226_v50 = vpop.permute.xlu1 %1343 }
 0x37a   : > { %3306 = vperm.xlu0 %6566, %v10863_v48   ;;  %v10988_v48 = vld [vmem:[#allocation15_spill] sm:$0xff]  ;;  %v8230_v40 = vpop.permute.xlu0 %3794  ;;  %v8234_v14 = vpop.permute.xlu2 %1350 }
 0x37b   : > { %v10865_v61 = vperm.slane %v10988_v48, 1  ;;  %10989 = vst [vmem:[#allocation15_spill] sm:$0xff] %v8230_v40 }
 0x37c   : > { %10990 = vst [vmem:[#allocation80_spill] sm:$0xff] %v8234_v14  ;;  %v10995_v14 = vld [vmem:[#allocation16_spill] sm:$0xff] }
 0x37d   : > { %v10867_v58 = vperm.slane %v10995_v14, 3 }
 0x381   : > { %2084 = vperm.xlu2 %6428, %v2073_v33   ;;  %2078 = vperm.xlu1 %6427, %v2073_v33   ;;  %v8236_v39 = vpop.permute.xlu1 %1363  ;;  %v10866_v33 = vperm.slane %v10988_v48, 6 }
 0x382   : > { %3371 = vperm.xlu0 %6566, %v10864_v10   ;;  %10991 = vst [vmem:[#allocation81_spill] sm:$0xff] %v8236_v39  ;;  %v8243_v10 = vpop.permute.xlu2 %1369  ;;  %v10996_v39 = vperm.slane %v7253_v57, 3 }
 0x383   : > { %10992 = vst [vmem:[#allocation82_spill] sm:$0xff] %v8243_v10 }
 0x389   : > { %2097 = vperm.xlu2 %6428, %v2086_v19   ;;  %2091 = vperm.xlu1 %6427, %v2086_v19   ;;  %v8245_v19 = vpop.permute.xlu0 %3859  ;;  %v8247_v40 = vpop.permute.xlu1 %1376 }
 0x38a   : > { %3436 = vperm.xlu0 %6566, %v10865_v61   ;;  %10993 = vst [vmem:[#allocation83_spill] sm:$0xff] %v8245_v19  ;;  %v2112_v61 = vperm.slane %v7253_v57, 4  ;;  %v8255_v44 = vpop.permute.xlu2 %1382  ;;  %v10999_v19 = vld [vmem:[#allocation19_spill] sm:$0xff] }
 0x38b   : > { %10994 = vst [vmem:[#allocation84_spill] sm:$0xff] %v8247_v40  ;;  %v10868_v59 = vperm.slane %v10999_v19, 0 }
 0x38c   : > { %10997 = vst [vmem:[#allocation16_spill] sm:$0xff] %v8255_v44 }
 0x391   : > { %6430 = vset.pattern.permute.xlu2 %v6858_v11  ;;  %6429 = vset.pattern.permute.xlu1 %v6863_v12  ;;  %v8259_v10 = vpop.permute.xlu1 %1395 }
 0x392   : > { %3501 = vperm.xlu0 %6566, %v10866_v33   ;;  %v8257_v33 = vpop.permute.xlu0 %3924  ;;  %v8266_v40 = vpop.permute.xlu2 %1402 }
 0x393   : > { %10998 = vst [vmem:[#allocation85_spill] sm:$0xff] %v8257_v33 }
 0x394   : > { %11001 = vst [vmem:[#allocation19_spill] sm:$0xff] %v8266_v40 }
 0x399   : > { %2117 = vperm.xlu2 %6430, %v2112_v61   ;;  %2110 = vperm.xlu1 %6429, %v10996_v39   ;;  %v8271_v63 = vpop.permute.xlu1 %1408 }
 0x39a   : > { %3566 = vperm.xlu0 %6566, %v10867_v58   ;;  %v8268_v39 = vpop.permute.xlu0 %3989  ;;  %v10869_v58 = vperm.slane %v10999_v19, 5 }
 0x39b   : > { %11002 = vst [vmem:[#allocation86_spill] sm:$0xff] %v8268_v39 }
 0x3a1   : > { %2130 = vperm.xlu2 %6430, %v11000_v21   ;;  %2123 = vperm.xlu1 %6429, %v2112_v61   ;;  %v8277_v21 = vpop.permute.xlu2 %1415  ;;  %v2138_v61 = vperm.slane %v7253_v57, 6  ;;  %v8281_v33 = vpop.permute.xlu1 %1428 }
 0x3a2   : > { %3631 = vperm.xlu0 %6566, %v10868_v59   ;;  %11003 = vst [vmem:[#allocation87_spill] sm:$0xff] %v8277_v21  ;;  %v10871_v59 = vperm.slane %v7774_v56, 2  ;;  %v8283_v39 = vpop.permute.xlu0 %4054 }
 0x3a3   : > { %11004 = vst [vmem:[#allocation88_spill] sm:$0xff] %v8281_v33 }
 0x3a4   : > { %11005 = vst [vmem:[#allocation89_spill] sm:$0xff] %v8283_v39 }
 0x3a9   : > { %6432 = vset.pattern.permute.xlu2 %v6863_v12  ;;  %6431 = vset.pattern.permute.xlu1 %v6858_v11  ;;  %v8287_v35 = vpop.permute.xlu2 %1434  ;;  %v8293_v3 = vpop.permute.xlu1 %1441 }
 0x3aa   : > { %3696 = vperm.xlu0 %6566, %v10869_v58   ;;  %11006 = vst [vmem:[#allocation90_spill] sm:$0xff] %v8287_v35  ;;  %v10870_v58 = vperm.slane %v7774_v56, 7  ;;  %v8295_v33 = vpop.permute.xlu0 %4119 }
 0x3ab   : > { %11007 = vst [vmem:[#allocation91_spill] sm:$0xff] %v8293_v3  ;;  %v11012_v3 = vperm.slane %v7271_v34, 0 }
 0x3ac   : > { %11008 = vst [vmem:[#allocation92_spill] sm:$0xff] %v8295_v33 }
 0x3b1   : > { %2149 = vperm.xlu2 %6432, %v2138_v61   ;;  %2143 = vperm.xlu1 %6431, %v2138_v61   ;;  %v10872_v61 = vperm.slane %v7817_v51, 4  ;;  %v8298_v39 = vpop.permute.xlu2 %1447  ;;  %v8304_v57 = vpop.permute.xlu1 %1460 }
 0x3b2   : > { %3761 = vperm.xlu0 %6566, %v10871_v59   ;;  %11009 = vst [vmem:[#allocation93_spill] sm:$0xff] %v8298_v39  ;;  %v10873_v59 = vperm.slane %v7863_v62, 1 }
 0x3b9   : > { %2162 = vperm.xlu2 %6432, %v2151_v28   ;;  %2156 = vperm.xlu1 %6431, %v2151_v28   ;;  %v8306_v28 = vpop.permute.xlu0 %4184  ;;  %v8310_v33 = vpop.permute.xlu2 %1467 }
 0x3ba   : > { %3826 = vperm.xlu0 %6566, %v10870_v58   ;;  %11010 = vst [vmem:[#allocation94_spill] sm:$0xff] %v8306_v28  ;;  %v2177_v58 = vperm.slane %v7271_v34, 1  ;;  %v8316_v9 = vpop.permute.xlu1 %1473  ;;  %v11015_v28 = vperm.slane %v7271_v34, 2 }
 0x3bb   : > { %11011 = vst [vmem:[#allocation95_spill] sm:$0xff] %v8310_v33 }
 0x3bc   : > { %11013 = vst [vmem:[#allocation96_spill] sm:$0xff] %v8316_v9 }
 0x3c1   : > { %6434 = vset.pattern.permute.xlu2 %v6858_v11  ;;  %6433 = vset.pattern.permute.xlu1 %v6863_v12  ;;  %v8325_v5 = vpop.permute.xlu2 %1480 }
 0x3c2   : > { %3891 = vperm.xlu0 %6566, %v10872_v61   ;;  %v8318_v61 = vpop.permute.xlu0 %4249  ;;  %11016 = vst [vmem:[#allocation98_spill] sm:$0xff] %v8325_v5  ;;  %v8327_v43 = vpop.permute.xlu1 %1493 }
 0x3c3   : > { %11014 = vst [vmem:[#allocation97_spill] sm:$0xff] %v8318_v61  ;;  %v10876_v61 = vperm.slane %v7926_v32, 0 }
 0x3c4   : > { %11017 = vst [vmem:[#allocation99_spill] sm:$0xff] %v8327_v43 }
 0x3c9   : > { %2182 = vperm.xlu2 %6434, %v2177_v58   ;;  %2175 = vperm.xlu1 %6433, %v11012_v3   ;;  %v10875_v3 = vperm.slane %v7889_v18, 3 }
 0x3ca   : > { %3956 = vperm.xlu0 %6566, %v10873_v59   ;;  %v8332_v59 = vpop.permute.xlu0 %4379 }
 0x3cb   : > { %11018 = vst [vmem:[#allocation100_spill] sm:$0xff] %v8332_v59 }
 0x3d1   : > { %2195 = vperm.xlu2 %6434, %v11015_v28   ;;  %2188 = vperm.xlu1 %6433, %v2177_v58   ;;  %v8336_v28 = vpop.permute.xlu2 %1499  ;;  %v8338_v58 = vpop.permute.xlu1 %1506 }
 0x3d2   : > { %4021 = vperm.xlu0 %6566, %v10874_v1   ;;  %11019 = vst [vmem:[#allocation101_spill] sm:$0xff] %v8336_v28  ;;  %v2203_v1 = vperm.slane %v7271_v34, 3  ;;  %v8344_v43 = vpop.permute.xlu0 %4314  ;;  %v10877_v28 = vperm.slane %v7926_v32, 5  ;;  %v11029_v32 = vperm.slane %v7271_v34, 5 }
 0x3d3   : > { %11020 = vst [vmem:[#allocation102_spill] sm:$0xff] %v8338_v58 }
 0x3d4   : > { %11021 = vst [vmem:[#allocation103_spill] sm:$0xff] %v8344_v43 }
 0x3d9   : > { %6436 = vset.pattern.permute.xlu2 %v6863_v12  ;;  %6435 = vset.pattern.permute.xlu1 %v6858_v11  ;;  %v8346_v5 = vpop.permute.xlu2 %1512  ;;  %v8348_v59 = vpop.permute.xlu1 %1525 }
 0x3da   : > { %4086 = vperm.xlu0 %6566, %v10875_v3   ;;  %11022 = vst [vmem:[#allocation104_spill] sm:$0xff] %v8346_v5  ;;  %v2216_v3 = vperm.slane %v7271_v34, 4 }
 0x3e1   : > { %2214 = vperm.xlu2 %6436, %v2203_v1   ;;  %2208 = vperm.xlu1 %6435, %v2203_v1   ;;  %v8354_v58 = vpop.permute.xlu2 %1532  ;;  %v8356_v1 = vpop.permute.xlu0 %4405 }
 0x3e2   : > { %4151 = vperm.xlu0 %6566, %v10876_v61   ;;  %11023 = vst [vmem:[#allocation105_spill] sm:$0xff] %v8354_v58  ;;  %v10880_v61 = vperm.slane %v7940_v46, 2  ;;  %v8359_v43 = vpop.permute.xlu1 %1538  ;;  %v10881_v58 = vperm.slane %v7940_v46, 7 }
 0x3e3   : > { %11024 = vst [vmem:[#allocation106_spill] sm:$0xff] %v8356_v1 }
 0x3e4   : > { %11025 = vst [vmem:[#allocation107_spill] sm:$0xff] %v8359_v43 }
 0x3e9   : > { %2227 = vperm.xlu2 %6436, %v2216_v3   ;;  %2221 = vperm.xlu1 %6435, %v2216_v3   ;;  %v8365_v5 = vpop.permute.xlu0 %1161  ;;  %v8367_v3 = vpop.permute.xlu2 %1545 }
 0x3ea   : > { %4216 = vperm.xlu0 %6566, %v10877_v28   ;;  %11026 = vst [vmem:[#allocation108_spill] sm:$0xff] %v8365_v5  ;;  %v2242_v28 = vperm.slane %v7271_v34, 6  ;;  %v8371_v1 = vpop.permute.xlu1 %1558  ;;  %v10882_v5 = vperm.slane %v7940_v46, 4 }
 0x3eb   : > { %11027 = vst [vmem:[#allocation109_spill] sm:$0xff] %v8367_v3  ;;  %v11032_v3 = vperm.slane %v7271_v34, 7 }
 0x3ec   : > { %11028 = vst [vmem:[#allocation110_spill] sm:$0xff] %v8371_v1 }
 0x3f1   : > { %6438 = vset.pattern.permute.xlu2 %v6858_v11  ;;  %6437 = vset.pattern.permute.xlu1 %v6863_v12  ;;  %v8377_v43 = vpop.permute.xlu2 %1564 }
 0x3f2   : > { %4281 = vperm.xlu0 %6566, %v10880_v61   ;;  %11030 = vst [vmem:[#allocation111_spill] sm:$0xff] %v8377_v43  ;;  %v8379_v61 = vpop.permute.xlu0 %1226  ;;  %v8386_v1 = vpop.permute.xlu1 %1571 }
 0x3f3   : > { %11031 = vst [vmem:[#allocation112_spill] sm:$0xff] %v8379_v61 }
 0x3f4   : > { %11033 = vst [vmem:[#allocation113_spill] sm:$0xff] %v8386_v1  ;;  %v2281_v1 = vperm.slane %v7310_v16, 1 }
 0x3f9   : > { %2247 = vperm.xlu2 %6438, %v2242_v28   ;;  %2240 = vperm.xlu1 %6437, %v11029_v32   ;;  %v10885_v32 = vperm.slane %v7952_v38, 1  ;;  %v8389_v25 = vpop.permute.xlu2 %1577 }
 0x3fa   : > { %4346 = vperm.xlu0 %6566, %v10881_v58   ;;  %11034 = vst [vmem:[#allocation114_spill] sm:$0xff] %v8389_v25  ;;  %v8393_v58 = vpop.permute.xlu0 %1291  ;;  %v8397_v34 = vpop.permute.xlu1 %1590 }
 0x3fb   : > { %11035 = vst [vmem:[#allocation115_spill] sm:$0xff] %v8393_v58  ;;  %v11045_v58 = vperm.slane %v7310_v16, 4 }
 0x3fc   : > { %11036 = vst [vmem:[#allocation116_spill] sm:$0xff] %v8397_v34 }
 0x401   : > { %2260 = vperm.xlu2 %6438, %v11032_v3   ;;  %2253 = vperm.xlu1 %6437, %v2242_v28   ;;  %v2268_v28 = vperm.slane %v7310_v16, 0  ;;  %v8400_v3 = vpop.permute.xlu2 %1597 }
 0x402   : > { %4307 = vperm.xlu0 %6566, %v10882_v5   ;;  %11037 = vst [vmem:[#allocation117_spill] sm:$0xff] %v8400_v3  ;;  %v8402_v5 = vpop.permute.xlu1 %1603  ;;  %v11042_v3 = vperm.slane %v7310_v16, 2 }
 0x409   : > { %6440 = vset.pattern.permute.xlu2 %v6863_v12  ;;  %6439 = vset.pattern.permute.xlu1 %v6858_v11  ;;  %v8405_v46 = vpop.permute.xlu2 %1610 }
 0x40a   : > { %4372 = vperm.xlu0 %6566, %v10885_v32   ;;  %11038 = vst [vmem:[#allocation118_spill] sm:$0xff] %v8405_v46  ;;  %v8407_v25 = vpop.permute.xlu1 %1623 }
 0x40b   : > { %11039 = vst [vmem:[#allocation119_spill] sm:$0xff] %v8407_v25 }
 0x411   : > { %2279 = vperm.xlu2 %6440, %v2268_v28   ;;  %2273 = vperm.xlu1 %6439, %v2268_v28   ;;  %v8411_v32 = vpop.permute.xlu2 %1629  ;;  %v2307_v28 = vperm.slane %v7310_v16, 3 }
 0x412   : > { %11040 = vst [vmem:[#allocation120_spill] sm:$0xff] %v8411_v32  ;;  %v8413_v38 = vpop.permute.xlu1 %1636 }
 0x413   : > { %11041 = vst [vmem:[#allocation121_spill] sm:$0xff] %v8413_v38 }
 0x419   : > { %2292 = vperm.xlu2 %6440, %v2281_v1   ;;  %2286 = vperm.xlu1 %6439, %v2281_v1   ;;  %v8418_v43 = vpop.permute.xlu2 %1642 }
 0x41a   : > { %11043 = vst [vmem:[#allocation122_spill] sm:$0xff] %v8418_v43  ;;  %v8420_v1 = vpop.permute.xlu1 %1655 }
 0x41b   : > { %11044 = vst [vmem:[#allocation123_spill] sm:$0xff] %v8420_v1 }
 0x421   : > { %6442 = vset.pattern.permute.xlu2 %v6858_v11  ;;  %6441 = vset.pattern.permute.xlu1 %v6863_v12  ;;  %v8424_v37 = vpop.permute.xlu2 %1662 }
 0x422   : > { %11046 = vst [vmem:[#allocation124_spill] sm:$0xff] %v8424_v37  ;;  %v8426_v15 = vpop.permute.xlu1 %1668 }
 0x429   : > { %2312 = vperm.xlu2 %6442, %v2307_v28   ;;  %2305 = vperm.xlu1 %6441, %v11042_v3   ;;  %v8430_v38 = vpop.permute.xlu2 %1675  ;;  %v2333_v3 = vperm.slane %v7310_v16, 5 }
 0x42a   : > { %11047 = vst [vmem:[#allocation125_spill] sm:$0xff] %v8430_v38  ;;  %v8433_v33 = vpop.permute.xlu1 %1688 }
 0x42b   : > { %11048 = vst [vmem:[#allocation126_spill] sm:$0xff] %v8433_v33  ;;  %v2372_v33 = vperm.slane %v7354_v55, 0 }
 0x431   : > { %2325 = vperm.xlu2 %6442, %v11045_v58   ;;  %2318 = vperm.xlu1 %6441, %v2307_v28   ;;  %v8435_v1 = vpop.permute.xlu2 %1694  ;;  %v2346_v58 = vperm.slane %v7310_v16, 6 }
 0x432   : > { %11049 = vst [vmem:[#allocation127_spill] sm:$0xff] %v8435_v1  ;;  %v8438_v28 = vpop.permute.xlu1 %1701 }
 0x433   : > { %11050 = vst [vmem:[#allocation128_spill] sm:$0xff] %v8438_v28 }
 0x439   : > { %6444 = vset.pattern.permute.xlu2 %v6863_v12  ;;  %6443 = vset.pattern.permute.xlu1 %v6858_v11  ;;  %v8440_v30 = vpop.permute.xlu2 %1707 }
 0x43a   : > { %11051 = vst [vmem:[#allocation129_spill] sm:$0xff] %v8440_v30  ;;  %v8444_v38 = vpop.permute.xlu1 %1720 }
 0x43b   : > { %11052 = vst [vmem:[#allocation130_spill] sm:$0xff] %v8444_v38 }
 0x441   : > { %2344 = vperm.xlu2 %6444, %v2333_v3   ;;  %2338 = vperm.xlu1 %6443, %v2333_v3   ;;  %v8447_v39 = vpop.permute.xlu2 %1727  ;;  %v11054_v3 = vperm.slane %v7310_v16, 7  ;;  %v2398_v16 = vperm.slane %v7354_v55, 2 }
 0x442   : > { %11053 = vst [vmem:[#allocation131_spill] sm:$0xff] %v8447_v39  ;;  %v8451_v1 = vpop.permute.xlu1 %1733 }
 0x449   : > { %2357 = vperm.xlu2 %6444, %v2346_v58   ;;  %2351 = vperm.xlu1 %6443, %v2346_v58   ;;  %v11055_v58 = vperm.slane %v7354_v55, 1  ;;  %v8455_v28 = vpop.permute.xlu2 %1740 }
 0x44a   : > { %11056 = vst [vmem:[#allocation132_spill] sm:$0xff] %v8455_v28  ;;  %v8457_v30 = vpop.permute.xlu1 %1753 }
 0x44b   : > { %11057 = vst [vmem:[#allocation133_spill] sm:$0xff] %v8457_v30 }
 0x451   : > { %6446 = vset.pattern.permute.xlu2 %v6858_v11  ;;  %6445 = vset.pattern.permute.xlu1 %v6863_v12  ;;  %v8461_v38 = vpop.permute.xlu2 %1759 }
 0x452   : > { %v8463_v39 = vpop.permute.xlu1 %1766 }
 0x453   : > { %11058 = vst [vmem:[#allocation134_spill] sm:$0xff] %v8463_v39 }
 0x459   : > { %2377 = vperm.xlu2 %6446, %v2372_v33   ;;  %2370 = vperm.xlu1 %6445, %v11054_v3   ;;  %v8466_v3 = vpop.permute.xlu2 %1772 }
 0x45a   : > { %11059 = vst [vmem:[#allocation135_spill] sm:$0xff] %v8466_v3 }
 0x461   : > { %2390 = vperm.xlu2 %6446, %v11055_v58   ;;  %2383 = vperm.xlu1 %6445, %v2372_v33   ;;  %v8468_v58 = vpop.permute.xlu1 %1785  ;;  %v2411_v33 = vperm.slane %v7354_v55, 3  ;;  %v8471_v30 = vpop.permute.xlu2 %1792 }
 0x462   : > { %11060 = vst [vmem:[#allocation136_spill] sm:$0xff] %v8468_v58  ;;  %v11065_v58 = vperm.slane %v7354_v55, 4 }
 0x463   : > { %11061 = vst [vmem:[#allocation137_spill] sm:$0xff] %v8471_v30 }
 0x469   : > { %6448 = vset.pattern.permute.xlu2 %v6863_v12  ;;  %6447 = vset.pattern.permute.xlu1 %v6858_v11  ;;  %v8473_v28 = vpop.permute.xlu1 %1798  ;;  %v8477_v39 = vpop.permute.xlu2 %1805 }
 0x46a   : > { %11062 = vst [vmem:[#allocation138_spill] sm:$0xff] %v8473_v28 }
 0x46b   : > { %11063 = vst [vmem:[#allocation139_spill] sm:$0xff] %v8477_v39 }
 0x471   : > { %2409 = vperm.xlu2 %6448, %v2398_v16   ;;  %2403 = vperm.xlu1 %6447, %v2398_v16   ;;  %v2437_v16 = vperm.slane %v7354_v55, 5  ;;  %v8480_v2 = vpop.permute.xlu1 %1818  ;;  %v8484_v3 = vpop.permute.xlu2 %1824 }
 0x472   : > { %11064 = vst [vmem:[#allocation140_spill] sm:$0xff] %v8480_v2 }
 0x479   : > { %2422 = vperm.xlu2 %6448, %v2411_v33   ;;  %2416 = vperm.xlu1 %6447, %v2411_v33   ;;  %v11066_v33 = vperm.slane %v7354_v55, 6  ;;  %v8488_v30 = vpop.permute.xlu1 %1831  ;;  %v8490_v43 = vpop.permute.xlu2 %1837 }
 0x47a   : > { %11067 = vst [vmem:[#allocation141_spill] sm:$0xff] %v8488_v30 }
 0x47b   : > { %11068 = vst [vmem:[#allocation142_spill] sm:$0xff] %v8490_v43 }
 0x481   : > { %6450 = vset.pattern.permute.xlu2 %v6858_v11  ;;  %6449 = vset.pattern.permute.xlu1 %v6863_v12  ;;  %v8494_v39 = vpop.permute.xlu1 %1850  ;;  %v8497_v9 = vpop.permute.xlu2 %1857 }
 0x482   : > { %11069 = vst [vmem:[#allocation143_spill] sm:$0xff] %v8494_v39 }
 0x483   : > { %11070 = vst [vmem:[#allocation144_spill] sm:$0xff] %v8497_v9  ;;  %v11076_v9 = vperm.slane %v7376_v13, 1 }
 0x489   : > { %2442 = vperm.xlu2 %6450, %v2437_v16   ;;  %2435 = vperm.xlu1 %6449, %v11065_v58   ;;  %v8499_v58 = vpop.permute.xlu1 %1863 }
 0x48a   : > { %11071 = vst [vmem:[#allocation145_spill] sm:$0xff] %v8499_v58 }
 0x491   : > { %2455 = vperm.xlu2 %6450, %v11066_v33   ;;  %2448 = vperm.xlu1 %6449, %v2437_v16   ;;  %v2476_v16 = vperm.slane %v7376_v13, 0  ;;  %v8502_v33 = vpop.permute.xlu2 %1870  ;;  %v8504_v49 = vpop.permute.xlu1 %1883 }
 0x492   : > { %11072 = vst [vmem:[#allocation146_spill] sm:$0xff] %v8502_v33 }
 0x493   : > { %11073 = vst [vmem:[#allocation147_spill] sm:$0xff] %v8504_v49  ;;  %v11079_v49 = vperm.slane %v7376_v13, 3 }
 0x499   : > { %6452 = vset.pattern.permute.xlu2 %v6863_v12  ;;  %6451 = vset.pattern.permute.xlu1 %v6858_v11  ;;  %v8508_v39 = vpop.permute.xlu2 %1889  ;;  %v8510_v55 = vpop.permute.xlu1 %1896 }
 0x49a   : > { %11074 = vst [vmem:[#allocation148_spill] sm:$0xff] %v8508_v39 }
 0x49b   : > { %11075 = vst [vmem:[#allocation149_spill] sm:$0xff] %v8510_v55 }
 0x4a1   : > { %2474 = vperm.xlu2 %6452, %v2463_v23   ;;  %2468 = vperm.xlu1 %6451, %v2463_v23   ;;  %v2502_v23 = vperm.slane %v7376_v13, 2  ;;  %v8515_v58 = vpop.permute.xlu2 %1902 }
 0x4a2   : > { %11077 = vst [vmem:[#allocation150_spill] sm:$0xff] %v8515_v58 }
 0x4a9   : > { %2487 = vperm.xlu2 %6452, %v2476_v16   ;;  %2481 = vperm.xlu1 %6451, %v2476_v16   ;;  %v8517_v16 = vpop.permute.xlu1 %1915  ;;  %v8521_v61 = vpop.permute.xlu2 %1922 }
 0x4aa   : > { %11078 = vst [vmem:[#allocation151_spill] sm:$0xff] %v8517_v16 }
 0x4ab   : > { %11080 = vst [vmem:[#allocation152_spill] sm:$0xff] %v8521_v61 }
 0x4b1   : > { %6454 = vset.pattern.permute.xlu2 %v6858_v11  ;;  %6453 = vset.pattern.permute.xlu1 %v6863_v12  ;;  %v8523_v35 = vpop.permute.xlu1 %1928  ;;  %v8527_v55 = vpop.permute.xlu2 %1935 }
 0x4b2   : > { %11081 = vst [vmem:[#allocation153_spill] sm:$0xff] %v8523_v35 }
 0x4b3   : > { %11082 = vst [vmem:[#allocation154_spill] sm:$0xff] %v8527_v55 }
 0x4b9   : > { %2507 = vperm.xlu2 %6454, %v2502_v23   ;;  %2500 = vperm.xlu1 %6453, %v11076_v9   ;;  %v2528_v9 = vperm.slane %v7376_v13, 4  ;;  %v8530_v39 = vpop.permute.xlu1 %1948  ;;  %v8532_v16 = vpop.permute.xlu2 %1954 }
 0x4ba   : > { %11083 = vst [vmem:[#allocation155_spill] sm:$0xff] %v8530_v39  ;;  %v2567_v39 = vperm.slane %v7376_v13, 7 }
 0x4bb   : > { %11084 = vst [vmem:[#allocation156_spill] sm:$0xff] %v8532_v16 }
 0x4c1   : > { %2520 = vperm.xlu2 %6454, %v11079_v49   ;;  %2513 = vperm.xlu1 %6453, %v2502_v23   ;;  %v2541_v49 = vperm.slane %v7376_v13, 5  ;;  %v8535_v23 = vpop.permute.xlu1 %1961  ;;  %v8537_v61 = vpop.permute.xlu2 %1967 }
 0x4c2   : > { %11085 = vst [vmem:[#allocation157_spill] sm:$0xff] %v8535_v23 }
 0x4c9   : > { %6456 = vset.pattern.permute.xlu2 %v6863_v12  ;;  %6455 = vset.pattern.permute.xlu1 %v6858_v11  ;;  %v8541_v35 = vpop.permute.xlu1 %1980  ;;  %v8544_v55 = vpop.permute.xlu2 %1987 }
 0x4ca   : > { %11086 = vst [vmem:[#allocation158_spill] sm:$0xff] %v8541_v35 }
 0x4cb   : > { %11087 = vst [vmem:[#allocation159_spill] sm:$0xff] %v8544_v55 }
 0x4d1   : > { %2539 = vperm.xlu2 %6456, %v2528_v9   ;;  %2533 = vperm.xlu1 %6455, %v2528_v9   ;;  %v11088_v9 = vperm.slane %v7376_v13, 6  ;;  %v8548_v16 = vpop.permute.xlu1 %1993  ;;  %v8552_v23 = vpop.permute.xlu2 %2000  ;;  %v2593_v13 = vperm.slane %v7422_v53, 1 }
 0x4d2   : > { %11089 = vst [vmem:[#allocation160_spill] sm:$0xff] %v8548_v16 }
 0x4d3   : > { %11091 = vst [vmem:[#allocation161_spill] sm:$0xff] %v8552_v23 }
 0x4d9   : > { %2552 = vperm.xlu2 %6456, %v2541_v49   ;;  %2546 = vperm.xlu1 %6455, %v2541_v49   ;;  %v11090_v49 = vperm.slane %v7422_v53, 0  ;;  %v8554_v58 = vpop.permute.xlu1 %2013  ;;  %v8558_v35 = vpop.permute.xlu2 %2019 }
 0x4da   : > { %11092 = vst [vmem:[#allocation162_spill] sm:$0xff] %v8554_v58 }
 0x4e1   : > { %6458 = vset.pattern.permute.xlu2 %v6858_v11  ;;  %6457 = vset.pattern.permute.xlu1 %v6863_v12  ;;  %v8560_v55 = vpop.permute.xlu1 %2026 }
 0x4e2   : > { %11093 = vst [vmem:[#allocation163_spill] sm:$0xff] %v8560_v55 }
 0x4e9   : > { %2572 = vperm.xlu2 %6458, %v2567_v39   ;;  %2565 = vperm.xlu1 %6457, %v11088_v9   ;;  %v8563_v9 = vpop.permute.xlu2 %2032 }
 0x4ea   : > { %11094 = vst [vmem:[#allocation164_spill] sm:$0xff] %v8563_v9 }
 0x4f1   : > { %2585 = vperm.xlu2 %6458, %v11090_v49   ;;  %2578 = vperm.xlu1 %6457, %v2567_v39   ;;  %v8565_v49 = vpop.permute.xlu1 %2045  ;;  %v2606_v39 = vperm.slane %v7422_v53, 2  ;;  %v8568_v58 = vpop.permute.xlu2 %2052 }
 0x4f2   : > { %11095 = vst [vmem:[#allocation165_spill] sm:$0xff] %v8565_v49 }
 0x4f3   : > { %11096 = vst [vmem:[#allocation166_spill] sm:$0xff] %v8568_v58 }
 0x4f9   : > { %6460 = vset.pattern.permute.xlu2 %v6863_v12  ;;  %6459 = vset.pattern.permute.xlu1 %v6858_v11  ;;  %v8570_v16 = vpop.permute.xlu1 %2058  ;;  %v8574_v23 = vpop.permute.xlu2 %2065 }
 0x4fa   : > { %11097 = vst [vmem:[#allocation167_spill] sm:$0xff] %v8570_v16 }
 0x4fb   : > { %11098 = vst [vmem:[#allocation168_spill] sm:$0xff] %v8574_v23 }
 0x501   : > { %2604 = vperm.xlu2 %6460, %v2593_v13   ;;  %2598 = vperm.xlu1 %6459, %v2593_v13   ;;  %v2632_v13 = vperm.slane %v7422_v53, 4  ;;  %v8577_v52 = vpop.permute.xlu1 %2078  ;;  %v8581_v8 = vpop.permute.xlu2 %2084 }
 0x502   : > { %11099 = vst [vmem:[#allocation169_spill] sm:$0xff] %v8577_v52 }
 0x509   : > { %2617 = vperm.xlu2 %6460, %v2606_v39   ;;  %2611 = vperm.xlu1 %6459, %v2606_v39   ;;  %v11101_v39 = vperm.slane %v7422_v53, 5  ;;  %v8585_v58 = vpop.permute.xlu1 %2091  ;;  %v8587_v16 = vpop.permute.xlu2 %2097 }
 0x50a   : > { %11102 = vst [vmem:[#allocation170_spill] sm:$0xff] %v8585_v58 }
 0x50b   : > { %11103 = vst [vmem:[#allocation171_spill] sm:$0xff] %v8587_v16 }
 0x511   : > { %6462 = vset.pattern.permute.xlu2 %v6858_v11  ;;  %6461 = vset.pattern.permute.xlu1 %v6863_v12  ;;  %v8591_v23 = vpop.permute.xlu1 %2110  ;;  %v8594_v52 = vpop.permute.xlu2 %2117 }
 0x512   : > { %11104 = vst [vmem:[#allocation172_spill] sm:$0xff] %v8591_v23 }
 0x513   : > { %11105 = vst [vmem:[#allocation173_spill] sm:$0xff] %v8594_v52  ;;  %v11110_v52 = vperm.slane %v7442_v27, 0 }
 0x519   : > { %2637 = vperm.xlu2 %6462, %v2632_v13   ;;  %2630 = vperm.xlu1 %6461, %v11100_v54   ;;  %v8596_v54 = vpop.permute.xlu1 %2123 }
 0x51a   : > { %11106 = vst [vmem:[#allocation174_spill] sm:$0xff] %v8596_v54 }
 0x521   : > { %2650 = vperm.xlu2 %6462, %v11101_v39   ;;  %2643 = vperm.xlu1 %6461, %v2632_v13   ;;  %v2671_v13 = vperm.slane %v7422_v53, 7  ;;  %v8599_v39 = vpop.permute.xlu2 %2130  ;;  %v8601_v58 = vpop.permute.xlu1 %2143 }
 0x522   : > { %11107 = vst [vmem:[#allocation175_spill] sm:$0xff] %v8599_v39  ;;  %v11112_v39 = vperm.slane %v7442_v27, 2 }
 0x523   : > { %11108 = vst [vmem:[#allocation176_spill] sm:$0xff] %v8601_v58 }
 0x529   : > { %6464 = vset.pattern.permute.xlu2 %v6863_v12  ;;  %6463 = vset.pattern.permute.xlu1 %v6858_v11  ;;  %v8605_v23 = vpop.permute.xlu2 %2149  ;;  %v8607_v16 = vpop.permute.xlu1 %2156 }
 0x52a   : > { %11109 = vst [vmem:[#allocation177_spill] sm:$0xff] %v8607_v16 }
 0x531   : > { %2669 = vperm.xlu2 %6464, %v2658_v4   ;;  %2663 = vperm.xlu1 %6463, %v2658_v4   ;;  %v2697_v4 = vperm.slane %v7442_v27, 1  ;;  %v8612_v53 = vpop.permute.xlu2 %2162 }
 0x532   : > { %11111 = vst [vmem:[#allocation178_spill] sm:$0xff] %v8612_v53 }
 0x539   : > { %2682 = vperm.xlu2 %6464, %v2671_v13   ;;  %2676 = vperm.xlu1 %6463, %v2671_v13   ;;  %v8614_v13 = vpop.permute.xlu1 %2175  ;;  %v8618_v54 = vpop.permute.xlu2 %2182 }
 0x53a   : > { %11113 = vst [vmem:[#allocation179_spill] sm:$0xff] %v8618_v54 }
 0x541   : > { %6466 = vset.pattern.permute.xlu2 %v6858_v11  ;;  %6465 = vset.pattern.permute.xlu1 %v6863_v12  ;;  %v8620_v58 = vpop.permute.xlu1 %2188  ;;  %v8624_v16 = vpop.permute.xlu2 %2195 }
 0x542   : > { %11114 = vst [vmem:[#allocation180_spill] sm:$0xff] %v8620_v58  ;;  %v2762_v58 = vperm.slane %v7442_v27, 6 }
 0x543   : > { %11115 = vst [vmem:[#allocation181_spill] sm:$0xff] %v8624_v16 }
 0x549   : > { %2702 = vperm.xlu2 %6466, %v2697_v4   ;;  %2695 = vperm.xlu1 %6465, %v11110_v52   ;;  %v2723_v52 = vperm.slane %v7442_v27, 3  ;;  %v8627_v30 = vpop.permute.xlu1 %2208  ;;  %v8629_v53 = vpop.permute.xlu2 %2214 }
 0x54a   : > { %11116 = vst [vmem:[#allocation182_spill] sm:$0xff] %v8627_v30 }
 0x54b   : > { %11117 = vst [vmem:[#allocation183_spill] sm:$0xff] %v8629_v53 }
 0x551   : > { %2715 = vperm.xlu2 %6466, %v11112_v39   ;;  %2708 = vperm.xlu1 %6465, %v2697_v4   ;;  %v2736_v39 = vperm.slane %v7442_v27, 4  ;;  %v8632_v4 = vpop.permute.xlu1 %2221  ;;  %v8634_v54 = vpop.permute.xlu2 %2227 }
 0x552   : > { %11118 = vst [vmem:[#allocation184_spill] sm:$0xff] %v8632_v4 }
 0x559   : > { %6468 = vset.pattern.permute.xlu2 %v6863_v12  ;;  %6467 = vset.pattern.permute.xlu1 %v6858_v11  ;;  %v8638_v16 = vpop.permute.xlu1 %2240  ;;  %v8641_v30 = vpop.permute.xlu2 %2247 }
 0x55a   : > { %11119 = vst [vmem:[#allocation185_spill] sm:$0xff] %v8638_v16 }
 0x55b   : > { %11120 = vst [vmem:[#allocation186_spill] sm:$0xff] %v8641_v30 }
 0x561   : > { %2734 = vperm.xlu2 %6468, %v2723_v52   ;;  %2728 = vperm.xlu1 %6467, %v2723_v52   ;;  %v11121_v52 = vperm.slane %v7442_v27, 5  ;;  %v8645_v33 = vpop.permute.xlu1 %2253  ;;  %v8649_v4 = vpop.permute.xlu2 %2260 }
 0x562   : > { %11122 = vst [vmem:[#allocation187_spill] sm:$0xff] %v8645_v33 }
 0x563   : > { %11124 = vst [vmem:[#allocation188_spill] sm:$0xff] %v8649_v4 }
 0x569   : > { %2747 = vperm.xlu2 %6468, %v2736_v39   ;;  %2741 = vperm.xlu1 %6467, %v2736_v39   ;;  %v11123_v39 = vperm.slane %v7442_v27, 7  ;;  %v8651_v25 = vpop.permute.xlu1 %2273  ;;  %v8655_v37 = vpop.permute.xlu2 %2279 }
 0x56a   : > { %11125 = vst [vmem:[#allocation189_spill] sm:$0xff] %v8651_v25 }
 0x56b   : > { %11126 = vst [vmem:[#allocation190_spill] sm:$0xff] %v8655_v37 }
 0x571   : > { %6470 = vset.pattern.permute.xlu2 %v6858_v11  ;;  %6469 = vset.pattern.permute.xlu1 %v6863_v12  ;;  %v8657_v30 = vpop.permute.xlu1 %2286  ;;  %v8660_v7 = vpop.permute.xlu2 %2292 }
 0x572   : > { %11127 = vst [vmem:[#allocation191_spill] sm:$0xff] %v8657_v30 }
 0x579   : > { %2767 = vperm.xlu2 %6470, %v2762_v58   ;;  %2760 = vperm.xlu1 %6469, %v11121_v52   ;;  %v2788_v52 = vperm.slane %v7486_v24, 0  ;;  %v8662_v27 = vpop.permute.xlu1 %2305 }
 0x57a   : > { %11128 = vst [vmem:[#allocation192_spill] sm:$0xff] %v8662_v27  ;;  %v11133_v27 = vperm.slane %v7486_v24, 2 }
 0x581   : > { %2780 = vperm.xlu2 %6470, %v11123_v39   ;;  %2773 = vperm.xlu1 %6469, %v2762_v58   ;;  %v2801_v58 = vperm.slane %v7486_v24, 1  ;;  %v8665_v39 = vpop.permute.xlu2 %2312  ;;  %v8667_v25 = vpop.permute.xlu1 %2318 }
 0x582   : > { %11129 = vst [vmem:[#allocation193_spill] sm:$0xff] %v8665_v39 }
 0x583   : > { %11130 = vst [vmem:[#allocation194_spill] sm:$0xff] %v8667_v25 }
 0x589   : > { %6472 = vset.pattern.permute.xlu2 %v6863_v12  ;;  %6471 = vset.pattern.permute.xlu1 %v6858_v11  ;;  %v8671_v4 = vpop.permute.xlu2 %2325  ;;  %v8674_v37 = vpop.permute.xlu1 %2338 }
 0x58a   : > { %11131 = vst [vmem:[#allocation195_spill] sm:$0xff] %v8671_v4 }
 0x58b   : > { %11132 = vst [vmem:[#allocation196_spill] sm:$0xff] %v8674_v37  ;;  %v2853_v37 = vperm.slane %v7486_v24, 5 }
 0x591   : > { %2799 = vperm.xlu2 %6472, %v2788_v52   ;;  %2793 = vperm.xlu1 %6471, %v2788_v52   ;;  %v2827_v52 = vperm.slane %v7486_v24, 3  ;;  %v8678_v30 = vpop.permute.xlu2 %2344  ;;  %v8682_v39 = vpop.permute.xlu1 %2351 }
 0x592   : > { %11134 = vst [vmem:[#allocation197_spill] sm:$0xff] %v8678_v30 }
 0x593   : > { %11136 = vst [vmem:[#allocation198_spill] sm:$0xff] %v8682_v39 }
 0x599   : > { %2812 = vperm.xlu2 %6472, %v2801_v58   ;;  %2806 = vperm.xlu1 %6471, %v2801_v58   ;;  %v11135_v58 = vperm.slane %v7486_v24, 4  ;;  %v8684_v25 = vpop.permute.xlu2 %2357  ;;  %v8688_v4 = vpop.permute.xlu1 %2370 }
 0x59a   : > { %11137 = vst [vmem:[#allocation199_spill] sm:$0xff] %v8688_v4 }
 0x5a1   : > { %6474 = vset.pattern.permute.xlu2 %v6858_v11  ;;  %6473 = vset.pattern.permute.xlu1 %v6863_v12  ;;  %v8691_v21 = vpop.permute.xlu2 %2377 }
 0x5a2   : > { %11138 = vst [vmem:[#allocation200_spill] sm:$0xff] %v8691_v21  ;;  %v11143_v21 = vperm.slane %v7486_v24, 7 }
 0x5a9   : > { %2832 = vperm.xlu2 %6474, %v2827_v52   ;;  %2825 = vperm.xlu1 %6473, %v11133_v27   ;;  %v8693_v27 = vpop.permute.xlu1 %2383 }
 0x5b1   : > { %2845 = vperm.xlu2 %6474, %v11135_v58   ;;  %2838 = vperm.xlu1 %6473, %v2827_v52   ;;  %v2866_v52 = vperm.slane %v7486_v24, 6  ;;  %v8696_v58 = vpop.permute.xlu2 %2390  ;;  %v8698_v30 = vpop.permute.xlu1 %2403  ;;  %v2918_v24 = vperm.slane %v7525_v6, 2 }
 0x5b2   : > { %11139 = vst [vmem:[#allocation201_spill] sm:$0xff] %v8696_v58 }
 0x5b3   : > { %11140 = vst [vmem:[#allocation202_spill] sm:$0xff] %v8698_v30  ;;  %v11145_v30 = vperm.slane %v7525_v6, 1 }
 0x5b9   : > { %6476 = vset.pattern.permute.xlu2 %v6863_v12  ;;  %6475 = vset.pattern.permute.xlu1 %v6858_v11  ;;  %v8702_v4 = vpop.permute.xlu2 %2409  ;;  %v8704_v39 = vpop.permute.xlu1 %2416 }
 0x5ba   : > { %11141 = vst [vmem:[#allocation203_spill] sm:$0xff] %v8702_v4 }
 0x5bb   : > { %11142 = vst [vmem:[#allocation204_spill] sm:$0xff] %v8704_v39 }
 0x5c1   : > { %2864 = vperm.xlu2 %6476, %v2853_v37   ;;  %2858 = vperm.xlu1 %6475, %v2853_v37   ;;  %v2892_v37 = vperm.slane %v7525_v6, 0  ;;  %v8709_v42 = vpop.permute.xlu2 %2422 }
 0x5c2   : > { %11144 = vst [vmem:[#allocation205_spill] sm:$0xff] %v8709_v42 }
 0x5c9   : > { %2877 = vperm.xlu2 %6476, %v2866_v52   ;;  %2871 = vperm.xlu1 %6475, %v2866_v52   ;;  %v8711_v52 = vpop.permute.xlu1 %2435  ;;  %v8715_v58 = vpop.permute.xlu2 %2442 }
 0x5ca   : > { %11146 = vst [vmem:[#allocation206_spill] sm:$0xff] %v8715_v58 }
 0x5d1   : > { %6478 = vset.pattern.permute.xlu2 %v6858_v11  ;;  %6477 = vset.pattern.permute.xlu1 %v6863_v12  ;;  %v8717_v22 = vpop.permute.xlu1 %2448  ;;  %v8721_v4 = vpop.permute.xlu2 %2455 }
 0x5d2   : > { %11147 = vst [vmem:[#allocation207_spill] sm:$0xff] %v8717_v22 }
 0x5d3   : > { %11148 = vst [vmem:[#allocation208_spill] sm:$0xff] %v8721_v4 }
 0x5d9   : > { %2897 = vperm.xlu2 %6478, %v2892_v37   ;;  %2890 = vperm.xlu1 %6477, %v11143_v21   ;;  %v8724_v21 = vpop.permute.xlu1 %2468  ;;  %v8726_v39 = vpop.permute.xlu2 %2474 }
 0x5da   : > { %11149 = vst [vmem:[#allocation209_spill] sm:$0xff] %v8724_v21  ;;  %v2957_v21 = vperm.slane %v7525_v6, 5 }
 0x5db   : > { %11150 = vst [vmem:[#allocation210_spill] sm:$0xff] %v8726_v39 }
 0x5e1   : > { %2910 = vperm.xlu2 %6478, %v11145_v30   ;;  %2903 = vperm.xlu1 %6477, %v2892_v37   ;;  %v2931_v30 = vperm.slane %v7525_v6, 3  ;;  %v8729_v37 = vpop.permute.xlu1 %2481  ;;  %v8731_v58 = vpop.permute.xlu2 %2487 }
 0x5e2   : > { %11151 = vst [vmem:[#allocation211_spill] sm:$0xff] %v8729_v37 }
 0x5e3   : > { %11152 = vst [vmem:[#allocation212_spill] sm:$0xff] %v8731_v58 }
 0x5e9   : > { %6480 = vset.pattern.permute.xlu2 %v6863_v12  ;;  %6479 = vset.pattern.permute.xlu1 %v6858_v11  ;;  %v8735_v4 = vpop.permute.xlu1 %2500  ;;  %v8738_v18 = vpop.permute.xlu2 %2507 }
 0x5ea   : > { %11153 = vst [vmem:[#allocation213_spill] sm:$0xff] %v8738_v18 }
 0x5f1   : > { %2929 = vperm.xlu2 %6480, %v2918_v24   ;;  %2923 = vperm.xlu1 %6479, %v2918_v24   ;;  %v11154_v24 = vperm.slane %v7525_v6, 4  ;;  %v8742_v39 = vpop.permute.xlu1 %2513  ;;  %v8746_v37 = vpop.permute.xlu2 %2520 }
 0x5f2   : > { %11155 = vst [vmem:[#allocation214_spill] sm:$0xff] %v8742_v39 }
 0x5f3   : > { %11157 = vst [vmem:[#allocation215_spill] sm:$0xff] %v8746_v37 }
 0x5f9   : > { %2942 = vperm.xlu2 %6480, %v2931_v30   ;;  %2936 = vperm.xlu1 %6479, %v2931_v30   ;;  %v11156_v30 = vperm.slane %v7525_v6, 6  ;;  %v8748_v58 = vpop.permute.xlu1 %2533  ;;  %v8752_v55 = vpop.permute.xlu2 %2539 }
 0x5fa   : > { %11158 = vst [vmem:[#allocation216_spill] sm:$0xff] %v8748_v58 }
 0x5fb   : > { %11159 = vst [vmem:[#allocation217_spill] sm:$0xff] %v8752_v55 }
 0x601   : > { %6482 = vset.pattern.permute.xlu2 %v6858_v11  ;;  %6481 = vset.pattern.permute.xlu1 %v6863_v12  ;;  %v8754_v18 = vpop.permute.xlu1 %2546  ;;  %v8757_v39 = vpop.permute.xlu2 %2552 }
 0x602   : > { %11160 = vst [vmem:[#allocation218_spill] sm:$0xff] %v8754_v18 }
 0x603   : > { %11161 = vst [vmem:[#allocation219_spill] sm:$0xff] %v8757_v39  ;;  %v11166_v39 = vperm.slane %v10970_v20, 1 }
 0x609   : > { %2962 = vperm.xlu2 %6482, %v2957_v21   ;;  %2955 = vperm.xlu1 %6481, %v11154_v24   ;;  %v2983_v24 = vperm.slane %v7525_v6, 7  ;;  %v8762_v58 = vpop.permute.xlu2 %2572  ;;  %v3022_v6 = vperm.slane %v10970_v20, 2 }
 0x60a   : > { %11162 = vst [vmem:[#allocation220_spill] sm:$0xff] %v8762_v58 }
 0x611   : > { %2975 = vperm.xlu2 %6482, %v11156_v30   ;;  %2968 = vperm.xlu1 %6481, %v2957_v21   ;;  %v8759_v30 = vpop.permute.xlu1 %2565  ;;  %v2996_v21 = vperm.slane %v10970_v20, 0  ;;  %v8768_v18 = vpop.permute.xlu2 %2585 }
 0x612   : > { %11164 = vst [vmem:[#allocation222_spill] sm:$0xff] %v8768_v18 }
 0x619   : > { %6484 = vset.pattern.permute.xlu2 %v6863_v12  ;;  %6483 = vset.pattern.permute.xlu1 %v6858_v11  ;;  %v8764_v37 = vpop.permute.xlu1 %2578  ;;  %v8775_v55 = vpop.permute.xlu2 %2604 }
 0x61a   : > { %11163 = vst [vmem:[#allocation221_spill] sm:$0xff] %v8764_v37 }
 0x61b   : > { %11167 = vst [vmem:[#allocation224_spill] sm:$0xff] %v8775_v55 }
 0x621   : > { %2994 = vperm.xlu2 %6484, %v2983_v24   ;;  %2988 = vperm.xlu1 %6483, %v2983_v24   ;;  %v8771_v24 = vpop.permute.xlu1 %2598  ;;  %v8781_v37 = vpop.permute.xlu2 %2617 }
 0x622   : > { %11165 = vst [vmem:[#allocation223_spill] sm:$0xff] %v8771_v24  ;;  %v3048_v24 = vperm.slane %v10970_v20, 4 }
 0x623   : > { %11170 = vst [vmem:[#allocation226_spill] sm:$0xff] %v8781_v37 }
 0x629   : > { %3007 = vperm.xlu2 %6484, %v2996_v21   ;;  %3001 = vperm.xlu1 %6483, %v2996_v21   ;;  %v11168_v21 = vperm.slane %v10970_v20, 3  ;;  %v8779_v58 = vpop.permute.xlu1 %2611  ;;  %v8788_v2 = vpop.permute.xlu2 %2637 }
 0x62a   : > { %11169 = vst [vmem:[#allocation225_spill] sm:$0xff] %v8779_v58 }
 0x62b   : > { %11172 = vst [vmem:[#allocation228_spill] sm:$0xff] %v8788_v2  ;;  %v11177_v2 = vperm.slane %v10970_v20, 6 }
 0x631   : > { %6486 = vset.pattern.permute.xlu2 %v6858_v11  ;;  %6485 = vset.pattern.permute.xlu1 %v6863_v12  ;;  %v8785_v18 = vpop.permute.xlu1 %2630 }
 0x632   : > { %11171 = vst [vmem:[#allocation227_spill] sm:$0xff] %v8785_v18 }
 0x639   : > { %3027 = vperm.xlu2 %6486, %v3022_v6   ;;  %3020 = vperm.xlu1 %6485, %v11166_v39   ;;  %v8790_v39 = vpop.permute.xlu1 %2643 }
 0x641   : > { %3040 = vperm.xlu2 %6486, %v11168_v21   ;;  %3033 = vperm.xlu1 %6485, %v3022_v6   ;;  %v3061_v6 = vperm.slane %v10970_v20, 5  ;;  %v8793_v21 = vpop.permute.xlu2 %2650  ;;  %v8795_v58 = vpop.permute.xlu1 %2663 }
 0x642   : > { %11173 = vst [vmem:[#allocation229_spill] sm:$0xff] %v8793_v21 }
 0x643   : > { %11174 = vst [vmem:[#allocation230_spill] sm:$0xff] %v8795_v58  ;;  %v11180_v58 = vperm.slane %v10972_v41, 0 }
 0x649   : > { %6488 = vset.pattern.permute.xlu2 %v6863_v12  ;;  %6487 = vset.pattern.permute.xlu1 %v6858_v11  ;;  %v8799_v37 = vpop.permute.xlu2 %2669  ;;  %v8801_v55 = vpop.permute.xlu1 %2676 }
 0x64a   : > { %11175 = vst [vmem:[#allocation231_spill] sm:$0xff] %v8799_v37 }
 0x64b   : > { %11176 = vst [vmem:[#allocation232_spill] sm:$0xff] %v8801_v55 }
 0x651   : > { %3059 = vperm.xlu2 %6488, %v3048_v24   ;;  %3053 = vperm.xlu1 %6487, %v3048_v24   ;;  %v3087_v24 = vperm.slane %v10970_v20, 7  ;;  %v8806_v46 = vpop.permute.xlu2 %2682  ;;  %v3113_v20 = vperm.slane %v10972_v41, 1 }
 0x652   : > { %11178 = vst [vmem:[#allocation233_spill] sm:$0xff] %v8806_v46 }
 0x659   : > { %3072 = vperm.xlu2 %6488, %v3061_v6   ;;  %3066 = vperm.xlu1 %6487, %v3061_v6   ;;  %v8808_v6 = vpop.permute.xlu1 %2695  ;;  %v8812_v21 = vpop.permute.xlu2 %2702 }
 0x65a   : > { %11179 = vst [vmem:[#allocation234_spill] sm:$0xff] %v8808_v6 }
 0x65b   : > { %11181 = vst [vmem:[#allocation235_spill] sm:$0xff] %v8812_v21 }
 0x661   : > { %6490 = vset.pattern.permute.xlu2 %v6858_v11  ;;  %6489 = vset.pattern.permute.xlu1 %v6863_v12  ;;  %v8814_v40 = vpop.permute.xlu1 %2708  ;;  %v8818_v55 = vpop.permute.xlu2 %2715 }
 0x662   : > { %11182 = vst [vmem:[#allocation236_spill] sm:$0xff] %v8818_v55 }
 0x669   : > { %3092 = vperm.xlu2 %6490, %v3087_v24   ;;  %3085 = vperm.xlu1 %6489, %v11177_v2   ;;  %v8821_v2 = vpop.permute.xlu1 %2728  ;;  %v8823_v6 = vpop.permute.xlu2 %2734 }
 0x66a   : > { %11183 = vst [vmem:[#allocation237_spill] sm:$0xff] %v8821_v2  ;;  %v3152_v2 = vperm.slane %v10972_v41, 4 }
 0x66b   : > { %11184 = vst [vmem:[#allocation238_spill] sm:$0xff] %v8823_v6 }
 0x671   : > { %3105 = vperm.xlu2 %6490, %v11180_v58   ;;  %3098 = vperm.xlu1 %6489, %v3087_v24   ;;  %v3126_v58 = vperm.slane %v10972_v41, 2  ;;  %v8826_v24 = vpop.permute.xlu1 %2741  ;;  %v8828_v46 = vpop.permute.xlu2 %2747 }
 0x672   : > { %11185 = vst [vmem:[#allocation239_spill] sm:$0xff] %v8826_v24 }
 0x673   : > { %11186 = vst [vmem:[#allocation240_spill] sm:$0xff] %v8828_v46 }
 0x679   : > { %6492 = vset.pattern.permute.xlu2 %v6863_v12  ;;  %6491 = vset.pattern.permute.xlu1 %v6858_v11  ;;  %v8832_v55 = vpop.permute.xlu1 %2760  ;;  %v8835_v21 = vpop.permute.xlu2 %2767 }
 0x67a   : > { %11187 = vst [vmem:[#allocation241_spill] sm:$0xff] %v8832_v55 }
 0x67b   : > { %11188 = vst [vmem:[#allocation242_spill] sm:$0xff] %v8835_v21 }
 0x681   : > { %3124 = vperm.xlu2 %6492, %v3113_v20   ;;  %3118 = vperm.xlu1 %6491, %v3113_v20   ;;  %v11189_v20 = vperm.slane %v10972_v41, 3  ;;  %v8839_v6 = vpop.permute.xlu1 %2773  ;;  %v8843_v24 = vpop.permute.xlu2 %2780 }
 0x682   : > { %11191 = vst [vmem:[#allocation243_spill] sm:$0xff] %v8843_v24 }
 0x689   : > { %3137 = vperm.xlu2 %6492, %v3126_v58   ;;  %3131 = vperm.xlu1 %6491, %v3126_v58   ;;  %v11190_v58 = vperm.slane %v10972_v41, 5  ;;  %v8845_v46 = vpop.permute.xlu1 %2793  ;;  %v8849_v55 = vpop.permute.xlu2 %2799 }
 0x68a   : > { %11192 = vst [vmem:[#allocation244_spill] sm:$0xff] %v8845_v46 }
 0x691   : > { %6494 = vset.pattern.permute.xlu2 %v6858_v11  ;;  %6493 = vset.pattern.permute.xlu1 %v6863_v12  ;;  %v8851_v21 = vpop.permute.xlu1 %2806  ;;  %v8854_v18 = vpop.permute.xlu2 %2812 }
 0x692   : > { %11193 = vst [vmem:[#allocation245_spill] sm:$0xff] %v8851_v21 }
 0x693   : > { %11194 = vst [vmem:[#allocation246_spill] sm:$0xff] %v8854_v18 }
 0x699   : > { %3157 = vperm.xlu2 %6494, %v3152_v2   ;;  %3150 = vperm.xlu1 %6493, %v11189_v20   ;;  %v3178_v20 = vperm.slane %v10972_v41, 6  ;;  %v8859_v46 = vpop.permute.xlu2 %2832 }
 0x69a   : > { %11196 = vst [vmem:[#allocation248_spill] sm:$0xff] %v8859_v46 }
 0x6a1   : > { %3170 = vperm.xlu2 %6494, %v11190_v58   ;;  %3163 = vperm.xlu1 %6493, %v3152_v2   ;;  %v8856_v58 = vpop.permute.xlu1 %2825  ;;  %v3191_v2 = vperm.slane %v10972_v41, 7  ;;  %v8865_v21 = vpop.permute.xlu2 %2845 }
 0x6a2   : > { %11195 = vst [vmem:[#allocation247_spill] sm:$0xff] %v8856_v58  ;;  %v11200_v58 = vperm.slane %v10980_v26, 0 }
 0x6a3   : > { %11198 = vst [vmem:[#allocation250_spill] sm:$0xff] %v8865_v21 }
 0x6a9   : > { %6496 = vset.pattern.permute.xlu2 %v6863_v12  ;;  %6495 = vset.pattern.permute.xlu1 %v6858_v11  ;;  %v8861_v24 = vpop.permute.xlu1 %2838  ;;  %v8872_v41 = vpop.permute.xlu2 %2864 }
 0x6aa   : > { %11197 = vst [vmem:[#allocation249_spill] sm:$0xff] %v8861_v24 }
 0x6ab   : > { %11201 = vst [vmem:[#allocation252_spill] sm:$0xff] %v8872_v41 }
 0x6b1   : > { %3189 = vperm.xlu2 %6496, %v3178_v20   ;;  %3183 = vperm.xlu1 %6495, %v3178_v20   ;;  %v3217_v20 = vperm.slane %v10980_v26, 1  ;;  %v8868_v37 = vpop.permute.xlu1 %2858  ;;  %v8878_v46 = vpop.permute.xlu2 %2877 }
 0x6b2   : > { %11199 = vst [vmem:[#allocation251_spill] sm:$0xff] %v8868_v37  ;;  %v3243_v37 = vperm.slane %v10980_v26, 3 }
 0x6b3   : > { %11204 = vst [vmem:[#allocation254_spill] sm:$0xff] %v8878_v46 }
 0x6b9   : > { %3202 = vperm.xlu2 %6496, %v3191_v2   ;;  %3196 = vperm.xlu1 %6495, %v3191_v2   ;;  %v11202_v2 = vperm.slane %v10980_v26, 2  ;;  %v8876_v18 = vpop.permute.xlu1 %2871  ;;  %v8885_v24 = vpop.permute.xlu2 %2897 }
 0x6ba   : > { %11203 = vst [vmem:[#allocation253_spill] sm:$0xff] %v8876_v18 }
 0x6bb   : > { %11206 = vst [vmem:[#allocation256_spill] sm:$0xff] %v8885_v24  ;;  %v11212_v24 = vperm.slane %v10980_v26, 5 }
 0x6c1   : > { %6498 = vset.pattern.permute.xlu2 %v6858_v11  ;;  %6497 = vset.pattern.permute.xlu1 %v6863_v12  ;;  %v8882_v21 = vpop.permute.xlu1 %2890 }
 0x6c2   : > { %11205 = vst [vmem:[#allocation255_spill] sm:$0xff] %v8882_v21 }
 0x6c9   : > { %3222 = vperm.xlu2 %6498, %v3217_v20   ;;  %3215 = vperm.xlu1 %6497, %v11200_v58   ;;  %v8887_v58 = vpop.permute.xlu1 %2903 }
 0x6ca   : > { %11207 = vst [vmem:[#allocation257_spill] sm:$0xff] %v8887_v58 }
 0x6d1   : > { %3235 = vperm.xlu2 %6498, %v11202_v2   ;;  %3228 = vperm.xlu1 %6497, %v3217_v20   ;;  %v3256_v20 = vperm.slane %v10980_v26, 4  ;;  %v8890_v2 = vpop.permute.xlu2 %2910  ;;  %v8892_v18 = vpop.permute.xlu1 %2923 }
 0x6d2   : > { %11208 = vst [vmem:[#allocation258_spill] sm:$0xff] %v8890_v2 }
 0x6d3   : > { %11209 = vst [vmem:[#allocation259_spill] sm:$0xff] %v8892_v18  ;;  %v11215_v18 = vperm.slane %v10980_v26, 7 }
 0x6d9   : > { %6500 = vset.pattern.permute.xlu2 %v6863_v12  ;;  %6499 = vset.pattern.permute.xlu1 %v6858_v11  ;;  %v8896_v21 = vpop.permute.xlu2 %2929  ;;  %v8898_v46 = vpop.permute.xlu1 %2936 }
 0x6da   : > { %11210 = vst [vmem:[#allocation260_spill] sm:$0xff] %v8896_v21 }
 0x6db   : > { %11211 = vst [vmem:[#allocation261_spill] sm:$0xff] %v8898_v46 }
 0x6e1   : > { %3254 = vperm.xlu2 %6500, %v3243_v37   ;;  %3248 = vperm.xlu1 %6499, %v3243_v37   ;;  %v3282_v37 = vperm.slane %v10980_v26, 6  ;;  %v8903_v58 = vpop.permute.xlu2 %2942 }
 0x6e2   : > { %11213 = vst [vmem:[#allocation262_spill] sm:$0xff] %v8903_v58 }
 0x6e9   : > { %3267 = vperm.xlu2 %6500, %v3256_v20   ;;  %3261 = vperm.xlu1 %6499, %v3256_v20   ;;  %v8905_v20 = vpop.permute.xlu1 %2955  ;;  %v8909_v2 = vpop.permute.xlu2 %2962 }
 0x6ea   : > { %11214 = vst [vmem:[#allocation263_spill] sm:$0xff] %v8905_v20 }
 0x6eb   : > { %11216 = vst [vmem:[#allocation264_spill] sm:$0xff] %v8909_v2 }
 0x6f1   : > { %6502 = vset.pattern.permute.xlu2 %v6858_v11  ;;  %6501 = vset.pattern.permute.xlu1 %v6863_v12  ;;  %v8911_v42 = vpop.permute.xlu1 %2968  ;;  %v8915_v46 = vpop.permute.xlu2 %2975 }
 0x6f2   : > { %11217 = vst [vmem:[#allocation265_spill] sm:$0xff] %v8911_v42 }
 0x6f3   : > { %11218 = vst [vmem:[#allocation266_spill] sm:$0xff] %v8915_v46 }
 0x6f9   : > { %3287 = vperm.xlu2 %6502, %v3282_v37   ;;  %3280 = vperm.xlu1 %6501, %v11212_v24   ;;  %v3308_v24 = vperm.slane %v10986_v36, 0  ;;  %v8918_v21 = vpop.permute.xlu1 %2988  ;;  %v8920_v20 = vpop.permute.xlu2 %2994 }
 0x6fa   : > { %11219 = vst [vmem:[#allocation267_spill] sm:$0xff] %v8918_v21  ;;  %v3347_v21 = vperm.slane %v10986_v36, 3 }
 0x6fb   : > { %11220 = vst [vmem:[#allocation268_spill] sm:$0xff] %v8920_v20 }
 0x701   : > { %3300 = vperm.xlu2 %6502, %v11215_v18   ;;  %3293 = vperm.xlu1 %6501, %v3282_v37   ;;  %v3321_v18 = vperm.slane %v10986_v36, 1  ;;  %v8923_v26 = vpop.permute.xlu1 %3001  ;;  %v8925_v37 = vpop.permute.xlu2 %3007 }
 0x702   : > { %11221 = vst [vmem:[#allocation269_spill] sm:$0xff] %v8923_v26 }
 0x709   : > { %6504 = vset.pattern.permute.xlu2 %v6863_v12  ;;  %6503 = vset.pattern.permute.xlu1 %v6858_v11  ;;  %v8929_v2 = vpop.permute.xlu1 %3020  ;;  %v8932_v42 = vpop.permute.xlu2 %3027 }
 0x70a   : > { %11222 = vst [vmem:[#allocation270_spill] sm:$0xff] %v8929_v2 }
 0x70b   : > { %11223 = vst [vmem:[#allocation271_spill] sm:$0xff] %v8932_v42 }
 0x711   : > { %3319 = vperm.xlu2 %6504, %v3308_v24   ;;  %3313 = vperm.xlu1 %6503, %v3308_v24   ;;  %v11224_v24 = vperm.slane %v10986_v36, 2  ;;  %v8936_v20 = vpop.permute.xlu1 %3033  ;;  %v8940_v26 = vpop.permute.xlu2 %3040 }
 0x712   : > { %11225 = vst [vmem:[#allocation272_spill] sm:$0xff] %v8936_v20 }
 0x713   : > { %11227 = vst [vmem:[#allocation273_spill] sm:$0xff] %v8940_v26 }
 0x719   : > { %3332 = vperm.xlu2 %6504, %v3321_v18   ;;  %3326 = vperm.xlu1 %6503, %v3321_v18   ;;  %v11226_v18 = vperm.slane %v10986_v36, 4  ;;  %v8942_v46 = vpop.permute.xlu1 %3053  ;;  %v8946_v2 = vpop.permute.xlu2 %3059 }
 0x71a   : > { %11228 = vst [vmem:[#allocation274_spill] sm:$0xff] %v8942_v46 }
 0x721   : > { %6506 = vset.pattern.permute.xlu2 %v6858_v11  ;;  %6505 = vset.pattern.permute.xlu1 %v6863_v12  ;;  %v8948_v42 = vpop.permute.xlu1 %3066  ;;  %v8951_v20 = vpop.permute.xlu2 %3072 }
 0x722   : > { %11229 = vst [vmem:[#allocation275_spill] sm:$0xff] %v8948_v42 }
 0x723   : > { %11230 = vst [vmem:[#allocation276_spill] sm:$0xff] %v8951_v20 }
 0x729   : > { %3352 = vperm.xlu2 %6506, %v3347_v21   ;;  %3345 = vperm.xlu1 %6505, %v11224_v24   ;;  %v3373_v24 = vperm.slane %v10986_v36, 5  ;;  %v8956_v46 = vpop.permute.xlu2 %3092 }
 0x72a   : > { %11232 = vst [vmem:[#allocation278_spill] sm:$0xff] %v8956_v46 }
 0x731   : > { %3365 = vperm.xlu2 %6506, %v11226_v18   ;;  %3358 = vperm.xlu1 %6505, %v3347_v21   ;;  %v8953_v18 = vpop.permute.xlu1 %3085  ;;  %v3386_v21 = vperm.slane %v10986_v36, 6  ;;  %v8962_v58 = vpop.permute.xlu2 %3105 }
 0x732   : > { %11231 = vst [vmem:[#allocation277_spill] sm:$0xff] %v8953_v18  ;;  %v11236_v18 = vperm.slane %v10986_v36, 7 }
 0x733   : > { %11234 = vst [vmem:[#allocation280_spill] sm:$0xff] %v8962_v58 }
 0x739   : > { %6508 = vset.pattern.permute.xlu2 %v6863_v12  ;;  %6507 = vset.pattern.permute.xlu1 %v6858_v11  ;;  %v8958_v26 = vpop.permute.xlu1 %3098  ;;  %v8969_v53 = vpop.permute.xlu2 %3124 }
 0x73a   : > { %11233 = vst [vmem:[#allocation279_spill] sm:$0xff] %v8958_v26 }
 0x741   : > { %3384 = vperm.xlu2 %6508, %v3373_v24   ;;  %3378 = vperm.xlu1 %6507, %v3373_v24   ;;  %v3412_v24 = vperm.slane %v10988_v48, 0  ;;  %v8965_v42 = vpop.permute.xlu1 %3118  ;;  %v8975_v26 = vpop.permute.xlu2 %3137 }
 0x742   : > { %11235 = vst [vmem:[#allocation281_spill] sm:$0xff] %v8965_v42  ;;  %v3438_v42 = vperm.slane %v10988_v48, 2 }
 0x743   : > { %11239 = vst [vmem:[#allocation283_spill] sm:$0xff] %v8975_v26 }
 0x749   : > { %3397 = vperm.xlu2 %6508, %v3386_v21   ;;  %3391 = vperm.xlu1 %6507, %v3386_v21   ;;  %v11237_v21 = vperm.slane %v10988_v48, 1  ;;  %v8973_v46 = vpop.permute.xlu1 %3131  ;;  %v8982_v36 = vpop.permute.xlu2 %3157 }
 0x74a   : > { %11238 = vst [vmem:[#allocation282_spill] sm:$0xff] %v8973_v46 }
 0x74b   : > { %11241 = vst [vmem:[#allocation285_spill] sm:$0xff] %v8982_v36  ;;  %v11246_v36 = vperm.slane %v10988_v48, 4 }
 0x751   : > { %6510 = vset.pattern.permute.xlu2 %v6858_v11  ;;  %6509 = vset.pattern.permute.xlu1 %v6863_v12  ;;  %v8979_v58 = vpop.permute.xlu1 %3150 }
 0x752   : > { %11240 = vst [vmem:[#allocation284_spill] sm:$0xff] %v8979_v58 }
 0x759   : > { %3417 = vperm.xlu2 %6510, %v3412_v24   ;;  %3410 = vperm.xlu1 %6509, %v11236_v18   ;;  %v8984_v18 = vpop.permute.xlu1 %3163 }
 0x75a   : > { %11242 = vst [vmem:[#allocation286_spill] sm:$0xff] %v8984_v18  ;;  %v9000_v18 = vpop.permute.xlu0 %1356 }
 0x75b   : > { %11247 = vst [vmem:[#allocation290_spill] sm:$0xff] %v9000_v18  ;;  %v3503_v18 = vperm.slane %v10988_v48, 7 }
 0x761   : > { %3430 = vperm.xlu2 %6510, %v11237_v21   ;;  %3423 = vperm.xlu1 %6509, %v3412_v24   ;;  %v3451_v24 = vperm.slane %v10988_v48, 3  ;;  %v8987_v21 = vpop.permute.xlu2 %3170  ;;  %v8989_v46 = vpop.permute.xlu1 %3183 }
 0x762   : > { %11243 = vst [vmem:[#allocation287_spill] sm:$0xff] %v8987_v21  ;;  %v9010_v28 = vpop.permute.xlu0 %1421 }
 0x763   : > { %11244 = vst [vmem:[#allocation288_spill] sm:$0xff] %v8989_v46  ;;  %v11249_v46 = vperm.slane %v10988_v48, 6 }
 0x764   : > { %11251 = vst [vmem:[#allocation293_spill] sm:$0xff] %v9010_v28 }
 0x769   : > { %6512 = vset.pattern.permute.xlu2 %v6863_v12  ;;  %6511 = vset.pattern.permute.xlu1 %v6858_v11  ;;  %v8993_v58 = vpop.permute.xlu2 %3189  ;;  %v8995_v26 = vpop.permute.xlu1 %3196 }
 0x76a   : > { %11245 = vst [vmem:[#allocation289_spill] sm:$0xff] %v8995_v26 }
 0x771   : > { %3449 = vperm.xlu2 %6512, %v3438_v42   ;;  %3443 = vperm.xlu1 %6511, %v3438_v42   ;;  %v3477_v42 = vperm.slane %v10988_v48, 5  ;;  %v9004_v21 = vpop.permute.xlu1 %3215 }
 0x779   : > { %3462 = vperm.xlu2 %6512, %v3451_v24   ;;  %3456 = vperm.xlu1 %6511, %v3451_v24   ;;  %v9002_v24 = vpop.permute.xlu2 %3202  ;;  %v9012_v26 = vpop.permute.xlu1 %3228 }
 0x77a   : > { %11248 = vst [vmem:[#allocation291_spill] sm:$0xff] %v9002_v24  ;;  %v9019_v24 = vpop.permute.xlu0 %1486 }
 0x77b   : > { %11252 = vst [vmem:[#allocation294_spill] sm:$0xff] %v9012_v26 }
 0x77c   : > { %11254 = vst [vmem:[#allocation296_spill] sm:$0xff] %v9019_v24 }
 0x781   : > { %6514 = vset.pattern.permute.xlu2 %v6858_v11  ;;  %6513 = vset.pattern.permute.xlu1 %v6863_v12  ;;  %v9008_v33 = vpop.permute.xlu2 %3222  ;;  %v9021_v49 = vpop.permute.xlu1 %3248 }
 0x782   : > { %11250 = vst [vmem:[#allocation292_spill] sm:$0xff] %v9008_v33  ;;  %v9026_v33 = vpop.permute.xlu0 %1551 }
 0x783   : > { %11255 = vst [vmem:[#allocation297_spill] sm:$0xff] %v9021_v49 }
 0x789   : > { %3482 = vperm.xlu2 %6514, %v3477_v42   ;;  %3475 = vperm.xlu1 %6513, %v11246_v36   ;;  %v9016_v36 = vpop.permute.xlu2 %3235  ;;  %v9028_v26 = vpop.permute.xlu1 %3261 }
 0x78a   : > { %11253 = vst [vmem:[#allocation295_spill] sm:$0xff] %v9016_v36  ;;  %v9036_v36 = vpop.permute.xlu0 %1616 }
 0x78b   : > { %11257 = vst [vmem:[#allocation299_spill] sm:$0xff] %v9028_v26 }
 0x791   : > { %3495 = vperm.xlu2 %6514, %v11249_v46   ;;  %3488 = vperm.xlu1 %6513, %v3477_v42   ;;  %v9023_v46 = vpop.permute.xlu2 %3254  ;;  %v3516_v42 = vperm.slane %v10995_v14, 0  ;;  %v9034_v48 = vpop.permute.xlu1 %3280 }
 0x792   : > { %11256 = vst [vmem:[#allocation298_spill] sm:$0xff] %v9023_v46  ;;  %v9045_v26 = vpop.permute.xlu0 %1681  ;;  %v11263_v46 = vperm.slane %v10995_v14, 3 }
 0x793   : > { %11258 = vst [vmem:[#allocation300_spill] sm:$0xff] %v9034_v48 }
 0x794   : > { %11262 = vst [vmem:[#allocation303_spill] sm:$0xff] %v9045_v26  ;;  %v3568_v26 = vperm.slane %v10995_v14, 4 }
 0x799   : > { %6516 = vset.pattern.permute.xlu2 %v6863_v12  ;;  %6515 = vset.pattern.permute.xlu1 %v6858_v11  ;;  %v9030_v34 = vpop.permute.xlu2 %3267  ;;  %v9043_v24 = vpop.permute.xlu1 %3293 }
 0x79a   : > { %11261 = vst [vmem:[#allocation302_spill] sm:$0xff] %v9043_v24  ;;  %v9053_v43 = vpop.permute.xlu0 %1746 }
 0x79b   : > { %11266 = vst [vmem:[#allocation306_spill] sm:$0xff] %v9053_v43 }
 0x7a1   : > { %3514 = vperm.xlu2 %6516, %v3503_v18   ;;  %3508 = vperm.xlu1 %6515, %v3503_v18   ;;  %v3542_v18 = vperm.slane %v10995_v14, 2  ;;  %v9039_v49 = vpop.permute.xlu2 %3287  ;;  %v9051_v48 = vpop.permute.xlu1 %3313 }
 0x7a2   : > { %11259 = vst [vmem:[#allocation301_spill] sm:$0xff] %v9039_v49 }
 0x7a3   : > { %11265 = vst [vmem:[#allocation305_spill] sm:$0xff] %v9051_v48  ;;  %v3581_v48 = vperm.slane %v10995_v14, 5 }
 0x7a9   : > { %3527 = vperm.xlu2 %6516, %v3516_v42   ;;  %3521 = vperm.xlu1 %6515, %v3516_v42   ;;  %v11260_v42 = vperm.slane %v10995_v14, 1  ;;  %v9049_v20 = vpop.permute.xlu2 %3300 }
 0x7aa   : > { %11264 = vst [vmem:[#allocation304_spill] sm:$0xff] %v9049_v20 }
 0x7b1   : > { %6518 = vset.pattern.permute.xlu2 %v6858_v11  ;;  %6517 = vset.pattern.permute.xlu1 %v6863_v12  ;;  %v9057_v49 = vpop.permute.xlu2 %3319 }
 0x7b2   : > { %11267 = vst [vmem:[#allocation307_spill] sm:$0xff] %v9057_v49 }
 0x7b9   : > { %3547 = vperm.xlu2 %6518, %v3542_v18   ;;  %3540 = vperm.xlu1 %6517, %v11260_v42   ;;  %v9059_v42 = vpop.permute.xlu1 %3326 }
 0x7ba   : > { %11268 = vst [vmem:[#allocation308_spill] sm:$0xff] %v9059_v42 }
 0x7c1   : > { %3560 = vperm.xlu2 %6518, %v11263_v46   ;;  %3553 = vperm.xlu1 %6517, %v3542_v18   ;;  %v9062_v46 = vpop.permute.xlu0 %1811  ;;  %v9064_v18 = vpop.permute.xlu2 %3332 }
 0x7c2   : > { %v9066_v20 = vpop.permute.xlu1 %3345 }
 0x7c3   : > { %11269 = vst [vmem:[#allocation309_spill] sm:$0xff] %v9066_v20  ;;  %v3607_v20 = vperm.slane %v10995_v14, 7 }
 0x7c9   : > { %6520 = vset.pattern.permute.xlu2 %v6863_v12  ;;  %6519 = vset.pattern.permute.xlu1 %v6858_v11  ;;  %v9069_v43 = vpop.permute.xlu0 %1876  ;;  %v9071_v24 = vpop.permute.xlu2 %3352 }
 0x7ca   : > { %11270 = vst [vmem:[#allocation310_spill] sm:$0xff] %v9071_v24  ;;  %v9073_v49 = vpop.permute.xlu1 %3358 }
 0x7cb   : > { %11271 = vst [vmem:[#allocation311_spill] sm:$0xff] %v9073_v49  ;;  %v11277_v49 = vperm.slane %v10999_v19, 0 }
 0x7d1   : > { %3579 = vperm.xlu2 %6520, %v3568_v26   ;;  %3573 = vperm.xlu1 %6519, %v3568_v26   ;;  %v9077_v26 = vpop.permute.xlu0 %1941  ;;  %v9079_v42 = vpop.permute.xlu2 %3365 }
 0x7d2   : > { %11272 = vst [vmem:[#allocation312_spill] sm:$0xff] %v9079_v42  ;;  %v9082_v29 = vpop.permute.xlu1 %3378 }
 0x7d3   : > { %11273 = vst [vmem:[#allocation313_spill] sm:$0xff] %v9082_v29 }
 0x7d9   : > { %3592 = vperm.xlu2 %6520, %v3581_v48   ;;  %3586 = vperm.xlu1 %6519, %v3581_v48   ;;  %v11274_v48 = vperm.slane %v10995_v14, 6  ;;  %v9086_v44 = vpop.permute.xlu2 %3384  ;;  %v9088_v24 = vpop.permute.xlu0 %2006 }
 0x7da   : > { %11275 = vst [vmem:[#allocation314_spill] sm:$0xff] %v9086_v44  ;;  %v9092_v41 = vpop.permute.xlu1 %3391  ;;  %v3646_v44 = vperm.slane %v10999_v19, 2 }
 0x7db   : > { %11276 = vst [vmem:[#allocation315_spill] sm:$0xff] %v9088_v24 }
 0x7dc   : > { %11278 = vst [vmem:[#allocation316_spill] sm:$0xff] %v9092_v41 }
 0x7e1   : > { %6522 = vset.pattern.permute.xlu2 %v6858_v11  ;;  %6521 = vset.pattern.permute.xlu1 %v6863_v12  ;;  %v9094_v32 = vpop.permute.xlu2 %3397  ;;  %v9098_v29 = vpop.permute.xlu0 %2071 }
 0x7e2   : > { %11279 = vst [vmem:[#allocation317_spill] sm:$0xff] %v9098_v29  ;;  %v9100_v14 = vpop.permute.xlu1 %3410 }
 0x7e3   : > { %11280 = vst [vmem:[#allocation318_spill] sm:$0xff] %v9100_v14 }
 0x7e9   : > { %3612 = vperm.xlu2 %6522, %v3607_v20   ;;  %3605 = vperm.xlu1 %6521, %v11274_v48   ;;  %v3633_v48 = vperm.slane %v10999_v19, 1  ;;  %v9103_v42 = vpop.permute.xlu2 %3417 }
 0x7ea   : > { %11281 = vst [vmem:[#allocation319_spill] sm:$0xff] %v9103_v42 }
 0x7f1   : > { %3625 = vperm.xlu2 %6522, %v11277_v49   ;;  %3618 = vperm.xlu1 %6521, %v3607_v20   ;;  %v9105_v49 = vpop.permute.xlu0 %2136  ;;  %v9107_v20 = vpop.permute.xlu1 %3423 }
 0x7f2   : > { %11282 = vst [vmem:[#allocation320_spill] sm:$0xff] %v9105_v49  ;;  %v9110_v41 = vpop.permute.xlu2 %3430  ;;  %v3672_v49 = vperm.slane %v10999_v19, 4 }
 0x7f3   : > { %11283 = vst [vmem:[#allocation321_spill] sm:$0xff] %v9110_v41 }
 0x7f9   : > { %6524 = vset.pattern.permute.xlu2 %v6863_v12  ;;  %6523 = vset.pattern.permute.xlu1 %v6858_v11  ;;  %v9112_v24 = vpop.permute.xlu1 %3443  ;;  %v9114_v29 = vpop.permute.xlu0 %2201 }
 0x7fa   : > { %11284 = vst [vmem:[#allocation322_spill] sm:$0xff] %v9112_v24  ;;  %v9118_v42 = vpop.permute.xlu2 %3449 }
 0x7fb   : > { %11285 = vst [vmem:[#allocation323_spill] sm:$0xff] %v9114_v29  ;;  %v11291_v29 = vperm.slane %v10999_v19, 5 }
 0x7fc   : > { %11286 = vst [vmem:[#allocation324_spill] sm:$0xff] %v9118_v42 }
 0x801   : > { %3644 = vperm.xlu2 %6524, %v3633_v48   ;;  %3638 = vperm.xlu1 %6523, %v3633_v48   ;;  %v9120_v48 = vpop.permute.xlu1 %3456  ;;  %v9123_v14 = vpop.permute.xlu0 %2266 }
 0x802   : > { %11287 = vst [vmem:[#allocation325_spill] sm:$0xff] %v9120_v48  ;;  %v9127_v41 = vpop.permute.xlu2 %3462 }
 0x803   : > { %11288 = vst [vmem:[#allocation326_spill] sm:$0xff] %v9123_v14 }
 0x804   : > { %11290 = vst [vmem:[#allocation327_spill] sm:$0xff] %v9127_v41  ;;  %v3698_v41 = vperm.slane %v10999_v19, 6 }
 0x809   : > { %3657 = vperm.xlu2 %6524, %v3646_v44   ;;  %3651 = vperm.xlu1 %6523, %v3646_v44   ;;  %v11289_v44 = vperm.slane %v10999_v19, 3  ;;  %v9129_v24 = vpop.permute.xlu1 %3475  ;;  %v9133_v17 = vpop.permute.xlu0 %2331 }
 0x80a   : > { %11292 = vst [vmem:[#allocation328_spill] sm:$0xff] %v9133_v17  ;;  %v9135_v42 = vpop.permute.xlu2 %3482  ;;  %v3711_v17 = vperm.slane %v10999_v19, 7  ;;  %v11304_v19 = vperm.slane %v7774_v56, 0 }
 0x80b   : > { %11293 = vst [vmem:[#allocation329_spill] sm:$0xff] %v9135_v42 }
 0x811   : > { %6526 = vset.pattern.permute.xlu2 %v6858_v11  ;;  %6525 = vset.pattern.permute.xlu1 %v6863_v12  ;;  %v9137_v48 = vpop.permute.xlu1 %3488  ;;  %v9141_v14 = vpop.permute.xlu0 %2396 }
 0x812   : > { %11294 = vst [vmem:[#allocation330_spill] sm:$0xff] %v9137_v48 }
 0x813   : > { %11295 = vst [vmem:[#allocation331_spill] sm:$0xff] %v9141_v14 }
 0x819   : > { %3677 = vperm.xlu2 %6526, %v3672_v49   ;;  %3670 = vperm.xlu1 %6525, %v11289_v44   ;;  %v9143_v44 = vpop.permute.xlu2 %3495  ;;  %v9146_v28 = vpop.permute.xlu1 %3508 }
 0x81a   : > { %11296 = vst [vmem:[#allocation332_spill] sm:$0xff] %v9143_v44 }
 0x81b   : > { %11297 = vst [vmem:[#allocation333_spill] sm:$0xff] %v9146_v28 }
 0x821   : > { %3690 = vperm.xlu2 %6526, %v11291_v29   ;;  %3683 = vperm.xlu1 %6525, %v3672_v49   ;;  %v9148_v29 = vpop.permute.xlu0 %2461  ;;  %v9150_v49 = vpop.permute.xlu2 %3514 }
 0x822   : > { %11298 = vst [vmem:[#allocation334_spill] sm:$0xff] %v9148_v29  ;;  %v9153_v42 = vpop.permute.xlu1 %3521 }
 0x823   : > { %11299 = vst [vmem:[#allocation335_spill] sm:$0xff] %v9150_v49 }
 0x824   : > { %11300 = vst [vmem:[#allocation336_spill] sm:$0xff] %v9153_v42 }
 0x829   : > { %6528 = vset.pattern.permute.xlu2 %v6863_v12  ;;  %6527 = vset.pattern.permute.xlu1 %v6858_v11  ;;  %v9155_v48 = vpop.permute.xlu0 %2526  ;;  %v9157_v14 = vpop.permute.xlu2 %3527 }
 0x82a   : > { %11301 = vst [vmem:[#allocation337_spill] sm:$0xff] %v9155_v48 }
 0x82b   : > { %11302 = vst [vmem:[#allocation338_spill] sm:$0xff] %v9157_v14  ;;  %v9161_v28 = vpop.permute.xlu1 %3540  ;;  %v11306_v14 = vperm.slane %v7774_v56, 2 }
 0x831   : > { %3709 = vperm.xlu2 %6528, %v3698_v41   ;;  %3703 = vperm.xlu1 %6527, %v3698_v41   ;;  %v3737_v41 = vperm.slane %v7774_v56, 1  ;;  %v9164_v44 = vpop.permute.xlu2 %3547 }
 0x832   : > { %11303 = vst [vmem:[#allocation339_spill] sm:$0xff] %v9164_v44 }
 0x833   : > { %v9170_v42 = vpop.permute.xlu1 %3553 }
 0x834   : > { %11305 = vst [vmem:[#allocation340_spill] sm:$0xff] %v9170_v42  ;;  %v3763_v42 = vperm.slane %v7774_v56, 3 }
 0x839   : > { %3722 = vperm.xlu2 %6528, %v3711_v17   ;;  %3716 = vperm.xlu1 %6527, %v3711_v17   ;;  %v9168_v17 = vpop.permute.xlu0 %2591  ;;  %v9174_v48 = vpop.permute.xlu2 %3560 }
 0x83a   : > { %11307 = vst [vmem:[#allocation341_spill] sm:$0xff] %v9174_v48 }
 0x841   : > { %6530 = vset.pattern.permute.xlu2 %v6858_v11  ;;  %6529 = vset.pattern.permute.xlu1 %v6863_v12  ;;  %v9176_v49 = vpop.permute.xlu0 %2656  ;;  %v9182_v44 = vpop.permute.xlu2 %3579 }
 0x842   : > { %11308 = vst [vmem:[#allocation342_spill] sm:$0xff] %v9176_v49 }
 0x843   : > { %v9178_v29 = vpop.permute.xlu1 %3573  ;;  %11310 = vst [vmem:[#allocation344_spill] sm:$0xff] %v9182_v44 }
 0x844   : > { %11309 = vst [vmem:[#allocation343_spill] sm:$0xff] %v9178_v29  ;;  %v3776_v29 = vperm.slane %v7774_v56, 4 }
 0x849   : > { %3742 = vperm.xlu2 %6530, %v3737_v41   ;;  %3735 = vperm.xlu1 %6529, %v11304_v19   ;;  %v9184_v19 = vpop.permute.xlu0 %2721 }
 0x84a   : > { %11311 = vst [vmem:[#allocation345_spill] sm:$0xff] %v9184_v19 }
 0x84b   : > { %v9186_v22 = vpop.permute.xlu1 %3586 }
 0x84c   : > { %11312 = vst [vmem:[#allocation346_spill] sm:$0xff] %v9186_v22 }
 0x851   : > { %3755 = vperm.xlu2 %6530, %v11306_v14   ;;  %3748 = vperm.xlu1 %6529, %v3737_v41   ;;  %v9189_v14 = vpop.permute.xlu2 %3592  ;;  %v9194_v48 = vpop.permute.xlu0 %2786 }
 0x852   : > { %11313 = vst [vmem:[#allocation347_spill] sm:$0xff] %v9189_v14  ;;  %v3802_v14 = vperm.slane %v7774_v56, 6 }
 0x853   : > { %11314 = vst [vmem:[#allocation348_spill] sm:$0xff] %v9194_v48  ;;  %v11318_v48 = vperm.slane %v7774_v56, 5 }
 0x859   : > { %6532 = vset.pattern.permute.xlu2 %v6863_v12  ;;  %6531 = vset.pattern.permute.xlu1 %v6858_v11  ;;  %v9196_v49 = vpop.permute.xlu2 %3612  ;;  %v2852_v22 = vpop.permute.xlu0 %2851 }
 0x85a   : > { %11315 = vst [vmem:[#allocation349_spill] sm:$0xff] %v9196_v49 }
 0x85b   : > { %v9191_v41 = vpop.permute.xlu1 %3605 }
 0x861   : > { %3774 = vperm.xlu2 %6532, %v3763_v42   ;;  %3768 = vperm.xlu1 %6531, %v3763_v42   ;;  %v9202_v42 = vpop.permute.xlu2 %3625 }
 0x863   : > { %v9198_v44 = vpop.permute.xlu1 %3618 }
 0x864   : > { %11316 = vst [vmem:[#allocation350_spill] sm:$0xff] %v9198_v44  ;;  %v11320_v44 = vperm.slane %v7774_v56, 7 }
 0x869   : > { %3787 = vperm.xlu2 %6532, %v3776_v29   ;;  %3781 = vperm.xlu1 %6531, %v3776_v29   ;;  %v9209_v29 = vpop.permute.xlu0 %2916  ;;  %v9211_v49 = vpop.permute.xlu2 %3644 }
 0x86a   : > { %11319 = vst [vmem:[#allocation352_spill] sm:$0xff] %v9211_v49 }
 0x871   : > { %6534 = vset.pattern.permute.xlu2 %v6858_v11  ;;  %6533 = vset.pattern.permute.xlu1 %v6863_v12  ;;  %v9217_v9 = vpop.permute.xlu0 %2981  ;;  %v9226_v56 = vpop.permute.xlu2 %3657 }
 0x873   : > { %v9205_v19 = vpop.permute.xlu1 %3638 }
 0x874   : > { %11317 = vst [vmem:[#allocation351_spill] sm:$0xff] %v9205_v19  ;;  %v4461_v19 = vsel %vm240_vm2, %v8119_v60, %v8259_v10 }
 0x879   : > { %3807 = vperm.xlu2 %6534, %v3802_v14   ;;  %3800 = vperm.xlu1 %6533, %v11318_v48   ;;  %v4494_v48 = vsel %vm4484_vm4, %v4461_v19, %v8402_v5  ;;  %v3828_v19 = vperm.slane %v7817_v51, 0 }
 0x87a   : > { %v4527_v49 = vsel %vm4517_vm5, %v4494_v48, %v9062_v46 }
 0x87b   : > { %v9215_v16 = vpop.permute.xlu1 %3651 }
 0x87c   : > { %11321 = vst [vmem:[#allocation353_spill] sm:$0xff] %v9215_v16 }
 0x881   : > { %3820 = vperm.xlu2 %6534, %v11320_v44   ;;  %3813 = vperm.xlu1 %6533, %v3802_v14   ;;  %v4560_v44 = vsel %vm4550_vm6, %v4527_v49, %v8558_v35  ;;  %v9241_v14 = vpop.permute.xlu0 %3046  ;;  %v9246_v49 = vpop.permute.xlu2 %3677 }
 0x882   : > { %v4593_v60 = vsel %vm4583_vm7, %v4560_v44, %v8634_v54  ;;  %11322 = vst [vmem:[#allocation354_spill] sm:$0xff] %v9246_v49 }
 0x883   : > { %v4626_v10 = vsel %vm4616_vm8, %v4593_v60, %v8711_v52 }
 0x884   : > { %v4659_v46 = vsel %vm4649_vm9, %v4626_v10, %v8790_v39  ;;  %v3867_v10 = vperm.slane %v7817_v51, 3 }
 0x885   : > { %v4692_v35 = vsel %vm4682_vm10, %v4659_v46, %v2852_v22  ;;  %v3841_v22 = vperm.slane %v7817_v51, 1 }
 0x886   : > { %v4725_v54 = vsel %vm4715_vm11, %v4692_v35, %v8946_v2 }
 0x887   : > { %v4758_v52 = vsel %vm4748_vm12, %v4725_v54, %v9030_v34 }
 0x888   : > { %v4791_v39 = vsel %vm4781_vm13, %v4758_v52, %v9129_v24  ;;  %v11324_v52 = vperm.slane %v7817_v51, 4 }
 0x889   : > { %6536 = vset.pattern.permute.xlu2 %v6863_v12  ;;  %6535 = vset.pattern.permute.xlu1 %v6858_v11  ;;  %v9256_v2 = vpop.permute.xlu0 %3111  ;;  %v9258_v60 = vpop.permute.xlu2 %3690 }
 0x88b   : > { %v9234_v5 = vpop.permute.xlu1 %3670 }
 0x891   : > { %3839 = vperm.xlu2 %6536, %v3828_v19   ;;  %3833 = vperm.xlu1 %6535, %v3828_v19   ;;  %v9262_v34 = vpop.permute.xlu2 %3709  ;;  %v9264_v24 = vpop.permute.xlu0 %3176  ;;  %v11323_v19 = vperm.slane %v7817_v51, 2 }
 0x893   : > { %v3684_v48 = vpop.permute.xlu1 %3683 }
 0x894   : > { %v9253_v44 = vsel %vm4814_vm14, %v4791_v39, %v3684_v48 }
 0x899   : > { %3852 = vperm.xlu2 %6536, %v3841_v22   ;;  %3846 = vperm.xlu1 %6535, %v3841_v22   ;;  %v9271_v35 = vpop.permute.xlu2 %3722  ;;  %v9273_v54 = vpop.permute.xlu0 %3241  ;;  %v4471_v22 = vsel %vm240_vm2, %v8165_v31, %v8304_v57 }
 0x89a   : > { %v4504_v16 = vsel %vm4484_vm4, %v4471_v22, %v8426_v15 }
 0x89b   : > { %v4537_v49 = vsel %vm4517_vm5, %v4504_v16, %v9069_v43  ;;  %v3893_v43 = vperm.slane %v7817_v51, 5 }
 0x8a1   : > { %6538 = vset.pattern.permute.xlu2 %v6858_v11  ;;  %6537 = vset.pattern.permute.xlu1 %v6863_v12 }
 0x8a3   : > { %v9267_v46 = vpop.permute.xlu1 %3703  ;;  %v9279_v48 = vpop.permute.xlu2 %3742 }
 0x8a9   : > { %3872 = vperm.xlu2 %6538, %v3867_v10   ;;  %3865 = vperm.xlu1 %6537, %v11323_v19   ;;  %v9286_v19 = vpop.permute.xlu0 %3306 }
 0x8ab   : > { %v9277_v39 = vpop.permute.xlu1 %3716  ;;  %v9302_v57 = vpop.permute.xlu2 %3755 }
 0x8ac   : > { %11325 = vst [vmem:[#allocation355_spill] sm:$0xff] %v9277_v39 }
 0x8b1   : > { %3885 = vperm.xlu2 %6538, %v11324_v52   ;;  %3878 = vperm.xlu1 %6537, %v3867_v10   ;;  %v4570_v10 = vsel %vm4550_vm6, %v4537_v49, %v8581_v8 }
 0x8b2   : > { %v4603_v52 = vsel %vm4583_vm7, %v4570_v10, %v8660_v7  ;;  %v9309_v7 = vpop.permute.xlu0 %3371 }
 0x8b3   : > { %v4636_v31 = vsel %vm4616_vm8, %v4603_v52, %v8735_v4 }
 0x8b4   : > { %v4669_v15 = vsel %vm4649_vm9, %v4636_v31, %v8814_v40 }
 0x8b5   : > { %v4702_v16 = vsel %vm4682_vm10, %v4669_v15, %v9209_v29  ;;  %v3906_v29 = vperm.slane %v7817_v51, 6 }
 0x8b6   : > { %v4735_v8 = vsel %vm4715_vm11, %v4702_v16, %v8969_v53  ;;  %v4453_v16 = vsel %vm240_vm2, %v8080_v0, %v8226_v50 }
 0x8b7   : > { %v4768_v4 = vsel %vm4748_vm12, %v4735_v8, %v9064_v18  ;;  %v4486_v8 = vsel %vm4484_vm4, %v4453_v16, %v9026_v33 }
 0x8b8   : > { %v4801_v40 = vsel %vm4781_vm13, %v4768_v4, %v9161_v28  ;;  %v3932_v28 = vperm.slane %v7863_v62, 0  ;;  %v4519_v4 = vsel %vm4517_vm5, %v4486_v8, %v8461_v38 }
 0x8b9   : > { %6540 = vset.pattern.permute.xlu2 %v6863_v12  ;;  %6539 = vset.pattern.permute.xlu1 %v6858_v11 }
 0x8ba   : > { %v9321_v53 = vpop.permute.xlu0 %3436 }
 0x8bb   : > { %v9296_v39 = vpop.permute.xlu1 %3735  ;;  %v9318_v10 = vpop.permute.xlu2 %3774 }
 0x8c1   : > { %3904 = vperm.xlu2 %6540, %v3893_v43   ;;  %3898 = vperm.xlu1 %6539, %v3893_v43   ;;  %v11326_v43 = vperm.slane %v7817_v51, 7 }
 0x8c2   : > { %v9327_v18 = vpop.permute.xlu0 %3501 }
 0x8c3   : > { %v3749_v49 = vpop.permute.xlu1 %3748  ;;  %v9323_v52 = vpop.permute.xlu2 %3787 }
 0x8c4   : > { %v9316_v22 = vsel %vm4814_vm14, %v4801_v40, %v3749_v49  ;;  %v4552_v40 = vsel %vm4550_vm6, %v4519_v4, %v8537_v61 }
 0x8c9   : > { %3917 = vperm.xlu2 %6540, %v3906_v29   ;;  %3911 = vperm.xlu1 %6539, %v3906_v29   ;;  %v4585_v29 = vsel %vm4583_vm7, %v4552_v40, %v8614_v13  ;;  %v4481_v13 = vsel %vm240_vm2, %v8210_v45, %v8348_v59 }
 0x8ca   : > { %v9345_v49 = vpop.permute.xlu0 %3566  ;;  %v4618_v51 = vsel %vm4616_vm8, %v4585_v29, %v8693_v27 }
 0x8cb   : > { %v4651_v38 = vsel %vm4649_vm9, %v4618_v51, %v9168_v17 }
 0x8cc   : > { %v4684_v61 = vsel %vm4682_vm10, %v4651_v38, %v8849_v55  ;;  %v4463_v38 = vsel %vm240_vm2, %v8125_v47, %v8271_v63  ;;  %v11333_v47 = vld [vmem:[#allocation293_spill] sm:$0xff]  ;;  %v11334_v63 = vld [vmem:[#allocation63_spill] sm:$0xff] }
 0x8cd   : > { %v4717_v33 = vsel %vm4715_vm11, %v4684_v61, %v8925_v37  ;;  %v4496_v61 = vsel %vm4484_vm4, %v4463_v38, %v9036_v36  ;;  %v4465_v36 = vsel %vm240_vm2, %v11334_v63, %v11333_v47  ;;  %v11342_v38 = vld [vmem:[#allocation116_spill] sm:$0xff]  ;;  %v11347_v47 = vld [vmem:[#allocation330_spill] sm:$0xff] }
 0x8ce   : > { %v4750_v27 = vsel %vm4748_vm12, %v4717_v33, %v9004_v21  ;;  %v4529_v33 = vsel %vm4517_vm5, %v4496_v61, %v8484_v3 }
 0x8cf   : > { %v4783_v16 = vsel %vm4781_vm13, %v4750_v27, %v9107_v20 }
 0x8d1   : > { %6542 = vset.pattern.permute.xlu2 %v6858_v11  ;;  %6541 = vset.pattern.permute.xlu1 %v6863_v12 }
 0x8d2   : > { %v3632_v59 = vpop.permute.xlu0 %3631 }
 0x8d3   : > { %v9330_v31 = vpop.permute.xlu2 %3807  ;;  %v9332_v15 = vpop.permute.xlu1 %3768 }
 0x8d9   : > { %3937 = vperm.xlu2 %6542, %v3932_v28   ;;  %3930 = vperm.xlu1 %6541, %v11326_v43   ;;  %v11327_v43 = vperm.slane %v7863_v62, 1 }
 0x8db   : > { %v9353_v0 = vpop.permute.xlu2 %3820  ;;  %v9355_v50 = vpop.permute.xlu1 %3781 }
 0x8e1   : > { %3950 = vperm.xlu2 %6542, %v11327_v43   ;;  %3943 = vperm.xlu1 %6541, %v3932_v28   ;;  %v4514_v28 = vsel %vm4484_vm4, %v4481_v13, %v8451_v1  ;;  %v4816_v1 = vsel %vm4814_vm14, %v4783_v16, %v3632_v59  ;;  %v11329_v13 = vld [vmem:[#allocation164_spill] sm:$0xff]  ;;  %v11332_v59 = vperm.slane %v7863_v62, 6 }
 0x8e2   : > { %v4547_v17 = vsel %vm4517_vm5, %v4514_v28, %v9077_v26  ;;  %v4562_v27 = vsel %vm4550_vm6, %v4529_v33, %v11329_v13  ;;  %v11330_v28 = vld [vmem:[#allocation185_spill] sm:$0xff] }
 0x8e3   : > { %v4580_v55 = vsel %vm4550_vm6, %v4547_v17, %v8605_v23  ;;  %v3958_v23 = vperm.slane %v7863_v62, 2  ;;  %v4595_v16 = vsel %vm4583_vm7, %v4562_v27, %v11330_v28  ;;  %v11331_v17 = vld [vmem:[#allocation207_spill] sm:$0xff]  ;;  %v11343_v33 = vld [vmem:[#allocation165_spill] sm:$0xff]  ;;  %v11344_v27 = vld [vmem:[#allocation300_spill] sm:$0xff] }
 0x8e4   : > { %v4613_v45 = vsel %vm4583_vm7, %v4580_v55, %v8684_v25  ;;  %v4628_v55 = vsel %vm4616_vm8, %v4595_v16, %v11331_v17  ;;  %v11345_v16 = vld [vmem:[#allocation138_spill] sm:$0xff] }
 0x8e5   : > { %v4646_v26 = vsel %vm4616_vm8, %v4613_v45, %v8759_v30 }
 0x8e6   : > { %v4679_v8 = vsel %vm4649_vm9, %v4646_v26, %v8839_v6  ;;  %v3971_v6 = vperm.slane %v7863_v62, 3  ;;  %v11336_v26 = vld [vmem:[#allocation120_spill] sm:$0xff] }
 0x8e7   : > { %v4712_v25 = vsel %vm4682_vm10, %v4679_v8, %v9217_v9  ;;  %v4498_v8 = vsel %vm4484_vm4, %v4465_v36, %v11336_v26  ;;  %v11348_v36 = vld [vmem:[#allocation315_spill] sm:$0xff] }
 0x8e8   : > { %v4745_v4 = vsel %vm4715_vm11, %v4712_v25, %v8993_v58  ;;  %v3997_v58 = vperm.slane %v7863_v62, 5  ;;  %v11349_v26 = vld [vmem:[#allocation183_spill] sm:$0xff] }
 0x8e9   : > { %6544 = vset.pattern.permute.xlu2 %v6863_v12  ;;  %6543 = vset.pattern.permute.xlu1 %v6858_v11  ;;  %v4778_v40 = vsel %vm4748_vm12, %v4745_v4, %v9094_v32  ;;  %v11338_v4 = vld [vmem:[#allocation16_spill] sm:$0xff] }
 0x8ea   : > { %v4811_v30 = vsel %vm4781_vm13, %v4778_v40, %v9191_v41  ;;  %v11328_v41 = vperm.slane %v7863_v62, 4  ;;  %v11339_v40 = vld [vmem:[#allocation58_spill] sm:$0xff] }
 0x8eb   : > { %v3840_v37 = vpop.permute.xlu2 %3839  ;;  %v9381_v21 = vpop.permute.xlu1 %3800 }
 0x8ec   : > { %v9386_v20 = vsel %vm4847_vm15, %v4816_v1, %v3840_v37  ;;  %v11335_v37 = vld [vmem:[#allocation342_spill] sm:$0xff] }
 0x8ed   : > { %v4661_v1 = vsel %vm4649_vm9, %v4628_v55, %v11335_v37  ;;  %v11346_v55 = vld [vmem:[#allocation187_spill] sm:$0xff] }
 0x8f1   : > { %3969 = vperm.xlu2 %6544, %v3958_v23   ;;  %3963 = vperm.xlu1 %6543, %v3958_v23   ;;  %v11337_v23 = vld [vmem:[#allocation252_spill] sm:$0xff] }
 0x8f2   : > { %v4694_v25 = vsel %vm4682_vm10, %v4661_v1, %v11337_v23  ;;  %v3697_v1 = vpop.permute.xlu0 %3696  ;;  %v11350_v23 = vld [vmem:[#allocation205_spill] sm:$0xff] }
 0x8f3   : > { %v3814_v29 = vpop.permute.xlu1 %3813  ;;  %v9403_v9 = vpop.permute.xlu2 %3852 }
 0x8f4   : > { %v9400_v51 = vsel %vm4814_vm14, %v4811_v30, %v3814_v29  ;;  %v4459_v30 = vsel %vm240_vm2, %v11339_v40, %v11338_v4  ;;  %v11340_v29 = vld [vmem:[#allocation142_spill] sm:$0xff] }
 0x8f5   : > { %v4492_v61 = vsel %vm4484_vm4, %v4459_v30, %v11342_v38  ;;  %v11351_v4 = vld [vmem:[#allocation334_spill] sm:$0xff]  ;;  %v11353_v38 = vld [vmem:[#allocation227_spill] sm:$0xff] }
 0x8f6   : > { %v4525_v17 = vsel %vm4517_vm5, %v4492_v61, %v11345_v16 }
 0x8f7   : > { %v4558_v37 = vsel %vm4550_vm6, %v4525_v17, %v11348_v36  ;;  %v11356_v17 = vld [vmem:[#allocation277_spill] sm:$0xff] }
 0x8f9   : > { %3982 = vperm.xlu2 %6544, %v3971_v6   ;;  %3976 = vperm.xlu1 %6543, %v3971_v6   ;;  %v4531_v6 = vsel %vm4517_vm5, %v4498_v8, %v11340_v29  ;;  %v4591_v8 = vsel %vm4583_vm7, %v4558_v37, %v11349_v26  ;;  %v11358_v37 = vld [vmem:[#allocation298_spill] sm:$0xff]  ;;  %v11359_v26 = vld [vmem:[#allocation327_spill] sm:$0xff] }
 0x8fa   : > { %v4564_v13 = vsel %vm4550_vm6, %v4531_v6, %v11343_v33 }
 0x901   : > { %6546 = vset.pattern.permute.xlu2 %v6858_v11  ;;  %6545 = vset.pattern.permute.xlu1 %v6863_v12 }
 0x903   : > { %v9408_v32 = vpop.permute.xlu2 %3872  ;;  %v9410_v43 = vpop.permute.xlu1 %3833 }
 0x909   : > { %4002 = vperm.xlu2 %6546, %v3997_v58   ;;  %3995 = vperm.xlu1 %6545, %v11328_v41  }
 0x90b   : > { %v9432_v45 = vpop.permute.xlu2 %3885  ;;  %v9434_v3 = vpop.permute.xlu1 %3846 }
 0x911   : > { %4015 = vperm.xlu2 %6546, %v11332_v59   ;;  %4008 = vperm.xlu1 %6545, %v3997_v58   ;;  %v11341_v58 = vld [vmem:[#allocation276_spill] sm:$0xff]  ;;  %v4597_v59 = vsel %vm4583_vm7, %v4564_v13, %v11346_v55  ;;  %v11354_v13 = vld [vmem:[#allocation254_spill] sm:$0xff] }
 0x912   : > { %v4727_v41 = vsel %vm4715_vm11, %v4694_v25, %v11341_v58  ;;  %v4624_v25 = vsel %vm4616_vm8, %v4591_v8, %v11350_v23  ;;  %v4630_v40 = vsel %vm4616_vm8, %v4597_v59, %v11351_v4  ;;  %v11352_v58 = vld [vmem:[#allocation231_spill] sm:$0xff]  ;;  %v11357_v59 = vld [vmem:[#allocation302_spill] sm:$0xff] }
 0x913   : > { %v4760_v28 = vsel %vm4748_vm12, %v4727_v41, %v11344_v27  ;;  %v4663_v41 = vsel %vm4649_vm9, %v4630_v40, %v11352_v58  ;;  %v4657_v61 = vsel %vm4649_vm9, %v4624_v25, %v11353_v38  ;;  %v11362_v38 = vld [vmem:[#allocation118_spill] sm:$0xff] }
 0x914   : > { %v4793_v63 = vsel %vm4781_vm13, %v4760_v28, %v11347_v47  ;;  %v4696_v27 = vsel %vm4682_vm10, %v4663_v41, %v11354_v13  ;;  %v11355_v28 = vld [vmem:[#allocation249_spill] sm:$0xff]  ;;  %v11364_v13 = vld [vmem:[#allocation163_spill] sm:$0xff] }
 0x915   : > { %v4826_v29 = vsel %vm4814_vm14, %v4793_v63, %v3697_v1  ;;  %v4690_v16 = vsel %vm4682_vm10, %v4657_v61, %v11355_v28  ;;  %v4729_v55 = vsel %vm4715_vm11, %v4696_v27, %v11356_v17  ;;  %v4023_v63 = vperm.slane %v7863_v62, 7  ;;  %v11363_v61 = vld [vmem:[#allocation140_spill] sm:$0xff]  ;;  %v11365_v27 = vld [vmem:[#allocation25_spill] sm:$0xff] }
 0x916   : > { %v4762_v47 = vsel %vm4748_vm12, %v4729_v55, %v11357_v59  ;;  %v4723_v36 = vsel %vm4715_vm11, %v4690_v16, %v9241_v14  ;;  %v11360_v14 = vld [vmem:[#allocation19_spill] sm:$0xff]  ;;  %v4036_v28 = vperm.slane %v11365_v27, 0  ;;  %v11367_v55 = vld [vmem:[#allocation206_spill] sm:$0xff] }
 0x917   : > { %v4756_v1 = vsel %vm4748_vm12, %v4723_v36, %v11358_v37  ;;  %v4795_v23 = vsel %vm4781_vm13, %v4762_v47, %v9327_v18  ;;  %v11366_v16 = vld [vmem:[#allocation39_spill] sm:$0xff] }
 0x918   : > { %v4789_v8 = vsel %vm4781_vm13, %v4756_v1, %v11359_v26  ;;  %v4828_v25 = vsel %vm4814_vm14, %v4795_v23, %v9262_v34  ;;  %v11368_v47 = vld [vmem:[#allocation23_spill] sm:$0xff]  ;;  %v11371_v1 = vld [vmem:[#allocation61_spill] sm:$0xff] }
 0x919   : > { %6548 = vset.pattern.permute.xlu2 %v6863_v12  ;;  %6547 = vset.pattern.permute.xlu1 %v6858_v11  ;;  %v4822_v62 = vsel %vm4814_vm14, %v4789_v8, %v9234_v5  ;;  %v11370_v37 = vld [vmem:[#allocation87_spill] sm:$0xff]  ;;  %v11372_v8 = vld [vmem:[#allocation229_spill] sm:$0xff] }
 0x91a   : > { %v4464_v26 = vsel %vm240_vm2, %v11371_v1, %v11370_v37  ;;  %v11384_v1 = vld [vmem:[#allocation329_spill] sm:$0xff] }
 0x91b   : > { %v3905_v30 = vpop.permute.xlu2 %3904  ;;  %v9472_v6 = vpop.permute.xlu1 %3865 }
 0x91c   : > { %v9479_v33 = vsel %vm4847_vm15, %v4826_v29, %v3905_v30  ;;  %v11361_v30 = vld [vmem:[#allocation18_spill] sm:$0xff] }
 0x91d   : > { %v4462_v29 = vsel %vm240_vm2, %v11361_v30, %v11360_v14  ;;  %v11375_v14 = vld [vmem:[#allocation251_spill] sm:$0xff] }
 0x91e   : > { %v4495_v18 = vsel %vm4484_vm4, %v4462_v29, %v11362_v38  ;;  %v11376_v29 = vld [vmem:[#allocation146_spill] sm:$0xff] }
 0x91f   : > { %v4528_v34 = vsel %vm4517_vm5, %v4495_v18, %v11363_v61  ;;  %v11377_v18 = vld [vmem:[#allocation141_spill] sm:$0xff] }
 0x920   : > { %v4561_v5 = vsel %vm4550_vm6, %v4528_v34, %v11364_v13  ;;  %v11378_v34 = vld [vmem:[#allocation275_spill] sm:$0xff] }
 0x921   : > { %4034 = vperm.xlu2 %6548, %v4023_v63   ;;  %4028 = vperm.xlu1 %6547, %v4023_v63   ;;  %v4594_v17 = vsel %vm4583_vm7, %v4561_v5, %v11366_v16  ;;  %v11369_v63 = vld [vmem:[#allocation69_spill] sm:$0xff]  ;;  %v11380_v16 = vld [vmem:[#allocation191_spill] sm:$0xff] }
 0x922   : > { %v4627_v59 = vsel %vm4616_vm8, %v4594_v17, %v11367_v55  ;;  %v4470_v36 = vsel %vm240_vm2, %v11369_v63, %v11368_v47  ;;  %v11379_v5 = vld [vmem:[#allocation169_spill] sm:$0xff]  ;;  %v11381_v55 = vld [vmem:[#allocation36_spill] sm:$0xff]  ;;  %v11382_v47 = vld [vmem:[#allocation62_spill] sm:$0xff] }
 0x923   : > { %v3918_v4 = vpop.permute.xlu2 %3917  ;;  %v3879_v40 = vpop.permute.xlu1 %3878  ;;  %v4660_v23 = vsel %vm4649_vm9, %v4627_v59, %v11372_v8  ;;  %v11385_v8 = vld [vmem:[#allocation208_spill] sm:$0xff] }
 0x924   : > { %v9506_v58 = vsel %vm4847_vm15, %v4828_v25, %v3918_v4  ;;  %v9509_v41 = vsel %vm4847_vm15, %v4822_v62, %v3879_v40  ;;  %v11373_v25 = vld [vmem:[#allocation124_spill] sm:$0xff]  ;;  %v11374_v4 = vld [vmem:[#allocation119_spill] sm:$0xff]  ;;  %v4693_v30 = vsel %vm4682_vm10, %v4660_v23, %v11375_v14 }
 0x925   : > { %v4503_v62 = vsel %vm4484_vm4, %v4470_v36, %v11373_v25  ;;  %v4497_v40 = vsel %vm4484_vm4, %v4464_v26, %v11374_v4  ;;  %v4726_v13 = vsel %vm4715_vm11, %v4693_v30, %v11378_v34  ;;  %v11383_v36 = vld [vmem:[#allocation186_spill] sm:$0xff]  ;;  %v11386_v25 = vld [vmem:[#allocation43_spill] sm:$0xff] }
 0x926   : > { %v4536_v38 = vsel %vm4517_vm5, %v4503_v62, %v11376_v29  ;;  %v4530_v61 = vsel %vm4517_vm5, %v4497_v40, %v11377_v18  ;;  %v4759_v63 = vsel %vm4748_vm12, %v4726_v13, %v11382_v47  ;;  %v11387_v30 = vld [vmem:[#allocation235_spill] sm:$0xff]  ;;  %v11389_v34 = vld [vmem:[#allocation258_spill] sm:$0xff] }
 0x927   : > { %v4563_v59 = vsel %vm4550_vm6, %v4530_v61, %v11381_v55  ;;  %v4792_v26 = vsel %vm4781_vm13, %v4759_v63, %v11384_v1  ;;  %v11393_v47 = vld [vmem:[#allocation54_spill] sm:$0xff]  ;;  %v11395_v1 = vperm.slane %v11365_v27, 1 }
 0x928   : > { %v4596_v37 = vsel %vm4583_vm7, %v4563_v59, %v11383_v36  ;;  %v4825_v4 = vsel %vm4814_vm14, %v4792_v26, %v9258_v60  ;;  %v4062_v59 = vperm.slane %v11365_v27, 2  ;;  %v11394_v36 = vld [vmem:[#allocation301_spill] sm:$0xff]  ;;  %v11396_v26 = vld [vmem:[#allocation90_spill] sm:$0xff] }
 0x929   : > { %4047 = vperm.xlu2 %6548, %v4036_v28   ;;  %4041 = vperm.xlu1 %6547, %v4036_v28   ;;  %v4569_v28 = vsel %vm4550_vm6, %v4536_v38, %v11379_v5  ;;  %v4629_v23 = vsel %vm4616_vm8, %v4596_v37, %v11385_v8  ;;  %v11388_v38 = vld [vmem:[#allocation230_spill] sm:$0xff]  ;;  %v11390_v5 = vld [vmem:[#allocation253_spill] sm:$0xff]  ;;  %v11397_v8 = vld [vmem:[#allocation112_spill] sm:$0xff] }
 0x92a   : > { %v4602_v17 = vsel %vm4583_vm7, %v4569_v28, %v11380_v16  ;;  %v4662_v18 = vsel %vm4649_vm9, %v4629_v23, %v11388_v38  ;;  %v11391_v16 = vld [vmem:[#allocation281_spill] sm:$0xff]  ;;  %v4467_v23 = vsel %vm240_vm2, %v11397_v8, %v11396_v26  ;;  %v11407_v26 = vld [vmem:[#allocation167_spill] sm:$0xff] }
 0x92b   : > { %v4635_v62 = vsel %vm4616_vm8, %v4602_v17, %v11386_v25  ;;  %v4695_v28 = vsel %vm4682_vm10, %v4662_v18, %v11390_v5  ;;  %v11392_v17 = vld [vmem:[#allocation308_spill] sm:$0xff] }
 0x92c   : > { %v4668_v29 = vsel %vm4649_vm9, %v4635_v62, %v11387_v30  ;;  %v4728_v63 = vsel %vm4715_vm11, %v4695_v28, %v11393_v47  ;;  %v11398_v25 = vld [vmem:[#allocation332_spill] sm:$0xff] }
 0x92d   : > { %v4701_v13 = vsel %vm4682_vm10, %v4668_v29, %v11389_v34  ;;  %v4761_v37 = vsel %vm4748_vm12, %v4728_v63, %v11394_v36  ;;  %v11400_v34 = vld [vmem:[#allocation96_spill] sm:$0xff]  ;;  %v11405_v63 = vld [vmem:[#allocation143_spill] sm:$0xff] }
 0x92e   : > { %v4734_v60 = vsel %vm4715_vm11, %v4701_v13, %v11391_v16  ;;  %v4794_v62 = vsel %vm4781_vm13, %v4761_v37, %v11398_v25  ;;  %v11401_v13 = vld [vmem:[#allocation70_spill] sm:$0xff]  ;;  %v11404_v47 = vld [vmem:[#allocation148_spill] sm:$0xff]  ;;  %v11406_v37 = vld [vmem:[#allocation171_spill] sm:$0xff] }
 0x92f   : > { %v4767_v55 = vsel %vm4748_vm12, %v4734_v60, %v11392_v17  ;;  %v4827_v29 = vsel %vm4814_vm14, %v4794_v62, %v9267_v46  ;;  %v4473_v5 = vsel %vm240_vm2, %v11401_v13, %v11400_v34  ;;  %v11402_v60 = vld [vmem:[#allocation303_spill] sm:$0xff]  ;;  %v11408_v25 = vld [vmem:[#allocation192_spill] sm:$0xff]  ;;  %v11414_v13 = vld [vmem:[#allocation210_spill] sm:$0xff] }
 0x930   : > { %v4506_v17 = vsel %vm4484_vm4, %v4473_v5, %v11402_v60  ;;  %v11415_v60 = vld [vmem:[#allocation93_spill] sm:$0xff] }
 0x931   : > { %6550 = vset.pattern.permute.xlu2 %v6858_v11  ;;  %6549 = vset.pattern.permute.xlu1 %v6863_v12  ;;  %v4539_v46 = vsel %vm4517_vm5, %v4506_v17, %v11404_v47  ;;  %v11416_v17 = vld [vmem:[#allocation67_spill] sm:$0xff] }
 0x933   : > { %v9562_v40 = vpop.permute.xlu2 %3937  ;;  %v3899_v14 = vpop.permute.xlu1 %3898 }
 0x934   : > { %v9569_v61 = vsel %vm4847_vm15, %v4825_v4, %v3899_v14  ;;  %v11399_v4 = vld [vmem:[#allocation72_spill] sm:$0xff] }
 0x935   : > { %v4800_v14 = vsel %vm4781_vm13, %v4767_v55, %v11399_v4  ;;  %v11403_v55 = vld [vmem:[#allocation122_spill] sm:$0xff] }
 0x936   : > { %v4833_v30 = vsel %vm4814_vm14, %v4800_v14, %v9279_v48  ;;  %v4500_v48 = vsel %vm4484_vm4, %v4467_v23, %v11403_v55  ;;  %v11409_v4 = vld [vmem:[#allocation214_spill] sm:$0xff]  ;;  %v11410_v23 = vperm.slane %v11365_v27, 3  ;;  %v4469_v55 = vsel %vm240_vm2, %v11416_v17, %v11415_v60  ;;  %v11428_v60 = vld [vmem:[#allocation309_spill] sm:$0xff] }
 0x937   : > { %v4533_v36 = vsel %vm4517_vm5, %v4500_v48, %v11405_v63  ;;  %v11417_v48 = vld [vmem:[#allocation233_spill] sm:$0xff]  ;;  %v11419_v63 = vld [vmem:[#allocation123_spill] sm:$0xff] }
 0x938   : > { %v4566_v8 = vsel %vm4550_vm6, %v4533_v36, %v11407_v26  ;;  %v4502_v36 = vsel %vm4484_vm4, %v4469_v55, %v11419_v63  ;;  %v11421_v26 = vld [vmem:[#allocation260_spill] sm:$0xff]  ;;  %v11429_v55 = vld [vmem:[#allocation194_spill] sm:$0xff] }
 0x939   : > { %4067 = vperm.xlu2 %6550, %v4062_v59   ;;  %4060 = vperm.xlu1 %6549, %v11395_v1   ;;  %v4572_v1 = vsel %vm4550_vm6, %v4539_v46, %v11406_v37  ;;  %v11418_v46 = vld [vmem:[#allocation345_spill] sm:$0xff]  ;;  %v11420_v37 = vld [vmem:[#allocation127_spill] sm:$0xff] }
 0x93a   : > { %v4605_v62 = vsel %vm4583_vm7, %v4572_v1, %v11408_v25  ;;  %v11422_v25 = vld [vmem:[#allocation255_spill] sm:$0xff] }
 0x93b   : > { %v3951_v38 = vpop.permute.xlu2 %3950  ;;  %v3912_v18 = vpop.permute.xlu1 %3911  ;;  %v4638_v14 = vsel %vm4616_vm8, %v4605_v62, %v11409_v4  ;;  %v11423_v4 = vld [vmem:[#allocation150_spill] sm:$0xff] }
 0x93c   : > { %v9601_v28 = vsel %vm4847_vm15, %v4833_v30, %v3951_v38  ;;  %v9604_v16 = vsel %vm4847_vm15, %v4827_v29, %v3912_v18  ;;  %v11411_v30 = vld [vmem:[#allocation296_spill] sm:$0xff]  ;;  %v11413_v18 = vld [vmem:[#allocation326_spill] sm:$0xff] }
 0x93d   : > { %v11412_v29 = vld [vmem:[#allocation12_spill] sm:$0xff]  ;;  %v4599_v34 = vsel %vm4583_vm7, %v4566_v8, %v11413_v18  ;;  %v11425_v18 = vld [vmem:[#allocation283_spill] sm:$0xff] }
 0x93e   : > { %v4475_v38 = vsel %vm240_vm2, %v11412_v29, %v11411_v30  ;;  %v4632_v5 = vsel %vm4616_vm8, %v4599_v34, %v11414_v13  ;;  %v11424_v30 = vld [vmem:[#allocation145_spill] sm:$0xff]  ;;  %v11426_v34 = vld [vmem:[#allocation279_spill] sm:$0xff] }
 0x93f   : > { %v4665_v47 = vsel %vm4649_vm9, %v4632_v5, %v11417_v48  ;;  %v4508_v1 = vsel %vm4484_vm4, %v4475_v38, %v11420_v37  ;;  %v4535_v29 = vsel %vm4517_vm5, %v4502_v36, %v11424_v30  ;;  %v11427_v5 = vld [vmem:[#allocation172_spill] sm:$0xff]  ;;  %v3762_v37 = vpop.permute.xlu0 %3761 }
 0x940   : > { %v4698_v62 = vsel %vm4682_vm10, %v4665_v47, %v11422_v25  ;;  %v11430_v47 = vld [vmem:[#allocation340_spill] sm:$0xff] }
 0x941   : > { %4080 = vperm.xlu2 %6550, %v11410_v23   ;;  %4073 = vperm.xlu1 %6549, %v4062_v59   ;;  %v4671_v59 = vsel %vm4649_vm9, %v4638_v14, %v11418_v46  ;;  %v4541_v23 = vsel %vm4517_vm5, %v4508_v1, %v11423_v4  ;;  %v4731_v13 = vsel %vm4715_vm11, %v4698_v62, %v11426_v34  ;;  %v11432_v1 = vld [vmem:[#allocation190_spill] sm:$0xff]  ;;  %v11434_v62 = vld [vmem:[#allocation212_spill] sm:$0xff] }
 0x942   : > { %v4704_v8 = vsel %vm4682_vm10, %v4671_v59, %v11421_v26  ;;  %v4574_v38 = vsel %vm4550_vm6, %v4541_v23, %v11427_v5  ;;  %v11431_v59 = vld [vmem:[#allocation317_spill] sm:$0xff]  ;;  %v4764_v36 = vsel %vm4748_vm12, %v4731_v13, %v9286_v19  ;;  %v11436_v34 = vld [vmem:[#allocation238_spill] sm:$0xff] }
 0x943   : > { %v4737_v14 = vsel %vm4715_vm11, %v4704_v8, %v11425_v18  ;;  %v4607_v48 = vsel %vm4583_vm7, %v4574_v38, %v11429_v55  ;;  %v4568_v63 = vsel %vm4550_vm6, %v4535_v29, %v11431_v59  ;;  %v11433_v8 = vld [vmem:[#allocation335_spill] sm:$0xff]  ;;  %v11435_v23 = vld [vmem:[#allocation337_spill] sm:$0xff]  ;;  %v11437_v5 = vld [vmem:[#allocation234_spill] sm:$0xff] }
 0x944   : > { %v4770_v17 = vsel %vm4748_vm12, %v4737_v14, %v11428_v60  ;;  %v4601_v26 = vsel %vm4583_vm7, %v4568_v63, %v11432_v1  ;;  %v4797_v25 = vsel %vm4781_vm13, %v4764_v36, %v11433_v8  ;;  %v4640_v30 = vsel %vm4616_vm8, %v4607_v48, %v11435_v23  ;;  %v11438_v55 = vld [vmem:[#allocation262_spill] sm:$0xff]  ;;  %v11441_v63 = vld [vmem:[#allocation311_spill] sm:$0xff] }
 0x945   : > { %v4803_v46 = vsel %vm4781_vm13, %v4770_v17, %v11430_v47  ;;  %v4634_v4 = vsel %vm4616_vm8, %v4601_v26, %v11434_v62  ;;  %v4830_v19 = vsel %vm4814_vm14, %v4797_v25, %v9271_v35  ;;  %v4673_v13 = vsel %vm4649_vm9, %v4640_v30, %v11436_v34  ;;  %v11439_v35 = vld [vmem:[#allocation257_spill] sm:$0xff]  ;;  %v11442_v26 = vld [vmem:[#allocation307_spill] sm:$0xff]  ;;  %v11443_v25 = vld [vmem:[#allocation338_spill] sm:$0xff] }
 0x946   : > { %v4836_v18 = vsel %vm4814_vm14, %v4803_v46, %v3762_v37  ;;  %v4667_v38 = vsel %vm4649_vm9, %v4634_v4, %v11437_v5  ;;  %v4706_v48 = vsel %vm4682_vm10, %v4673_v13, %v11438_v55  ;;  %v11440_v46 = vld [vmem:[#allocation284_spill] sm:$0xff]  ;;  %v4088_v37 = vperm.slane %v11365_v27, 4  ;;  %v11446_v5 = vld [vmem:[#allocation125_spill] sm:$0xff]  ;;  %v11448_v55 = vld [vmem:[#allocation170_spill] sm:$0xff] }
 0x947   : > { %v4700_v47 = vsel %vm4682_vm10, %v4667_v38, %v11439_v35  ;;  %v4739_v59 = vsel %vm4715_vm11, %v4706_v48, %v11440_v46  ;;  %v11447_v38 = vld [vmem:[#allocation147_spill] sm:$0xff]  ;;  %v4101_v48 = vperm.slane %v11365_v27, 5  ;;  %v11449_v35 = vld [vmem:[#allocation40_spill] sm:$0xff]  ;;  %v11450_v46 = vld [vmem:[#allocation213_spill] sm:$0xff] }
 0x948   : > { %v4772_v36 = vsel %vm4748_vm12, %v4739_v59, %v11441_v63  ;;  %v4733_v1 = vsel %vm4715_vm11, %v4700_v47, %v9256_v2  ;;  %v11444_v2 = vld [vmem:[#allocation95_spill] sm:$0xff]  ;;  %v11451_v63 = vld [vmem:[#allocation24_spill] sm:$0xff] }
 0x949   : > { %6552 = vset.pattern.permute.xlu2 %v6863_v12  ;;  %6551 = vset.pattern.permute.xlu1 %v6858_v11  ;;  %v4766_v8 = vsel %vm4748_vm12, %v4733_v1, %v11442_v26  ;;  %v4805_v4 = vsel %vm4781_vm13, %v4772_v36, %v9345_v49  ;;  %v11452_v36 = vld [vmem:[#allocation13_spill] sm:$0xff]  ;;  %v11453_v1 = vld [vmem:[#allocation98_spill] sm:$0xff]  ;;  %v11454_v26 = vld [vmem:[#allocation11_spill] sm:$0xff] }
 0x94a   : > { %v4799_v62 = vsel %vm4781_vm13, %v4766_v8, %v11443_v25  ;;  %v4838_v23 = vsel %vm4814_vm14, %v4805_v4, %v9318_v10  ;;  %v4474_v8 = vsel %vm240_vm2, %v11454_v26, %v11453_v1  ;;  %v11455_v25 = vld [vmem:[#allocation236_spill] sm:$0xff]  ;;  %v11456_v4 = vld [vmem:[#allocation131_spill] sm:$0xff] }
 0x94b   : > { %v3970_v29 = vpop.permute.xlu2 %3969  ;;  %v3931_v14 = vpop.permute.xlu1 %3930  ;;  %v4832_v30 = vsel %vm4814_vm14, %v4799_v62, %v9296_v39  ;;  %v11467_v1 = vld [vmem:[#allocation339_spill] sm:$0xff] }
 0x94c   : > { %v9684_v60 = vsel %vm4847_vm15, %v4836_v18, %v3970_v29  ;;  %v9687_v17 = vsel %vm4847_vm15, %v4830_v19, %v3931_v14  ;;  %v11445_v18 = vld [vmem:[#allocation20_spill] sm:$0xff] }
 0x94d   : > { %v4472_v14 = vsel %vm240_vm2, %v11445_v18, %v11444_v2  ;;  %v11459_v18 = vld [vmem:[#allocation154_spill] sm:$0xff] }
 0x94e   : > { %v4505_v49 = vsel %vm4484_vm4, %v4472_v14, %v11446_v5  ;;  %v11460_v5 = vld [vmem:[#allocation149_spill] sm:$0xff] }
 0x94f   : > { %v4538_v10 = vsel %vm4517_vm5, %v4505_v49, %v11447_v38  ;;  %v11461_v38 = vld [vmem:[#allocation282_spill] sm:$0xff] }
 0x950   : > { %v4571_v39 = vsel %vm4550_vm6, %v4538_v10, %v11448_v55  ;;  %v11462_v55 = vld [vmem:[#allocation176_spill] sm:$0xff] }
 0x951   : > { %4099 = vperm.xlu2 %6552, %v4088_v37   ;;  %4093 = vperm.xlu1 %6551, %v4088_v37   ;;  %v4604_v47 = vsel %vm4583_vm7, %v4571_v39, %v11449_v35  ;;  %v4480_v37 = vsel %vm240_vm2, %v11452_v36, %v11451_v63  ;;  %v11466_v36 = vld [vmem:[#allocation193_spill] sm:$0xff] }
 0x952   : > { %v4637_v59 = vsel %vm4616_vm8, %v4604_v47, %v11450_v46  ;;  %v11464_v47 = vld [vmem:[#allocation37_spill] sm:$0xff] }
 0x953   : > { %v3983_v19 = vpop.permute.xlu2 %3982  ;;  %v3944_v29 = vpop.permute.xlu1 %3943  ;;  %v4670_v62 = vsel %vm4649_vm9, %v4637_v59, %v11455_v25  ;;  %v11465_v59 = vld [vmem:[#allocation65_spill] sm:$0xff] }
 0x954   : > { %v9714_v34 = vsel %vm4847_vm15, %v4838_v23, %v3983_v19  ;;  %v9717_v13 = vsel %vm4847_vm15, %v4832_v30, %v3944_v29  ;;  %v4513_v23 = vsel %vm4484_vm4, %v4480_v37, %v11456_v4  ;;  %v11457_v30 = vld [vmem:[#allocation126_spill] sm:$0xff]  ;;  %v11458_v29 = vld [vmem:[#allocation259_spill] sm:$0xff] }
 0x955   : > { %v4507_v19 = vsel %vm4484_vm4, %v4474_v8, %v11457_v30  ;;  %v4703_v2 = vsel %vm4682_vm10, %v4670_v62, %v11458_v29  ;;  %v4546_v14 = vsel %vm4517_vm5, %v4513_v23, %v11459_v18  ;;  %v11468_v8 = vld [vmem:[#allocation215_spill] sm:$0xff]  ;;  %v11469_v62 = vld [vmem:[#allocation44_spill] sm:$0xff]  ;;  %v11470_v29 = vld [vmem:[#allocation242_spill] sm:$0xff] }
 0x956   : > { %v4540_v49 = vsel %vm4517_vm5, %v4507_v19, %v11460_v5  ;;  %v4736_v10 = vsel %vm4715_vm11, %v4703_v2, %v11461_v38  ;;  %v4579_v39 = vsel %vm4550_vm6, %v4546_v14, %v11462_v55  ;;  %v11471_v18 = vld [vmem:[#allocation237_spill] sm:$0xff] }
 0x957   : > { %v4573_v46 = vsel %vm4550_vm6, %v4540_v49, %v11464_v47  ;;  %v4769_v63 = vsel %vm4748_vm12, %v4736_v10, %v11465_v59  ;;  %v11472_v49 = vld [vmem:[#allocation266_spill] sm:$0xff]  ;;  %v11473_v10 = vld [vmem:[#allocation261_spill] sm:$0xff]  ;;  %v4127_v47 = vperm.slane %v11365_v27, 7 }
 0x958   : > { %v4606_v37 = vsel %vm4583_vm7, %v4573_v46, %v11466_v36  ;;  %v4802_v26 = vsel %vm4781_vm13, %v4769_v63, %v11467_v1  ;;  %v11476_v46 = vld [vmem:[#allocation57_spill] sm:$0xff]  ;;  %v11477_v63 = vld [vmem:[#allocation310_spill] sm:$0xff] }
 0x959   : > { %4112 = vperm.xlu2 %6552, %v4101_v48   ;;  %4106 = vperm.xlu1 %6551, %v4101_v48   ;;  %v11463_v48 = vld [vmem:[#allocation198_spill] sm:$0xff]  ;;  %v4639_v25 = vsel %vm4616_vm8, %v4606_v37, %v11468_v8  ;;  %v4835_v23 = vsel %vm4814_vm14, %v4802_v26, %v9302_v57  ;;  %v11478_v37 = vperm.slane %v11365_v27, 6  ;;  %v11479_v1 = vld [vmem:[#allocation101_spill] sm:$0xff]  ;;  %v11480_v26 = vld [vmem:[#allocation115_spill] sm:$0xff] }
 0x95a   : > { %v4612_v35 = vsel %vm4583_vm7, %v4579_v39, %v11463_v48  ;;  %v4672_v14 = vsel %vm4649_vm9, %v4639_v25, %v11471_v18  ;;  %v11474_v39 = vld [vmem:[#allocation288_spill] sm:$0xff]  ;;  %v4477_v8 = vsel %vm240_vm2, %v11480_v26, %v11479_v1  ;;  %v11481_v25 = vld [vmem:[#allocation341_spill] sm:$0xff]  ;;  %v11483_v27 = vld [vmem:[#allocation107_spill] sm:$0xff] }
 0x95b   : > { %v4645_v4 = vsel %vm4616_vm8, %v4612_v35, %v11469_v62  ;;  %v4705_v55 = vsel %vm4682_vm10, %v4672_v14, %v11473_v10  ;;  %v11475_v48 = vld [vmem:[#allocation316_spill] sm:$0xff]  ;;  %v11484_v14 = vld [vmem:[#allocation78_spill] sm:$0xff]  ;;  %v11491_v1 = vld [vmem:[#allocation199_spill] sm:$0xff] }
 0x95c   : > { %v4678_v2 = vsel %vm4649_vm9, %v4645_v4, %v11470_v29  ;;  %v4738_v59 = vsel %vm4715_vm11, %v4705_v55, %v11476_v46  ;;  %v11482_v4 = vld [vmem:[#allocation75_spill] sm:$0xff]  ;;  %v11485_v55 = vld [vmem:[#allocation306_spill] sm:$0xff] }
 0x95d   : > { %v4711_v38 = vsel %vm4682_vm10, %v4678_v2, %v11472_v49  ;;  %v4771_v36 = vsel %vm4748_vm12, %v4738_v59, %v11477_v63  ;;  %v4483_v49 = vsel %vm240_vm2, %v11484_v14, %v11483_v27  ;;  %v11489_v59 = vld [vmem:[#allocation178_spill] sm:$0xff]  ;;  %v11498_v27 = vld [vmem:[#allocation76_spill] sm:$0xff] }
 0x95e   : > { %v4744_v57 = vsel %vm4715_vm11, %v4711_v38, %v11474_v39  ;;  %v4804_v62 = vsel %vm4781_vm13, %v4771_v36, %v11481_v25  ;;  %v4516_v39 = vsel %vm4484_vm4, %v4483_v49, %v11485_v55  ;;  %v11490_v36 = vld [vmem:[#allocation174_spill] sm:$0xff]  ;;  %v11492_v25 = vld [vmem:[#allocation221_spill] sm:$0xff]  ;;  %v11499_v49 = vld [vmem:[#allocation240_spill] sm:$0xff] }
 0x95f   : > { %v4777_v35 = vsel %vm4748_vm12, %v4744_v57, %v11475_v48  ;;  %v4837_v29 = vsel %vm4814_vm14, %v4804_v62, %v9332_v15  ;;  %v11486_v57 = vld [vmem:[#allocation129_spill] sm:$0xff]  ;;  %v11487_v48 = vld [vmem:[#allocation156_spill] sm:$0xff] }
 0x960   : > { %v4549_v15 = vsel %vm4517_vm5, %v4516_v39, %v11487_v48  ;;  %v11500_v39 = vld [vmem:[#allocation348_spill] sm:$0xff] }
 0x961   : > { %6554 = vset.pattern.permute.xlu2 %v6858_v11  ;;  %6553 = vset.pattern.permute.xlu1 %v6863_v12  ;;  %v4582_v63 = vsel %vm4550_vm6, %v4549_v15, %v11489_v59  ;;  %v11504_v59 = vld [vmem:[#allocation153_spill] sm:$0xff] }
 0x962   : > { %v4615_v26 = vsel %vm4583_vm7, %v4582_v63, %v11491_v1  ;;  %v11506_v1 = vld [vmem:[#allocation286_spill] sm:$0xff] }
 0x963   : > { %v9770_v30 = vpop.permute.xlu2 %4002  ;;  %v3964_v19 = vpop.permute.xlu1 %3963  ;;  %v4648_v62 = vsel %vm4616_vm8, %v4615_v26, %v11492_v25  ;;  %v11507_v25 = vld [vmem:[#allocation318_spill] sm:$0xff] }
 0x964   : > { %v9777_v5 = vsel %vm4847_vm15, %v4835_v23, %v3964_v19  ;;  %v4810_v23 = vsel %vm4781_vm13, %v4777_v35, %v11482_v4  ;;  %v11488_v35 = vld [vmem:[#allocation151_spill] sm:$0xff] }
 0x965   : > { %v4843_v19 = vsel %vm4814_vm14, %v4810_v23, %v9330_v31  ;;  %v4510_v31 = vsel %vm4484_vm4, %v4477_v8, %v11486_v57  ;;  %v11493_v4 = vld [vmem:[#allocation27_spill] sm:$0xff]  ;;  %v11495_v23 = vld [vmem:[#allocation328_spill] sm:$0xff]  ;;  %v4681_v57 = vsel %vm4649_vm9, %v4648_v62, %v11500_v39 }
 0x966   : > { %v4543_v46 = vsel %vm4517_vm5, %v4510_v31, %v11488_v35  ;;  %v11494_v8 = vperm.slane %v11493_v4, 0  ;;  %v11501_v31 = vld [vmem:[#allocation130_spill] sm:$0xff]  ;;  %v11503_v35 = vld [vmem:[#allocation263_spill] sm:$0xff] }
 0x967   : > { %v11512_v39 = vld [vmem:[#allocation219_spill] sm:$0xff] }
 0x969   : > { %4132 = vperm.xlu2 %6554, %v4127_v47   ;;  %4125 = vperm.xlu1 %6553, %v11478_v37   ;;  %v4576_v37 = vsel %vm4550_vm6, %v4543_v46, %v11490_v36  ;;  %v11505_v36 = vld [vmem:[#allocation291_spill] sm:$0xff] }
 0x96b   : > { %v4016_v2 = vpop.permute.xlu2 %4015  ;;  %v3977_v18 = vpop.permute.xlu1 %3976 }
 0x96c   : > { %v9809_v38 = vsel %vm4847_vm15, %v4843_v19, %v4016_v2  ;;  %v9812_v10 = vsel %vm4847_vm15, %v4837_v29, %v3977_v18  ;;  %v4609_v19 = vsel %vm4583_vm7, %v4576_v37, %v11495_v23  ;;  %v11496_v29 = vld [vmem:[#allocation217_spill] sm:$0xff]  ;;  %v11497_v18 = vld [vmem:[#allocation104_spill] sm:$0xff] }
 0x96d   : > { %v4642_v2 = vsel %vm4616_vm8, %v4609_v19, %v11496_v29  ;;  %v4479_v14 = vsel %vm240_vm2, %v11498_v27, %v11497_v18  ;;  %v11509_v19 = vld [vmem:[#allocation320_spill] sm:$0xff]  ;;  %v3827_v18 = vpop.permute.xlu0 %3826  ;;  %v11510_v27 = vld [vmem:[#allocation197_spill] sm:$0xff] }
 0x96e   : > { %v4675_v55 = vsel %vm4649_vm9, %v4642_v2, %v11499_v49  ;;  %v4512_v48 = vsel %vm4484_vm4, %v4479_v14, %v11501_v31  ;;  %v11511_v49 = vld [vmem:[#allocation344_spill] sm:$0xff] }
 0x96f   : > { %v4708_v46 = vsel %vm4682_vm10, %v4675_v55, %v11503_v35  ;;  %v4545_v63 = vsel %vm4517_vm5, %v4512_v48, %v11504_v59 }
 0x970   : > { %v4741_v26 = vsel %vm4715_vm11, %v4708_v46, %v11506_v1  ;;  %v4578_v29 = vsel %vm4550_vm6, %v4545_v63, %v11509_v19  ;;  %v11514_v63 = vld [vmem:[#allocation265_spill] sm:$0xff]  ;;  %v11515_v1 = vld [vmem:[#allocation314_spill] sm:$0xff] }
 0x971   : > { %4145 = vperm.xlu2 %6554, %v11494_v8   ;;  %4138 = vperm.xlu1 %6553, %v4127_v47   ;;  %v11502_v47 = vld [vmem:[#allocation268_spill] sm:$0xff]  ;;  %v11508_v8 = vld [vmem:[#allocation350_spill] sm:$0xff]  ;;  %v4774_v2 = vsel %vm4748_vm12, %v4741_v26, %v9309_v7  ;;  %v4611_v14 = vsel %vm4583_vm7, %v4578_v29, %v11510_v27  ;;  %v11517_v29 = vld [vmem:[#allocation105_spill] sm:$0xff] }
 0x972   : > { %v4714_v15 = vsel %vm4682_vm10, %v4681_v57, %v11502_v47  ;;  %v4807_v55 = vsel %vm4781_vm13, %v4774_v2, %v11511_v49  ;;  %v4644_v57 = vsel %vm4616_vm8, %v4611_v14, %v11512_v39  ;;  %v11518_v2 = vld [vmem:[#allocation21_spill] sm:$0xff]  ;;  %v11519_v14 = vld [vmem:[#allocation132_spill] sm:$0xff] }
 0x973   : > { %v4747_v37 = vsel %vm4715_vm11, %v4714_v15, %v11505_v36  ;;  %v4840_v31 = vsel %vm4814_vm14, %v4807_v55, %v9323_v52  ;;  %v11513_v15 = vld [vmem:[#allocation241_spill] sm:$0xff]  ;;  %v11520_v55 = vld [vmem:[#allocation155_spill] sm:$0xff] }
 0x974   : > { %v4780_v62 = vsel %vm4748_vm12, %v4747_v37, %v11507_v25  ;;  %v4677_v35 = vsel %vm4649_vm9, %v4644_v57, %v11513_v15  ;;  %v4153_v37 = vperm.slane %v11493_v4, 1  ;;  %v11516_v25 = vld [vmem:[#allocation347_spill] sm:$0xff]  ;;  %v11521_v39 = vld [vmem:[#allocation177_spill] sm:$0xff] }
 0x975   : > { %v4813_v23 = vsel %vm4781_vm13, %v4780_v62, %v11508_v8  ;;  %v4710_v36 = vsel %vm4682_vm10, %v4677_v35, %v11514_v63  ;;  %v11525_v35 = vld [vmem:[#allocation14_spill] sm:$0xff]  ;;  %v11526_v63 = vld [vmem:[#allocation17_spill] sm:$0xff] }
 0x976   : > { %v4846_v7 = vsel %vm4814_vm14, %v4813_v23, %v3827_v18  ;;  %v4743_v52 = vsel %vm4715_vm11, %v4710_v36, %v9264_v24  ;;  %v4482_v18 = vsel %vm240_vm2, %v11518_v2, %v11517_v29  ;;  %v4452_v36 = vsel %vm240_vm2, %v11526_v63, %v11525_v35  ;;  %v11532_v2 = vld [vmem:[#allocation133_spill] sm:$0xff]  ;;  %v11539_v35 = vld [vmem:[#allocation38_spill] sm:$0xff] }
 0x977   : > { %v4776_v26 = vsel %vm4748_vm12, %v4743_v52, %v11515_v1  ;;  %v4515_v49 = vsel %vm4484_vm4, %v4482_v18, %v11519_v14  ;;  %v11528_v1 = vld [vmem:[#allocation109_spill] sm:$0xff]  ;;  %v11533_v14 = vld [vmem:[#allocation267_spill] sm:$0xff] }
 0x978   : > { %v4809_v62 = vsel %vm4781_vm13, %v4776_v26, %v11516_v25  ;;  %v4485_v26 = vsel %vm4484_vm4, %v4452_v36, %v11528_v1  ;;  %v11529_v25 = vld [vmem:[#allocation26_spill] sm:$0xff]  ;;  %v11540_v36 = vld [vmem:[#allocation68_spill] sm:$0xff] }
 0x979   : > { %6556 = vset.pattern.permute.xlu2 %v6863_v12  ;;  %6555 = vset.pattern.permute.xlu1 %v6858_v11  ;;  %v4842_v8 = vsel %vm4814_vm14, %v4809_v62, %v9381_v21  ;;  %v4548_v21 = vsel %vm4517_vm5, %v4515_v49, %v11520_v55  ;;  %v4518_v18 = vsel %vm4517_vm5, %v4485_v26, %v11532_v2  ;;  %v11534_v55 = vld [vmem:[#allocation161_spill] sm:$0xff] }
 0x97a   : > { %v4581_v57 = vsel %vm4550_vm6, %v4548_v21, %v11521_v39  ;;  %v11535_v39 = vld [vmem:[#allocation157_spill] sm:$0xff] }
 0x97b   : > { %v4035_v48 = vpop.permute.xlu2 %4034  ;;  %v3996_v47 = vpop.permute.xlu1 %3995  ;;  %v11542_v26 = vld [vmem:[#allocation349_spill] sm:$0xff] }
 0x97c   : > { %v9877_v46 = vsel %vm4847_vm15, %v4846_v7, %v4035_v48  ;;  %v9880_v59 = vsel %vm4847_vm15, %v4840_v31, %v3996_v47  ;;  %v4166_v31 = vperm.slane %v11493_v4, 2  ;;  %v11522_v48 = vld [vmem:[#allocation84_spill] sm:$0xff] }
 0x97d   : > { %v11523_v7 = vld [vmem:[#allocation56_spill] sm:$0xff] }
 0x97e   : > { %v4458_v47 = vsel %vm240_vm2, %v11523_v7, %v11522_v48  ;;  %v11537_v7 = vld [vmem:[#allocation182_spill] sm:$0xff] }
 0x97f   : > { %v4491_v62 = vsel %vm4484_vm4, %v4458_v47, %v11529_v25 }
 0x981   : > { %4164 = vperm.xlu2 %6556, %v4153_v37   ;;  %4158 = vperm.xlu1 %6555, %v4153_v37   ;;  %v11527_v37 = vld [vmem:[#allocation220_spill] sm:$0xff] }
 0x983   : > { %v4048_v23 = vpop.permute.xlu2 %4047  ;;  %v4009_v19 = vpop.permute.xlu1 %4008 }
 0x984   : > { %v9898_v24 = vsel %vm4880_vm0, %v9386_v20, %v4048_v23  ;;  %v9901_v27 = vsel %vm4847_vm15, %v4842_v8, %v4009_v19  ;;  %v11524_v20 = vld [vmem:[#allocation41_spill] sm:$0xff]  ;;  %v11530_v8 = vld [vmem:[#allocation243_spill] sm:$0xff] }
 0x985   : > { %v4614_v15 = vsel %vm4583_vm7, %v4581_v57, %v11524_v20  ;;  %v11531_v19 = vld [vmem:[#allocation137_spill] sm:$0xff]  ;;  %v4551_v57 = vsel %vm4550_vm6, %v4518_v18, %v11535_v39  ;;  %v11538_v20 = vld [vmem:[#allocation204_spill] sm:$0xff] }
 0x986   : > { %v4647_v52 = vsel %vm4616_vm8, %v4614_v15, %v11527_v37  ;;  %v4524_v29 = vsel %vm4517_vm5, %v4491_v62, %v11531_v19  ;;  %v4584_v63 = vsel %vm4583_vm7, %v4551_v57, %v11539_v35  ;;  %v11543_v62 = vld [vmem:[#allocation222_spill] sm:$0xff]  ;;  %v11547_v57 = vld [vmem:[#allocation273_spill] sm:$0xff] }
 0x987   : > { %v4680_v23 = vsel %vm4649_vm9, %v4647_v52, %v11530_v8  ;;  %v4557_v21 = vsel %vm4550_vm6, %v4524_v29, %v11534_v55  ;;  %v11541_v52 = vld [vmem:[#allocation200_spill] sm:$0xff] }
 0x988   : > { %v4713_v49 = vsel %vm4682_vm10, %v4680_v23, %v11533_v14  ;;  %v4590_v47 = vsel %vm4583_vm7, %v4557_v21, %v11537_v7  ;;  %v4617_v1 = vsel %vm4616_vm8, %v4584_v63, %v11541_v52  ;;  %v11544_v23 = vld [vmem:[#allocation45_spill] sm:$0xff]  ;;  %v11545_v14 = vld [vmem:[#allocation248_spill] sm:$0xff] }
 0x989   : > { %4177 = vperm.xlu2 %6556, %v4166_v31   ;;  %4171 = vperm.xlu1 %6555, %v4166_v31   ;;  %v11536_v31 = vld [vmem:[#allocation289_spill] sm:$0xff]  ;;  %v4623_v15 = vsel %vm4616_vm8, %v4590_v47, %v11538_v20  ;;  %v4650_v8 = vsel %vm4649_vm9, %v4617_v1, %v11543_v62  ;;  %v11546_v55 = vld [vmem:[#allocation244_spill] sm:$0xff]  ;;  %v11550_v20 = vld [vmem:[#allocation290_spill] sm:$0xff]  ;;  %v11555_v62 = vperm.slane %v11493_v4, 3 }
 0x98a   : > { %v4746_v48 = vsel %vm4715_vm11, %v4713_v49, %v11536_v31  ;;  %v4656_v19 = vsel %vm4649_vm9, %v4623_v15, %v11544_v23  ;;  %v4683_v21 = vsel %vm4682_vm10, %v4650_v8, %v11546_v55  ;;  %v11549_v47 = vld [vmem:[#allocation297_spill] sm:$0xff]  ;;  %v11553_v52 = vld [vmem:[#allocation60_spill] sm:$0xff]  ;;  %v11556_v8 = vld [vmem:[#allocation111_spill] sm:$0xff] }
 0x98b   : > { %v4779_v37 = vsel %vm4748_vm12, %v4746_v48, %v11540_v36  ;;  %v4689_v49 = vsel %vm4682_vm10, %v4656_v19, %v11545_v14  ;;  %v11548_v48 = vld [vmem:[#allocation269_spill] sm:$0xff] }
 0x98c   : > { %v4812_v25 = vsel %vm4781_vm13, %v4779_v37, %v11542_v26  ;;  %v4722_v31 = vsel %vm4715_vm11, %v4689_v49, %v11547_v57  ;;  %v4716_v7 = vsel %vm4715_vm11, %v4683_v21, %v11548_v48  ;;  %v11551_v15 = vld [vmem:[#allocation53_spill] sm:$0xff]  ;;  %v4192_v37 = vperm.slane %v11493_v4, 4  ;;  %v11554_v26 = vld [vmem:[#allocation319_spill] sm:$0xff] }
 0x98d   : > { %v4845_v29 = vsel %vm4814_vm14, %v4812_v25, %v9353_v0  ;;  %v4755_v0 = vsel %vm4748_vm12, %v4722_v31, %v11549_v47  ;;  %v4455_v35 = vsel %vm240_vm2, %v11551_v15, %v11550_v20  ;;  %v11552_v63 = vld [vmem:[#allocation325_spill] sm:$0xff]  ;;  %v4749_v1 = vsel %vm4748_vm12, %v4716_v7, %v11553_v52  ;;  %v11558_v48 = vld [vmem:[#allocation135_spill] sm:$0xff]  ;;  %v11559_v7 = vld [vmem:[#allocation158_spill] sm:$0xff] }
 0x98e   : > { %v4788_v36 = vsel %vm4781_vm13, %v4755_v0, %v11552_v63  ;;  %v4782_v25 = vsel %vm4781_vm13, %v4749_v1, %v11554_v26  ;;  %v4488_v23 = vsel %vm4484_vm4, %v4455_v35, %v11556_v8  ;;  %v11560_v0 = vld [vmem:[#allocation180_spill] sm:$0xff]  ;;  %v11561_v20 = vld [vmem:[#allocation82_spill] sm:$0xff]  ;;  %v11563_v35 = vperm.slane %v11493_v4, 5  ;;  %v11564_v63 = vld [vmem:[#allocation331_spill] sm:$0xff] }
 0x98f   : > { %v4815_v19 = vsel %vm4814_vm14, %v4782_v25, %v9202_v42  ;;  %v4521_v42 = vsel %vm4517_vm5, %v4488_v23, %v11558_v48  ;;  %v11562_v15 = vld [vmem:[#allocation108_spill] sm:$0xff]  ;;  %v11566_v26 = vld [vmem:[#allocation114_spill] sm:$0xff] }
 0x990   : > { %v4848_v49 = vsel %vm4847_vm15, %v4815_v19, %v9410_v43  ;;  %v4554_v47 = vsel %vm4550_vm6, %v4521_v42, %v11559_v7  ;;  %v4457_v43 = vsel %vm240_vm2, %v11562_v15, %v11561_v20  ;;  %v11565_v52 = vld [vmem:[#allocation224_spill] sm:$0xff]  ;;  %v3892_v7 = vpop.permute.xlu0 %3891  ;;  %v11575_v15 = vld [vmem:[#allocation226_spill] sm:$0xff] }
 0x991   : > { %6558 = vset.pattern.permute.xlu2 %v6858_v11  ;;  %6557 = vset.pattern.permute.xlu1 %v6863_v12  ;;  %v4490_v25 = vsel %vm4484_vm4, %v4457_v43, %v11566_v26  ;;  %v11568_v23 = vld [vmem:[#allocation136_spill] sm:$0xff] }
 0x992   : > { %v4523_v19 = vsel %vm4517_vm5, %v4490_v25, %v11568_v23  ;;  %v4218_v23 = vperm.slane %v11493_v4, 6 }
 0x993   : > { %v9958_v2 = vpop.permute.xlu2 %4067  ;;  %v4029_v18 = vpop.permute.xlu1 %4028 }
 0x994   : > { %v9965_v39 = vsel %vm4847_vm15, %v4845_v29, %v4029_v18  ;;  %v11557_v29 = vld [vmem:[#allocation77_spill] sm:$0xff] }
 0x995   : > { %v4821_v18 = vsel %vm4814_vm14, %v4788_v36, %v11557_v29  ;;  %v11569_v29 = vld [vmem:[#allocation270_spill] sm:$0xff] }
 0x996   : > { %v4854_v14 = vsel %vm4847_vm15, %v4821_v18, %v9408_v32  ;;  %v4587_v32 = vsel %vm4583_vm7, %v4554_v47, %v11560_v0  ;;  %v11573_v47 = vld [vmem:[#allocation203_spill] sm:$0xff] }
 0x997   : > { %v4620_v36 = vsel %vm4616_vm8, %v4587_v32, %v11564_v63  ;;  %v11574_v32 = vld [vmem:[#allocation352_spill] sm:$0xff] }
 0x998   : > { %v4653_v1 = vsel %vm4649_vm9, %v4620_v36, %v11565_v52  ;;  %v11576_v52 = vld [vmem:[#allocation247_spill] sm:$0xff] }
 0x999   : > { %4197 = vperm.xlu2 %6558, %v4192_v37   ;;  %4190 = vperm.xlu1 %6557, %v11555_v62   ;;  %v11567_v62 = vld [vmem:[#allocation246_spill] sm:$0xff] }
 0x99a   : > { %v4686_v8 = vsel %vm4682_vm10, %v4653_v1, %v11567_v62  ;;  %v11577_v62 = vld [vmem:[#allocation272_spill] sm:$0xff] }
 0x99b   : > { %v4081_v55 = vpop.permute.xlu2 %4080  ;;  %v4042_v21 = vpop.permute.xlu1 %4041  ;;  %v4719_v18 = vsel %vm4715_vm11, %v4686_v8, %v11569_v29 }
 0x99c   : > { %v9996_v57 = vsel %vm4880_vm0, %v4854_v14, %v4081_v55  ;;  %v9999_v31 = vsel %vm4880_vm0, %v4848_v49, %v4042_v21  ;;  %v11570_v14 = vld [vmem:[#allocation160_spill] sm:$0xff]  ;;  %v11571_v49 = vld [vmem:[#allocation294_spill] sm:$0xff]  ;;  %v11572_v21 = vld [vmem:[#allocation323_spill] sm:$0xff] }
 0x99d   : > { %v4752_v55 = vsel %vm4748_vm12, %v4719_v18, %v11571_v49  ;;  %v11580_v18 = vld [vmem:[#allocation324_spill] sm:$0xff] }
 0x99e   : > { %v4785_v42 = vsel %vm4781_vm13, %v4752_v55, %v9321_v53  ;;  %v4857_v53 = vsel %vm4847_vm15, %v9253_v44, %v3892_v7  ;;  %v11579_v44 = vld [vmem:[#allocation64_spill] sm:$0xff] }
 0x99f   : > { %v4818_v20 = vsel %vm4814_vm14, %v4785_v42, %v11574_v32 }
 0x9a1   : > { %4210 = vperm.xlu2 %6558, %v11563_v35   ;;  %4203 = vperm.xlu1 %6557, %v4192_v37   ;;  %v4556_v37 = vsel %vm4550_vm6, %v4523_v19, %v11570_v14  ;;  %v4851_v35 = vsel %vm4847_vm15, %v4818_v20, %v9403_v9  ;;  %v11578_v19 = vld [vmem:[#allocation88_spill] sm:$0xff] }
 0x9a2   : > { %v4589_v48 = vsel %vm4583_vm7, %v4556_v37, %v11572_v21  ;;  %v4466_v29 = vsel %vm240_vm2, %v11579_v44, %v11578_v19  ;;  %v11581_v37 = vld [vmem:[#allocation121_spill] sm:$0xff]  ;;  %v11582_v21 = vld [vmem:[#allocation22_spill] sm:$0xff]  ;;  %v11592_v44 = vld [vmem:[#allocation91_spill] sm:$0xff] }
 0x9a3   : > { %v4622_v0 = vsel %vm4616_vm8, %v4589_v48, %v11573_v47  ;;  %v4499_v49 = vsel %vm4484_vm4, %v4466_v29, %v11581_v37  ;;  %v11583_v48 = vld [vmem:[#allocation59_spill] sm:$0xff]  ;;  %v11593_v29 = vld [vmem:[#allocation66_spill] sm:$0xff] }
 0x9a4   : > { %v4655_v43 = vsel %vm4649_vm9, %v4622_v0, %v11575_v15  ;;  %v4460_v42 = vsel %vm240_vm2, %v11583_v48, %v11582_v21  ;;  %v11584_v0 = vld [vmem:[#allocation117_spill] sm:$0xff]  ;;  %v11596_v21 = vld [vmem:[#allocation228_spill] sm:$0xff] }
 0x9a5   : > { %v4688_v1 = vsel %vm4682_vm10, %v4655_v43, %v11576_v52  ;;  %v4493_v32 = vsel %vm4484_vm4, %v4460_v42, %v11584_v0  ;;  %v11597_v42 = vld [vmem:[#allocation28_spill] sm:$0xff] }
 0x9a6   : > { %v4721_v8 = vsel %vm4715_vm11, %v4688_v1, %v11577_v62  ;;  %v11589_v1 = vld [vmem:[#allocation188_spill] sm:$0xff] }
 0x9a7   : > { %v4754_v9 = vsel %vm4748_vm12, %v4721_v8, %v9273_v54 }
 0x9a8   : > { %v4787_v14 = vsel %vm4781_vm13, %v4754_v9, %v11580_v18  ;;  %v11591_v9 = vld [vmem:[#allocation209_spill] sm:$0xff]  ;;  %v4468_v18 = vsel %vm240_vm2, %v11593_v29, %v11592_v44  ;;  %v11608_v44 = vld [vmem:[#allocation211_spill] sm:$0xff] }
 0x9a9   : > { %6560 = vset.pattern.permute.xlu2 %v6863_v12  ;;  %6559 = vset.pattern.permute.xlu1 %v6858_v11  ;;  %v4820_v55 = vsel %vm4814_vm14, %v4787_v14, %v9226_v56  ;;  %v11585_v56 = vld [vmem:[#allocation139_spill] sm:$0xff]  ;;  %v11594_v14 = vld [vmem:[#allocation232_spill] sm:$0xff] }
 0x9aa   : > { %v4853_v54 = vsel %vm4847_vm15, %v4820_v55, %v9472_v6  ;;  %v4526_v43 = vsel %vm4517_vm5, %v4493_v32, %v11585_v56  ;;  %v11600_v32 = vld [vmem:[#allocation144_spill] sm:$0xff] }
 0x9ab   : > { %v4100_v63 = vpop.permute.xlu2 %4099  ;;  %v4061_v36 = vpop.permute.xlu1 %4060 }
 0x9ac   : > { %v10047_v26 = vsel %vm4880_vm0, %v4857_v53, %v4100_v63  ;;  %v10050_v25 = vsel %vm4880_vm0, %v4851_v35, %v4061_v36  ;;  %v11586_v35 = vld [vmem:[#allocation33_spill] sm:$0xff]  ;;  %v11587_v53 = vld [vmem:[#allocation166_spill] sm:$0xff] }
 0x9ad   : > { %v4532_v63 = vsel %vm4517_vm5, %v4499_v49, %v11586_v35  ;;  %v11588_v36 = vld [vmem:[#allocation162_spill] sm:$0xff] }
 0x9ae   : > { %v4565_v6 = vsel %vm4550_vm6, %v4532_v63, %v11587_v53  ;;  %v4559_v52 = vsel %vm4550_vm6, %v4526_v43, %v11588_v36  ;;  %v11595_v49 = vld [vmem:[#allocation42_spill] sm:$0xff] }
 0x9af   : > { %v4598_v62 = vsel %vm4583_vm7, %v4565_v6, %v11589_v1  ;;  %v11601_v43 = vld [vmem:[#allocation278_spill] sm:$0xff]  ;;  %v11603_v6 = vld [vmem:[#allocation168_spill] sm:$0xff] }
 0x9b0   : > { %v4631_v19 = vsel %vm4616_vm8, %v4598_v62, %v11591_v9  ;;  %v11602_v63 = vld [vmem:[#allocation274_spill] sm:$0xff]  ;;  %v11605_v62 = vld [vmem:[#allocation299_spill] sm:$0xff]  ;;  %v11607_v9 = vld [vmem:[#allocation333_spill] sm:$0xff] }
 0x9b1   : > { %4229 = vperm.xlu2 %6560, %v4218_v23   ;;  %4223 = vperm.xlu1 %6559, %v4218_v23   ;;  %v4231_v23 = vperm.slane %v11493_v4, 7  ;;  %v4664_v37 = vsel %vm4649_vm9, %v4631_v19, %v11594_v14  ;;  %v4501_v4 = vsel %vm4484_vm4, %v4468_v18, %v11597_v42  ;;  %v11609_v18 = vld [vmem:[#allocation355_spill] sm:$0xff] }
 0x9b2   : > { %v4534_v56 = vsel %vm4517_vm5, %v4501_v4, %v11600_v32  ;;  %v11614_v32 = vld [vmem:[#allocation256_spill] sm:$0xff] }
 0x9b3   : > { %v4113_v7 = vpop.permute.xlu2 %4112  ;;  %v4074_v47 = vpop.permute.xlu1 %4073  ;;  %v4567_v36 = vsel %vm4550_vm6, %v4534_v56, %v11603_v6  ;;  %v11616_v6 = vld [vmem:[#allocation305_spill] sm:$0xff] }
 0x9b4   : > { %v10075_v20 = vsel %vm4880_vm0, %v9479_v33, %v4113_v7  ;;  %v10078_v15 = vsel %vm4880_vm0, %v4853_v54, %v4074_v47  ;;  %v11590_v33 = vld [vmem:[#allocation184_spill] sm:$0xff]  ;;  %v11598_v54 = vld [vmem:[#allocation250_spill] sm:$0xff]  ;;  %v11599_v47 = vld [vmem:[#allocation49_spill] sm:$0xff] }
 0x9b5   : > { %v4592_v8 = vsel %vm4583_vm7, %v4559_v52, %v11590_v33  ;;  %v4697_v0 = vsel %vm4682_vm10, %v4664_v37, %v11599_v47  ;;  %v11604_v52 = vld [vmem:[#allocation304_spill] sm:$0xff]  ;;  %v11610_v37 = vld [vmem:[#allocation71_spill] sm:$0xff] }
 0x9b6   : > { %v4625_v55 = vsel %vm4616_vm8, %v4592_v8, %v11595_v49  ;;  %v4730_v35 = vsel %vm4715_vm11, %v4697_v0, %v11601_v43  ;;  %v11606_v8 = vld [vmem:[#allocation189_spill] sm:$0xff] }
 0x9b7   : > { %v4658_v48 = vsel %vm4649_vm9, %v4625_v55, %v11596_v21  ;;  %v4763_v1 = vsel %vm4748_vm12, %v4730_v35, %v11604_v52  ;;  %v11611_v55 = vld [vmem:[#allocation354_spill] sm:$0xff] }
 0x9b8   : > { %v4691_v7 = vsel %vm4682_vm10, %v4658_v48, %v11598_v54  ;;  %v4796_v19 = vsel %vm4781_vm13, %v4763_v1, %v11607_v9  ;;  %v11612_v48 = vld [vmem:[#allocation46_spill] sm:$0xff]  ;;  %v11618_v1 = vld [vmem:[#allocation29_spill] sm:$0xff] }
 0x9b9   : > { %4242 = vperm.xlu2 %6560, %v4231_v23   ;;  %4236 = vperm.xlu1 %6559, %v4231_v23   ;;  %v4724_v53 = vsel %vm4715_vm11, %v4691_v7, %v11602_v63  ;;  %v4600_v23 = vsel %vm4583_vm7, %v4567_v36, %v11606_v8  ;;  %v4829_v14 = vsel %vm4814_vm14, %v4796_v19, %v11609_v18  ;;  %v11613_v7 = vld [vmem:[#allocation85_spill] sm:$0xff]  ;;  %v11615_v63 = vld [vmem:[#allocation280_spill] sm:$0xff]  ;;  %v11620_v8 = vld [vmem:[#allocation79_spill] sm:$0xff] }
 0x9ba   : > { %v4757_v33 = vsel %vm4748_vm12, %v4724_v53, %v11605_v62  ;;  %v4633_v29 = vsel %vm4616_vm8, %v4600_v23, %v11608_v44  ;;  %v4862_v47 = vsel %vm4847_vm15, %v4829_v14, %v11613_v7  ;;  %v11617_v36 = vld [vmem:[#allocation336_spill] sm:$0xff]  ;;  %v4257_v62 = vperm.slane %v11618_v1, 1 }
 0x9bb   : > { %v4790_v49 = vsel %vm4781_vm13, %v4757_v33, %v11610_v37  ;;  %v4666_v42 = vsel %vm4649_vm9, %v4633_v29, %v11612_v48  ;;  %v11619_v33 = vperm.slane %v11618_v1, 0  ;;  %v11621_v14 = vperm.slane %v11618_v1, 2  ;;  %v3957_v37 = vpop.permute.xlu0 %3956  ;;  %v11624_v7 = vld [vmem:[#allocation128_spill] sm:$0xff] }
 0x9bc   : > { %v4823_v21 = vsel %vm4814_vm14, %v4790_v49, %v11611_v55  ;;  %v4699_v56 = vsel %vm4682_vm10, %v4666_v42, %v11614_v32  ;;  %v4283_v48 = vperm.slane %v11618_v1, 3  ;;  %v11622_v42 = vld [vmem:[#allocation99_spill] sm:$0xff] }
 0x9bd   : > { %v4856_v4 = vsel %vm4847_vm15, %v4823_v21, %v9432_v45  ;;  %v4732_v53 = vsel %vm4715_vm11, %v4699_v56, %v11615_v63  ;;  %v11625_v56 = vld [vmem:[#allocation34_spill] sm:$0xff] }
 0x9be   : > { %v4765_v45 = vsel %vm4748_vm12, %v4732_v53, %v11616_v6  ;;  %v11626_v53 = vld [vmem:[#allocation173_spill] sm:$0xff] }
 0x9bf   : > { %v4798_v52 = vsel %vm4781_vm13, %v4765_v45, %v11617_v36  ;;  %v11627_v45 = vld [vmem:[#allocation195_spill] sm:$0xff] }
 0x9c0   : > { %v4831_v23 = vsel %vm4814_vm14, %v4798_v52, %v11620_v8  ;;  %v4322_v52 = vperm.slane %v11618_v1, 6  ;;  %v11630_v8 = vld [vmem:[#allocation74_spill] sm:$0xff] }
 0x9c1   : > { %6562 = vset.pattern.permute.xlu2 %v6858_v11  ;;  %6561 = vset.pattern.permute.xlu1 %v6863_v12  ;;  %v4864_v9 = vsel %vm4847_vm15, %v4831_v23, %v9562_v40  ;;  %v4867_v40 = vsel %vm4847_vm15, %v9316_v22, %v3957_v37 }
 0x9c3   : > { %v4133_v54 = vpop.permute.xlu2 %4132  ;;  %v4094_v0 = vpop.permute.xlu1 %4093 }
 0x9c4   : > { %v10145_v43 = vsel %vm4880_vm0, %v4862_v47, %v4133_v54  ;;  %v10148_v35 = vsel %vm4880_vm0, %v4856_v4, %v4094_v0  ;;  %v11623_v4 = vld [vmem:[#allocation73_spill] sm:$0xff] }
 0x9c5   : > { %v4476_v54 = vsel %vm240_vm2, %v11623_v4, %v11622_v42  ;;  %v11636_v42 = vld [vmem:[#allocation175_spill] sm:$0xff] }
 0x9c6   : > { %v4509_v47 = vsel %vm4484_vm4, %v4476_v54, %v11624_v7  ;;  %v11637_v54 = vld [vmem:[#allocation312_spill] sm:$0xff] }
 0x9c7   : > { %v4542_v63 = vsel %vm4517_vm5, %v4509_v47, %v11625_v56  ;;  %v11638_v7 = vld [vmem:[#allocation196_spill] sm:$0xff]  ;;  %v11640_v56 = vld [vmem:[#allocation31_spill] sm:$0xff] }
 0x9c8   : > { %v4575_v6 = vsel %vm4550_vm6, %v4542_v63, %v11626_v53  ;;  %v4387_v63 = vperm.slane %v11640_v56, 3  ;;  %v11641_v53 = vld [vmem:[#allocation218_spill] sm:$0xff] }
 0x9c9   : > { %4262 = vperm.xlu2 %6562, %v4257_v62   ;;  %4255 = vperm.xlu1 %6561, %v11619_v33   ;;  %v4608_v36 = vsel %vm4583_vm7, %v4575_v6, %v11627_v45 }
 0x9cb   : > { %v4146_v19 = vpop.permute.xlu2 %4145  ;;  %v4107_v44 = vpop.permute.xlu1 %4106 }
 0x9cc   : > { %v10164_v29 = vsel %vm4880_vm0, %v4864_v9, %v4146_v19  ;;  %v10168_v18 = vsel %vm4880_vm0, %v9569_v61, %v4107_v44  ;;  %v11632_v19 = vld [vmem:[#allocation30_spill] sm:$0xff] }
 0x9d1   : > { %4275 = vperm.xlu2 %6562, %v11621_v14   ;;  %4268 = vperm.xlu1 %6561, %v4257_v62   ;;  %v11628_v62 = vld [vmem:[#allocation216_spill] sm:$0xff]  ;;  %v11633_v14 = vld [vmem:[#allocation50_spill] sm:$0xff] }
 0x9d2   : > { %v4641_v33 = vsel %vm4616_vm8, %v4608_v36, %v11628_v62  ;;  %v11642_v36 = vperm.slane %v11618_v1, 7  ;;  %v11643_v62 = vld [vmem:[#allocation47_spill] sm:$0xff] }
 0x9d9   : > { %6564 = vset.pattern.permute.xlu2 %v6863_v12  ;;  %6563 = vset.pattern.permute.xlu1 %v6858_v11 }
 0x9db   : > { %v4165_v49 = vpop.permute.xlu2 %4164  ;;  %v4126_v55 = vpop.permute.xlu1 %4125 }
 0x9dc   : > { %v10177_v21 = vsel %vm4880_vm0, %v4867_v40, %v4165_v49  ;;  %v10181_v61 = vsel %vm4880_vm0, %v9506_v58, %v4126_v55  ;;  %v11634_v49 = vld [vmem:[#allocation152_spill] sm:$0xff]  ;;  %v11635_v55 = vld [vmem:[#allocation285_spill] sm:$0xff] }
 0x9e1   : > { %4294 = vperm.xlu2 %6564, %v4283_v48   ;;  %4288 = vperm.xlu1 %6563, %v4283_v48  }
 0x9e3   : > { %v4178_v22 = vpop.permute.xlu2 %4177  ;;  %v4139_v0 = vpop.permute.xlu1 %4138 }
 0x9e4   : > { %v10191_v32 = vsel %vm4880_vm0, %v9684_v60, %v4178_v22  ;;  %v10195_v58 = vsel %vm4880_vm0, %v9687_v17, %v4139_v0  ;;  %v11629_v60 = vld [vmem:[#allocation102_spill] sm:$0xff]  ;;  %v11631_v17 = vld [vmem:[#allocation239_spill] sm:$0xff] }
 0x9e5   : > { %v4478_v23 = vsel %vm240_vm2, %v11630_v8, %v11629_v60  ;;  %v4674_v9 = vsel %vm4649_vm9, %v4641_v33, %v11631_v17  ;;  %v11639_v22 = vld [vmem:[#allocation343_spill] sm:$0xff]  ;;  %v11644_v8 = vld [vmem:[#allocation86_spill] sm:$0xff] }
 0x9e6   : > { %v4511_v44 = vsel %vm4484_vm4, %v4478_v23, %v11632_v19  ;;  %v4707_v37 = vsel %vm4682_vm10, %v4674_v9, %v11633_v14  ;;  %v11645_v9 = vld [vmem:[#allocation264_spill] sm:$0xff]  ;;  %v11646_v14 = vld [vmem:[#allocation287_spill] sm:$0xff] }
 0x9e7   : > { %v4544_v40 = vsel %vm4517_vm5, %v4511_v44, %v11634_v49  ;;  %v4740_v48 = vsel %vm4715_vm11, %v4707_v37, %v11635_v55  ;;  %v11647_v49 = vld [vmem:[#allocation313_spill] sm:$0xff]  ;;  %v11648_v55 = vld [vmem:[#allocation346_spill] sm:$0xff] }
 0x9e8   : > { %v4577_v4 = vsel %vm4550_vm6, %v4544_v40, %v11636_v42  ;;  %v4426_v42 = vperm.slane %v11640_v56, 6 }
 0x9e9   : > { %6565 = vset.pattern.permute.xlu2 %v6858_v11  ;;  %4327 = vperm.xlu1 %6563, %v4322_v52   ;;  %v4773_v11 = vsel %vm4748_vm12, %v4740_v48, %v11637_v54  ;;  %v4610_v47 = vsel %vm4583_vm7, %v4577_v4, %v11638_v7  ;;  %v4439_v4 = vperm.slane %v11640_v56, 7  ;;  %v11649_v54 = vld [vmem:[#allocation15_spill] sm:$0xff] }
 0x9ea   : > { %v4806_v0 = vsel %vm4781_vm13, %v4773_v11, %v11639_v22  ;;  %v4643_v6 = vsel %vm4616_vm8, %v4610_v47, %v11641_v53  ;;  %v4348_v53 = vperm.slane %v11640_v56, 0 }
 0x9eb   : > { %v4839_v45 = vsel %vm4814_vm14, %v4806_v0, %v9355_v50  ;;  %v4676_v33 = vsel %vm4649_vm9, %v4643_v6, %v11643_v62  ;;  %v11650_v6 = vperm.slane %v11618_v1, 4 }
 0x9ec   : > { %v4872_v23 = vsel %vm4847_vm15, %v4839_v45, %v11644_v8  ;;  %v4709_v19 = vsel %vm4682_vm10, %v4676_v33, %v11645_v9  ;;  %v4413_v45 = vperm.slane %v11640_v56, 5 }
 0x9ed   : > { %v4742_v37 = vsel %vm4715_vm11, %v4709_v19, %v11646_v14  ;;  %v11654_v19 = vld [vmem:[#allocation110_spill] sm:$0xff] }
 0x9ee   : > { %v4775_v40 = vsel %vm4748_vm12, %v4742_v37, %v11647_v49 }
 0x9ef   : > { %v4808_v48 = vsel %vm4781_vm13, %v4775_v40, %v11648_v55 }
 0x9f0   : > { %v4841_v11 = vsel %vm4814_vm14, %v4808_v48, %v11649_v54  ;;  %v11656_v48 = vld [vmem:[#allocation35_spill] sm:$0xff] }
 0x9f1   : > { %4340 = vperm.xlu2 %6565, %v11642_v36   ;;  %4392 = vperm.xlu1 %6563, %v4387_v63   ;;  %v11651_v36 = vperm.slane %v11640_v56, 1 }
 0x9f3   : > { %v4198_v60 = vpop.permute.xlu2 %4197  ;;  %v4159_v17 = vpop.permute.xlu1 %4158 }
 0x9f4   : > { %v10244_v44 = vsel %vm4880_vm0, %v4872_v23, %v4198_v60  ;;  %v10248_v50 = vsel %vm4880_vm0, %v9601_v28, %v4159_v17  ;;  %v4874_v28 = vsel %vm4847_vm15, %v4841_v11, %v9770_v30  ;;  %v4022_v30 = vpop.permute.xlu0 %4021  ;;  %v11652_v23 = vld [vmem:[#allocation80_spill] sm:$0xff]  ;;  %v11653_v17 = vld [vmem:[#allocation51_spill] sm:$0xff] }
 0x9f5   : > { %v4877_v33 = vsel %vm4847_vm15, %v9400_v51, %v4022_v30  ;;  %v4454_v9 = vsel %vm240_vm2, %v11653_v17, %v11652_v23  ;;  %v11655_v51 = vld [vmem:[#allocation134_spill] sm:$0xff]  ;;  %v11657_v11 = vld [vmem:[#allocation179_spill] sm:$0xff]  ;;  %v11660_v30 = vld [vmem:[#allocation245_spill] sm:$0xff] }
 0x9f6   : > { %v4487_v14 = vsel %vm4484_vm4, %v4454_v9, %v11654_v19  ;;  %v11664_v17 = vld [vmem:[#allocation321_spill] sm:$0xff]  ;;  %v11665_v19 = vld [vmem:[#allocation351_spill] sm:$0xff] }
 0x9f7   : > { %v4520_v37 = vsel %vm4517_vm5, %v4487_v14, %v11655_v51  ;;  %v10323_v51 = vld [vmem:[#allocation6] ss:$0 sm:$0xff] }
 0x9f8   : > { %v4553_v54 = vsel %vm4550_vm6, %v4520_v37, %v11656_v48  ;;  %v11666_v37 = vld [vmem:[#allocation97_spill] sm:$0xff] }
 0x9f9   : > { %4431 = vperm.xlu2 %6565, %v4426_v42   ;;  %4444 = vperm.xlu1 %6563, %v4439_v4  }
 0x9fb   : > { %v4211_v7 = vpop.permute.xlu2 %4210  ;;  %v4172_v47 = vpop.permute.xlu1 %4171 }
 0x9fc   : > { %v10263_v22 = vsel %vm4880_vm0, %v4874_v28, %v4211_v7  ;;  %v10267_v0 = vsel %vm4880_vm0, %v9777_v5, %v4172_v47  ;;  %v4586_v28 = vsel %vm4583_vm7, %v4553_v54, %v11657_v11  ;;  %v4087_v47 = vpop.permute.xlu0 %4086  ;;  %v11667_v11 = vld [vmem:[#allocation89_spill] sm:$0xff] }
 0xa01   : > { %4301 = vperm.xlu2 %6565, %v11650_v6   ;;  %4353 = vperm.xlu1 %6563, %v4348_v53   ;;  %v11659_v6 = vld [vmem:[#allocation223_spill] sm:$0xff] }
 0xa09   : > { %4366 = vperm.xlu2 %6565, %v11651_v36   ;;  %4418 = vperm.xlu1 %6563, %v4413_v45  }
 0xa0b   : > { %v4230_v62 = vpop.permute.xlu2 %4229  ;;  %v4191_v60 = vpop.permute.xlu1 %4190 }
 0xa0c   : > { %v10278_v5 = vsel %vm4880_vm0, %v4877_v33, %v4230_v62  ;;  %v10282_v8 = vsel %vm4880_vm0, %v9714_v34, %v4191_v60  ;;  %v11662_v62 = vld [vmem:[#allocation52_spill] sm:$0xff] }
 0xa0d   : > { %v11663_v60 = vld [vmem:[#allocation292_spill] sm:$0xff] }
 0xa11   : > { %6567 = vset.pattern.permute.xlu2 %v6863_v12  ;;  %6568 = vset.pattern.permute.xlu1 %v6863_v12  ;;  %v11658_v12 = vld [vmem:[#allocation201_spill] sm:$0xff] }
 0xa12   : > { %v4619_v7 = vsel %vm4616_vm8, %v4586_v28, %v11658_v12 }
 0xa13   : > { %v4243_v49 = vpop.permute.xlu2 %4242  ;;  %v4204_v40 = vpop.permute.xlu1 %4203  ;;  %v4652_v36 = vsel %vm4649_vm9, %v4619_v7, %v11659_v6 }
 0xa14   : > { %v10295_v34 = vsel %vm4880_vm0, %v9877_v46, %v4243_v49  ;;  %v10299_v55 = vsel %vm4880_vm0, %v9880_v59, %v4204_v40  ;;  %v4685_v46 = vsel %vm4682_vm10, %v4652_v36, %v11660_v30  ;;  %v11661_v59 = vperm.slane %v11640_v56, 2  ;;  %v10330_v40 = vpop.permute.xlu0 %4151 }
 0xa15   : > { %v4718_v33 = vsel %vm4715_vm11, %v4685_v46, %v11662_v62  ;;  %v4913_v49 = vsel %vm249_vm3, %v9999_v31, %v11666_v37  ;;  %v11668_v36 = vperm.slane %v11618_v1, 5 }
 0xa16   : > { %v4751_v23 = vsel %vm4748_vm12, %v4718_v33, %v11663_v60  ;;  %v4949_v48 = vadd.f32 %v10323_v51, %v4913_v49  ;;  %v11670_v60 = vld [vmem:[#allocation81_spill] sm:$0xff] }
 0xa17   : > { %v4784_v9 = vsel %vm4781_vm13, %v4751_v23, %v11664_v17  ;;  %v11671_v23 = vld [vmem:[#allocation55_spill] sm:$0xff]  ;;  %v11672_v17 = vld [vmem:[#allocation113_spill] sm:$0xff] }
 0xa18   : > { %v4817_v14 = vsel %vm4814_vm14, %v4784_v9, %v11665_v19  ;;  %v4981_v31 = vmax.f32 %v4949_v48, 0.0 }
 0xa19   : > { %4333 = vperm.xlu2 %6567, %v4322_v52   ;;  %4385 = vperm.xlu1 %6568, %v11661_v59   ;;  %v4850_v52 = vsel %vm4847_vm15, %v4817_v14, %v9434_v3  ;;  %v11673_v14 = vld [vmem:[#allocation32_spill] sm:$0xff] }
 0xa1a   : > { %v4883_v28 = vsel %vm4880_vm0, %v4850_v52, %v11667_v11 }
 0xa1c   : > { %v10349_v59 = vpop.permute.xlu0 %4216 }
 0xa21   : > { %4398 = vperm.xlu2 %6567, %v4387_v63   ;;  %4437 = vperm.xlu1 %6568, %v4426_v42  }
 0xa23   : > { %v4263_v54 = vpop.permute.xlu2 %4262  ;;  %v4224_v12 = vpop.permute.xlu1 %4223 }
 0xa24   : > { %v4915_v7 = vsel %vm249_vm3, %v4883_v28, %v4263_v54  ;;  %v10338_v3 = vsel %vm4880_vm0, %v9809_v38, %v4224_v12  ;;  %v11669_v38 = vperm.slane %v11640_v56, 4  ;;  %v4282_v33 = vpop.permute.xlu0 %4281  ;;  %v4888_v56 = vsel %vm4880_vm0, %v9509_v41, %v4087_v47  ;;  %v11675_v54 = vld [vmem:[#allocation181_spill] sm:$0xff]  ;;  %v11676_v28 = vld [vmem:[#allocation202_spill] sm:$0xff] }
 0xa25   : > { %v4951_v6 = vadd.f32 %v10323_v51, %v4915_v7  ;;  %v4918_v1 = vsel %vm249_vm3, %v10078_v15, %v4282_v33  ;;  %v11674_v15 = vld [vmem:[#allocation159_spill] sm:$0xff]  ;;  %v11677_v7 = vld [vmem:[#allocation225_spill] sm:$0xff] }
 0xa27   : > { %v4983_v63 = vmax.f32 %v4951_v6, 0.0 }
 0xa29   : > { %v10341_v42 = vmax.f32 %v4981_v31, %v4983_v63  ;;  %4450 = vperm.xlu2 %6567, %v4439_v4   ;;  %4320 = vperm.xlu1 %6568, %v11668_v36   ;;  %v4456_v4 = vsel %vm240_vm2, %v11671_v23, %v11670_v60  ;;  %v11678_v63 = vld [vmem:[#allocation48_spill] sm:$0xff]  ;;  %v11679_v60 = vld [vmem:[#allocation271_spill] sm:$0xff]  ;;  %vm5468_vm2 = vcmask 1043459  }
 0xa2a   : > { %v4489_v9 = vsel %vm4484_vm4, %v4456_v4, %v11672_v17  ;;  %vm5470_vm4 = vcmask 1045509  }
 0xa2b   : > { %v4237_v30 = vpop.permute.xlu1 %4236  ;;  %v4276_v62 = vpop.permute.xlu2 %4275  ;;  %v4522_v52 = vsel %vm4517_vm5, %v4489_v9, %v11673_v14  ;;  %vm5472_vm5 = vcmask 1047559  }
 0xa2c   : > { %v10347_v46 = vsel %vm4880_vm0, %v9965_v39, %v4237_v30  ;;  %v4954_v39 = vadd.f32 %v10323_v51, %v4918_v1  ;;  %v4555_v48 = vsel %vm4550_vm6, %v4522_v52, %v11674_v15  ;;  %v11681_v52 = vld [vmem:[#allocation322_spill] sm:$0xff]  ;;  %vm5724_vm6 = vcmask 1047556  }
 0xa2d   : > { %v4588_v11 = vsel %vm4583_vm7, %v4555_v48, %v11675_v54  ;;  %vm5972_vm7 = vcmask 261120  }
 0xa2e   : > { %v4621_v41 = vsel %vm4616_vm8, %v4588_v11, %v11676_v28  ;;  %v4986_v47 = vmax.f32 %v4954_v39, 0.0  ;;  %vm5974_vm8 = vcmask 392192  }
 0xa2f   : > { %v4654_v6 = vsel %vm4649_vm9, %v4621_v41, %v11677_v7  ;;  %vm5976_vm9 = vcmask 523264  }
 0xa31   : > { %4359 = vperm.xlu2 %6567, %v4348_v53   ;;  %4411 = vperm.xlu1 %6568, %v11669_v38  }
 0xa39   : > { %4424 = vperm.xlu2 %6567, %v4413_v45  }
 0xa3b   : > { %v4295_v19 = vpop.permute.xlu2 %4294  ;;  %v4256_v53 = vpop.permute.xlu1 %4255 }
 0xa3c   : > { %v4920_v37 = vsel %vm249_vm3, %v4888_v56, %v4295_v19  ;;  %v4914_v49 = vsel %vm249_vm3, %v9898_v24, %v4256_v53  ;;  %v4687_v24 = vsel %vm4682_vm10, %v4654_v6, %v11678_v63  ;;  %v11680_v56 = vld [vmem:[#allocation295_spill] sm:$0xff]  ;;  %vm5978_vm10 = vcmask 654336  }
 0xa3d   : > { %v4956_v45 = vadd.f32 %v10323_v51, %v4920_v37  ;;  %v4720_v23 = vsel %vm4715_vm11, %v4687_v24, %v11679_v60  ;;  %v4950_v4 = vadd.f32 %v10323_v51, %v4914_v49  ;;  %v11683_v6 = vld [vmem:[#allocation83_spill] sm:$0xff]  ;;  %v5047_v24 = vrot.slane %v10341_v42, 6 }
 0xa3e   : > { %v4753_v53 = vsel %vm4748_vm12, %v4720_v23, %v11680_v56  ;;  %v5046_v23 = vrot.slane %v10341_v42, 4  ;;  %vm5980_vm11 = vcmask 785408   ;;  %vm5982_vm12 = vcmask 916480  }
 0xa3f   : > { %v4988_v12 = vmax.f32 %v4956_v45, 0.0  ;;  %v4786_v37 = vsel %vm4781_vm13, %v4753_v53, %v11681_v52  ;;  %v11682_v45 = vld [vmem:[#allocation353_spill] sm:$0xff]  ;;  %v4982_v54 = vmax.f32 %v4950_v4, 0.0  ;;  %v6232_v53 = vrot.slane %v5047_v24, 9 }
 0xa40   : > { %v4819_v49 = vsel %vm4814_vm14, %v4786_v37, %v11682_v45 }
 0xa41   : > { %v5016_v31 = vmax.f32 %v4986_v47, %v4988_v12  ;;  %v5045_v12 = vrot.slane %v10341_v42, 2  ;;  %v4852_v63 = vsel %vm4847_vm15, %v4819_v49, %v11683_v6 }
 0xa43   : > { %v5054_v36 = vrot.slane %v5016_v31, 2  ;;  %v5055_v30 = vrot.slane %v5016_v31, 4  ;;  %v5056_v38 = vrot.slane %v5016_v31, 6  ;;  %v4269_v33 = vpop.permute.xlu1 %4268  ;;  %v6241_v17 = vrot.slane %v5016_v31, 9 }
 0xa44   : > { %v4916_v1 = vsel %vm249_vm3, %v10050_v25, %v4269_v33 }
 0xa45   : > { %v6242_v9 = vrot.slane %v5054_v36, 9  ;;  %v6243_v39 = vrot.slane %v5055_v30, 9  ;;  %v6244_v19 = vrot.slane %v5056_v38, 9  ;;  %v4952_v14 = vadd.f32 %v10323_v51, %v4916_v1 }
 0xa46   : > { %v5345_v25 = vmax.f32 %v5016_v31, %v6241_v17  ;;  %v4885_v31 = vsel %vm4880_vm0, %v4852_v63, %v9958_v2  ;;  %v11684_v2 = vld [vmem:[#allocation103_spill] sm:$0xff]  ;;  %v5336_v63 = vmax.f32 %v5047_v24, %v6232_v53 }
 0xa47   : > { %v5346_v15 = vmax.f32 %v5054_v36, %v6242_v9  ;;  %v5348_v48 = vmax.f32 %v5056_v38, %v6244_v19  ;;  %v4984_v11 = vmax.f32 %v4952_v14, 0.0  ;;  %v5347_v28 = vmax.f32 %v5055_v30, %v6243_v39 }
 0xa48   : > { %v4917_v4 = vsel %vm249_vm3, %v4885_v31, %v4276_v62  ;;  %v6230_v9 = vrot.slane %v5045_v12, 9  ;;  %v4923_v37 = vsel %vm249_vm3, %v10168_v18, %v11684_v2 }
 0xa49   : > { %v5511_v41 = vrot.slane %v5346_v15, 7  ;;  %v5518_v47 = vrot.slane %v5348_v48, 7  ;;  %v5014_v7 = vmax.f32 %v4982_v54, %v4984_v11  ;;  %v6229_v48 = vrot.slane %v10341_v42, 9 }
 0xa4a   : > { %v4953_v45 = vadd.f32 %v10323_v51, %v4917_v4  ;;  %v6231_v11 = vrot.slane %v5046_v23, 9 }
 0xa4b   : > { %v5512_v36 = vsel %vm5466_vm1, %v5511_v41, %v5345_v25  ;;  %v5519_v38 = vsel %vm5466_vm1, %v5518_v47, %v5347_v28  ;;  %v4341_v33 = vpop.permute.xlu2 %4340  ;;  %v5048_v30 = vrot.slane %v5014_v7, 2  ;;  %v5049_v60 = vrot.slane %v5014_v7, 4 }
 0xa4c   : > { %v5513_v1 = vsel %vm5468_vm2, %v5511_v41, %v5512_v36  ;;  %v5050_v17 = vrot.slane %v5014_v7, 6  ;;  %v5520_v39 = vsel %vm5468_vm2, %v5518_v47, %v5519_v38  ;;  %v6233_v19 = vrot.slane %v5014_v7, 9 }
 0xa4d   : > { %v6234_v56 = vrot.slane %v5048_v30, 9  ;;  %v6235_v14 = vrot.slane %v5049_v60, 9  ;;  %v5514_v15 = vsel %vm5470_vm4, %v5511_v41, %v5513_v1  ;;  %v5521_v49 = vsel %vm5470_vm4, %v5518_v47, %v5520_v39 }
 0xa4e   : > { %v6236_v52 = vrot.slane %v5050_v17, 9  ;;  %v5334_v25 = vmax.f32 %v5045_v12, %v6230_v9  ;;  %v5337_v28 = vmax.f32 %v5014_v7, %v6233_v19  ;;  %v5515_v36 = vsel %vm5472_vm5, %v5511_v41, %v5514_v15 }
 0xa4f   : > { %v5338_v62 = vmax.f32 %v5048_v30, %v6234_v56  ;;  %v5339_v38 = vmax.f32 %v5049_v60, %v6235_v14  ;;  %v5522_v30 = vsel %vm5472_vm5, %v5518_v47, %v5521_v49  ;;  %v4985_v39 = vmax.f32 %v4953_v45, 0.0 }
 0xa50   : > { %v5340_v54 = vmax.f32 %v5050_v17, %v6236_v52  ;;  %v5465_v24 = vrot.slane %v5334_v25, 7  ;;  %v5788_v60 = vrot.slane %v5515_v36, 4  ;;  %v5820_v47 = vrot.slane %v5522_v30, 4 }
 0xa51   : > { %v5483_v6 = vrot.slane %v5338_v62, 7  ;;  %v5333_v15 = vmax.f32 %v10341_v42, %v6229_v48  ;;  %v4927_v45 = vsel %vm249_vm3, %v10145_v43, %v4341_v33  ;;  %v5335_v25 = vmax.f32 %v5046_v23, %v6231_v11 }
 0xa52   : > { %v5490_v18 = vrot.slane %v5340_v54, 7  ;;  %v4959_v54 = vadd.f32 %v10323_v51, %v4923_v37  ;;  %v4963_v30 = vadd.f32 %v10323_v51, %v4927_v45 }
 0xa53   : > { %v10411_v31 = vpop.permute.xlu2 %4431  ;;  %v4289_v1 = vpop.permute.xlu1 %4288  ;;  %v5484_v4 = vsel %vm5466_vm1, %v5483_v6, %v5337_v28  ;;  %v11685_v28 = vld [vmem:[#allocation92_spill] sm:$0xff] }
 0xa54   : > { %v4919_v17 = vsel %vm249_vm3, %v9996_v57, %v4289_v1  ;;  %v5485_v12 = vsel %vm5468_vm2, %v5483_v6, %v5484_v4  ;;  %v5491_v7 = vsel %vm5466_vm1, %v5490_v18, %v5339_v38  ;;  %v5476_v57 = vrot.slane %v5336_v63, 7 }
 0xa55   : > { %v4955_v41 = vadd.f32 %v10323_v51, %v4919_v17  ;;  %v5486_v9 = vsel %vm5470_vm4, %v5483_v6, %v5485_v12  ;;  %v5492_v19 = vsel %vm5468_vm2, %v5490_v18, %v5491_v7  ;;  %v5467_v63 = vsel %vm5466_vm1, %v5465_v24, %v5333_v15 }
 0xa56   : > { %v5487_v56 = vsel %vm5472_vm5, %v5483_v6, %v5486_v9  ;;  %v5493_v53 = vsel %vm5470_vm4, %v5490_v18, %v5492_v19  ;;  %v4893_v6 = vsel %vm4880_vm0, %v9604_v16, %v11685_v28  ;;  %v5477_v1 = vsel %vm5466_vm1, %v5476_v57, %v5335_v25 }
 0xa57   : > { %v4987_v14 = vmax.f32 %v4955_v41, 0.0  ;;  %v5494_v52 = vsel %vm5472_vm5, %v5490_v18, %v5493_v53  ;;  %v10426_v2 = vsel %vm5724_vm6, %v5788_v60, %v5487_v56  ;;  %v4991_v4 = vmax.f32 %v4959_v54, 0.0 }
 0xa58   : > { %v10430_v62 = vsel %vm5724_vm6, %v5820_v47, %v5494_v52  ;;  %v5469_v12 = vsel %vm5468_vm2, %v5465_v24, %v5467_v63  ;;  %v6700_v7 = vmov 1934713408   ;;  %v5478_v19 = vsel %vm5468_vm2, %v5476_v57, %v5477_v1 }
 0xa59   : > { %v5015_v49 = vmax.f32 %v4985_v39, %v4987_v14  ;;  %v5727_v41 = vunpack.c.l.s4 %v6700_v7  ;;  %v5471_v45 = vsel %vm5470_vm4, %v5465_v24, %v5469_v12  ;;  %v5479_v28 = vsel %vm5470_vm4, %v5476_v57, %v5478_v19 }
 0xa5a   : > { %v5473_v1 = vsel %vm5472_vm5, %v5465_v24, %v5471_v45 }
 0xa5b   : > { %v5051_v36 = vrot.slane %v5015_v49, 2  ;;  %v5052_v38 = vrot.slane %v5015_v49, 4  ;;  %v5053_v18 = vrot.slane %v5015_v49, 6  ;;  %v4302_v42 = vpop.permute.xlu2 %4301  ;;  %v4328_v48 = vpop.permute.xlu1 %4327  ;;  %v6237_v23 = vrot.slane %v5015_v49, 9 }
 0xa5c   : > { %v4921_v43 = vsel %vm249_vm3, %v10148_v35, %v4302_v42  ;;  %v4925_v33 = vsel %vm249_vm3, %v4893_v6, %v4328_v48  ;;  %v4995_v35 = vmax.f32 %v4963_v30, 0.0  ;;  %v10450_v6 = vunpack.c.0.s8 %v5727_v41 }
 0xa5d   : > { %v6238_v37 = vrot.slane %v5051_v36, 9  ;;  %v6239_v11 = vrot.slane %v5052_v38, 9  ;;  %v6240_v16 = vrot.slane %v5053_v18, 9  ;;  %v4957_v17 = vadd.f32 %v10323_v51, %v4921_v43 }
 0xa5e   : > { %v4961_v39 = vadd.f32 %v10323_v51, %v4925_v33  ;;  %v5341_v53 = vmax.f32 %v5015_v49, %v6237_v23 }
 0xa5f   : > { %v5342_v60 = vmax.f32 %v5051_v36, %v6238_v37  ;;  %v5344_v9 = vmax.f32 %v5053_v18, %v6240_v16  ;;  %v4989_v47 = vmax.f32 %v4957_v17, 0.0  ;;  %v5343_v14 = vmax.f32 %v5052_v38, %v6239_v11 }
 0xa60   : > { %v4993_v56 = vmax.f32 %v4961_v39, 0.0 }
 0xa61   : > { %v5497_v52 = vrot.slane %v5342_v60, 7  ;;  %v5504_v15 = vrot.slane %v5344_v9, 7  ;;  %v5017_v54 = vmax.f32 %v4989_v47, %v4991_v4  ;;  %v5480_v4 = vsel %vm5472_vm5, %v5476_v57, %v5479_v28 }
 0xa62   : > { %v5019_v25 = vmax.f32 %v4993_v56, %v4995_v35  ;;  %v11686_v56 = vld [vmem:[#allocation100_spill] sm:$0xff] }
 0xa63   : > { %v5498_v63 = vsel %vm5466_vm1, %v5497_v52, %v5341_v53  ;;  %v5505_v36 = vsel %vm5466_vm1, %v5504_v15, %v5343_v14  ;;  %v4393_v18 = vpop.permute.xlu1 %4392  ;;  %v5057_v38 = vrot.slane %v5017_v54, 2  ;;  %v5058_v48 = vrot.slane %v5017_v54, 4 }
 0xa64   : > { %v5499_v42 = vsel %vm5468_vm2, %v5497_v52, %v5498_v63  ;;  %v5506_v49 = vsel %vm5468_vm2, %v5504_v15, %v5505_v36  ;;  %v5059_v33 = vrot.slane %v5017_v54, 6  ;;  %v6245_v11 = vrot.slane %v5017_v54, 9 }
 0xa65   : > { %v5500_v30 = vsel %vm5470_vm4, %v5497_v52, %v5499_v42  ;;  %v5507_v43 = vsel %vm5470_vm4, %v5504_v15, %v5506_v49  ;;  %v6246_v16 = vrot.slane %v5057_v38, 9  ;;  %v6247_v7 = vrot.slane %v5058_v48, 9  ;;  %v10476_v42 = vpop.permute.xlu2 %4366 }
 0xa66   : > { %v5501_v23 = vsel %vm5472_vm5, %v5497_v52, %v5500_v30  ;;  %v5508_v37 = vsel %vm5472_vm5, %v5504_v15, %v5507_v43  ;;  %v6248_v12 = vrot.slane %v5059_v33, 9  ;;  %v5063_v60 = vrot.slane %v5019_v25, 2  ;;  %v11687_v43 = vld [vmem:[#allocation94_spill] sm:$0xff] }
 0xa67   : > { %v5723_v17 = vrot.slane %v5501_v23, 4  ;;  %v5756_v39 = vrot.slane %v5508_v37, 4  ;;  %v5350_v41 = vmax.f32 %v5057_v38, %v6246_v16  ;;  %v5064_v24 = vrot.slane %v5019_v25, 4 }
 0xa68   : > { %v5352_v35 = vmax.f32 %v5059_v33, %v6248_v12  ;;  %v5065_v47 = vrot.slane %v5019_v25, 6  ;;  %v4933_v53 = vsel %vm249_vm3, %v10267_v0, %v11686_v56  ;;  %v5349_v14 = vmax.f32 %v5017_v54, %v6245_v11 }
 0xa69   : > { %v5725_v9 = vsel %vm5724_vm6, %v5723_v17, %v5473_v1  ;;  %v10464_v19 = vsel %vm5724_vm6, %v5756_v39, %v5480_v4  ;;  %v5525_v52 = vrot.slane %v5350_v41, 7  ;;  %v6253_v45 = vrot.slane %v5019_v25, 9 }
 0xa6a   : > { %v10470_v57 = vperm.slane %v5725_v9, %v10450_v6  ;;  %v5532_v15 = vrot.slane %v5352_v35, 7  ;;  %v6254_v28 = vrot.slane %v5063_v60, 9  ;;  %v6256_v63 = vrot.slane %v5065_v47, 9 }
 0xa6b   : > { %v4941_v36 = vsel %vm249_vm3, %v10338_v3, %v10411_v31  ;;  %v5351_v49 = vmax.f32 %v5058_v48, %v6247_v7  ;;  %v5526_v0 = vsel %vm5466_vm1, %v5525_v52, %v5349_v14  ;;  %v6255_v38 = vrot.slane %v5064_v24, 9  ;;  %v4445_v30 = vpop.permute.xlu1 %4444 }
 0xa6c   : > { %5856 = vst [vmem:[#allocation1] ss:$4 sm:$0xff] %v10470_v57  ;;  %v5358_v1 = vmax.f32 %v5063_v60, %v6254_v28  ;;  %v4969_v54 = vadd.f32 %v10323_v51, %v4933_v53  ;;  %v4903_v33 = vsel %vm4880_vm0, %v9812_v10, %v11687_v43  ;;  %v5357_v37 = vmax.f32 %v5019_v25, %v6253_v45  ;;  %v4347_v45 = vpop.permute.xlu0 %4346 }
 0xa6d   : > { %v5533_v23 = vsel %vm5466_vm1, %v5532_v15, %v5351_v49  ;;  %v5360_v3 = vmax.f32 %v5065_v47, %v6256_v63  ;;  %v4977_v11 = vadd.f32 %v10323_v51, %v4941_v36  ;;  %v5527_v48 = vsel %vm5468_vm2, %v5525_v52, %v5526_v0 }
 0xa6e   : > { %v5553_v31 = vrot.slane %v5358_v1, 7  ;;  %v4935_v16 = vsel %vm249_vm3, %v4903_v33, %v4393_v18  ;;  %v4943_v4 = vsel %vm249_vm3, %v10347_v46, %v4445_v30  ;;  %v5359_v17 = vmax.f32 %v5064_v24, %v6255_v38 }
 0xa6f   : > { %v5560_v12 = vrot.slane %v5360_v3, 7  ;;  %v4971_v10 = vadd.f32 %v10323_v51, %v4935_v16  ;;  %v5001_v7 = vmax.f32 %v4969_v54, 0.0  ;;  %v5534_v25 = vsel %vm5468_vm2, %v5532_v15, %v5533_v23 }
 0xa70   : > { %v5554_v39 = vsel %vm5466_vm1, %v5553_v31, %v5357_v37  ;;  %v4979_v60 = vadd.f32 %v10323_v51, %v4943_v4  ;;  %v5528_v9 = vsel %vm5470_vm4, %v5525_v52, %v5527_v48  ;;  %v5009_v24 = vmax.f32 %v4977_v11, 0.0 }
 0xa71   : > { %v5555_v41 = vsel %vm5468_vm2, %v5553_v31, %v5554_v39  ;;  %v5561_v35 = vsel %vm5466_vm1, %v5560_v12, %v5359_v17  ;;  %v5003_v46 = vmax.f32 %v4971_v10, 0.0  ;;  %v5535_v28 = vsel %vm5470_vm4, %v5532_v15, %v5534_v25 }
 0xa72   : > { %v5556_v18 = vsel %vm5470_vm4, %v5553_v31, %v5555_v41  ;;  %v5562_v56 = vsel %vm5468_vm2, %v5560_v12, %v5561_v35  ;;  %v5011_v53 = vmax.f32 %v4979_v60, 0.0  ;;  %v4928_v0 = vsel %vm249_vm3, %v10195_v58, %v4347_v45 }
 0xa73   : > { %v5557_v47 = vsel %vm5472_vm5, %v5553_v31, %v5556_v18  ;;  %v4334_v14 = vpop.permute.xlu2 %4333  ;;  %v5563_v63 = vsel %vm5470_vm4, %v5560_v12, %v5562_v56  ;;  %v5023_v49 = vmax.f32 %v5001_v7, %v5003_v46  ;;  %v5529_v38 = vsel %vm5472_vm5, %v5525_v52, %v5528_v9  ;;  %v4354_v48 = vpop.permute.xlu1 %4353  ;;  %v11688_v56 = vld [vmem:[#allocation106_spill] sm:$0xff] }
 0xa74   : > { %v5732_v36 = vrot.slane %v5557_v47, 4  ;;  %v5564_v1 = vsel %vm5472_vm5, %v5560_v12, %v5563_v63  ;;  %v5027_v30 = vmax.f32 %v5009_v24, %v5011_v53  ;;  %v4926_v23 = vsel %vm249_vm3, %v10181_v61, %v4334_v14 }
 0xa75   : > { %v5764_v43 = vrot.slane %v5564_v1, 4  ;;  %v5075_v33 = vrot.slane %v5023_v49, 2  ;;  %v5536_v37 = vsel %vm5472_vm5, %v5532_v15, %v5535_v28  ;;  %v5077_v31 = vrot.slane %v5023_v49, 6 }
 0xa76   : > { %v5733_v54 = vsel %vm5724_vm6, %v5732_v36, %v5529_v38  ;;  %v4964_v58 = vadd.f32 %v10323_v51, %v4928_v0  ;;  %v5076_v16 = vrot.slane %v5023_v49, 4  ;;  %v4962_v17 = vadd.f32 %v10323_v51, %v4926_v23 }
 0xa77   : > { %v10510_v3 = vperm.slane %v5733_v54, %v10450_v6  ;;  %v10514_v52 = vsel %vm5724_vm6, %v5764_v43, %v5536_v37  ;;  %v6270_v11 = vrot.slane %v5075_v33, 9  ;;  %v6272_v4 = vrot.slane %v5077_v31, 9 }
 0xa78   : > { %v5087_v15 = vrot.slane %v5027_v30, 2  ;;  %v4929_v12 = vsel %vm249_vm3, %v10164_v29, %v4354_v48  ;;  %v4996_v10 = vmax.f32 %v4964_v58, 0.0  ;;  %v6269_v7 = vrot.slane %v5023_v49, 9 }
 0xa79   : > { %5858 = vst [vmem:[#allocation1 + $0x1] ss:$4 sm:$0xff] %v10510_v3  ;;  %v5374_v61 = vmax.f32 %v5075_v33, %v6270_v11  ;;  %v5376_v39 = vmax.f32 %v5077_v31, %v6272_v4  ;;  %v4931_v25 = vsel %vm249_vm3, %v10248_v50, %v10476_v42  ;;  %v6271_v41 = vrot.slane %v5076_v16, 9 }
 0xa7a   : > { %v5089_v60 = vrot.slane %v5027_v30, 6  ;;  %v4994_v9 = vmax.f32 %v4962_v17, 0.0  ;;  %v4965_v35 = vadd.f32 %v10323_v51, %v4929_v12  ;;  %v6286_v24 = vrot.slane %v5087_v15, 9 }
 0xa7b   : > { %v5609_v18 = vrot.slane %v5374_v61, 7  ;;  %v5616_v46 = vrot.slane %v5376_v39, 7  ;;  %v4937_v29 = vsel %vm249_vm3, %v10244_v44, %v11688_v56  ;;  %v4967_v53 = vadd.f32 %v10323_v51, %v4931_v25  ;;  %v4419_v54 = vpop.permute.xlu1 %4418 }
 0xa7c   : > { %v10524_v47 = vmax.f32 %v4994_v9, %v4996_v10  ;;  %v5373_v14 = vmax.f32 %v5023_v49, %v6269_v7  ;;  %v5375_v45 = vmax.f32 %v5076_v16, %v6271_v41  ;;  %v6288_v28 = vrot.slane %v5089_v60, 9 }
 0xa7d   : > { %v5088_v42 = vrot.slane %v5027_v30, 4  ;;  %v4997_v63 = vmax.f32 %v4965_v35, 0.0  ;;  %v4973_v36 = vadd.f32 %v10323_v51, %v4937_v29  ;;  %v5390_v38 = vmax.f32 %v5087_v15, %v6286_v24 }
 0xa7e   : > { %v5610_v50 = vsel %vm5466_vm1, %v5609_v18, %v5373_v14  ;;  %v5617_v0 = vsel %vm5466_vm1, %v5616_v46, %v5375_v45  ;;  %v4999_v1 = vmax.f32 %v4967_v53, 0.0  ;;  %v6285_v33 = vrot.slane %v5027_v30, 9 }
 0xa7f   : > { %v5611_v43 = vsel %vm5468_vm2, %v5609_v18, %v5610_v50  ;;  %v5392_v44 = vmax.f32 %v5089_v60, %v6288_v28  ;;  %v5618_v23 = vsel %vm5468_vm2, %v5616_v46, %v5617_v0  ;;  %v6287_v49 = vrot.slane %v5088_v42, 9 }
 0xa80   : > { %v5021_v37 = vmax.f32 %v4997_v63, %v4999_v1  ;;  %v5005_v31 = vmax.f32 %v4973_v36, 0.0  ;;  %v5665_v58 = vrot.slane %v5390_v38, 7  ;;  %v4939_v11 = vsel %vm249_vm3, %v10263_v22, %v4419_v54 }
 0xa81   : > { %v5612_v48 = vsel %vm5470_vm4, %v5609_v18, %v5611_v43  ;;  %v5619_v61 = vsel %vm5470_vm4, %v5616_v46, %v5618_v23  ;;  %v5389_v39 = vmax.f32 %v5027_v30, %v6285_v33  ;;  %v5672_v15 = vrot.slane %v5392_v44, 7 }
 0xa82   : > { %v5069_v16 = vrot.slane %v5021_v37, 2  ;;  %v5070_v4 = vrot.slane %v5021_v37, 4  ;;  %v5071_v17 = vrot.slane %v5021_v37, 6  ;;  %v4975_v12 = vadd.f32 %v10323_v51, %v4939_v11 }
 0xa83   : > { %v5391_v10 = vmax.f32 %v5088_v42, %v6287_v49  ;;  %v6261_v7 = vrot.slane %v5021_v37, 9  ;;  %v5613_v60 = vsel %vm5472_vm5, %v5609_v18, %v5612_v48  ;;  %v5666_v9 = vsel %vm5466_vm1, %v5665_v58, %v5389_v39 }
 0xa84   : > { %v6262_v25 = vrot.slane %v5069_v16, 9  ;;  %v6264_v41 = vrot.slane %v5071_v17, 9  ;;  %v6263_v22 = vrot.slane %v5070_v4, 9  ;;  %v5007_v35 = vmax.f32 %v4975_v12, 0.0 }
 0xa85   : > { %v5620_v24 = vsel %vm5472_vm5, %v5616_v46, %v5619_v61  ;;  %v5673_v29 = vsel %vm5466_vm1, %v5672_v15, %v5391_v10  ;;  %v5740_v14 = vrot.slane %v5613_v60, 4  ;;  %v5667_v45 = vsel %vm5468_vm2, %v5665_v58, %v5666_v9 }
 0xa86   : > { %v5366_v56 = vmax.f32 %v5069_v16, %v6262_v25  ;;  %v5368_v53 = vmax.f32 %v5071_v17, %v6264_v41  ;;  %v5025_v30 = vmax.f32 %v5005_v31, %v5007_v35  ;;  %v5365_v28 = vmax.f32 %v5021_v37, %v6261_v7  ;;  %v4399_v25 = vpop.permute.xlu2 %4398 }
 0xa87   : > { %v5772_v42 = vrot.slane %v5620_v24, 4  ;;  %v5367_v63 = vmax.f32 %v5070_v4, %v6263_v22  ;;  %v5674_v0 = vsel %vm5468_vm2, %v5672_v15, %v5673_v29  ;;  %v5668_v11 = vsel %vm5470_vm4, %v5665_v58, %v5667_v45  ;;  %v4308_v24 = vpop.permute.xlu0 %4307 }
 0xa88   : > { %v5581_v50 = vrot.slane %v5366_v56, 7  ;;  %v5588_v36 = vrot.slane %v5368_v53, 7  ;;  %v5081_v18 = vrot.slane %v5025_v30, 2  ;;  %v5082_v1 = vrot.slane %v5025_v30, 4 }
 0xa89   : > { %v5083_v46 = vrot.slane %v5025_v30, 6  ;;  %v6277_v33 = vrot.slane %v5025_v30, 9  ;;  %v5675_v17 = vsel %vm5470_vm4, %v5672_v15, %v5674_v0  ;;  %v5669_v9 = vsel %vm5472_vm5, %v5665_v58, %v5668_v11 }
 0xa8a   : > { %v5582_v38 = vsel %vm5466_vm1, %v5581_v50, %v5365_v28  ;;  %v5589_v43 = vsel %vm5466_vm1, %v5588_v36, %v5367_v63  ;;  %v6278_v44 = vrot.slane %v5081_v18, 9  ;;  %v6279_v37 = vrot.slane %v5082_v1, 9 }
 0xa8b   : > { %v5583_v54 = vsel %vm5468_vm2, %v5581_v50, %v5582_v38  ;;  %v5590_v49 = vsel %vm5468_vm2, %v5588_v36, %v5589_v43  ;;  %v6280_v31 = vrot.slane %v5083_v46, 9  ;;  %v5381_v41 = vmax.f32 %v5025_v30, %v6277_v33 }
 0xa8c   : > { %v5584_v23 = vsel %vm5470_vm4, %v5581_v50, %v5583_v54  ;;  %v5591_v16 = vsel %vm5470_vm4, %v5588_v36, %v5590_v49  ;;  %v5382_v4 = vmax.f32 %v5081_v18, %v6278_v44  ;;  %v5383_v22 = vmax.f32 %v5082_v1, %v6279_v37 }
 0xa8d   : > { %v5585_v48 = vsel %vm5472_vm5, %v5581_v50, %v5584_v23  ;;  %v5592_v61 = vsel %vm5472_vm5, %v5588_v36, %v5591_v16  ;;  %v5384_v12 = vmax.f32 %v5083_v46, %v6280_v31  ;;  %v5676_v56 = vsel %vm5472_vm5, %v5672_v15, %v5675_v17 }
 0xa8e   : > { %v5741_v39 = vsel %vm5724_vm6, %v5740_v14, %v5585_v48  ;;  %v10559_v7 = vsel %vm5724_vm6, %v5772_v42, %v5592_v61  ;;  %v5637_v60 = vrot.slane %v5382_v4, 7  ;;  %v5748_v45 = vrot.slane %v5669_v9, 4  ;;  %v10575_v1 = vpop.permute.xlu2 %4450 }
 0xa8f   : > { %v5745_v10 = vperm.slane %v5741_v39, %v10450_v6  ;;  %v5644_v35 = vrot.slane %v5384_v12, 7  ;;  %v5780_v50 = vrot.slane %v5676_v56, 4  ;;  %v5066_v58 = vrot.slane %v10524_v47, 2  ;;  %v4373_v54 = vpop.permute.xlu0 %4372  ;;  %v4386_v12 = vpop.permute.xlu1 %4385 }
 0xa90   : > { %v5638_v29 = vsel %vm5466_vm1, %v5637_v60, %v5381_v41  ;;  %v5068_v46 = vrot.slane %v10524_v47, 6  ;;  %v5730_v43 = vrot.slane %v10470_v57, 4  ;;  %v4932_v33 = vsel %vm249_vm3, %v10177_v21, %v4373_v54 }
 0xa91   : > { %5860 = vst [vmem:[#allocation1 + $0x2] ss:$4 sm:$0xff] %v5745_v10  ;;  %v5639_v53 = vsel %vm5468_vm2, %v5637_v60, %v5638_v29  ;;  %v5645_v14 = vsel %vm5466_vm1, %v5644_v35, %v5383_v22  ;;  %v6258_v38 = vrot.slane %v5066_v58, 9  ;;  %v5738_v44 = vrot.slane %v10510_v3, 4 }
 0xa92   : > { %v5640_v28 = vsel %vm5470_vm4, %v5637_v60, %v5639_v53  ;;  %v5646_v30 = vsel %vm5468_vm2, %v5644_v35, %v5645_v14  ;;  %v6257_v49 = vrot.slane %v10524_v47, 9  ;;  %v5746_v37 = vrot.slane %v5745_v10, 4 }
 0xa93   : > { %v5641_v42 = vsel %vm5472_vm5, %v5637_v60, %v5640_v28  ;;  %v5647_v63 = vsel %vm5470_vm4, %v5644_v35, %v5646_v30  ;;  %v5362_v23 = vmax.f32 %v5066_v58, %v6258_v38  ;;  %v4936_v31 = vsel %vm249_vm3, %v10282_v8, %v4399_v25 }
 0xa94   : > { %v5648_v15 = vsel %vm5472_vm5, %v5644_v35, %v5647_v63  ;;  %v5749_v36 = vsel %vm5724_vm6, %v5748_v45, %v5641_v42  ;;  %v4922_v11 = vsel %vm249_vm3, %v10047_v26, %v4308_v24  ;;  %v6260_v48 = vrot.slane %v5068_v46, 9 }
 0xa95   : > { %v5753_v18 = vperm.slane %v5749_v36, %v10450_v6  ;;  %v5781_v0 = vsel %vm5724_vm6, %v5780_v50, %v5648_v15  ;;  %v4968_v4 = vadd.f32 %v10323_v51, %v4932_v33  ;;  %v5731_v57 = vsel %vm5724_vm6, 0.0, %v5730_v43 }
 0xa96   : > { %v5067_v21 = vrot.slane %v10524_v47, 4  ;;  %v4898_v3 = vsel %vm4880_vm0, %v9717_v13, %v10330_v40  ;;  %v10597_v8 = vperm.slane %v10464_v19, %v10450_v6  ;;  %v5739_v26 = vsel %vm5724_vm6, 0.0, %v5738_v44  ;;  %v4360_v40 = vpop.permute.xlu2 %4359 }
 0xa97   : > { %5862 = vst [vmem:[#allocation1 + $0x3] ss:$4 sm:$0xff] %v5753_v18  ;;  %v5754_v16 = vrot.slane %v5753_v18, 4  ;;  %v10600_v61 = vrot.slane %v5362_v23, 7  ;;  %v4972_v39 = vadd.f32 %v10323_v51, %v4936_v31  ;;  %v10605_v10 = vperm.slane %v10514_v52, %v10450_v6 }
 0xa98   : > { %v5361_v25 = vmax.f32 %v10524_v47, %v6257_v49  ;;  %v5747_v13 = vsel %vm5724_vm6, 0.0, %v5746_v37  ;;  %v4934_v19 = vsel %vm249_vm3, %v10191_v32, %v4386_v12  ;;  %v5364_v41 = vmax.f32 %v5068_v46, %v6260_v48  ;;  %v4438_v46 = vpop.permute.xlu1 %4437 }
 0xa99   : > { %v5755_v60 = vsel %vm5724_vm6, 0.0, %v5754_v16  ;;  %v4930_v9 = vsel %vm249_vm3, %v4898_v3, %v4360_v40  ;;  %v4970_v22 = vadd.f32 %v10323_v51, %v4934_v19  ;;  %v6259_v35 = vrot.slane %v5067_v21, 9 }
 0xa9a   : > { %v4966_v52 = vadd.f32 %v10323_v51, %v4930_v9  ;;  %v5568_v47 = vsel %vm5466_vm1, %v10600_v61, %v5361_v25  ;;  %v5004_v24 = vmax.f32 %v4972_v39, 0.0  ;;  %v10618_v29 = vadd.f32 %v10323_v51, %v4922_v11 }
 0xa9b   : > { %v5002_v56 = vmax.f32 %v4970_v22, 0.0  ;;  %v5000_v32 = vmax.f32 %v4968_v4, 0.0  ;;  %v5762_v14 = vrot.slane %v10597_v8, 4  ;;  %v5770_v45 = vrot.slane %v10605_v10, 4 }
 0xa9c   : > { %v4998_v53 = vmax.f32 %v4966_v52, 0.0  ;;  %v10622_v28 = vrot.slane %v5364_v41, 7  ;;  %v5363_v50 = vmax.f32 %v5067_v21, %v6259_v35  ;;  %v10626_v58 = vsel %vm5468_vm2, %v10600_v61, %v5568_v47 }
 0xa9d   : > { %v5024_v30 = vmax.f32 %v5002_v56, %v5004_v24  ;;  %v10630_v42 = vperm.slane %v10559_v7, %v10450_v6  ;;  %v5785_v15 = vperm.slane %v5781_v0, %v10450_v6  ;;  %v4942_v41 = vsel %vm249_vm3, %v10278_v5, %v4438_v46 }
 0xa9e   : > { %v10590_v17 = vld.sshfl [vmem:[#allocation1] sm:$0xff pattern:$0x73625140]  ;;  %v5022_v63 = vmax.f32 %v4998_v53, %v5000_v32  ;;  %v10635_v23 = vsel %vm5466_vm1, %v10622_v28, %v5363_v50 }
 0xa9f   : > { %5869 = vst [vmem:[#allocation1] ss:$4 sm:$0xff] %v5731_v57  ;;  %v5078_v36 = vrot.slane %v5024_v30, 2  ;;  %v5079_v18 = vrot.slane %v5024_v30, 4  ;;  %v5080_v38 = vrot.slane %v5024_v30, 6  ;;  %v6273_v44 = vrot.slane %v5024_v30, 9 }
 0xaa0   : > { %5871 = vst [vmem:[#allocation1 + $0x1] ss:$4 sm:$0xff] %v5739_v26  ;;  %v5072_v54 = vrot.slane %v5022_v63, 2  ;;  %v5073_v43 = vrot.slane %v5022_v63, 4  ;;  %v5074_v33 = vrot.slane %v5022_v63, 6  ;;  %v6265_v11 = vrot.slane %v5022_v63, 9  ;;  %v4321_v24 = vpop.permute.xlu1 %4320 }
 0xaa1   : > { %5873 = vst [vmem:[#allocation1 + $0x2] ss:$4 sm:$0xff] %v5747_v13  ;;  %v6274_v37 = vrot.slane %v5078_v36, 9  ;;  %v6275_v31 = vrot.slane %v5079_v18, 9  ;;  %v6276_v7 = vrot.slane %v5080_v38, 9  ;;  %v5778_v4 = vrot.slane %v10630_v42, 4 }
 0xaa2   : > { %5875 = vst [vmem:[#allocation1 + $0x3] ss:$4 sm:$0xff] %v5755_v60  ;;  %v6266_v0 = vrot.slane %v5072_v54, 9  ;;  %v6267_v48 = vrot.slane %v5073_v43, 9  ;;  %v6268_v16 = vrot.slane %v5074_v33, 9  ;;  %v5786_v57 = vrot.slane %v5785_v15, 4 }
 0xaa3   : > { %v5378_v21 = vmax.f32 %v5078_v36, %v6274_v37  ;;  %v5380_v3 = vmax.f32 %v5080_v38, %v6276_v7  ;;  %v4944_v26 = vsel %vm249_vm3, %v10295_v34, %v10575_v1  ;;  %v5377_v25 = vmax.f32 %v5024_v30, %v6273_v44 }
 0xaa4   : > { %v5370_v39 = vmax.f32 %v5072_v54, %v6266_v0  ;;  %v5372_v12 = vmax.f32 %v5074_v33, %v6268_v16  ;;  %v5379_v13 = vmax.f32 %v5079_v18, %v6275_v31  ;;  %v5369_v60 = vmax.f32 %v5022_v63, %v6265_v11  ;;  %v4425_v16 = vpop.permute.xlu2 %4424 }
 0xaa5   : > { %v5623_v40 = vrot.slane %v5378_v21, 7  ;;  %v5630_v19 = vrot.slane %v5380_v3, 7  ;;  %v5371_v9 = vmax.f32 %v5073_v43, %v6267_v48  ;;  %v4980_v52 = vadd.f32 %v10323_v51, %v4944_v26 }
 0xaa6   : > { %v5595_v22 = vrot.slane %v5370_v39, 7  ;;  %v5602_v35 = vrot.slane %v5372_v12, 7  ;;  %v4978_v1 = vadd.f32 %v10323_v51, %v4942_v41  ;;  %v5787_v46 = vsel %vm5724_vm6, 0.0, %v5786_v57 }
 0xaa7   : > { %v5624_v47 = vsel %vm5466_vm1, %v5623_v40, %v5377_v25  ;;  %v5631_v34 = vsel %vm5466_vm1, %v5630_v19, %v5379_v13  ;;  %v5012_v54 = vmax.f32 %v4980_v52, 0.0  ;;  %v4924_v7 = vsel %vm249_vm3, %v10075_v20, %v4321_v24 }
 0xaa8   : > { %v5596_v56 = vsel %vm5466_vm1, %v5595_v22, %v5369_v60  ;;  %v5603_v32 = vsel %vm5466_vm1, %v5602_v35, %v5371_v9  ;;  %v5625_v53 = vsel %vm5468_vm2, %v5623_v40, %v5624_v47  ;;  %v5632_v5 = vsel %vm5468_vm2, %v5630_v19, %v5631_v34  ;;  %v4412_v26 = vpop.permute.xlu1 %4411 }
 0xaa9   : > { %v5876_v49 = vld.sshfl [vmem:[#allocation1] sm:$0xff pattern:$0x73625140]  ;;  %v5597_v30 = vsel %vm5468_vm2, %v5595_v22, %v5596_v56  ;;  %v5604_v50 = vsel %vm5468_vm2, %v5602_v35, %v5603_v32  ;;  %v5633_v63 = vsel %vm5470_vm4, %v5630_v19, %v5632_v5  ;;  %v5010_v31 = vmax.f32 %v4978_v1, 0.0 }
 0xaaa   : > { %5884 = vst [vmem:[#allocation1] ss:$4 sm:$0xff] %v10597_v8  ;;  %5877 = vrot.lane.b32.xlu0 %v5876_v49, %s6701_s10  ;;  %v5605_v36 = vsel %vm5470_vm4, %v5602_v35, %v5604_v50  ;;  %v5634_v38 = vsel %vm5472_vm5, %v5630_v19, %v5633_v63  ;;  %v5763_v11 = vsel %vm5724_vm6, 0.0, %v5762_v14  ;;  %v4960_v57 = vadd.f32 %v10323_v51, %v4924_v7 }
 0xaab   : > { %5886 = vst [vmem:[#allocation1 + $0x1] ss:$4 sm:$0xff] %v10605_v10  ;;  %v5836_v33 = vrot.slane %v5634_v38, 4  ;;  %v5606_v37 = vsel %vm5472_vm5, %v5602_v35, %v5605_v36  ;;  %v4990_v21 = vmax.f32 %v10618_v29, 0.0  ;;  %v5771_v20 = vsel %vm5724_vm6, 0.0, %v5770_v45 }
 0xaac   : > { %5888 = vst [vmem:[#allocation1 + $0x2] ss:$4 sm:$0xff] %v10630_v42  ;;  %v5626_v42 = vsel %vm5470_vm4, %v5623_v40, %v5625_v53  ;;  %v4908_v8 = vsel %vm4880_vm0, %v9901_v27, %v10349_v59  ;;  %v5028_v14 = vmax.f32 %v5010_v31, %v5012_v54  ;;  %v5570_v3 = vsel %vm5470_vm4, %v10600_v61, %v10626_v58 }
 0xaad   : > { %5890 = vst [vmem:[#allocation1 + $0x3] ss:$4 sm:$0xff] %v5785_v15  ;;  %v5598_v15 = vsel %vm5470_vm4, %v5595_v22, %v5597_v30  ;;  %v5627_v18 = vsel %vm5472_vm5, %v5623_v40, %v5626_v42  ;;  %v10672_v48 = vsel %vm5724_vm6, %v5836_v33, %v5606_v37  ;;  %v5576_v51 = vsel %vm5468_vm2, %v10622_v28, %v10635_v23  ;;  %v6574_v40 = vld [vmem:[#allocation6] ss:$0 sm:$0xff] }
 0xaae   : > { %v5804_v43 = vrot.slane %v5627_v18, 4  ;;  %v5599_v49 = vsel %vm5472_vm5, %v5595_v22, %v5598_v15  ;;  %v5779_v29 = vsel %vm5724_vm6, 0.0, %v5778_v4  ;;  %v4992_v10 = vmax.f32 %v4960_v57, 0.0 }
 0xaaf   : > { %v4940_v45 = vsel %vm249_vm3, %v4908_v8, %v4425_v16  ;;  %v5090_v39 = vrot.slane %v5028_v14, 2  ;;  %v5091_v12 = vrot.slane %v5028_v14, 4  ;;  %v10692_v27 = vperm.slane %v10426_v2, %v10450_v6 }
 0xab0   : > { %v5805_v0 = vsel %vm5724_vm6, %v5804_v43, %v5599_v49  ;;  %v5092_v59 = vrot.slane %v5028_v14, 6  ;;  %v5018_v58 = vmax.f32 %v4990_v21, %v4992_v10  ;;  %v5571_v25 = vsel %vm5472_vm5, %v10600_v61, %v5570_v3 }
 0xab1   : > { %v5577_v23 = vsel %vm5470_vm4, %v10622_v28, %v5576_v51  ;;  %v6290_v4 = vrot.slane %v5090_v39, 9  ;;  %v4938_v13 = vsel %vm249_vm3, %v10299_v55, %v4412_v26  ;;  %v4976_v19 = vadd.f32 %v6574_v40, %v4940_v45 }
 0xab2   : > { %v6292_v41 = vrot.slane %v5092_v59, 9  ;;  %v5060_v60 = vrot.slane %v5018_v58, 2  ;;  %v5061_v9 = vrot.slane %v5018_v58, 4  ;;  %v6289_v22 = vrot.slane %v5028_v14, 9 }
 0xab3   : > { %v6291_v2 = vrot.slane %v5091_v12, 9  ;;  %v5394_v35 = vmax.f32 %v5090_v39, %v6290_v4  ;;  %v5062_v52 = vrot.slane %v5018_v58, 6  ;;  %v6249_v34 = vrot.slane %v5018_v58, 9 }
 0xab4   : > { %v5891_v44 = vld.sshfl [vmem:[#allocation1] sm:$0xff pattern:$0x73625140]  ;;  %v5396_v47 = vmax.f32 %v5092_v59, %v6292_v41  ;;  %v6250_v1 = vrot.slane %v5060_v60, 9  ;;  %v4974_v61 = vadd.f32 %v6574_v40, %v4938_v13  ;;  %v10701_v24 = vperm.slane %v5805_v0, %v10450_v6 }
 0xab5   : > { %5905 = vst [vmem:[#allocation1 + $0x3] ss:$4 sm:$0xff] %v5787_v46  ;;  %5892 = vrot.lane.b32.xlu1 %v5891_v44, %s6702_s9  ;;  %v5679_v56 = vrot.slane %v5394_v35, 7  ;;  %v6251_v32 = vrot.slane %v5061_v9, 9  ;;  %v6252_v53 = vrot.slane %v5062_v52, 9  ;;  %v5008_v5 = vmax.f32 %v4976_v19, 0.0 }
 0xab6   : > { %5899 = vst [vmem:[#allocation1] ss:$4 sm:$0xff] %v5763_v11  ;;  %v5686_v30 = vrot.slane %v5396_v47, 7  ;;  %v5354_v50 = vmax.f32 %v5060_v60, %v6250_v1  ;;  %v5006_v42 = vmax.f32 %v4974_v61, 0.0  ;;  %v5578_v63 = vsel %vm5472_vm5, %v10622_v28, %v5577_v23 }
 0xab7   : > { %5901 = vst [vmem:[#allocation1 + $0x1] ss:$4 sm:$0xff] %v5771_v20  ;;  %v5393_v15 = vmax.f32 %v5028_v14, %v6289_v22  ;;  %v5356_v36 = vmax.f32 %v5062_v52, %v6252_v53  ;;  %v5395_v18 = vmax.f32 %v5091_v12, %v6291_v2  ;;  %v5353_v38 = vmax.f32 %v5018_v58, %v6249_v34 }
 0xab8   : > { %5903 = vst [vmem:[#allocation1 + $0x2] ss:$4 sm:$0xff] %v5779_v29  ;;  %v5539_v46 = vrot.slane %v5354_v50, 7  ;;  %v5026_v54 = vmax.f32 %v5006_v42, %v5008_v5  ;;  %v5355_v33 = vmax.f32 %v5061_v9, %v6251_v32  ;;  %v5796_v31 = vrot.slane %v5571_v25, 4 }
 0xab9   : > { %v5680_v43 = vsel %vm5466_vm1, %v5679_v56, %v5393_v15  ;;  %v5546_v44 = vrot.slane %v5356_v36, 7  ;;  %v5687_v49 = vsel %vm5466_vm1, %v5686_v30, %v5395_v18  ;;  %v5828_v7 = vrot.slane %v5578_v63, 4 }
 0xaba   : > { %v5540_v28 = vsel %vm5466_vm1, %v5539_v46, %v5353_v38  ;;  %v5084_v37 = vrot.slane %v5026_v54, 2  ;;  %v5681_v16 = vsel %vm5468_vm2, %v5679_v56, %v5680_v43  ;;  %v5085_v20 = vrot.slane %v5026_v54, 4 }
 0xabb   : > { %v5541_v11 = vsel %vm5468_vm2, %v5539_v46, %v5540_v28  ;;  %v5547_v0 = vsel %vm5466_vm1, %v5546_v44, %v5355_v33  ;;  %v5688_v8 = vsel %vm5468_vm2, %v5686_v30, %v5687_v49  ;;  %v5086_v51 = vrot.slane %v5026_v54, 6 }
 0xabc   : > { %v5542_v57 = vsel %vm5470_vm4, %v5539_v46, %v5541_v11  ;;  %v5548_v21 = vsel %vm5468_vm2, %v5546_v44, %v5547_v0  ;;  %v6281_v26 = vrot.slane %v5026_v54, 9  ;;  %v6282_v45 = vrot.slane %v5084_v37, 9 }
 0xabd   : > { %v5543_v14 = vsel %vm5472_vm5, %v5539_v46, %v5542_v57  ;;  %v5549_v3 = vsel %vm5470_vm4, %v5546_v44, %v5548_v21  ;;  %v6283_v59 = vrot.slane %v5085_v20, 9  ;;  %v6284_v58 = vrot.slane %v5086_v51, 9 }
 0xabe   : > { %v5550_v29 = vsel %vm5472_vm5, %v5546_v44, %v5549_v3  ;;  %v5797_v10 = vsel %vm5724_vm6, %v5796_v31, %v5543_v14  ;;  %v5682_v25 = vsel %vm5470_vm4, %v5679_v56, %v5681_v16  ;;  %v5386_v23 = vmax.f32 %v5084_v37, %v6282_v45 }
 0xabf   : > { %v5906_v55 = vld.sshfl [vmem:[#allocation1] sm:$0xff pattern:$0x73625140]  ;;  %v5801_v39 = vperm.slane %v5797_v10, %v10450_v6  ;;  %v5829_v12 = vsel %vm5724_vm6, %v5828_v7, %v5550_v29  ;;  %v5689_v4 = vsel %vm5470_vm4, %v5686_v30, %v5688_v8  ;;  %v5388_v13 = vmax.f32 %v5086_v51, %v6284_v58 }
 0xac0   : > { %5918 = vst [vmem:[#allocation1 + $0x2] ss:$4 sm:$0xff] %v10701_v24  ;;  %5907 = vrot.lane.b32.xlu2 %v5906_v55, %s6703_s17  ;;  %v5385_v40 = vmax.f32 %v5026_v54, %v6281_v26  ;;  %v5651_v19 = vrot.slane %v5386_v23, 7  ;;  %v5683_v41 = vsel %vm5472_vm5, %v5679_v56, %v5682_v25  ;;  %v5387_v60 = vmax.f32 %v5085_v20, %v6283_v59 }
 0xac1   : > { %5914 = vst [vmem:[#allocation1] ss:$4 sm:$0xff] %v10692_v27  ;;  %v5658_v9 = vrot.slane %v5388_v13, 7  ;;  %v5690_v22 = vsel %vm5472_vm5, %v5686_v30, %v5689_v4  ;;  %v5812_v47 = vrot.slane %v5683_v41, 4  ;;  %v5794_v50 = vrot.slane %v10692_v27, 4 }
 0xac2   : > { %5916 = vst [vmem:[#allocation1 + $0x1] ss:$4 sm:$0xff] %v5801_v39  ;;  %v5652_v2 = vsel %vm5466_vm1, %v5651_v19, %v5385_v40  ;;  %v5844_v61 = vrot.slane %v5690_v22, 4  ;;  %v5802_v42 = vrot.slane %v5801_v39, 4  ;;  %v5810_v63 = vrot.slane %v10701_v24, 4 }
 0xac3   : > { %v5653_v35 = vsel %vm5468_vm2, %v5651_v19, %v5652_v2  ;;  %v5659_v52 = vsel %vm5466_vm1, %v5658_v9, %v5387_v60  ;;  %v5795_v36 = vsel %vm5724_vm6, 0.0, %v5794_v50  ;;  %v5825_v27 = vperm.slane %v10430_v62, %v10450_v6 }
 0xac4   : > { %v5654_v34 = vsel %vm5470_vm4, %v5651_v19, %v5653_v35  ;;  %v5660_v1 = vsel %vm5468_vm2, %v5658_v9, %v5659_v52  ;;  %v5803_v38 = vsel %vm5724_vm6, 0.0, %v5802_v42  ;;  %v5811_v46 = vsel %vm5724_vm6, 0.0, %v5810_v63 }
 0xac5   : > { %v5655_v32 = vsel %vm5472_vm5, %v5651_v19, %v5654_v34  ;;  %v5661_v56 = vsel %vm5470_vm4, %v5658_v9, %v5660_v1  ;;  %v5833_v24 = vperm.slane %v5829_v12, %v10450_v6  ;;  %v5841_v33 = vperm.slane %v10672_v48, %v10450_v6 }
 0xac6   : > { %v5662_v53 = vsel %vm5472_vm5, %v5658_v9, %v5661_v56  ;;  %v5813_v55 = vsel %vm5724_vm6, %v5812_v47, %v5655_v32  ;;  %v5826_v49 = vrot.slane %v5825_v27, 4  ;;  %vm5970_vm3 = vcmask 130048  }
 0xac7   : > { %v5817_v5 = vperm.slane %v5813_v55, %v10450_v6  ;;  %v5845_v30 = vsel %vm5724_vm6, %v5844_v61, %v5662_v53  ;;  %v5834_v28 = vrot.slane %v5833_v24, 4  ;;  %v5842_v37 = vrot.slane %v5841_v33, 4 }
 0xac8   : > { %v5849_v44 = vperm.slane %v5845_v30, %v10450_v6  ;;  %v5827_v62 = vsel %vm5724_vm6, 0.0, %v5826_v49 }
 0xac9   : > { %5920 = vst [vmem:[#allocation1 + $0x3] ss:$4 sm:$0xff] %v5817_v5  ;;  %v5818_v15 = vrot.slane %v5817_v5, 4  ;;  %v5835_v11 = vsel %vm5724_vm6, 0.0, %v5834_v28  ;;  %v5843_v48 = vsel %vm5724_vm6, 0.0, %v5842_v37 }
 0xaca   : > { %v5850_v31 = vrot.slane %v5849_v44, 4 }
 0xacb   : > { %v5819_v54 = vsel %vm5724_vm6, 0.0, %v5818_v15 }
 0xacc   : > { %v5851_v6 = vsel %vm5724_vm6, 0.0, %v5850_v31 }
 0xad0   : > { %v5921_v18 = vld.sshfl [vmem:[#allocation1] sm:$0xff pattern:$0x73625140] }
 0xad1   : > { %5922 = vrot.lane.b32.xlu0 %v5921_v18, %s6704_s21  ;;  %5929 = vst [vmem:[#allocation1] ss:$4 sm:$0xff] %v5795_v36 }
 0xad2   : > { %5931 = vst [vmem:[#allocation1 + $0x1] ss:$4 sm:$0xff] %v5803_v38 }
 0xad3   : > { %5933 = vst [vmem:[#allocation1 + $0x2] ss:$4 sm:$0xff] %v5811_v46 }
 0xad4   : > { %5935 = vst [vmem:[#allocation1 + $0x3] ss:$4 sm:$0xff] %v5819_v54 }
 0xadb   : > { %v5936_v43 = vld.sshfl [vmem:[#allocation1] sm:$0xff pattern:$0x73625140] }
 0xadc   : > { %5937 = vrot.lane.b32.xlu1 %v5936_v43, %s6705_s28  ;;  %5944 = vst [vmem:[#allocation1] ss:$4 sm:$0xff] %v5825_v27 }
 0xadd   : > { %5946 = vst [vmem:[#allocation1 + $0x1] ss:$4 sm:$0xff] %v5833_v24 }
 0xade   : > { %5948 = vst [vmem:[#allocation1 + $0x2] ss:$4 sm:$0xff] %v5841_v33 }
 0xadf   : > { %5950 = vst [vmem:[#allocation1 + $0x3] ss:$4 sm:$0xff] %v5849_v44 }
 0xae6   : > { %v5951_v7 = vld.sshfl [vmem:[#allocation1] sm:$0xff pattern:$0x73625140] }
 0xae7   : > { %5952 = vrot.lane.b32.xlu2 %v5951_v7, %s6706_s29  ;;  %5959 = vst [vmem:[#allocation1] ss:$4 sm:$0xff] %v5827_v62 }
 0xae8   : > { %5961 = vst [vmem:[#allocation1 + $0x1] ss:$4 sm:$0xff] %v5835_v11 }
 0xae9   : > { %5963 = vst [vmem:[#allocation1 + $0x2] ss:$4 sm:$0xff] %v5843_v48 }
 0xaea   : > { %5965 = vst [vmem:[#allocation1 + $0x3] ss:$4 sm:$0xff] %v5851_v6 }
 0xaf1   : > { %v5966_v0 = vld.sshfl [vmem:[#allocation1] sm:$0xff pattern:$0x73625140] }
 0xaf2   : > { %5967 = vrot.lane.b32.xlu0 %v5966_v0, %s6707_s11 }
 0xb1a   : > { %v5908_v21 = vpop.permute.xlu2 %5907 }
 0xb1c   : > { %v5878_v16 = vpop.permute.xlu0 %5877 }
 0xb1d   : > { %v5971_v20 = vsel %vm5970_vm3, %v10590_v17, %v5878_v16 }
 0xb27   : > { %v5893_v57 = vpop.permute.xlu1 %5892 }
 0xb28   : > { %v5973_v8 = vsel %vm5972_vm7, %v5971_v20, %v5893_v57 }
 0xb29   : > { %v5975_v51 = vsel %vm5974_vm8, %v5973_v8, %v5908_v21 }
 0xb41   : > { %v5953_v26 = vpop.permute.xlu2 %5952 }
 0xb43   : > { %v5923_v14 = vpop.permute.xlu0 %5922 }
 0xb44   : > { %v5977_v29 = vsel %vm5976_vm9, %v5975_v51, %v5923_v14 }
 0xb4e   : > { %v5938_v3 = vpop.permute.xlu1 %5937 }
 0xb4f   : > { %v5979_v10 = vsel %vm5978_vm10, %v5977_v29, %v5938_v3 }
 0xb50   : > { %v5981_v39 = vsel %vm5980_vm11, %v5979_v10, %v5953_v26 }
 0xb64   : > { %v5968_v45 = vpop.permute.xlu0 %5967 }
 0xb65   : > { %v5983_v17 = vsel %vm5982_vm12, %v5981_v39, %v5968_v45 }
 0xb66   : > { %v5984_v12 = vpack.c.bf16 %v5983_v17, %v5983_v17 }
 0xb68   : > { %5985 = vst [vmem:[%s221_s20] sm:$0xf] %v5984_v12 }
 0xb69 PF: > { %p15_p4 = scmp.ge.s32.totalorder %s6777_s30, 4   ;;  %s11689_s12 = smov %s6684_s13 }
 0xb6a   : > { %s11690_s13 = smov %s6688_s14  ;;  %s11691_s14 = smov %s6787_s7 }
 0xb6b   : > { %s11692_s15 = smov %s6777_s30  ;;  %17 = sbr.rel (!%p15_p4) target bundleno = 5 (0x5), region = 105 }
 0xb70   :  { %6005 = vsyncpa [#allocation3], 1 }
 0xb71   :  { %6007 = vsyncpa [#allocation3 + $0x1], 1 }
 0xb72   :  { %6008 = vsyncpa [#allocation7], 1 }
 0xb73   :  { %6009 = vsyncpa [#allocation4], 1 }
 0xb74   :  { %6011 = vsyncpa [#allocation4 + $0x1], 1 }

</bundles_post_ra>
